<compile_context>
chip_gen: v6e
topology: v6e:2x2x1
jax: 0.10.0
libtpu: 0.0.40
codegen_flags: <defaults>
</compile_context>

<pallas_src>
import functools
import math

import numpy as np
import jax
import jax.numpy as jnp
from jax.experimental import pallas as pl
from jax.experimental.pallas import tpu as pltpu


# ----------------------------------------------------------------------------
# Per-generation VMEM budget / tile preferences
# ----------------------------------------------------------------------------
def _tpu_budget():
    try:
        info = pltpu.get_tpu_info()
        vmem = int(getattr(info, "vmem_capacity_bytes", 0))
    except Exception:
        vmem = 0
    if vmem >= 100 * 1024 * 1024:          # v5e / v6e: 128 MiB physical VMEM
        return 64 * 1024 * 1024, 1024
    return 32 * 1024 * 1024, 512           # v7x (64 MiB) or unknown


_VMEM_LIMIT, _BIG_PREF = _tpu_budget()


# ----------------------------------------------------------------------------
# sin-cos positional embeddings (same as the PyTorch reference, numpy)
# ----------------------------------------------------------------------------
def get_1d_sincos_pos_embed_from_grid(embed_dim, pos):
    assert embed_dim % 2 == 0
    omega = np.arange(embed_dim // 2, dtype=np.float64)
    omega /= embed_dim / 2.0
    omega = 1.0 / 10000 ** omega
    pos = pos.reshape(-1)
    out = np.einsum('m,d->md', pos, omega)
    return np.concatenate([np.sin(out), np.cos(out)], axis=1)


def get_1d_sincos_pos_embed(embed_dim, length, cls_token=False):
    grid_l = np.arange(length, dtype=np.float32).reshape([1, length])
    pos_embed = get_1d_sincos_pos_embed_from_grid(embed_dim, grid_l)
    if cls_token:
        pos_embed = np.concatenate([np.zeros([1, embed_dim]), pos_embed], axis=0)
    return pos_embed


# ----------------------------------------------------------------------------
# Tiling helpers
# ----------------------------------------------------------------------------
def _pick_tile(dim, pref, align):
    """Largest tile <= pref that divides dim and respects TPU tiling, else full dim."""
    if dim <= pref:
        return dim
    t = (pref // align) * align
    while t >= align:
        if dim % t == 0:
            return t
        t -= align
    return dim


def _tile_dim(dim, pref, align):
    """(tile, padded_dim): like _pick_tile but pads instead of a full-dim fallback."""
    if dim <= pref:
        return dim, dim
    t = _pick_tile(dim, pref, align)
    if t != dim:
        return t, dim
    t = (pref // align) * align
    return t, ((dim + t - 1) // t) * t


def _gelu_tanh(x):
    # TODO(synk): PyTorch nn.GELU is exact-erf; the tanh approximation is used so
    # the activation can be fused into the matmul finalize (EUP tanh), ~1e-3 abs dev.
    c = math.sqrt(2.0 / math.pi)
    return 0.5 * x * (1.0 + jnp.tanh(c * (x + 0.044715 * x * x * x)))


# ----------------------------------------------------------------------------
# Fused (LayerNorm?) -> bf16 matmul (+bias) (+GELU) (+residual) kernel
# grid = (M/tm, N/tn, K/tk); f32 accumulation on the MXU
# ----------------------------------------------------------------------------
def _fused_linear_kernel(*refs, nk, has_ln, has_res, act, cache_ln):
    it = iter(refs)
    x_ref = next(it)
    w_ref = next(it)
    b_ref = next(it)
    g_ref = next(it) if has_ln else None
    bt_ref = next(it) if has_ln else None
    r_ref = next(it) if has_res else None
    o_ref = next(it)
    xn_ref = next(it) if cache_ln else None
    acc_ref = next(it) if nk > 1 else None

    j = pl.program_id(1)
    k = pl.program_id(2)

    def _normalize():
        xf = x_ref[...].astype(jnp.float32)
        mu = jnp.mean(xf, axis=-1, keepdims=True)
        xc = xf - mu
        var = jnp.mean(xc * xc, axis=-1, keepdims=True)
        xn = xc * jax.lax.rsqrt(var + 1e-5) * g_ref[...] + bt_ref[...]
        return xn.astype(jnp.bfloat16)

    if has_ln:
        if cache_ln:
            # Normalize + cast once per row tile (j == 0), reuse for all N tiles.
            @pl.when(j == 0)
            def _():
                xn_ref[...] = _normalize()
            xb = xn_ref[...]
        else:
            xb = _normalize()
    else:
        xb = x_ref[...]
        if xb.dtype != jnp.bfloat16:
            xb = xb.astype(jnp.bfloat16)

    part = jnp.dot(xb, w_ref[...], preferred_element_type=jnp.float32)

    def _finalize(y):
        y = y + b_ref[...]
        if act == 'gelu':
            y = _gelu_tanh(y)
        if has_res:
            y = y + r_ref[...].astype(jnp.float32)
        o_ref[...] = y.astype(o_ref.dtype)

    if nk > 1:
        @pl.when(k == 0)
        def _():
            acc_ref[...] = jnp.zeros_like(acc_ref)
        acc_ref[...] += part

        @pl.when(k == nk - 1)
        def _():
            _finalize(acc_ref[...])
    else:
        _finalize(part)


def fused_linear(x, w, b, *, ln=None, residual=None, act=None,
                 out_dtype=jnp.float32, tm_pref=256, tn_pref=None, tk_pref=None):
    """y = act((LN(x) if ln else x) @ w + b) (+ residual).  x:(M,K) w:(K,N) b:(N,)."""
    M, K = x.shape
    N = w.shape[1]
    has_ln = ln is not None
    has_res = residual is not None
    tn_pref = tn_pref or _BIG_PREF
    tk_pref = tk_pref or _BIG_PREF

    w = w.astype(jnp.bfloat16)
    b2 = b.reshape(1, N).astype(jnp.float32)

    tm, Mp = _tile_dim(M, tm_pref, 8)
    tn, Np = _tile_dim(N, tn_pref, 128)
    tk = K if has_ln else _pick_tile(K, tk_pref, 128)   # LN needs the full row
    nm, nn_, nk = Mp // tm, Np // tn, K // tk
    cache_ln = has_ln and nn_ > 1

    # Crude working-set check (x2 for double-buffering) against the VMEM budget.
    est = 2 * (tm * tk * x.dtype.itemsize + tk * tn * 2 + tn * 4
               + tm * tn * max(2, jnp.dtype(out_dtype).itemsize))
    if has_res:
        est += 2 * tm * tn * 4
    if has_ln:
        est += tm * K * 2 + 4 * K * 4
    if nk > 1:
        est += tm * tn * 4
    assert est <= _VMEM_LIMIT, "fused_linear tile working set exceeds VMEM budget"

    # Pad M / N if no clean divisor was found (output is sliced back afterwards).
    xp = x if Mp == M else jnp.pad(x, ((0, Mp - M), (0, 0)))
    wp = w if Np == N else jnp.pad(w, ((0, 0), (0, Np - N)))
    bp = b2 if Np == N else jnp.pad(b2, ((0, 0), (0, Np - N)))
    rp = None
    if has_res:
        rp = residual
        if Mp != M or Np != N:
            rp = jnp.pad(rp, ((0, Mp - M), (0, Np - N)))

    kernel = functools.partial(_fused_linear_kernel, nk=nk, has_ln=has_ln,
                               has_res=has_res, act=act, cache_ln=cache_ln)

    in_specs = [
        pl.BlockSpec((tm, tk), lambda i, j, k: (i, k)),
        pl.BlockSpec((tk, tn), lambda i, j, k: (k, j)),
        pl.BlockSpec((1, tn), lambda i, j, k: (0, j)),
    ]
    args = [xp, wp, bp]
    if has_ln:
        g, beta = ln
        in_specs += [pl.BlockSpec((1, K), lambda i, j, k: (0, 0)),
                     pl.BlockSpec((1, K), lambda i, j, k: (0, 0))]
        args += [g.reshape(1, K).astype(jnp.float32),
                 beta.reshape(1, K).astype(jnp.float32)]
    if has_res:
        in_specs += [pl.BlockSpec((tm, tn), lambda i, j, k: (i, j))]
        args += [rp]

    scratch_shapes = []
    if cache_ln:
        scratch_shapes.append(pltpu.VMEM((tm, K), jnp.bfloat16))
    if nk > 1:
        scratch_shapes.append(pltpu.VMEM((tm, tn), jnp.float32))

    # When the LN cache is live, the j axis must stay sequential per core.
    dims = (("parallel", "arbitrary", "arbitrary") if cache_ln
            else ("parallel", "parallel", "arbitrary"))

    out = pl.pallas_call(
        kernel,
        out_shape=jax.ShapeDtypeStruct((Mp, Np), out_dtype),
        grid=(nm, nn_, nk),
        in_specs=in_specs,
        out_specs=pl.BlockSpec((tm, tn), lambda i, j, k: (i, j)),
        scratch_shapes=scratch_shapes,
        compiler_params=pltpu.CompilerParams(
            dimension_semantics=dims, vmem_limit_bytes=_VMEM_LIMIT),
    )(*args)
    if Mp != M or Np != N:
        out = out[:M, :N]
    return out


# ----------------------------------------------------------------------------
# Multi-head self-attention: fused (B, S, 3D) qkv (bf16) -> (B, S, D) (bf16)
# grid = (B, H, q_tiles), all parallel; per-head blocks come from 128-aligned
# last-dim slices of the fused qkv so the output stays lane-dense.
# ----------------------------------------------------------------------------
def _attn_kernel(q_ref, k_ref, v_ref, o_ref, *, scale):
    q = q_ref[...]                          # (tq, hd) bf16
    k = k_ref[...]                          # (S, hd) bf16
    v = v_ref[...]                          # (S, hd) bf16
    s = jax.lax.dot_general(q, k, (((1,), (1,)), ((), ())),
                            preferred_element_type=jnp.float32) * scale
    s = s - jnp.max(s, axis=-1, keepdims=True)
    p = jnp.exp(s)
    l = jnp.sum(p, axis=-1, keepdims=True)
    p = p * pl.reciprocal(l, approx=True)   # EUP reciprocal (free slot)
    o = jnp.dot(p.astype(jnp.bfloat16), v, preferred_element_type=jnp.float32)
    o_ref[...] = o.astype(o_ref.dtype)


def pallas_attention(qkv, num_heads, *, tq_pref=256):
    """softmax(q k^T / sqrt(hd)) v over the fused qkv; returns (B, S, D) bf16."""
    B, S, three_d = qkv.shape
    D = three_d // 3
    H = num_heads
    hd = D // H
    scale = hd ** -0.5
    tq = _pick_tile(S, tq_pref, 8)          # bounds the live (tq, S) score tile
    nq = S // tq
    kernel = functools.partial(_attn_kernel, scale=scale)
    cparams = pltpu.CompilerParams(
        dimension_semantics=("parallel", "parallel", "parallel"),
        vmem_limit_bytes=_VMEM_LIMIT)

    if hd % 128 == 0:
        # Head slices as 128-aligned last-dim blocks directly on the fused qkv,
        # output written straight into the lane-dense (B, S, D) slab.
        return pl.pallas_call(
            kernel,
            out_shape=jax.ShapeDtypeStruct((B, S, D), jnp.bfloat16),
            grid=(B, H, nq),
            in_specs=[pl.BlockSpec((None, tq, hd), lambda b, h, qi: (b, qi, h)),
                      pl.BlockSpec((None, S, hd), lambda b, h, qi: (b, 0, H + h)),
                      pl.BlockSpec((None, S, hd), lambda b, h, qi: (b, 0, 2 * H + h))],
            out_specs=pl.BlockSpec((None, tq, hd), lambda b, h, qi: (b, qi, h)),
            compiler_params=cparams,
        )(qkv, qkv, qkv)

    # Fallback for head_dim not a multiple of 128: split heads in plain JAX.
    qkv5 = qkv.reshape(B, S, 3, H, hd)
    q = qkv5[:, :, 0].transpose(0, 2, 1, 3)
    k = qkv5[:, :, 1].transpose(0, 2, 1, 3)
    v = qkv5[:, :, 2].transpose(0, 2, 1, 3)
    out = pl.pallas_call(
        kernel,
        out_shape=jax.ShapeDtypeStruct((B, H, S, hd), jnp.bfloat16),
        grid=(B, H, nq),
        in_specs=[pl.BlockSpec((None, None, tq, hd), lambda b, h, qi: (b, h, qi, 0)),
                  pl.BlockSpec((None, None, S, hd), lambda b, h, qi: (b, h, 0, 0)),
                  pl.BlockSpec((None, None, S, hd), lambda b, h, qi: (b, h, 0, 0))],
        out_specs=pl.BlockSpec((None, None, tq, hd), lambda b, h, qi: (b, h, qi, 0)),
        compiler_params=cparams,
    )(q, k, v)
    return out.transpose(0, 2, 1, 3).reshape(B, S, D)


# ----------------------------------------------------------------------------
# Masked MSE loss: mask-weighted SSE accumulated into resident output blocks
# ----------------------------------------------------------------------------
def _loss_kernel(p_ref, t_ref, m_ref, num_ref, den_ref):
    step = pl.program_id(0)

    @pl.when(step == 0)
    def _():
        num_ref[...] = jnp.zeros_like(num_ref)
        den_ref[...] = jnp.zeros_like(den_ref)

    d = p_ref[...] - t_ref[...]
    m = m_ref[...]                                             # (tr, 1)
    num_ref[...] += jnp.sum(d * d * m, axis=0, keepdims=True)  # (1, p) lane vector
    den_ref[...] += jnp.sum(m, axis=0, keepdims=True)          # (1, 1)


def pallas_masked_mse(pred, target, mask):
    N, L, p = pred.shape
    rows = N * L
    pr = pred.reshape(rows, p).astype(jnp.float32)
    tg = target.reshape(rows, p).astype(jnp.float32)
    mk = mask.reshape(rows, 1).astype(jnp.float32)

    tr = rows if rows <= 2048 else 2048
    if rows % tr:
        pad = tr - rows % tr                  # zero-mask rows contribute nothing
        pr = jnp.pad(pr, ((0, pad), (0, 0)))
        tg = jnp.pad(tg, ((0, pad), (0, 0)))
        mk = jnp.pad(mk, ((0, pad), (0, 0)))
        rows += pad
    nsteps = rows // tr

    num, den = pl.pallas_call(
        _loss_kernel,
        out_shape=(jax.ShapeDtypeStruct((1, p), jnp.float32),
                   jax.ShapeDtypeStruct((1, 1), jnp.float32)),
        grid=(nsteps,),
        in_specs=[pl.BlockSpec((tr, p), lambda i: (i, 0)),
                  pl.BlockSpec((tr, p), lambda i: (i, 0)),
                  pl.BlockSpec((tr, 1), lambda i: (i, 0))],
        out_specs=(pl.BlockSpec((1, p), lambda i: (0, 0)),
                   pl.BlockSpec((1, 1), lambda i: (0, 0))),
        compiler_params=pltpu.CompilerParams(
            dimension_semantics=("arbitrary",), vmem_limit_bytes=_VMEM_LIMIT),
    )(pr, tg, mk)

    den_s = den[0, 0]
    num_s = jnp.sum(num) / p
    # Exact final division; matches the torch `if mask.sum() != 0` guard.
    return num_s / jnp.where(den_s != 0, den_s, 1.0)


# ----------------------------------------------------------------------------
# Transformer block built from the fused kernels
# ----------------------------------------------------------------------------
def block_forward(x, p, num_heads):
    """Pre-norm ViT Block: x + Attn(LN(x)); x + MLP(LN(x)).  x is the f32 residual."""
    B, S, D = x.shape
    x2 = x.reshape(B * S, D)

    # LN1 + QKV projection fused; qkv emitted in bf16 for the attention MXU.
    qkv = fused_linear(x2, p['qkv_w'], p['qkv_b'],
                       ln=(p['norm1_w'], p['norm1_b']), out_dtype=jnp.bfloat16)
    attn = pallas_attention(qkv.reshape(B, S, 3 * D), num_heads)
    # Output projection with residual fused into the store (f32 residual stream).
    x2 = fused_linear(attn.reshape(B * S, D), p['proj_w'], p['proj_b'], residual=x2)

    # LN2 + fc1 + GELU fused; bf16 hidden feeds fc2 directly.
    h = fused_linear(x2, p['fc1_w'], p['fc1_b'],
                     ln=(p['norm2_w'], p['norm2_b']), act='gelu',
                     out_dtype=jnp.bfloat16)
    # fc2 with residual fused.
    x2 = fused_linear(h, p['fc2_w'], p['fc2_b'], residual=x2)
    return x2.reshape(B, S, D)


# ----------------------------------------------------------------------------
# MAEforEEG forward
# ----------------------------------------------------------------------------
def mae_forward(imgs, params, noise_key, cfg, mask_ratio=0.75):
    B, C, T = imgs.shape
    P = cfg['patch_size']
    E = cfg['embed_dim']
    Dd = cfg['dec_dim']
    L = T // P

    # ---- patch embed (Conv1d k=s=P lowered to a matmul) ----
    xp = imgs.reshape(B, C, L, P).transpose(0, 2, 1, 3).reshape(B * L, C * P)
    x = fused_linear(xp, params['patch_w'], params['patch_b']).reshape(B, L, E)
    x = x + params['pos_embed'][1:, :][None]

    # ---- random masking (shuffle/gather glue in JAX) ----
    # TODO(synk): focus_range weighted masking branch not implemented (default None).
    len_keep = int(L * (1 - mask_ratio))
    noise = jax.random.uniform(noise_key, (B, L))
    ids_shuffle = jnp.argsort(noise, axis=1)
    ids_restore = jnp.argsort(ids_shuffle, axis=1)
    ids_keep = ids_shuffle[:, :len_keep]
    x_masked = jnp.take_along_axis(
        x, jnp.broadcast_to(ids_keep[:, :, None], (B, len_keep, E)), axis=1)
    mask = jnp.ones((B, L), jnp.float32).at[:, :len_keep].set(0.0)
    mask = jnp.take_along_axis(mask, ids_restore, axis=1)

    # ---- cls token + encoder blocks ----
    cls = params['cls_token'] + params['pos_embed'][:1, :][None]
    cls = jnp.broadcast_to(cls, (B, 1, E))
    x = jnp.concatenate([cls, x_masked], axis=1)
    for blk in params['enc_blocks']:
        x = block_forward(x, blk, cfg['num_heads'])

    # ---- encoder final norm fused into decoder_embed ----
    Bs, Se, _ = x.shape
    x = fused_linear(x.reshape(Bs * Se, E), params['dec_embed_w'], params['dec_embed_b'],
                     ln=(params['norm_w'], params['norm_b'])).reshape(Bs, Se, Dd)

    # ---- decoder: restore sequence with mask tokens ----
    n_mask = L + 1 - x.shape[1]
    mask_tokens = jnp.broadcast_to(params['mask_token'], (B, n_mask, Dd))
    x_ = jnp.concatenate([x[:, 1:, :], mask_tokens], axis=1)
    x_ = jnp.take_along_axis(
        x_, jnp.broadcast_to(ids_restore[:, :, None], (B, L, Dd)), axis=1)
    x = jnp.concatenate([x[:, :1, :], x_], axis=1)
    x = x + params['dec_pos_embed'][None]
    for blk in params['dec_blocks']:
        x = block_forward(x, blk, cfg['dec_heads'])

    # ---- decoder norm fused into decoder_pred ----
    Bs, Sd, _ = x.shape
    pred = fused_linear(x.reshape(Bs * Sd, Dd), params['dec_pred_w'], params['dec_pred_b'],
                        ln=(params['dec_norm_w'], params['dec_norm_b']))
    pred = pred.reshape(Bs, Sd, -1)[:, 1:, :]

    # ---- loss: masked MSE against patchified input (same ordering as torch ref) ----
    target = imgs.transpose(0, 2, 1).reshape(B, T // P, P * C)
    loss = pallas_masked_mse(pred, target, mask)
    return loss, pred, mask
    # TODO(synk): use_nature_img_loss branch (nature image decoder) not implemented
    # (default use_nature_img_loss=False / img_features=None).


# ----------------------------------------------------------------------------
# Deterministic parameter init (synthetic; mirrors the module's init scheme)
# Matmul weights are stored in bf16 (streamed straight to the MXU), rest in f32.
# ----------------------------------------------------------------------------
def xavier_uniform(key, shape, dtype=jnp.bfloat16):
    fan_in, fan_out = shape[0], shape[1]
    a = math.sqrt(6.0 / (fan_in + fan_out))
    return jax.random.uniform(key, shape, jnp.float32, minval=-a, maxval=a).astype(dtype)


def init_block(key, dim, mlp_ratio):
    hidden = int(dim * mlp_ratio)
    k = jax.random.split(key, 4)
    return dict(
        norm1_w=jnp.ones((1, dim), jnp.float32), norm1_b=jnp.zeros((1, dim), jnp.float32),
        qkv_w=xavier_uniform(k[0], (dim, 3 * dim)), qkv_b=jnp.zeros((3 * dim,), jnp.float32),
        proj_w=xavier_uniform(k[1], (dim, dim)), proj_b=jnp.zeros((dim,), jnp.float32),
        norm2_w=jnp.ones((1, dim), jnp.float32), norm2_b=jnp.zeros((1, dim), jnp.float32),
        fc1_w=xavier_uniform(k[2], (dim, hidden)), fc1_b=jnp.zeros((hidden,), jnp.float32),
        fc2_w=xavier_uniform(k[3], (hidden, dim)), fc2_b=jnp.zeros((dim,), jnp.float32),
    )


def init_params(key, cfg):
    T, P, C = cfg['time_len'], cfg['patch_size'], cfg['in_chans']
    E, Dd = cfg['embed_dim'], cfg['dec_dim']
    L = T // P
    ks = jax.random.split(key, cfg['depth'] + cfg['dec_depth'] + 6)
    it = iter(ks)
    params = {}
    # Conv1d weight (E, C, P), normal std=0.02 (as in _init_weights), bias 0.
    conv_w = jax.random.normal(next(it), (E, C, P), jnp.float32) * 0.02
    params['patch_w'] = conv_w.reshape(E, C * P).T.astype(jnp.bfloat16)   # (C*P, E)
    params['patch_b'] = jnp.zeros((E,), jnp.float32)
    params['pos_embed'] = jnp.asarray(
        get_1d_sincos_pos_embed(E, L, cls_token=True), jnp.float32)
    params['dec_pos_embed'] = jnp.asarray(
        get_1d_sincos_pos_embed(Dd, L, cls_token=True), jnp.float32)
    params['cls_token'] = jax.random.normal(next(it), (1, 1, E), jnp.float32) * 0.02
    params['mask_token'] = jax.random.normal(next(it), (1, 1, Dd), jnp.float32) * 0.02
    params['enc_blocks'] = [init_block(next(it), E, cfg['mlp_ratio'])
                            for _ in range(cfg['depth'])]
    params['norm_w'] = jnp.ones((1, E), jnp.float32)
    params['norm_b'] = jnp.zeros((1, E), jnp.float32)
    params['dec_embed_w'] = xavier_uniform(next(it), (E, Dd))
    params['dec_embed_b'] = jnp.zeros((Dd,), jnp.float32)
    params['dec_blocks'] = [init_block(next(it), Dd, cfg['mlp_ratio'])
                            for _ in range(cfg['dec_depth'])]
    params['dec_norm_w'] = jnp.ones((1, Dd), jnp.float32)
    params['dec_norm_b'] = jnp.zeros((1, Dd), jnp.float32)
    params['dec_pred_w'] = xavier_uniform(next(it), (Dd, C * P))
    params['dec_pred_b'] = jnp.zeros((C * P,), jnp.float32)
    return params


# ----------------------------------------------------------------------------
if __name__ == "__main__":
    # Small config consistent with MAEforEEG (scaled-down depth/width).
    cfg = dict(time_len=64, patch_size=4, in_chans=4,
               embed_dim=256, depth=2, num_heads=2,
               dec_dim=256, dec_depth=2, dec_heads=2,
               mlp_ratio=2.0)
    B = 2

    key = jax.random.PRNGKey(0)
    k_param, k_data, k_mask = jax.random.split(key, 3)
    params = init_params(k_param, cfg)
    imgs = jax.random.normal(k_data, (B, cfg['in_chans'], cfg['time_len']), jnp.float32)

    fwd = jax.jit(lambda im, nk: mae_forward(im, params, nk, cfg, mask_ratio=0.75))
    loss, pred, mask = fwd(imgs, k_mask)
    jax.block_until_ready((loss, pred, mask))

    assert pred.shape == (B, cfg['time_len'] // cfg['patch_size'],
                          cfg['in_chans'] * cfg['patch_size'])
    assert mask.shape == (B, cfg['time_len'] // cfg['patch_size'])
    assert bool(jnp.isfinite(loss))
    print("KERNEL_OK")
</pallas_src>

<mosaic_0001>
module attributes {stable_mosaic.version = 11 : i64} {
  func.func @_fused_linear_kernel(%arg0: i32, %arg1: i32, %arg2: i32, %arg3: memref<32x16xf32, #tpu.memory_space<vmem>>, %arg4: memref<16x256xbf16, #tpu.memory_space<vmem>>, %arg5: memref<1x256xf32, #tpu.memory_space<vmem>>, %arg6: memref<32x256xf32, #tpu.memory_space<vmem>>) attributes {dimension_semantics = [#tpu.dimension_semantics<parallel>, #tpu.dimension_semantics<parallel>, #tpu.dimension_semantics<arbitrary>], iteration_bounds = array<i64: 1, 1, 1>, scalar_prefetch = 0 : i64, scratch_operands = 0 : i64, tpu.core_type = #tpu.core_type<tc>, window_params = [{transform_indices = @transform_0, window_bounds = array<i64: 32, 16>}, {transform_indices = @transform_1, window_bounds = array<i64: 16, 256>}, {transform_indices = @transform_2, window_bounds = array<i64: 1, 256>}, {transform_indices = @transform_3, window_bounds = array<i64: 32, 256>}]} {
    %c0 = arith.constant 0 : index
    %c0_0 = arith.constant 0 : index
    %0 = vector.load %arg3[%c0, %c0_0] : memref<32x16xf32, #tpu.memory_space<vmem>>, vector<32x16xf32>
    %1 = arith.truncf %0 : vector<32x16xf32> to vector<32x16xbf16>
    %c0_1 = arith.constant 0 : index
    %c0_2 = arith.constant 0 : index
    %2 = vector.load %arg4[%c0_1, %c0_2] : memref<16x256xbf16, #tpu.memory_space<vmem>>, vector<16x256xbf16>
    %cst = arith.constant dense<0.000000e+00> : vector<32x256xf32>
    %3 = tpu.matmul %1, %2, %cst {dimension_numbers = #tpu.dot_dimension_numbers<[1], [0], [0], [1], [0, 0, 1, 1], [], []>} : vector<32x16xbf16>, vector<16x256xbf16>, vector<32x256xf32> -> vector<32x256xf32>
    %c0_3 = arith.constant 0 : index
    %c0_4 = arith.constant 0 : index
    %4 = vector.load %arg5[%c0_3, %c0_4] : memref<1x256xf32, #tpu.memory_space<vmem>>, vector<1x256xf32>
    %5 = vector.broadcast %4 : vector<1x256xf32> to vector<32x256xf32>
    %6 = arith.addf %3, %5 : vector<32x256xf32>
    %c0_5 = arith.constant 0 : index
    %c0_6 = arith.constant 0 : index
    %7 = vector.load %arg6[%c0_5, %c0_6] : memref<32x256xf32, #tpu.memory_space<vmem>>, vector<32x256xf32>
    tpu.vector_store %arg6[%c0_5, %c0_6], %6 {strides = array<i32>} : memref<32x256xf32, #tpu.memory_space<vmem>>, vector<32x256xf32>,
    return
  }
  func.func @transform_0(%arg0: i32, %arg1: i32, %arg2: i32) -> (i32, i32) {
    %c0_i32 = arith.constant 0 : i32
    return %arg0, %arg2 : i32, i32
  }
  func.func @transform_1(%arg0: i32, %arg1: i32, %arg2: i32) -> (i32, i32) {
    %c0_i32 = arith.constant 0 : i32
    return %arg2, %arg1 : i32, i32
  }
  func.func @transform_2(%arg0: i32, %arg1: i32, %arg2: i32) -> (i32, i32) {
    %c0_i32 = arith.constant 0 : i32
    %c0_i32_0 = arith.constant 0 : i32
    return %c0_i32, %arg1 : i32, i32
  }
  func.func @transform_3(%arg0: i32, %arg1: i32, %arg2: i32) -> (i32, i32) {
    %c0_i32 = arith.constant 0 : i32
    return %arg0, %arg1 : i32, i32
  }
}

module attributes {stable_mosaic.version = 11 : i64} {
  func.func @_attn_kernel(%arg0: i32, %arg1: i32, %arg2: i32, %arg3: memref<1x5x128xbf16, #tpu.memory_space<vmem>>, %arg4: memref<1x5x128xbf16, #tpu.memory_space<vmem>>, %arg5: memref<1x5x128xbf16, #tpu.memory_space<vmem>>, %arg6: memref<1x5x128xbf16, #tpu.memory_space<vmem>>) attributes {dimension_semantics = [#tpu.dimension_semantics<parallel>, #tpu.dimension_semantics<parallel>, #tpu.dimension_semantics<parallel>], iteration_bounds = array<i64: 2, 2, 1>, scalar_prefetch = 0 : i64, scratch_operands = 0 : i64, tpu.core_type = #tpu.core_type<tc>, window_params = [{transform_indices = @transform_0, window_bounds = array<i64: 1, 5, 128>}, {transform_indices = @transform_1, window_bounds = array<i64: 1, 5, 128>}, {transform_indices = @transform_2, window_bounds = array<i64: 1, 5, 128>}, {transform_indices = @transform_3, window_bounds = array<i64: 1, 5, 128>}]} {
    %c0 = arith.constant 0 : index
    %c0_0 = arith.constant 0 : index
    %c0_1 = arith.constant 0 : index
    %0 = vector.load %arg3[%c0, %c0_0, %c0_1] : memref<1x5x128xbf16, #tpu.memory_space<vmem>>, vector<1x5x128xbf16>
    %1 = vector.shape_cast %0 : vector<1x5x128xbf16> to vector<5x128xbf16>
    %c0_2 = arith.constant 0 : index
    %c0_3 = arith.constant 0 : index
    %c0_4 = arith.constant 0 : index
    %2 = vector.load %arg4[%c0_2, %c0_3, %c0_4] : memref<1x5x128xbf16, #tpu.memory_space<vmem>>, vector<1x5x128xbf16>
    %3 = vector.shape_cast %2 : vector<1x5x128xbf16> to vector<5x128xbf16>
    %c0_5 = arith.constant 0 : index
    %c0_6 = arith.constant 0 : index
    %c0_7 = arith.constant 0 : index
    %4 = vector.load %arg5[%c0_5, %c0_6, %c0_7] : memref<1x5x128xbf16, #tpu.memory_space<vmem>>, vector<1x5x128xbf16>
    %5 = vector.shape_cast %4 : vector<1x5x128xbf16> to vector<5x128xbf16>
    %cst = arith.constant dense<0.000000e+00> : vector<5x5xf32>
    %6 = tpu.matmul %1, %3, %cst {dimension_numbers = #tpu.dot_dimension_numbers<[1], [1], [0], [0], [0, 0, 1, 0], [], []>} : vector<5x128xbf16>, vector<5x128xbf16>, vector<5x5xf32> -> vector<5x5xf32>
    %cst_8 = arith.constant 0.0883883461 : f32
    %7 = vector.broadcast %cst_8 : f32 to vector<5x5xf32>
    %8 = arith.mulf %6, %7 : vector<5x5xf32>
    %cst_9 = arith.constant dense<0xFF800000> : vector<5xf32>
    %9 = vector.multi_reduction <maximumf>, %8, %cst_9 [1] : vector<5x5xf32> to vector<5xf32>
    %10 = vector.shape_cast %9 : vector<5xf32> to vector<5x1xf32>
    %11 = vector.broadcast %10 : vector<5x1xf32> to vector<5x5xf32>
    %12 = arith.subf %8, %11 : vector<5x5xf32>
    %13 = math.exp %12 : vector<5x5xf32>
    %cst_10 = arith.constant dense<0.000000e+00> : vector<5xf32>
    %14 = vector.multi_reduction <add>, %13, %cst_10 [1] : vector<5x5xf32> to vector<5xf32>
    %15 = vector.shape_cast %14 : vector<5xf32> to vector<5x1xf32>
    %16 = tpu.reciprocal %15 {approx = true} : vector<5x1xf32> -> vector<5x1xf32>
    %17 = vector.broadcast %16 : vector<5x1xf32> to vector<5x5xf32>
    %18 = arith.mulf %13, %17 : vector<5x5xf32>
    %19 = arith.truncf %18 : vector<5x5xf32> to vector<5x5xbf16>
    %cst_11 = arith.constant dense<0.000000e+00> : vector<5x128xf32>
    %20 = tpu.matmul %19, %5, %cst_11 {dimension_numbers = #tpu.dot_dimension_numbers<[1], [0], [0], [1], [0, 0, 1, 1], [], []>} : vector<5x5xbf16>, vector<5x128xbf16>, vector<5x128xf32> -> vector<5x128xf32>
    %21 = arith.truncf %20 : vector<5x128xf32> to vector<5x128xbf16>
    %c0_12 = arith.constant 0 : index
    %c0_13 = arith.constant 0 : index
    %c0_14 = arith.constant 0 : index
    %22 = vector.load %arg6[%c0_12, %c0_13, %c0_14] : memref<1x5x128xbf16, #tpu.memory_space<vmem>>, vector<1x5x128xbf16>
    %23 = vector.shape_cast %22 : vector<1x5x128xbf16> to vector<5x128xbf16>
    %24 = vector.shape_cast %21 : vector<5x128xbf16> to vector<1x5x128xbf16>
    tpu.vector_store %arg6[%c0_12, %c0_13, %c0_14], %24 {strides = array<i32>} : memref<1x5x128xbf16, #tpu.memory_space<vmem>>, vector<1x5x128xbf16>,
    return
  }
  func.func @transform_0(%arg0: i32, %arg1: i32, %arg2: i32) -> (i32, i32, i32) {
    %c0_i32 = arith.constant 0 : i32
    return %arg0, %arg2, %arg1 : i32, i32, i32
  }
  func.func @transform_1(%arg0: i32, %arg1: i32, %arg2: i32) -> (i32, i32, i32) {
    %c2_i32 = arith.constant 2 : i32
    %0 = arith.addi %c2_i32, %arg1 : i32
    %c0_i32 = arith.constant 0 : i32
    %c0_i32_0 = arith.constant 0 : i32
    return %arg0, %c0_i32, %0 : i32, i32, i32
  }
  func.func @transform_2(%arg0: i32, %arg1: i32, %arg2: i32) -> (i32, i32, i32) {
    %c4_i32 = arith.constant 4 : i32
    %0 = arith.addi %c4_i32, %arg1 : i32
    %c0_i32 = arith.constant 0 : i32
    %c0_i32_0 = arith.constant 0 : i32
    return %arg0, %c0_i32, %0 : i32, i32, i32
  }
  func.func @transform_3(%arg0: i32, %arg1: i32, %arg2: i32) -> (i32, i32, i32) {
    %c0_i32 = arith.constant 0 : i32
    return %arg0, %arg2, %arg1 : i32, i32, i32
  }
}

module attributes {stable_mosaic.version = 11 : i64} {
  func.func @_fused_linear_kernel(%arg0: i32, %arg1: i32, %arg2: i32, %arg3: memref<10x256xf32, #tpu.memory_space<vmem>>, %arg4: memref<256x384xbf16, #tpu.memory_space<vmem>>, %arg5: memref<1x384xf32, #tpu.memory_space<vmem>>, %arg6: memref<1x256xf32, #tpu.memory_space<vmem>>, %arg7: memref<1x256xf32, #tpu.memory_space<vmem>>, %arg8: memref<10x384xbf16, #tpu.memory_space<vmem>>, %arg9: memref<10x256xbf16, #tpu.memory_space<vmem>>) attributes {dimension_semantics = [#tpu.dimension_semantics<parallel>, #tpu.dimension_semantics<arbitrary>, #tpu.dimension_semantics<arbitrary>], iteration_bounds = array<i64: 1, 2, 1>, scalar_prefetch = 0 : i64, scratch_operands = 1 : i64, tpu.core_type = #tpu.core_type<tc>, window_params = [{transform_indices = @transform_0, window_bounds = array<i64: 10, 256>}, {transform_indices = @transform_1, window_bounds = array<i64: 256, 384>}, {transform_indices = @transform_2, window_bounds = array<i64: 1, 384>}, {pipeline_mode = #tpu.pipeline_mode<synchronous>, transform_indices = @transform_3, window_bounds = array<i64: 1, 256>}, {pipeline_mode = #tpu.pipeline_mode<synchronous>, transform_indices = @transform_4, window_bounds = array<i64: 1, 256>}, {transform_indices = @transform_5, window_bounds = array<i64: 10, 384>}]} {
    %c0_i32 = arith.constant 0 : i32
    %0 = arith.cmpi eq, %arg1, %c0_i32 : i32
    %1 = arith.extui %0 : i1 to i32
    %c0_i32_0 = arith.constant 0 : i32
    %2 = arith.cmpi ne, %1, %c0_i32_0 : i32
    scf.if %2 {
      %c0_8 = arith.constant 0 : index
      %c0_9 = arith.constant 0 : index
      %11 = vector.load %arg3[%c0_8, %c0_9] : memref<10x256xf32, #tpu.memory_space<vmem>>, vector<10x256xf32>
      %cst_10 = arith.constant dense<0.000000e+00> : vector<10xf32>
      %12 = vector.multi_reduction <add>, %11, %cst_10 [1] : vector<10x256xf32> to vector<10xf32>
      %13 = vector.shape_cast %12 : vector<10xf32> to vector<10x1xf32>
      %cst_11 = arith.constant 2.560000e+02 : f32
      %14 = vector.broadcast %cst_11 : f32 to vector<10x1xf32>
      %15 = arith.divf %13, %14 : vector<10x1xf32>
      %16 = vector.broadcast %15 : vector<10x1xf32> to vector<10x256xf32>
      %17 = arith.subf %11, %16 : vector<10x256xf32>
      %18 = arith.mulf %17, %17 : vector<10x256xf32>
      %cst_12 = arith.constant dense<0.000000e+00> : vector<10xf32>
      %19 = vector.multi_reduction <add>, %18, %cst_12 [1] : vector<10x256xf32> to vector<10xf32>
      %20 = vector.shape_cast %19 : vector<10xf32> to vector<10x1xf32>
      %cst_13 = arith.constant 2.560000e+02 : f32
      %21 = vector.broadcast %cst_13 : f32 to vector<10x1xf32>
      %22 = arith.divf %20, %21 : vector<10x1xf32>
      %cst_14 = arith.constant 9.99999974E-6 : f32
      %23 = vector.broadcast %cst_14 : f32 to vector<10x1xf32>
      %24 = arith.addf %22, %23 : vector<10x1xf32>
      %25 = math.rsqrt %24 : vector<10x1xf32>
      %26 = vector.broadcast %25 : vector<10x1xf32> to vector<10x256xf32>
      %27 = arith.mulf %17, %26 : vector<10x256xf32>
      %c0_15 = arith.constant 0 : index
      %c0_16 = arith.constant 0 : index
      %28 = vector.load %arg6[%c0_15, %c0_16] : memref<1x256xf32, #tpu.memory_space<vmem>>, vector<1x256xf32>
      %29 = vector.broadcast %28 : vector<1x256xf32> to vector<10x256xf32>
      %30 = arith.mulf %27, %29 : vector<10x256xf32>
      %c0_17 = arith.constant 0 : index
      %c0_18 = arith.constant 0 : index
      %31 = vector.load %arg7[%c0_17, %c0_18] : memref<1x256xf32, #tpu.memory_space<vmem>>, vector<1x256xf32>
      %32 = vector.broadcast %31 : vector<1x256xf32> to vector<10x256xf32>
      %33 = arith.addf %30, %32 : vector<10x256xf32>
      %34 = arith.truncf %33 : vector<10x256xf32> to vector<10x256xbf16>
      %c0_19 = arith.constant 0 : index
      %c0_20 = arith.constant 0 : index
      %35 = vector.load %arg9[%c0_19, %c0_20] : memref<10x256xbf16, #tpu.memory_space<vmem>>, vector<10x256xbf16>
      tpu.vector_store %arg9[%c0_19, %c0_20], %34 {strides = array<i32>} : memref<10x256xbf16, #tpu.memory_space<vmem>>, vector<10x256xbf16>,
    } else {
    }
    %c0 = arith.constant 0 : index
    %c0_1 = arith.constant 0 : index
    %3 = vector.load %arg9[%c0, %c0_1] : memref<10x256xbf16, #tpu.memory_space<vmem>>, vector<10x256xbf16>
    %c0_2 = arith.constant 0 : index
    %c0_3 = arith.constant 0 : index
    %4 = vector.load %arg4[%c0_2, %c0_3] : memref<256x384xbf16, #tpu.memory_space<vmem>>, vector<256x384xbf16>
    %cst = arith.constant dense<0.000000e+00> : vector<10x384xf32>
    %5 = tpu.matmul %3, %4, %cst {dimension_numbers = #tpu.dot_dimension_numbers<[1], [0], [0], [1], [0, 0, 1, 1], [], []>} : vector<10x256xbf16>, vector<256x384xbf16>, vector<10x384xf32> -> vector<10x384xf32>
    %c0_4 = arith.constant 0 : index
    %c0_5 = arith.constant 0 : index
    %6 = vector.load %arg5[%c0_4, %c0_5] : memref<1x384xf32, #tpu.memory_space<vmem>>, vector<1x384xf32>
    %7 = vector.broadcast %6 : vector<1x384xf32> to vector<10x384xf32>
    %8 = arith.addf %5, %7 : vector<10x384xf32>
    %9 = arith.truncf %8 : vector<10x384xf32> to vector<10x384xbf16>
    %c0_6 = arith.constant 0 : index
    %c0_7 = arith.constant 0 : index
    %10 = vector.load %arg8[%c0_6, %c0_7] : memref<10x384xbf16, #tpu.memory_space<vmem>>, vector<10x384xbf16>
    tpu.vector_store %arg8[%c0_6, %c0_7], %9 {strides = array<i32>} : memref<10x384xbf16, #tpu.memory_space<vmem>>, vector<10x384xbf16>,
    return
  }
  func.func @transform_0(%arg0: i32, %arg1: i32, %arg2: i32) -> (i32, i32) {
    %c0_i32 = arith.constant 0 : i32
    return %arg0, %arg2 : i32, i32
  }
  func.func @transform_1(%arg0: i32, %arg1: i32, %arg2: i32) -> (i32, i32) {
    %c0_i32 = arith.constant 0 : i32
    return %arg2, %arg1 : i32, i32
  }
  func.func @transform_2(%arg0: i32, %arg1: i32, %arg2: i32) -> (i32, i32) {
    %c0_i32 = arith.constant 0 : i32
    %c0_i32_0 = arith.constant 0 : i32
    return %c0_i32, %arg1 : i32, i32
  }
  func.func @transform_3(%arg0: i32, %arg1: i32, %arg2: i32) -> (i32, i32) {
    %c0_i32 = arith.constant 0 : i32
    %c0_i32_0 = arith.constant 0 : i32
    %c0_i32_1 = arith.constant 0 : i32
    return %c0_i32, %c0_i32_0 : i32, i32
  }
  func.func @transform_4(%arg0: i32, %arg1: i32, %arg2: i32) -> (i32, i32) {
    %c0_i32 = arith.constant 0 : i32
    %c0_i32_0 = arith.constant 0 : i32
    %c0_i32_1 = arith.constant 0 : i32
    return %c0_i32, %c0_i32_0 : i32, i32
  }
  func.func @transform_5(%arg0: i32, %arg1: i32, %arg2: i32) -> (i32, i32) {
    %c0_i32 = arith.constant 0 : i32
    return %arg0, %arg1 : i32, i32
  }
}

module attributes {stable_mosaic.version = 11 : i64} {
  func.func @_fused_linear_kernel(%arg0: i32, %arg1: i32, %arg2: i32, %arg3: memref<10x256xbf16, #tpu.memory_space<vmem>>, %arg4: memref<256x256xbf16, #tpu.memory_space<vmem>>, %arg5: memref<1x256xf32, #tpu.memory_space<vmem>>, %arg6: memref<10x256xf32, #tpu.memory_space<vmem>>, %arg7: memref<10x256xf32, #tpu.memory_space<vmem>>) attributes {dimension_semantics = [#tpu.dimension_semantics<parallel>, #tpu.dimension_semantics<parallel>, #tpu.dimension_semantics<arbitrary>], iteration_bounds = array<i64: 1, 1, 1>, scalar_prefetch = 0 : i64, scratch_operands = 0 : i64, tpu.core_type = #tpu.core_type<tc>, window_params = [{transform_indices = @transform_0, window_bounds = array<i64: 10, 256>}, {transform_indices = @transform_1, window_bounds = array<i64: 256, 256>}, {transform_indices = @transform_2, window_bounds = array<i64: 1, 256>}, {transform_indices = @transform_3, window_bounds = array<i64: 10, 256>}, {transform_indices = @transform_4, window_bounds = array<i64: 10, 256>}]} {
    %c0 = arith.constant 0 : index
    %c0_0 = arith.constant 0 : index
    %0 = vector.load %arg3[%c0, %c0_0] : memref<10x256xbf16, #tpu.memory_space<vmem>>, vector<10x256xbf16>
    %c0_1 = arith.constant 0 : index
    %c0_2 = arith.constant 0 : index
    %1 = vector.load %arg4[%c0_1, %c0_2] : memref<256x256xbf16, #tpu.memory_space<vmem>>, vector<256x256xbf16>
    %cst = arith.constant dense<0.000000e+00> : vector<10x256xf32>
    %2 = tpu.matmul %0, %1, %cst {dimension_numbers = #tpu.dot_dimension_numbers<[1], [0], [0], [1], [0, 0, 1, 1], [], []>} : vector<10x256xbf16>, vector<256x256xbf16>, vector<10x256xf32> -> vector<10x256xf32>
    %c0_3 = arith.constant 0 : index
    %c0_4 = arith.constant 0 : index
    %3 = vector.load %arg5[%c0_3, %c0_4] : memref<1x256xf32, #tpu.memory_space<vmem>>, vector<1x256xf32>
    %4 = vector.broadcast %3 : vector<1x256xf32> to vector<10x256xf32>
    %5 = arith.addf %2, %4 : vector<10x256xf32>
    %c0_5 = arith.constant 0 : index
    %c0_6 = arith.constant 0 : index
    %6 = vector.load %arg6[%c0_5, %c0_6] : memref<10x256xf32, #tpu.memory_space<vmem>>, vector<10x256xf32>
    %7 = arith.addf %5, %6 : vector<10x256xf32>
    %c0_7 = arith.constant 0 : index
    %c0_8 = arith.constant 0 : index
    %8 = vector.load %arg7[%c0_7, %c0_8] : memref<10x256xf32, #tpu.memory_space<vmem>>, vector<10x256xf32>
    tpu.vector_store %arg7[%c0_7, %c0_8], %7 {strides = array<i32>} : memref<10x256xf32, #tpu.memory_space<vmem>>, vector<10x256xf32>,
    return
  }
  func.func @transform_0(%arg0: i32, %arg1: i32, %arg2: i32) -> (i32, i32) {
    %c0_i32 = arith.constant 0 : i32
    return %arg0, %arg2 : i32, i32
  }
  func.func @transform_1(%arg0: i32, %arg1: i32, %arg2: i32) -> (i32, i32) {
    %c0_i32 = arith.constant 0 : i32
    return %arg2, %arg1 : i32, i32
  }
  func.func @transform_2(%arg0: i32, %arg1: i32, %arg2: i32) -> (i32, i32) {
    %c0_i32 = arith.constant 0 : i32
    %c0_i32_0 = arith.constant 0 : i32
    return %c0_i32, %arg1 : i32, i32
  }
  func.func @transform_3(%arg0: i32, %arg1: i32, %arg2: i32) -> (i32, i32) {
    %c0_i32 = arith.constant 0 : i32
    return %arg0, %arg1 : i32, i32
  }
  func.func @transform_4(%arg0: i32, %arg1: i32, %arg2: i32) -> (i32, i32) {
    %c0_i32 = arith.constant 0 : i32
    return %arg0, %arg1 : i32, i32
  }
}

module attributes {stable_mosaic.version = 11 : i64} {
  func.func @_fused_linear_kernel(%arg0: i32, %arg1: i32, %arg2: i32, %arg3: memref<10x256xf32, #tpu.memory_space<vmem>>, %arg4: memref<256x512xbf16, #tpu.memory_space<vmem>>, %arg5: memref<1x512xf32, #tpu.memory_space<vmem>>, %arg6: memref<1x256xf32, #tpu.memory_space<vmem>>, %arg7: memref<1x256xf32, #tpu.memory_space<vmem>>, %arg8: memref<10x512xbf16, #tpu.memory_space<vmem>>) attributes {dimension_semantics = [#tpu.dimension_semantics<parallel>, #tpu.dimension_semantics<parallel>, #tpu.dimension_semantics<arbitrary>], iteration_bounds = array<i64: 1, 1, 1>, scalar_prefetch = 0 : i64, scratch_operands = 0 : i64, tpu.core_type = #tpu.core_type<tc>, window_params = [{transform_indices = @transform_0, window_bounds = array<i64: 10, 256>}, {transform_indices = @transform_1, window_bounds = array<i64: 256, 512>}, {transform_indices = @transform_2, window_bounds = array<i64: 1, 512>}, {pipeline_mode = #tpu.pipeline_mode<synchronous>, transform_indices = @transform_3, window_bounds = array<i64: 1, 256>}, {pipeline_mode = #tpu.pipeline_mode<synchronous>, transform_indices = @transform_4, window_bounds = array<i64: 1, 256>}, {transform_indices = @transform_5, window_bounds = array<i64: 10, 512>}]} {
    %c0 = arith.constant 0 : index
    %c0_0 = arith.constant 0 : index
    %0 = vector.load %arg3[%c0, %c0_0] : memref<10x256xf32, #tpu.memory_space<vmem>>, vector<10x256xf32>
    %cst = arith.constant dense<0.000000e+00> : vector<10xf32>
    %1 = vector.multi_reduction <add>, %0, %cst [1] : vector<10x256xf32> to vector<10xf32>
    %2 = vector.shape_cast %1 : vector<10xf32> to vector<10x1xf32>
    %cst_1 = arith.constant 2.560000e+02 : f32
    %3 = vector.broadcast %cst_1 : f32 to vector<10x1xf32>
    %4 = arith.divf %2, %3 : vector<10x1xf32>
    %5 = vector.broadcast %4 : vector<10x1xf32> to vector<10x256xf32>
    %6 = arith.subf %0, %5 : vector<10x256xf32>
    %7 = arith.mulf %6, %6 : vector<10x256xf32>
    %cst_2 = arith.constant dense<0.000000e+00> : vector<10xf32>
    %8 = vector.multi_reduction <add>, %7, %cst_2 [1] : vector<10x256xf32> to vector<10xf32>
    %9 = vector.shape_cast %8 : vector<10xf32> to vector<10x1xf32>
    %cst_3 = arith.constant 2.560000e+02 : f32
    %10 = vector.broadcast %cst_3 : f32 to vector<10x1xf32>
    %11 = arith.divf %9, %10 : vector<10x1xf32>
    %cst_4 = arith.constant 9.99999974E-6 : f32
    %12 = vector.broadcast %cst_4 : f32 to vector<10x1xf32>
    %13 = arith.addf %11, %12 : vector<10x1xf32>
    %14 = math.rsqrt %13 : vector<10x1xf32>
    %15 = vector.broadcast %14 : vector<10x1xf32> to vector<10x256xf32>
    %16 = arith.mulf %6, %15 : vector<10x256xf32>
    %c0_5 = arith.constant 0 : index
    %c0_6 = arith.constant 0 : index
    %17 = vector.load %arg6[%c0_5, %c0_6] : memref<1x256xf32, #tpu.memory_space<vmem>>, vector<1x256xf32>
    %18 = vector.broadcast %17 : vector<1x256xf32> to vector<10x256xf32>
    %19 = arith.mulf %16, %18 : vector<10x256xf32>
    %c0_7 = arith.constant 0 : index
    %c0_8 = arith.constant 0 : index
    %20 = vector.load %arg7[%c0_7, %c0_8] : memref<1x256xf32, #tpu.memory_space<vmem>>, vector<1x256xf32>
    %21 = vector.broadcast %20 : vector<1x256xf32> to vector<10x256xf32>
    %22 = arith.addf %19, %21 : vector<10x256xf32>
    %23 = arith.truncf %22 : vector<10x256xf32> to vector<10x256xbf16>
    %c0_9 = arith.constant 0 : index
    %c0_10 = arith.constant 0 : index
    %24 = vector.load %arg4[%c0_9, %c0_10] : memref<256x512xbf16, #tpu.memory_space<vmem>>, vector<256x512xbf16>
    %cst_11 = arith.constant dense<0.000000e+00> : vector<10x512xf32>
    %25 = tpu.matmul %23, %24, %cst_11 {dimension_numbers = #tpu.dot_dimension_numbers<[1], [0], [0], [1], [0, 0, 1, 1], [], []>} : vector<10x256xbf16>, vector<256x512xbf16>, vector<10x512xf32> -> vector<10x512xf32>
    %c0_12 = arith.constant 0 : index
    %c0_13 = arith.constant 0 : index
    %26 = vector.load %arg5[%c0_12, %c0_13] : memref<1x512xf32, #tpu.memory_space<vmem>>, vector<1x512xf32>
    %27 = vector.broadcast %26 : vector<1x512xf32> to vector<10x512xf32>
    %28 = arith.addf %25, %27 : vector<10x512xf32>
    %cst_14 = arith.constant 5.000000e-01 : f32
    %29 = vector.broadcast %cst_14 : f32 to vector<10x512xf32>
    %30 = arith.mulf %29, %28 : vector<10x512xf32>
    %cst_15 = arith.constant 4.471500e-02 : f32
    %31 = vector.broadcast %cst_15 : f32 to vector<10x512xf32>
    %32 = arith.mulf %31, %28 : vector<10x512xf32>
    %33 = arith.mulf %32, %28 : vector<10x512xf32>
    %34 = arith.mulf %33, %28 : vector<10x512xf32>
    %35 = arith.addf %28, %34 : vector<10x512xf32>
    %cst_16 = arith.constant 0.797884583 : f32
    %36 = vector.broadcast %cst_16 : f32 to vector<10x512xf32>
    %37 = arith.mulf %36, %35 : vector<10x512xf32>
    %38 = math.tanh %37 : vector<10x512xf32>
    %cst_17 = arith.constant 1.000000e+00 : f32
    %39 = vector.broadcast %cst_17 : f32 to vector<10x512xf32>
    %40 = arith.addf %39, %38 : vector<10x512xf32>
    %41 = arith.mulf %30, %40 : vector<10x512xf32>
    %42 = arith.truncf %41 : vector<10x512xf32> to vector<10x512xbf16>
    %c0_18 = arith.constant 0 : index
    %c0_19 = arith.constant 0 : index
    %43 = vector.load %arg8[%c0_18, %c0_19] : memref<10x512xbf16, #tpu.memory_space<vmem>>, vector<10x512xbf16>
    tpu.vector_store %arg8[%c0_18, %c0_19], %42 {strides = array<i32>} : memref<10x512xbf16, #tpu.memory_space<vmem>>, vector<10x512xbf16>,
    return
  }
  func.func @transform_0(%arg0: i32, %arg1: i32, %arg2: i32) -> (i32, i32) {
    %c0_i32 = arith.constant 0 : i32
    return %arg0, %arg2 : i32, i32
  }
  func.func @transform_1(%arg0: i32, %arg1: i32, %arg2: i32) -> (i32, i32) {
    %c0_i32 = arith.constant 0 : i32
    return %arg2, %arg1 : i32, i32
  }
  func.func @transform_2(%arg0: i32, %arg1: i32, %arg2: i32) -> (i32, i32) {
    %c0_i32 = arith.constant 0 : i32
    %c0_i32_0 = arith.constant 0 : i32
    return %c0_i32, %arg1 : i32, i32
  }
  func.func @transform_3(%arg0: i32, %arg1: i32, %arg2: i32) -> (i32, i32) {
    %c0_i32 = arith.constant 0 : i32
    %c0_i32_0 = arith.constant 0 : i32
    %c0_i32_1 = arith.constant 0 : i32
    return %c0_i32, %c0_i32_0 : i32, i32
  }
  func.func @transform_4(%arg0: i32, %arg1: i32, %arg2: i32) -> (i32, i32) {
    %c0_i32 = arith.constant 0 : i32
    %c0_i32_0 = arith.constant 0 : i32
    %c0_i32_1 = arith.constant 0 : i32
    return %c0_i32, %c0_i32_0 : i32, i32
  }
  func.func @transform_5(%arg0: i32, %arg1: i32, %arg2: i32) -> (i32, i32) {
    %c0_i32 = arith.constant 0 : i32
    return %arg0, %arg1 : i32, i32
  }
}

module attributes {stable_mosaic.version = 11 : i64} {
  func.func @_fused_linear_kernel(%arg0: i32, %arg1: i32, %arg2: i32, %arg3: memref<10x256xf32, #tpu.memory_space<vmem>>, %arg4: memref<256x256xbf16, #tpu.memory_space<vmem>>, %arg5: memref<1x256xf32, #tpu.memory_space<vmem>>, %arg6: memref<1x256xf32, #tpu.memory_space<vmem>>, %arg7: memref<1x256xf32, #tpu.memory_space<vmem>>, %arg8: memref<10x256xf32, #tpu.memory_space<vmem>>) attributes {dimension_semantics = [#tpu.dimension_semantics<parallel>, #tpu.dimension_semantics<parallel>, #tpu.dimension_semantics<arbitrary>], iteration_bounds = array<i64: 1, 1, 1>, scalar_prefetch = 0 : i64, scratch_operands = 0 : i64, tpu.core_type = #tpu.core_type<tc>, window_params = [{transform_indices = @transform_0, window_bounds = array<i64: 10, 256>}, {transform_indices = @transform_1, window_bounds = array<i64: 256, 256>}, {transform_indices = @transform_2, window_bounds = array<i64: 1, 256>}, {pipeline_mode = #tpu.pipeline_mode<synchronous>, transform_indices = @transform_3, window_bounds = array<i64: 1, 256>}, {pipeline_mode = #tpu.pipeline_mode<synchronous>, transform_indices = @transform_4, window_bounds = array<i64: 1, 256>}, {transform_indices = @transform_5, window_bounds = array<i64: 10, 256>}]} {
    %c0 = arith.constant 0 : index
    %c0_0 = arith.constant 0 : index
    %0 = vector.load %arg3[%c0, %c0_0] : memref<10x256xf32, #tpu.memory_space<vmem>>, vector<10x256xf32>
    %cst = arith.constant dense<0.000000e+00> : vector<10xf32>
    %1 = vector.multi_reduction <add>, %0, %cst [1] : vector<10x256xf32> to vector<10xf32>
    %2 = vector.shape_cast %1 : vector<10xf32> to vector<10x1xf32>
    %cst_1 = arith.constant 2.560000e+02 : f32
    %3 = vector.broadcast %cst_1 : f32 to vector<10x1xf32>
    %4 = arith.divf %2, %3 : vector<10x1xf32>
    %5 = vector.broadcast %4 : vector<10x1xf32> to vector<10x256xf32>
    %6 = arith.subf %0, %5 : vector<10x256xf32>
    %7 = arith.mulf %6, %6 : vector<10x256xf32>
    %cst_2 = arith.constant dense<0.000000e+00> : vector<10xf32>
    %8 = vector.multi_reduction <add>, %7, %cst_2 [1] : vector<10x256xf32> to vector<10xf32>
    %9 = vector.shape_cast %8 : vector<10xf32> to vector<10x1xf32>
    %cst_3 = arith.constant 2.560000e+02 : f32
    %10 = vector.broadcast %cst_3 : f32 to vector<10x1xf32>
    %11 = arith.divf %9, %10 : vector<10x1xf32>
    %cst_4 = arith.constant 9.99999974E-6 : f32
    %12 = vector.broadcast %cst_4 : f32 to vector<10x1xf32>
    %13 = arith.addf %11, %12 : vector<10x1xf32>
    %14 = math.rsqrt %13 : vector<10x1xf32>
    %15 = vector.broadcast %14 : vector<10x1xf32> to vector<10x256xf32>
    %16 = arith.mulf %6, %15 : vector<10x256xf32>
    %c0_5 = arith.constant 0 : index
    %c0_6 = arith.constant 0 : index
    %17 = vector.load %arg6[%c0_5, %c0_6] : memref<1x256xf32, #tpu.memory_space<vmem>>, vector<1x256xf32>
    %18 = vector.broadcast %17 : vector<1x256xf32> to vector<10x256xf32>
    %19 = arith.mulf %16, %18 : vector<10x256xf32>
    %c0_7 = arith.constant 0 : index
    %c0_8 = arith.constant 0 : index
    %20 = vector.load %arg7[%c0_7, %c0_8] : memref<1x256xf32, #tpu.memory_space<vmem>>, vector<1x256xf32>
    %21 = vector.broadcast %20 : vector<1x256xf32> to vector<10x256xf32>
    %22 = arith.addf %19, %21 : vector<10x256xf32>
    %23 = arith.truncf %22 : vector<10x256xf32> to vector<10x256xbf16>
    %c0_9 = arith.constant 0 : index
    %c0_10 = arith.constant 0 : index
    %24 = vector.load %arg4[%c0_9, %c0_10] : memref<256x256xbf16, #tpu.memory_space<vmem>>, vector<256x256xbf16>
    %cst_11 = arith.constant dense<0.000000e+00> : vector<10x256xf32>
    %25 = tpu.matmul %23, %24, %cst_11 {dimension_numbers = #tpu.dot_dimension_numbers<[1], [0], [0], [1], [0, 0, 1, 1], [], []>} : vector<10x256xbf16>, vector<256x256xbf16>, vector<10x256xf32> -> vector<10x256xf32>
    %c0_12 = arith.constant 0 : index
    %c0_13 = arith.constant 0 : index
    %26 = vector.load %arg5[%c0_12, %c0_13] : memref<1x256xf32, #tpu.memory_space<vmem>>, vector<1x256xf32>
    %27 = vector.broadcast %26 : vector<1x256xf32> to vector<10x256xf32>
    %28 = arith.addf %25, %27 : vector<10x256xf32>
    %c0_14 = arith.constant 0 : index
    %c0_15 = arith.constant 0 : index
    %29 = vector.load %arg8[%c0_14, %c0_15] : memref<10x256xf32, #tpu.memory_space<vmem>>, vector<10x256xf32>
    tpu.vector_store %arg8[%c0_14, %c0_15], %28 {strides = array<i32>} : memref<10x256xf32, #tpu.memory_space<vmem>>, vector<10x256xf32>,
    return
  }
  func.func @transform_0(%arg0: i32, %arg1: i32, %arg2: i32) -> (i32, i32) {
    %c0_i32 = arith.constant 0 : i32
    return %arg0, %arg2 : i32, i32
  }
  func.func @transform_1(%arg0: i32, %arg1: i32, %arg2: i32) -> (i32, i32) {
    %c0_i32 = arith.constant 0 : i32
    return %arg2, %arg1 : i32, i32
  }
  func.func @transform_2(%arg0: i32, %arg1: i32, %arg2: i32) -> (i32, i32) {
    %c0_i32 = arith.constant 0 : i32
    %c0_i32_0 = arith.constant 0 : i32
    return %c0_i32, %arg1 : i32, i32
  }
  func.func @transform_3(%arg0: i32, %arg1: i32, %arg2: i32) -> (i32, i32) {
    %c0_i32 = arith.constant 0 : i32
    %c0_i32_0 = arith.constant 0 : i32
    %c0_i32_1 = arith.constant 0 : i32
    return %c0_i32, %c0_i32_0 : i32, i32
  }
  func.func @transform_4(%arg0: i32, %arg1: i32, %arg2: i32) -> (i32, i32) {
    %c0_i32 = arith.constant 0 : i32
    %c0_i32_0 = arith.constant 0 : i32
    %c0_i32_1 = arith.constant 0 : i32
    return %c0_i32, %c0_i32_0 : i32, i32
  }
  func.func @transform_5(%arg0: i32, %arg1: i32, %arg2: i32) -> (i32, i32) {
    %c0_i32 = arith.constant 0 : i32
    return %arg0, %arg1 : i32, i32
  }
}

module attributes {stable_mosaic.version = 11 : i64} {
  func.func @_fused_linear_kernel(%arg0: i32, %arg1: i32, %arg2: i32, %arg3: memref<10x512xbf16, #tpu.memory_space<vmem>>, %arg4: memref<512x256xbf16, #tpu.memory_space<vmem>>, %arg5: memref<1x256xf32, #tpu.memory_space<vmem>>, %arg6: memref<10x256xf32, #tpu.memory_space<vmem>>, %arg7: memref<10x256xf32, #tpu.memory_space<vmem>>) attributes {dimension_semantics = [#tpu.dimension_semantics<parallel>, #tpu.dimension_semantics<parallel>, #tpu.dimension_semantics<arbitrary>], iteration_bounds = array<i64: 1, 1, 1>, scalar_prefetch = 0 : i64, scratch_operands = 0 : i64, tpu.core_type = #tpu.core_type<tc>, window_params = [{transform_indices = @transform_0, window_bounds = array<i64: 10, 512>}, {transform_indices = @transform_1, window_bounds = array<i64: 512, 256>}, {transform_indices = @transform_2, window_bounds = array<i64: 1, 256>}, {transform_indices = @transform_3, window_bounds = array<i64: 10, 256>}, {transform_indices = @transform_4, window_bounds = array<i64: 10, 256>}]} {
    %c0 = arith.constant 0 : index
    %c0_0 = arith.constant 0 : index
    %0 = vector.load %arg3[%c0, %c0_0] : memref<10x512xbf16, #tpu.memory_space<vmem>>, vector<10x512xbf16>
    %c0_1 = arith.constant 0 : index
    %c0_2 = arith.constant 0 : index
    %1 = vector.load %arg4[%c0_1, %c0_2] : memref<512x256xbf16, #tpu.memory_space<vmem>>, vector<512x256xbf16>
    %cst = arith.constant dense<0.000000e+00> : vector<10x256xf32>
    %2 = tpu.matmul %0, %1, %cst {dimension_numbers = #tpu.dot_dimension_numbers<[1], [0], [0], [1], [0, 0, 1, 1], [], []>} : vector<10x512xbf16>, vector<512x256xbf16>, vector<10x256xf32> -> vector<10x256xf32>
    %c0_3 = arith.constant 0 : index
    %c0_4 = arith.constant 0 : index
    %3 = vector.load %arg5[%c0_3, %c0_4] : memref<1x256xf32, #tpu.memory_space<vmem>>, vector<1x256xf32>
    %4 = vector.broadcast %3 : vector<1x256xf32> to vector<10x256xf32>
    %5 = arith.addf %2, %4 : vector<10x256xf32>
    %c0_5 = arith.constant 0 : index
    %c0_6 = arith.constant 0 : index
    %6 = vector.load %arg6[%c0_5, %c0_6] : memref<10x256xf32, #tpu.memory_space<vmem>>, vector<10x256xf32>
    %7 = arith.addf %5, %6 : vector<10x256xf32>
    %c0_7 = arith.constant 0 : index
    %c0_8 = arith.constant 0 : index
    %8 = vector.load %arg7[%c0_7, %c0_8] : memref<10x256xf32, #tpu.memory_space<vmem>>, vector<10x256xf32>
    tpu.vector_store %arg7[%c0_7, %c0_8], %7 {strides = array<i32>} : memref<10x256xf32, #tpu.memory_space<vmem>>, vector<10x256xf32>,
    return
  }
  func.func @transform_0(%arg0: i32, %arg1: i32, %arg2: i32) -> (i32, i32) {
    %c0_i32 = arith.constant 0 : i32
    return %arg0, %arg2 : i32, i32
  }
  func.func @transform_1(%arg0: i32, %arg1: i32, %arg2: i32) -> (i32, i32) {
    %c0_i32 = arith.constant 0 : i32
    return %arg2, %arg1 : i32, i32
  }
  func.func @transform_2(%arg0: i32, %arg1: i32, %arg2: i32) -> (i32, i32) {
    %c0_i32 = arith.constant 0 : i32
    %c0_i32_0 = arith.constant 0 : i32
    return %c0_i32, %arg1 : i32, i32
  }
  func.func @transform_3(%arg0: i32, %arg1: i32, %arg2: i32) -> (i32, i32) {
    %c0_i32 = arith.constant 0 : i32
    return %arg0, %arg1 : i32, i32
  }
  func.func @transform_4(%arg0: i32, %arg1: i32, %arg2: i32) -> (i32, i32) {
    %c0_i32 = arith.constant 0 : i32
    return %arg0, %arg1 : i32, i32
  }
}

module attributes {stable_mosaic.version = 11 : i64} {
  func.func @_fused_linear_kernel(%arg0: i32, %arg1: i32, %arg2: i32, %arg3: memref<34x256xf32, #tpu.memory_space<vmem>>, %arg4: memref<256x384xbf16, #tpu.memory_space<vmem>>, %arg5: memref<1x384xf32, #tpu.memory_space<vmem>>, %arg6: memref<1x256xf32, #tpu.memory_space<vmem>>, %arg7: memref<1x256xf32, #tpu.memory_space<vmem>>, %arg8: memref<34x384xbf16, #tpu.memory_space<vmem>>, %arg9: memref<34x256xbf16, #tpu.memory_space<vmem>>) attributes {dimension_semantics = [#tpu.dimension_semantics<parallel>, #tpu.dimension_semantics<arbitrary>, #tpu.dimension_semantics<arbitrary>], iteration_bounds = array<i64: 1, 2, 1>, scalar_prefetch = 0 : i64, scratch_operands = 1 : i64, tpu.core_type = #tpu.core_type<tc>, window_params = [{transform_indices = @transform_0, window_bounds = array<i64: 34, 256>}, {transform_indices = @transform_1, window_bounds = array<i64: 256, 384>}, {transform_indices = @transform_2, window_bounds = array<i64: 1, 384>}, {pipeline_mode = #tpu.pipeline_mode<synchronous>, transform_indices = @transform_3, window_bounds = array<i64: 1, 256>}, {pipeline_mode = #tpu.pipeline_mode<synchronous>, transform_indices = @transform_4, window_bounds = array<i64: 1, 256>}, {transform_indices = @transform_5, window_bounds = array<i64: 34, 384>}]} {
    %c0_i32 = arith.constant 0 : i32
    %0 = arith.cmpi eq, %arg1, %c0_i32 : i32
    %1 = arith.extui %0 : i1 to i32
    %c0_i32_0 = arith.constant 0 : i32
    %2 = arith.cmpi ne, %1, %c0_i32_0 : i32
    scf.if %2 {
      %c0_8 = arith.constant 0 : index
      %c0_9 = arith.constant 0 : index
      %11 = vector.load %arg3[%c0_8, %c0_9] : memref<34x256xf32, #tpu.memory_space<vmem>>, vector<34x256xf32>
      %cst_10 = arith.constant dense<0.000000e+00> : vector<34xf32>
      %12 = vector.multi_reduction <add>, %11, %cst_10 [1] : vector<34x256xf32> to vector<34xf32>
      %13 = vector.shape_cast %12 : vector<34xf32> to vector<34x1xf32>
      %cst_11 = arith.constant 2.560000e+02 : f32
      %14 = vector.broadcast %cst_11 : f32 to vector<34x1xf32>
      %15 = arith.divf %13, %14 : vector<34x1xf32>
      %16 = vector.broadcast %15 : vector<34x1xf32> to vector<34x256xf32>
      %17 = arith.subf %11, %16 : vector<34x256xf32>
      %18 = arith.mulf %17, %17 : vector<34x256xf32>
      %cst_12 = arith.constant dense<0.000000e+00> : vector<34xf32>
      %19 = vector.multi_reduction <add>, %18, %cst_12 [1] : vector<34x256xf32> to vector<34xf32>
      %20 = vector.shape_cast %19 : vector<34xf32> to vector<34x1xf32>
      %cst_13 = arith.constant 2.560000e+02 : f32
      %21 = vector.broadcast %cst_13 : f32 to vector<34x1xf32>
      %22 = arith.divf %20, %21 : vector<34x1xf32>
      %cst_14 = arith.constant 9.99999974E-6 : f32
      %23 = vector.broadcast %cst_14 : f32 to vector<34x1xf32>
      %24 = arith.addf %22, %23 : vector<34x1xf32>
      %25 = math.rsqrt %24 : vector<34x1xf32>
      %26 = vector.broadcast %25 : vector<34x1xf32> to vector<34x256xf32>
      %27 = arith.mulf %17, %26 : vector<34x256xf32>
      %c0_15 = arith.constant 0 : index
      %c0_16 = arith.constant 0 : index
      %28 = vector.load %arg6[%c0_15, %c0_16] : memref<1x256xf32, #tpu.memory_space<vmem>>, vector<1x256xf32>
      %29 = vector.broadcast %28 : vector<1x256xf32> to vector<34x256xf32>
      %30 = arith.mulf %27, %29 : vector<34x256xf32>
      %c0_17 = arith.constant 0 : index
      %c0_18 = arith.constant 0 : index
      %31 = vector.load %arg7[%c0_17, %c0_18] : memref<1x256xf32, #tpu.memory_space<vmem>>, vector<1x256xf32>
      %32 = vector.broadcast %31 : vector<1x256xf32> to vector<34x256xf32>
      %33 = arith.addf %30, %32 : vector<34x256xf32>
      %34 = arith.truncf %33 : vector<34x256xf32> to vector<34x256xbf16>
      %c0_19 = arith.constant 0 : index
      %c0_20 = arith.constant 0 : index
      %35 = vector.load %arg9[%c0_19, %c0_20] : memref<34x256xbf16, #tpu.memory_space<vmem>>, vector<34x256xbf16>
      tpu.vector_store %arg9[%c0_19, %c0_20], %34 {strides = array<i32>} : memref<34x256xbf16, #tpu.memory_space<vmem>>, vector<34x256xbf16>,
    } else {
    }
    %c0 = arith.constant 0 : index
    %c0_1 = arith.constant 0 : index
    %3 = vector.load %arg9[%c0, %c0_1] : memref<34x256xbf16, #tpu.memory_space<vmem>>, vector<34x256xbf16>
    %c0_2 = arith.constant 0 : index
    %c0_3 = arith.constant 0 : index
    %4 = vector.load %arg4[%c0_2, %c0_3] : memref<256x384xbf16, #tpu.memory_space<vmem>>, vector<256x384xbf16>
    %cst = arith.constant dense<0.000000e+00> : vector<34x384xf32>
    %5 = tpu.matmul %3, %4, %cst {dimension_numbers = #tpu.dot_dimension_numbers<[1], [0], [0], [1], [0, 0, 1, 1], [], []>} : vector<34x256xbf16>, vector<256x384xbf16>, vector<34x384xf32> -> vector<34x384xf32>
    %c0_4 = arith.constant 0 : index
    %c0_5 = arith.constant 0 : index
    %6 = vector.load %arg5[%c0_4, %c0_5] : memref<1x384xf32, #tpu.memory_space<vmem>>, vector<1x384xf32>
    %7 = vector.broadcast %6 : vector<1x384xf32> to vector<34x384xf32>
    %8 = arith.addf %5, %7 : vector<34x384xf32>
    %9 = arith.truncf %8 : vector<34x384xf32> to vector<34x384xbf16>
    %c0_6 = arith.constant 0 : index
    %c0_7 = arith.constant 0 : index
    %10 = vector.load %arg8[%c0_6, %c0_7] : memref<34x384xbf16, #tpu.memory_space<vmem>>, vector<34x384xbf16>
    tpu.vector_store %arg8[%c0_6, %c0_7], %9 {strides = array<i32>} : memref<34x384xbf16, #tpu.memory_space<vmem>>, vector<34x384xbf16>,
    return
  }
  func.func @transform_0(%arg0: i32, %arg1: i32, %arg2: i32) -> (i32, i32) {
    %c0_i32 = arith.constant 0 : i32
    return %arg0, %arg2 : i32, i32
  }
  func.func @transform_1(%arg0: i32, %arg1: i32, %arg2: i32) -> (i32, i32) {
    %c0_i32 = arith.constant 0 : i32
    return %arg2, %arg1 : i32, i32
  }
  func.func @transform_2(%arg0: i32, %arg1: i32, %arg2: i32) -> (i32, i32) {
    %c0_i32 = arith.constant 0 : i32
    %c0_i32_0 = arith.constant 0 : i32
    return %c0_i32, %arg1 : i32, i32
  }
  func.func @transform_3(%arg0: i32, %arg1: i32, %arg2: i32) -> (i32, i32) {
    %c0_i32 = arith.constant 0 : i32
    %c0_i32_0 = arith.constant 0 : i32
    %c0_i32_1 = arith.constant 0 : i32
    return %c0_i32, %c0_i32_0 : i32, i32
  }
  func.func @transform_4(%arg0: i32, %arg1: i32, %arg2: i32) -> (i32, i32) {
    %c0_i32 = arith.constant 0 : i32
    %c0_i32_0 = arith.constant 0 : i32
    %c0_i32_1 = arith.constant 0 : i32
    return %c0_i32, %c0_i32_0 : i32, i32
  }
  func.func @transform_5(%arg0: i32, %arg1: i32, %arg2: i32) -> (i32, i32) {
    %c0_i32 = arith.constant 0 : i32
    return %arg0, %arg1 : i32, i32
  }
}

module attributes {stable_mosaic.version = 11 : i64} {
  func.func @_attn_kernel(%arg0: i32, %arg1: i32, %arg2: i32, %arg3: memref<1x17x128xbf16, #tpu.memory_space<vmem>>, %arg4: memref<1x17x128xbf16, #tpu.memory_space<vmem>>, %arg5: memref<1x17x128xbf16, #tpu.memory_space<vmem>>, %arg6: memref<1x17x128xbf16, #tpu.memory_space<vmem>>) attributes {dimension_semantics = [#tpu.dimension_semantics<parallel>, #tpu.dimension_semantics<parallel>, #tpu.dimension_semantics<parallel>], iteration_bounds = array<i64: 2, 2, 1>, scalar_prefetch = 0 : i64, scratch_operands = 0 : i64, tpu.core_type = #tpu.core_type<tc>, window_params = [{transform_indices = @transform_0, window_bounds = array<i64: 1, 17, 128>}, {transform_indices = @transform_1, window_bounds = array<i64: 1, 17, 128>}, {transform_indices = @transform_2, window_bounds = array<i64: 1, 17, 128>}, {transform_indices = @transform_3, window_bounds = array<i64: 1, 17, 128>}]} {
    %c0 = arith.constant 0 : index
    %c0_0 = arith.constant 0 : index
    %c0_1 = arith.constant 0 : index
    %0 = vector.load %arg3[%c0, %c0_0, %c0_1] : memref<1x17x128xbf16, #tpu.memory_space<vmem>>, vector<1x17x128xbf16>
    %1 = vector.shape_cast %0 : vector<1x17x128xbf16> to vector<17x128xbf16>
    %c0_2 = arith.constant 0 : index
    %c0_3 = arith.constant 0 : index
    %c0_4 = arith.constant 0 : index
    %2 = vector.load %arg4[%c0_2, %c0_3, %c0_4] : memref<1x17x128xbf16, #tpu.memory_space<vmem>>, vector<1x17x128xbf16>
    %3 = vector.shape_cast %2 : vector<1x17x128xbf16> to vector<17x128xbf16>
    %c0_5 = arith.constant 0 : index
    %c0_6 = arith.constant 0 : index
    %c0_7 = arith.constant 0 : index
    %4 = vector.load %arg5[%c0_5, %c0_6, %c0_7] : memref<1x17x128xbf16, #tpu.memory_space<vmem>>, vector<1x17x128xbf16>
    %5 = vector.shape_cast %4 : vector<1x17x128xbf16> to vector<17x128xbf16>
    %cst = arith.constant dense<0.000000e+00> : vector<17x17xf32>
    %6 = tpu.matmul %1, %3, %cst {dimension_numbers = #tpu.dot_dimension_numbers<[1], [1], [0], [0], [0, 0, 1, 0], [], []>} : vector<17x128xbf16>, vector<17x128xbf16>, vector<17x17xf32> -> vector<17x17xf32>
    %cst_8 = arith.constant 0.0883883461 : f32
    %7 = vector.broadcast %cst_8 : f32 to vector<17x17xf32>
    %8 = arith.mulf %6, %7 : vector<17x17xf32>
    %cst_9 = arith.constant dense<0xFF800000> : vector<17xf32>
    %9 = vector.multi_reduction <maximumf>, %8, %cst_9 [1] : vector<17x17xf32> to vector<17xf32>
    %10 = vector.shape_cast %9 : vector<17xf32> to vector<17x1xf32>
    %11 = vector.broadcast %10 : vector<17x1xf32> to vector<17x17xf32>
    %12 = arith.subf %8, %11 : vector<17x17xf32>
    %13 = math.exp %12 : vector<17x17xf32>
    %cst_10 = arith.constant dense<0.000000e+00> : vector<17xf32>
    %14 = vector.multi_reduction <add>, %13, %cst_10 [1] : vector<17x17xf32> to vector<17xf32>
    %15 = vector.shape_cast %14 : vector<17xf32> to vector<17x1xf32>
    %16 = tpu.reciprocal %15 {approx = true} : vector<17x1xf32> -> vector<17x1xf32>
    %17 = vector.broadcast %16 : vector<17x1xf32> to vector<17x17xf32>
    %18 = arith.mulf %13, %17 : vector<17x17xf32>
    %19 = arith.truncf %18 : vector<17x17xf32> to vector<17x17xbf16>
    %cst_11 = arith.constant dense<0.000000e+00> : vector<17x128xf32>
    %20 = tpu.matmul %19, %5, %cst_11 {dimension_numbers = #tpu.dot_dimension_numbers<[1], [0], [0], [1], [0, 0, 1, 1], [], []>} : vector<17x17xbf16>, vector<17x128xbf16>, vector<17x128xf32> -> vector<17x128xf32>
    %21 = arith.truncf %20 : vector<17x128xf32> to vector<17x128xbf16>
    %c0_12 = arith.constant 0 : index
    %c0_13 = arith.constant 0 : index
    %c0_14 = arith.constant 0 : index
    %22 = vector.load %arg6[%c0_12, %c0_13, %c0_14] : memref<1x17x128xbf16, #tpu.memory_space<vmem>>, vector<1x17x128xbf16>
    %23 = vector.shape_cast %22 : vector<1x17x128xbf16> to vector<17x128xbf16>
    %24 = vector.shape_cast %21 : vector<17x128xbf16> to vector<1x17x128xbf16>
    tpu.vector_store %arg6[%c0_12, %c0_13, %c0_14], %24 {strides = array<i32>} : memref<1x17x128xbf16, #tpu.memory_space<vmem>>, vector<1x17x128xbf16>,
    return
  }
  func.func @transform_0(%arg0: i32, %arg1: i32, %arg2: i32) -> (i32, i32, i32) {
    %c0_i32 = arith.constant 0 : i32
    return %arg0, %arg2, %arg1 : i32, i32, i32
  }
  func.func @transform_1(%arg0: i32, %arg1: i32, %arg2: i32) -> (i32, i32, i32) {
    %c2_i32 = arith.constant 2 : i32
    %0 = arith.addi %c2_i32, %arg1 : i32
    %c0_i32 = arith.constant 0 : i32
    %c0_i32_0 = arith.constant 0 : i32
    return %arg0, %c0_i32, %0 : i32, i32, i32
  }
  func.func @transform_2(%arg0: i32, %arg1: i32, %arg2: i32) -> (i32, i32, i32) {
    %c4_i32 = arith.constant 4 : i32
    %0 = arith.addi %c4_i32, %arg1 : i32
    %c0_i32 = arith.constant 0 : i32
    %c0_i32_0 = arith.constant 0 : i32
    return %arg0, %c0_i32, %0 : i32, i32, i32
  }
  func.func @transform_3(%arg0: i32, %arg1: i32, %arg2: i32) -> (i32, i32, i32) {
    %c0_i32 = arith.constant 0 : i32
    return %arg0, %arg2, %arg1 : i32, i32, i32
  }
}

module attributes {stable_mosaic.version = 11 : i64} {
  func.func @_fused_linear_kernel(%arg0: i32, %arg1: i32, %arg2: i32, %arg3: memref<34x256xbf16, #tpu.memory_space<vmem>>, %arg4: memref<256x256xbf16, #tpu.memory_space<vmem>>, %arg5: memref<1x256xf32, #tpu.memory_space<vmem>>, %arg6: memref<34x256xf32, #tpu.memory_space<vmem>>, %arg7: memref<34x256xf32, #tpu.memory_space<vmem>>) attributes {dimension_semantics = [#tpu.dimension_semantics<parallel>, #tpu.dimension_semantics<parallel>, #tpu.dimension_semantics<arbitrary>], iteration_bounds = array<i64: 1, 1, 1>, scalar_prefetch = 0 : i64, scratch_operands = 0 : i64, tpu.core_type = #tpu.core_type<tc>, window_params = [{transform_indices = @transform_0, window_bounds = array<i64: 34, 256>}, {transform_indices = @transform_1, window_bounds = array<i64: 256, 256>}, {transform_indices = @transform_2, window_bounds = array<i64: 1, 256>}, {transform_indices = @transform_3, window_bounds = array<i64: 34, 256>}, {transform_indices = @transform_4, window_bounds = array<i64: 34, 256>}]} {
    %c0 = arith.constant 0 : index
    %c0_0 = arith.constant 0 : index
    %0 = vector.load %arg3[%c0, %c0_0] : memref<34x256xbf16, #tpu.memory_space<vmem>>, vector<34x256xbf16>
    %c0_1 = arith.constant 0 : index
    %c0_2 = arith.constant 0 : index
    %1 = vector.load %arg4[%c0_1, %c0_2] : memref<256x256xbf16, #tpu.memory_space<vmem>>, vector<256x256xbf16>
    %cst = arith.constant dense<0.000000e+00> : vector<34x256xf32>
    %2 = tpu.matmul %0, %1, %cst {dimension_numbers = #tpu.dot_dimension_numbers<[1], [0], [0], [1], [0, 0, 1, 1], [], []>} : vector<34x256xbf16>, vector<256x256xbf16>, vector<34x256xf32> -> vector<34x256xf32>
    %c0_3 = arith.constant 0 : index
    %c0_4 = arith.constant 0 : index
    %3 = vector.load %arg5[%c0_3, %c0_4] : memref<1x256xf32, #tpu.memory_space<vmem>>, vector<1x256xf32>
    %4 = vector.broadcast %3 : vector<1x256xf32> to vector<34x256xf32>
    %5 = arith.addf %2, %4 : vector<34x256xf32>
    %c0_5 = arith.constant 0 : index
    %c0_6 = arith.constant 0 : index
    %6 = vector.load %arg6[%c0_5, %c0_6] : memref<34x256xf32, #tpu.memory_space<vmem>>, vector<34x256xf32>
    %7 = arith.addf %5, %6 : vector<34x256xf32>
    %c0_7 = arith.constant 0 : index
    %c0_8 = arith.constant 0 : index
    %8 = vector.load %arg7[%c0_7, %c0_8] : memref<34x256xf32, #tpu.memory_space<vmem>>, vector<34x256xf32>
    tpu.vector_store %arg7[%c0_7, %c0_8], %7 {strides = array<i32>} : memref<34x256xf32, #tpu.memory_space<vmem>>, vector<34x256xf32>,
    return
  }
  func.func @transform_0(%arg0: i32, %arg1: i32, %arg2: i32) -> (i32, i32) {
    %c0_i32 = arith.constant 0 : i32
    return %arg0, %arg2 : i32, i32
  }
  func.func @transform_1(%arg0: i32, %arg1: i32, %arg2: i32) -> (i32, i32) {
    %c0_i32 = arith.constant 0 : i32
    return %arg2, %arg1 : i32, i32
  }
  func.func @transform_2(%arg0: i32, %arg1: i32, %arg2: i32) -> (i32, i32) {
    %c0_i32 = arith.constant 0 : i32
    %c0_i32_0 = arith.constant 0 : i32
    return %c0_i32, %arg1 : i32, i32
  }
  func.func @transform_3(%arg0: i32, %arg1: i32, %arg2: i32) -> (i32, i32) {
    %c0_i32 = arith.constant 0 : i32
    return %arg0, %arg1 : i32, i32
  }
  func.func @transform_4(%arg0: i32, %arg1: i32, %arg2: i32) -> (i32, i32) {
    %c0_i32 = arith.constant 0 : i32
    return %arg0, %arg1 : i32, i32
  }
}

module attributes {stable_mosaic.version = 11 : i64} {
  func.func @_fused_linear_kernel(%arg0: i32, %arg1: i32, %arg2: i32, %arg3: memref<34x256xf32, #tpu.memory_space<vmem>>, %arg4: memref<256x512xbf16, #tpu.memory_space<vmem>>, %arg5: memref<1x512xf32, #tpu.memory_space<vmem>>, %arg6: memref<1x256xf32, #tpu.memory_space<vmem>>, %arg7: memref<1x256xf32, #tpu.memory_space<vmem>>, %arg8: memref<34x512xbf16, #tpu.memory_space<vmem>>) attributes {dimension_semantics = [#tpu.dimension_semantics<parallel>, #tpu.dimension_semantics<parallel>, #tpu.dimension_semantics<arbitrary>], iteration_bounds = array<i64: 1, 1, 1>, scalar_prefetch = 0 : i64, scratch_operands = 0 : i64, tpu.core_type = #tpu.core_type<tc>, window_params = [{transform_indices = @transform_0, window_bounds = array<i64: 34, 256>}, {transform_indices = @transform_1, window_bounds = array<i64: 256, 512>}, {transform_indices = @transform_2, window_bounds = array<i64: 1, 512>}, {pipeline_mode = #tpu.pipeline_mode<synchronous>, transform_indices = @transform_3, window_bounds = array<i64: 1, 256>}, {pipeline_mode = #tpu.pipeline_mode<synchronous>, transform_indices = @transform_4, window_bounds = array<i64: 1, 256>}, {transform_indices = @transform_5, window_bounds = array<i64: 34, 512>}]} {
    %c0 = arith.constant 0 : index
    %c0_0 = arith.constant 0 : index
    %0 = vector.load %arg3[%c0, %c0_0] : memref<34x256xf32, #tpu.memory_space<vmem>>, vector<34x256xf32>
    %cst = arith.constant dense<0.000000e+00> : vector<34xf32>
    %1 = vector.multi_reduction <add>, %0, %cst [1] : vector<34x256xf32> to vector<34xf32>
    %2 = vector.shape_cast %1 : vector<34xf32> to vector<34x1xf32>
    %cst_1 = arith.constant 2.560000e+02 : f32
    %3 = vector.broadcast %cst_1 : f32 to vector<34x1xf32>
    %4 = arith.divf %2, %3 : vector<34x1xf32>
    %5 = vector.broadcast %4 : vector<34x1xf32> to vector<34x256xf32>
    %6 = arith.subf %0, %5 : vector<34x256xf32>
    %7 = arith.mulf %6, %6 : vector<34x256xf32>
    %cst_2 = arith.constant dense<0.000000e+00> : vector<34xf32>
    %8 = vector.multi_reduction <add>, %7, %cst_2 [1] : vector<34x256xf32> to vector<34xf32>
    %9 = vector.shape_cast %8 : vector<34xf32> to vector<34x1xf32>
    %cst_3 = arith.constant 2.560000e+02 : f32
    %10 = vector.broadcast %cst_3 : f32 to vector<34x1xf32>
    %11 = arith.divf %9, %10 : vector<34x1xf32>
    %cst_4 = arith.constant 9.99999974E-6 : f32
    %12 = vector.broadcast %cst_4 : f32 to vector<34x1xf32>
    %13 = arith.addf %11, %12 : vector<34x1xf32>
    %14 = math.rsqrt %13 : vector<34x1xf32>
    %15 = vector.broadcast %14 : vector<34x1xf32> to vector<34x256xf32>
    %16 = arith.mulf %6, %15 : vector<34x256xf32>
    %c0_5 = arith.constant 0 : index
    %c0_6 = arith.constant 0 : index
    %17 = vector.load %arg6[%c0_5, %c0_6] : memref<1x256xf32, #tpu.memory_space<vmem>>, vector<1x256xf32>
    %18 = vector.broadcast %17 : vector<1x256xf32> to vector<34x256xf32>
    %19 = arith.mulf %16, %18 : vector<34x256xf32>
    %c0_7 = arith.constant 0 : index
    %c0_8 = arith.constant 0 : index
    %20 = vector.load %arg7[%c0_7, %c0_8] : memref<1x256xf32, #tpu.memory_space<vmem>>, vector<1x256xf32>
    %21 = vector.broadcast %20 : vector<1x256xf32> to vector<34x256xf32>
    %22 = arith.addf %19, %21 : vector<34x256xf32>
    %23 = arith.truncf %22 : vector<34x256xf32> to vector<34x256xbf16>
    %c0_9 = arith.constant 0 : index
    %c0_10 = arith.constant 0 : index
    %24 = vector.load %arg4[%c0_9, %c0_10] : memref<256x512xbf16, #tpu.memory_space<vmem>>, vector<256x512xbf16>
    %cst_11 = arith.constant dense<0.000000e+00> : vector<34x512xf32>
    %25 = tpu.matmul %23, %24, %cst_11 {dimension_numbers = #tpu.dot_dimension_numbers<[1], [0], [0], [1], [0, 0, 1, 1], [], []>} : vector<34x256xbf16>, vector<256x512xbf16>, vector<34x512xf32> -> vector<34x512xf32>
    %c0_12 = arith.constant 0 : index
    %c0_13 = arith.constant 0 : index
    %26 = vector.load %arg5[%c0_12, %c0_13] : memref<1x512xf32, #tpu.memory_space<vmem>>, vector<1x512xf32>
    %27 = vector.broadcast %26 : vector<1x512xf32> to vector<34x512xf32>
    %28 = arith.addf %25, %27 : vector<34x512xf32>
    %cst_14 = arith.constant 5.000000e-01 : f32
    %29 = vector.broadcast %cst_14 : f32 to vector<34x512xf32>
    %30 = arith.mulf %29, %28 : vector<34x512xf32>
    %cst_15 = arith.constant 4.471500e-02 : f32
    %31 = vector.broadcast %cst_15 : f32 to vector<34x512xf32>
    %32 = arith.mulf %31, %28 : vector<34x512xf32>
    %33 = arith.mulf %32, %28 : vector<34x512xf32>
    %34 = arith.mulf %33, %28 : vector<34x512xf32>
    %35 = arith.addf %28, %34 : vector<34x512xf32>
    %cst_16 = arith.constant 0.797884583 : f32
    %36 = vector.broadcast %cst_16 : f32 to vector<34x512xf32>
    %37 = arith.mulf %36, %35 : vector<34x512xf32>
    %38 = math.tanh %37 : vector<34x512xf32>
    %cst_17 = arith.constant 1.000000e+00 : f32
    %39 = vector.broadcast %cst_17 : f32 to vector<34x512xf32>
    %40 = arith.addf %39, %38 : vector<34x512xf32>
    %41 = arith.mulf %30, %40 : vector<34x512xf32>
    %42 = arith.truncf %41 : vector<34x512xf32> to vector<34x512xbf16>
    %c0_18 = arith.constant 0 : index
    %c0_19 = arith.constant 0 : index
    %43 = vector.load %arg8[%c0_18, %c0_19] : memref<34x512xbf16, #tpu.memory_space<vmem>>, vector<34x512xbf16>
    tpu.vector_store %arg8[%c0_18, %c0_19], %42 {strides = array<i32>} : memref<34x512xbf16, #tpu.memory_space<vmem>>, vector<34x512xbf16>,
    return
  }
  func.func @transform_0(%arg0: i32, %arg1: i32, %arg2: i32) -> (i32, i32) {
    %c0_i32 = arith.constant 0 : i32
    return %arg0, %arg2 : i32, i32
  }
  func.func @transform_1(%arg0: i32, %arg1: i32, %arg2: i32) -> (i32, i32) {
    %c0_i32 = arith.constant 0 : i32
    return %arg2, %arg1 : i32, i32
  }
  func.func @transform_2(%arg0: i32, %arg1: i32, %arg2: i32) -> (i32, i32) {
    %c0_i32 = arith.constant 0 : i32
    %c0_i32_0 = arith.constant 0 : i32
    return %c0_i32, %arg1 : i32, i32
  }
  func.func @transform_3(%arg0: i32, %arg1: i32, %arg2: i32) -> (i32, i32) {
    %c0_i32 = arith.constant 0 : i32
    %c0_i32_0 = arith.constant 0 : i32
    %c0_i32_1 = arith.constant 0 : i32
    return %c0_i32, %c0_i32_0 : i32, i32
  }
  func.func @transform_4(%arg0: i32, %arg1: i32, %arg2: i32) -> (i32, i32) {
    %c0_i32 = arith.constant 0 : i32
    %c0_i32_0 = arith.constant 0 : i32
    %c0_i32_1 = arith.constant 0 : i32
    return %c0_i32, %c0_i32_0 : i32, i32
  }
  func.func @transform_5(%arg0: i32, %arg1: i32, %arg2: i32) -> (i32, i32) {
    %c0_i32 = arith.constant 0 : i32
    return %arg0, %arg1 : i32, i32
  }
}

module attributes {stable_mosaic.version = 11 : i64} {
  func.func @_fused_linear_kernel(%arg0: i32, %arg1: i32, %arg2: i32, %arg3: memref<34x512xbf16, #tpu.memory_space<vmem>>, %arg4: memref<512x256xbf16, #tpu.memory_space<vmem>>, %arg5: memref<1x256xf32, #tpu.memory_space<vmem>>, %arg6: memref<34x256xf32, #tpu.memory_space<vmem>>, %arg7: memref<34x256xf32, #tpu.memory_space<vmem>>) attributes {dimension_semantics = [#tpu.dimension_semantics<parallel>, #tpu.dimension_semantics<parallel>, #tpu.dimension_semantics<arbitrary>], iteration_bounds = array<i64: 1, 1, 1>, scalar_prefetch = 0 : i64, scratch_operands = 0 : i64, tpu.core_type = #tpu.core_type<tc>, window_params = [{transform_indices = @transform_0, window_bounds = array<i64: 34, 512>}, {transform_indices = @transform_1, window_bounds = array<i64: 512, 256>}, {transform_indices = @transform_2, window_bounds = array<i64: 1, 256>}, {transform_indices = @transform_3, window_bounds = array<i64: 34, 256>}, {transform_indices = @transform_4, window_bounds = array<i64: 34, 256>}]} {
    %c0 = arith.constant 0 : index
    %c0_0 = arith.constant 0 : index
    %0 = vector.load %arg3[%c0, %c0_0] : memref<34x512xbf16, #tpu.memory_space<vmem>>, vector<34x512xbf16>
    %c0_1 = arith.constant 0 : index
    %c0_2 = arith.constant 0 : index
    %1 = vector.load %arg4[%c0_1, %c0_2] : memref<512x256xbf16, #tpu.memory_space<vmem>>, vector<512x256xbf16>
    %cst = arith.constant dense<0.000000e+00> : vector<34x256xf32>
    %2 = tpu.matmul %0, %1, %cst {dimension_numbers = #tpu.dot_dimension_numbers<[1], [0], [0], [1], [0, 0, 1, 1], [], []>} : vector<34x512xbf16>, vector<512x256xbf16>, vector<34x256xf32> -> vector<34x256xf32>
    %c0_3 = arith.constant 0 : index
    %c0_4 = arith.constant 0 : index
    %3 = vector.load %arg5[%c0_3, %c0_4] : memref<1x256xf32, #tpu.memory_space<vmem>>, vector<1x256xf32>
    %4 = vector.broadcast %3 : vector<1x256xf32> to vector<34x256xf32>
    %5 = arith.addf %2, %4 : vector<34x256xf32>
    %c0_5 = arith.constant 0 : index
    %c0_6 = arith.constant 0 : index
    %6 = vector.load %arg6[%c0_5, %c0_6] : memref<34x256xf32, #tpu.memory_space<vmem>>, vector<34x256xf32>
    %7 = arith.addf %5, %6 : vector<34x256xf32>
    %c0_7 = arith.constant 0 : index
    %c0_8 = arith.constant 0 : index
    %8 = vector.load %arg7[%c0_7, %c0_8] : memref<34x256xf32, #tpu.memory_space<vmem>>, vector<34x256xf32>
    tpu.vector_store %arg7[%c0_7, %c0_8], %7 {strides = array<i32>} : memref<34x256xf32, #tpu.memory_space<vmem>>, vector<34x256xf32>,
    return
  }
  func.func @transform_0(%arg0: i32, %arg1: i32, %arg2: i32) -> (i32, i32) {
    %c0_i32 = arith.constant 0 : i32
    return %arg0, %arg2 : i32, i32
  }
  func.func @transform_1(%arg0: i32, %arg1: i32, %arg2: i32) -> (i32, i32) {
    %c0_i32 = arith.constant 0 : i32
    return %arg2, %arg1 : i32, i32
  }
  func.func @transform_2(%arg0: i32, %arg1: i32, %arg2: i32) -> (i32, i32) {
    %c0_i32 = arith.constant 0 : i32
    %c0_i32_0 = arith.constant 0 : i32
    return %c0_i32, %arg1 : i32, i32
  }
  func.func @transform_3(%arg0: i32, %arg1: i32, %arg2: i32) -> (i32, i32) {
    %c0_i32 = arith.constant 0 : i32
    return %arg0, %arg1 : i32, i32
  }
  func.func @transform_4(%arg0: i32, %arg1: i32, %arg2: i32) -> (i32, i32) {
    %c0_i32 = arith.constant 0 : i32
    return %arg0, %arg1 : i32, i32
  }
}

module attributes {stable_mosaic.version = 11 : i64} {
  func.func @_fused_linear_kernel(%arg0: i32, %arg1: i32, %arg2: i32, %arg3: memref<34x256xf32, #tpu.memory_space<vmem>>, %arg4: memref<256x16xbf16, #tpu.memory_space<vmem>>, %arg5: memref<1x16xf32, #tpu.memory_space<vmem>>, %arg6: memref<1x256xf32, #tpu.memory_space<vmem>>, %arg7: memref<1x256xf32, #tpu.memory_space<vmem>>, %arg8: memref<34x16xf32, #tpu.memory_space<vmem>>) attributes {dimension_semantics = [#tpu.dimension_semantics<parallel>, #tpu.dimension_semantics<parallel>, #tpu.dimension_semantics<arbitrary>], iteration_bounds = array<i64: 1, 1, 1>, scalar_prefetch = 0 : i64, scratch_operands = 0 : i64, tpu.core_type = #tpu.core_type<tc>, window_params = [{transform_indices = @transform_0, window_bounds = array<i64: 34, 256>}, {transform_indices = @transform_1, window_bounds = array<i64: 256, 16>}, {transform_indices = @transform_2, window_bounds = array<i64: 1, 16>}, {pipeline_mode = #tpu.pipeline_mode<synchronous>, transform_indices = @transform_3, window_bounds = array<i64: 1, 256>}, {pipeline_mode = #tpu.pipeline_mode<synchronous>, transform_indices = @transform_4, window_bounds = array<i64: 1, 256>}, {transform_indices = @transform_5, window_bounds = array<i64: 34, 16>}]} {
    %c0 = arith.constant 0 : index
    %c0_0 = arith.constant 0 : index
    %0 = vector.load %arg3[%c0, %c0_0] : memref<34x256xf32, #tpu.memory_space<vmem>>, vector<34x256xf32>
    %cst = arith.constant dense<0.000000e+00> : vector<34xf32>
    %1 = vector.multi_reduction <add>, %0, %cst [1] : vector<34x256xf32> to vector<34xf32>
    %2 = vector.shape_cast %1 : vector<34xf32> to vector<34x1xf32>
    %cst_1 = arith.constant 2.560000e+02 : f32
    %3 = vector.broadcast %cst_1 : f32 to vector<34x1xf32>
    %4 = arith.divf %2, %3 : vector<34x1xf32>
    %5 = vector.broadcast %4 : vector<34x1xf32> to vector<34x256xf32>
    %6 = arith.subf %0, %5 : vector<34x256xf32>
    %7 = arith.mulf %6, %6 : vector<34x256xf32>
    %cst_2 = arith.constant dense<0.000000e+00> : vector<34xf32>
    %8 = vector.multi_reduction <add>, %7, %cst_2 [1] : vector<34x256xf32> to vector<34xf32>
    %9 = vector.shape_cast %8 : vector<34xf32> to vector<34x1xf32>
    %cst_3 = arith.constant 2.560000e+02 : f32
    %10 = vector.broadcast %cst_3 : f32 to vector<34x1xf32>
    %11 = arith.divf %9, %10 : vector<34x1xf32>
    %cst_4 = arith.constant 9.99999974E-6 : f32
    %12 = vector.broadcast %cst_4 : f32 to vector<34x1xf32>
    %13 = arith.addf %11, %12 : vector<34x1xf32>
    %14 = math.rsqrt %13 : vector<34x1xf32>
    %15 = vector.broadcast %14 : vector<34x1xf32> to vector<34x256xf32>
    %16 = arith.mulf %6, %15 : vector<34x256xf32>
    %c0_5 = arith.constant 0 : index
    %c0_6 = arith.constant 0 : index
    %17 = vector.load %arg6[%c0_5, %c0_6] : memref<1x256xf32, #tpu.memory_space<vmem>>, vector<1x256xf32>
    %18 = vector.broadcast %17 : vector<1x256xf32> to vector<34x256xf32>
    %19 = arith.mulf %16, %18 : vector<34x256xf32>
    %c0_7 = arith.constant 0 : index
    %c0_8 = arith.constant 0 : index
    %20 = vector.load %arg7[%c0_7, %c0_8] : memref<1x256xf32, #tpu.memory_space<vmem>>, vector<1x256xf32>
    %21 = vector.broadcast %20 : vector<1x256xf32> to vector<34x256xf32>
    %22 = arith.addf %19, %21 : vector<34x256xf32>
    %23 = arith.truncf %22 : vector<34x256xf32> to vector<34x256xbf16>
    %c0_9 = arith.constant 0 : index
    %c0_10 = arith.constant 0 : index
    %24 = vector.load %arg4[%c0_9, %c0_10] : memref<256x16xbf16, #tpu.memory_space<vmem>>, vector<256x16xbf16>
    %cst_11 = arith.constant dense<0.000000e+00> : vector<34x16xf32>
    %25 = tpu.matmul %23, %24, %cst_11 {dimension_numbers = #tpu.dot_dimension_numbers<[1], [0], [0], [1], [0, 0, 1, 1], [], []>} : vector<34x256xbf16>, vector<256x16xbf16>, vector<34x16xf32> -> vector<34x16xf32>
    %c0_12 = arith.constant 0 : index
    %c0_13 = arith.constant 0 : index
    %26 = vector.load %arg5[%c0_12, %c0_13] : memref<1x16xf32, #tpu.memory_space<vmem>>, vector<1x16xf32>
    %27 = vector.broadcast %26 : vector<1x16xf32> to vector<34x16xf32>
    %28 = arith.addf %25, %27 : vector<34x16xf32>
    %c0_14 = arith.constant 0 : index
    %c0_15 = arith.constant 0 : index
    %29 = vector.load %arg8[%c0_14, %c0_15] : memref<34x16xf32, #tpu.memory_space<vmem>>, vector<34x16xf32>
    tpu.vector_store %arg8[%c0_14, %c0_15], %28 {strides = array<i32>} : memref<34x16xf32, #tpu.memory_space<vmem>>, vector<34x16xf32>,
    return
  }
  func.func @transform_0(%arg0: i32, %arg1: i32, %arg2: i32) -> (i32, i32) {
    %c0_i32 = arith.constant 0 : i32
    return %arg0, %arg2 : i32, i32
  }
  func.func @transform_1(%arg0: i32, %arg1: i32, %arg2: i32) -> (i32, i32) {
    %c0_i32 = arith.constant 0 : i32
    return %arg2, %arg1 : i32, i32
  }
  func.func @transform_2(%arg0: i32, %arg1: i32, %arg2: i32) -> (i32, i32) {
    %c0_i32 = arith.constant 0 : i32
    %c0_i32_0 = arith.constant 0 : i32
    return %c0_i32, %arg1 : i32, i32
  }
  func.func @transform_3(%arg0: i32, %arg1: i32, %arg2: i32) -> (i32, i32) {
    %c0_i32 = arith.constant 0 : i32
    %c0_i32_0 = arith.constant 0 : i32
    %c0_i32_1 = arith.constant 0 : i32
    return %c0_i32, %c0_i32_0 : i32, i32
  }
  func.func @transform_4(%arg0: i32, %arg1: i32, %arg2: i32) -> (i32, i32) {
    %c0_i32 = arith.constant 0 : i32
    %c0_i32_0 = arith.constant 0 : i32
    %c0_i32_1 = arith.constant 0 : i32
    return %c0_i32, %c0_i32_0 : i32, i32
  }
  func.func @transform_5(%arg0: i32, %arg1: i32, %arg2: i32) -> (i32, i32) {
    %c0_i32 = arith.constant 0 : i32
    return %arg0, %arg1 : i32, i32
  }
}

module attributes {stable_mosaic.version = 11 : i64} {
  func.func @_loss_kernel(%arg0: i32, %arg1: memref<32x16xf32, #tpu.memory_space<vmem>>, %arg2: memref<32x16xf32, #tpu.memory_space<vmem>>, %arg3: memref<32x1xf32, #tpu.memory_space<vmem>>, %arg4: memref<1x16xf32, #tpu.memory_space<vmem>>, %arg5: memref<1x1xf32, #tpu.memory_space<vmem>>) attributes {dimension_semantics = [#tpu.dimension_semantics<arbitrary>], iteration_bounds = array<i64: 1>, scalar_prefetch = 0 : i64, scratch_operands = 0 : i64, tpu.core_type = #tpu.core_type<tc>, window_params = [{transform_indices = @transform_0, window_bounds = array<i64: 32, 16>}, {transform_indices = @transform_1, window_bounds = array<i64: 32, 16>}, {transform_indices = @transform_2, window_bounds = array<i64: 32, 1>}, {pipeline_mode = #tpu.pipeline_mode<synchronous>, transform_indices = @transform_3, window_bounds = array<i64: 1, 16>}, {pipeline_mode = #tpu.pipeline_mode<synchronous>, transform_indices = @transform_4, window_bounds = array<i64: 1, 1>}]} {
    %c0_i32 = arith.constant 0 : i32
    %0 = arith.cmpi eq, %arg0, %c0_i32 : i32
    %1 = arith.extui %0 : i1 to i32
    %c0_i32_0 = arith.constant 0 : i32
    %2 = arith.cmpi ne, %1, %c0_i32_0 : i32
    scf.if %2 {
      %cst_15 = arith.constant 0.000000e+00 : f32
      %20 = vector.broadcast %cst_15 : f32 to vector<1x16xf32>
      %c0_16 = arith.constant 0 : index
      %c0_17 = arith.constant 0 : index
      %21 = vector.load %arg4[%c0_16, %c0_17] : memref<1x16xf32, #tpu.memory_space<vmem>>, vector<1x16xf32>
      tpu.vector_store %arg4[%c0_16, %c0_17], %20 {strides = array<i32>} : memref<1x16xf32, #tpu.memory_space<vmem>>, vector<1x16xf32>,
      %cst_18 = arith.constant 0.000000e+00 : f32
      %22 = vector.broadcast %cst_18 : f32 to vector<1x1xf32>
      %c0_19 = arith.constant 0 : index
      %c0_20 = arith.constant 0 : index
      %23 = vector.load %arg5[%c0_19, %c0_20] : memref<1x1xf32, #tpu.memory_space<vmem>>, vector<1x1xf32>
      tpu.vector_store %arg5[%c0_19, %c0_20], %22 {strides = array<i32>} : memref<1x1xf32, #tpu.memory_space<vmem>>, vector<1x1xf32>,
    } else {
    }
    %c0 = arith.constant 0 : index
    %c0_1 = arith.constant 0 : index
    %3 = vector.load %arg1[%c0, %c0_1] : memref<32x16xf32, #tpu.memory_space<vmem>>, vector<32x16xf32>
    %c0_2 = arith.constant 0 : index
    %c0_3 = arith.constant 0 : index
    %4 = vector.load %arg2[%c0_2, %c0_3] : memref<32x16xf32, #tpu.memory_space<vmem>>, vector<32x16xf32>
    %5 = arith.subf %3, %4 : vector<32x16xf32>
    %c0_4 = arith.constant 0 : index
    %c0_5 = arith.constant 0 : index
    %6 = vector.load %arg3[%c0_4, %c0_5] : memref<32x1xf32, #tpu.memory_space<vmem>>, vector<32x1xf32>
    %c0_6 = arith.constant 0 : index
    %c0_7 = arith.constant 0 : index
    %7 = vector.load %arg4[%c0_6, %c0_7] : memref<1x16xf32, #tpu.memory_space<vmem>>, vector<1x16xf32>
    %8 = arith.mulf %5, %5 : vector<32x16xf32>
    %9 = vector.broadcast %6 : vector<32x1xf32> to vector<32x16xf32>
    %10 = arith.mulf %8, %9 : vector<32x16xf32>
    %cst = arith.constant dense<0.000000e+00> : vector<16xf32>
    %11 = vector.multi_reduction <add>, %10, %cst [0] : vector<32x16xf32> to vector<16xf32>
    %12 = vector.shape_cast %11 : vector<16xf32> to vector<1x16xf32>
    %13 = arith.addf %7, %12 : vector<1x16xf32>
    %c0_8 = arith.constant 0 : index
    %c0_9 = arith.constant 0 : index
    %14 = vector.load %arg4[%c0_8, %c0_9] : memref<1x16xf32, #tpu.memory_space<vmem>>, vector<1x16xf32>
    tpu.vector_store %arg4[%c0_8, %c0_9], %13 {strides = array<i32>} : memref<1x16xf32, #tpu.memory_space<vmem>>, vector<1x16xf32>,
    %c0_10 = arith.constant 0 : index
    %c0_11 = arith.constant 0 : index
    %15 = vector.load %arg5[%c0_10, %c0_11] : memref<1x1xf32, #tpu.memory_space<vmem>>, vector<1x1xf32>
    %cst_12 = arith.constant dense<0.000000e+00> : vector<1xf32>
    %16 = vector.multi_reduction <add>, %6, %cst_12 [0] : vector<32x1xf32> to vector<1xf32>
    %17 = vector.shape_cast %16 : vector<1xf32> to vector<1x1xf32>
    %18 = arith.addf %15, %17 : vector<1x1xf32>
    %c0_13 = arith.constant 0 : index
    %c0_14 = arith.constant 0 : index
    %19 = vector.load %arg5[%c0_13, %c0_14] : memref<1x1xf32, #tpu.memory_space<vmem>>, vector<1x1xf32>
    tpu.vector_store %arg5[%c0_13, %c0_14], %18 {strides = array<i32>} : memref<1x1xf32, #tpu.memory_space<vmem>>, vector<1x1xf32>,
    return
  }
  func.func @transform_0(%arg0: i32) -> (i32, i32) {
    %c0_i32 = arith.constant 0 : i32
    %c0_i32_0 = arith.constant 0 : i32
    return %arg0, %c0_i32 : i32, i32
  }
  func.func @transform_1(%arg0: i32) -> (i32, i32) {
    %c0_i32 = arith.constant 0 : i32
    %c0_i32_0 = arith.constant 0 : i32
    return %arg0, %c0_i32 : i32, i32
  }
  func.func @transform_2(%arg0: i32) -> (i32, i32) {
    %c0_i32 = arith.constant 0 : i32
    %c0_i32_0 = arith.constant 0 : i32
    return %arg0, %c0_i32 : i32, i32
  }
  func.func @transform_3(%arg0: i32) -> (i32, i32) {
    %c0_i32 = arith.constant 0 : i32
    %c0_i32_0 = arith.constant 0 : i32
    %c0_i32_1 = arith.constant 0 : i32
    return %c0_i32, %c0_i32_0 : i32, i32
  }
  func.func @transform_4(%arg0: i32) -> (i32, i32) {
    %c0_i32 = arith.constant 0 : i32
    %c0_i32_0 = arith.constant 0 : i32
    %c0_i32_1 = arith.constant 0 : i32
    return %c0_i32, %c0_i32_0 : i32, i32
  }
}

</mosaic_0001>

<bundles_post_ra>
// kernel: _lambda_.24
= control target key start
LH: loop header
LB: loop body
LE: loop exit
PB: predicated region body
PF: predicated region fallthrough
CT: control target
= control target key end

     0   :  { %8 = vsyncpa [#allocation3], 0  ;;  %s167_s12 = smov [#allocation2]   ;;  %s233_s0 = inlined_call_operand.vmem [shape: f32[32,16], index: 0, kind: input, shape index: {}]   ;;  %s234_s1 = inlined_call_operand.hbm [shape: bf16[16,256], index: 1, kind: input, shape index: {}]   ;;  %s235_s2 = inlined_call_operand.vmem [shape: f32[1,256], index: 2, kind: input, shape index: {}]   ;;  %s236_s3 = inlined_call_operand.vmem [shape: f32[32,256], index: 3, kind: output, shape index: {}]  }
   0x1   :  { %s16_s13 = sshll.u32 %s167_s12, 4  ;;  %s17_s13 = int_to_ptr.vmem [resolvable:$true] %s16_s13 }
   0x2   :  { %s153_s14 = scalar_lea.vmem %s17_s13, 256  ;;  %p158_p1 = scmp.lt.s32.totalorder %s17_s13, %s17_s13 }
   0x3   :  { %p154_p0 = scmp.ne.s32.totalorder %s17_s13, %s153_s14  ;;  %p159_p2 = scmp.lt.s32.totalorder %s153_s14, %s153_s14 }
   0x5   :  { %p160_p3 = por %p159_p2, %p158_p1 }
   0x7   :  { %p161_p4 = pnand %p160_p3, %p154_p0 }
   0x9   :  { %164 = shalt.err (!%p161_p4)
}
   0xa   :  { %s168_s15 = smov 128   ;;  %s169_s16 = smov 8  }
   0xb   :  { %22 = dma.hbm_to_vmem [thread:$0]  %s234_s1, 256, %s17_s13, [#allocation3], %s168_s15, %s168_s15, %s169_s16  }
   0xc   :  { %165 = dma.done.wait [#allocation3], 256  }
   0xd   :  { %166 = vsyncadd [#allocation3], 4294967040  ;;  %v170_v0 = vmov 0   ;;  %v142_v1 = vld [vmem:[#allocation2 + $0x4] ss:$8 sps:$4 sm:$0xff]   ;;  %v31_v6 = vld [vmem:[%s233_s0 + $0x10] sm:$0xff]  ;;  %v39_v9 = vlaneseq }
   0xe   :  { %98 = vmatprep.mubr.bf16.mxu0 %v170_v0  ;;  %108 = vmatprep.mubr.bf16.mxu1 %v170_v0  ;;  %v144_v2 = vld [vmem:[#allocation2] ss:$8 sps:$4 sm:$0xff]   ;;  %v32_v7 = vld [vmem:[%s233_s0 + $0x18] sm:$0xff]  ;;  %vm59_vm0 = vcmask 130048  }
   0xf   :  { %v29_v3 = vld [vmem:[%s233_s0] sm:$0xff]  ;;  %v30_v4 = vld [vmem:[%s233_s0 + $0x8] sm:$0xff]  ;;  %80 = vmatprep.subr.bf16.mxu0 %v142_v1  ;;  %136 = vmatprep.subr.bf16.mxu1 %v142_v1  ;;  %v34_v8 = vpack.c.bf16 %v32_v7, %v31_v6  ;;  %v40_v10 = vshrl.u32 %v39_v9, 7 }
  0x10   :  { %v33_v5 = vpack.c.bf16 %v30_v4, %v29_v3  ;;  %81 = vmatpush1.bf16.msra.mxu0 %v144_v2  ;;  %137 = vmatpush1.bf16.msra.mxu1 %v144_v2  ;;  %v37_v12 = vld [vmem:[%s235_s2] sm:$0x3] }
  0x11   :  { %v41_v11 = vsub.s32 0, %v40_v10  ;;  %v45_v13 = vsub.s32 1, %v40_v10 }
  0x13   :  { %134 = vmatmul.mubr.msk.bf16.vlgmr.msra.gmra.mxu0 %vm59_vm0, %v33_v5  ;;  %135 = vmatmul.mubr.msk.bf16.vlgmr.msra.gmra.mxu1 %vm59_vm0, %v34_v8  ;;  %v42_v14 = vrot.slane %v37_v12, %v41_v11  ;;  %v46_v15 = vrot.slane %v37_v12, %v45_v13 }
  0xd3   :  { %v100_v16 = vpop.f32.mrf.mxu0  ;;  %v110_v17 = vpop.f32.mrf.mxu1 }
  0xd4   :  { %v101_v18 = vadd.f32 %v100_v16, %v42_v14  ;;  %v111_v19 = vadd.f32 %v110_v17, %v42_v14 }
  0xd5   :  { %v102_v20 = vpop.f32.mrf.mxu0  ;;  %v112_v21 = vpop.f32.mrf.mxu1 }
  0xd6   :  { %119 = vst [vmem:[%s236_s3] sm:$0xff] %v101_v18  ;;  %123 = vst [vmem:[%s236_s3 + $0x20] sm:$0xff] %v111_v19  ;;  %v103_v22 = vadd.f32 %v102_v20, %v46_v15  ;;  %v113_v23 = vadd.f32 %v112_v21, %v46_v15 }
  0xd7   :  { %v104_v24 = vpop.f32.mrf.mxu0  ;;  %v114_v25 = vpop.f32.mrf.mxu1 }
  0xd8   :  { %120 = vst [vmem:[%s236_s3 + $0x8] sm:$0xff] %v103_v22  ;;  %124 = vst [vmem:[%s236_s3 + $0x28] sm:$0xff] %v113_v23  ;;  %v105_v26 = vadd.f32 %v104_v24, %v42_v14  ;;  %v115_v27 = vadd.f32 %v114_v25, %v42_v14 }
  0xd9   :  { %v106_v28 = vpop.f32.mrf.mxu0  ;;  %v116_v29 = vpop.f32.mrf.mxu1 }
  0xda   :  { %121 = vst [vmem:[%s236_s3 + $0x10] sm:$0xff] %v105_v26  ;;  %125 = vst [vmem:[%s236_s3 + $0x30] sm:$0xff] %v115_v27  ;;  %v107_v30 = vadd.f32 %v106_v28, %v46_v15  ;;  %v117_v31 = vadd.f32 %v116_v29, %v46_v15 }
  0xdc   :  { %122 = vst [vmem:[%s236_s3 + $0x18] sm:$0xff] %v107_v30  ;;  %126 = vst [vmem:[%s236_s3 + $0x38] sm:$0xff] %v117_v31 }
  0xdd   :  { %131 = vsyncpa [#allocation3], 1 }

// kernel: _lambda_.26
= control target key start
LH: loop header
LB: loop body
LE: loop exit
PB: predicated region body
PF: predicated region fallthrough
CT: control target
= control target key end

     0   :  { %s712_s12 = smov 0   ;;  %s714_s13 = smov 0   ;;  %s788_s0 = inlined_call_operand.vmem [shape: bf16[2,5,768], index: 0, kind: input, shape index: {}, may-alias: {0,1,2}]   ;;  %s789_s1 = inlined_call_operand.vmem [shape: bf16[2,5,768], index: 1, kind: input, shape index: {}, may-alias: {0,1,2}]   ;;  %s790_s2 = inlined_call_operand.vmem [shape: bf16[2,5,768], index: 2, kind: input, shape index: {}, may-alias: {0,1,2}]   ;;  %s791_s3 = inlined_call_operand.vmem [shape: bf16[2,5,256], index: 3, kind: output, shape index: {}]  }
   0x1   :  { %s716_s14 = smov 0   ;;  %s718_s15 = smov 0  }
   0x2   :  { %s720_s16 = smov 0  }
   0x3 LB: > { %s28_s17 = sadd.s32 1, %s679_s14  ;;  %s32_s18 = sadd.s32 1, %s683_s15  ;;  %s687_s16 = sphi %s720_s16, %s13_s16   ;;  %s683_s15 = sphi %s718_s15, %s795_s15   ;;  %s679_s14 = sphi %s716_s14, %s794_s14   ;;  %s675_s13 = sphi %s714_s13, %s793_s13   ;;  %s671_s12 = sphi %s712_s12, %s792_s12  }
   0x4   : > { %p30_p0 = scmp.ge.s32.totalorder %s28_s17, 2  ;;  %p576_p1 = scmp.ge.s32.totalorder %s687_s16, 1 }
   0x5   : > { %p209_p2 = scmp.lt.s32.totalorder %s687_s16, 5 }
   0x6   : > { %s797_s17 = smov (%p30_p0, %s28_s17), 0  ;;  %s799_s18 = smov (!%p30_p0, %s32_s18), %s683_s15 }
   0x7   : > { %p210_p3 = pnand %p576_p1, %p209_p2  ;;  %p34_p4 = scmp.ge.s32.totalorder %s799_s18, 2 }
   0x8   : > { %p265_p5 = scmp.lt.s32.totalorder (!%p210_p3), %s675_s13, 1  ;;  %s277_s19 = sadd.s32 (!%p210_p3), 2, %s671_s12 }
   0x9   : > { %s801_s18 = smov (%p34_p4, %s799_s18), 0  ;;  %213 = sbr.rel (%p210_p3) target bundleno = 736 (0x2e0), region = 32 }
   0xa   : > { %p280_p6 = scmp.lt.s32.totalorder (!%p210_p3), %s277_s19, 5  ;;  %p269_p7 = scmp.lt.s32.totalorder (!%p210_p3), %s671_s12, 5 }
   0xb   : > { %s287_s5 = sadd.s32 (!%p210_p3), 4, %s671_s12  ;;  %p301_p9 = scmp.lt.s32.totalorder (!%p210_p3), %s671_s12, 1 }
   0xc   : > { %p290_p8 = scmp.lt.s32.totalorder (!%p210_p3), %s287_s5, 5 }
   0xe   : > { %v689_v0 = vmov 0.0   ;;  %vm690_vm0 = vmmov 0   ;;  %s803_s13 = smov (!%p265_p5, %s675_s13), 1  ;;  %s805_s19 = smov (!%p280_p6, %s277_s19), 5  ;;  %vm354_vm1 = vcmask 36864   ;;  %vm371_vm2 = vcmask 1041408  }
   0xf   : > { %589 = vmatprep.subr.bf16.mxu0 %v689_v0  ;;  %591 = vmatprep.mubr.msk.bf16.mxu0 %vm690_vm0, %v689_v0  ;;  %s749_s20 = smul.u32 6, %s803_s13  ;;  %s807_s5 = smov (!%p290_p8, %s287_s5), 5  ;;  %vm372_vm3 = vcmask 1042432   ;;  %v691_v14 = vmov 65535   ;;  %vm367_vm4 = vcmask 39936  }
  0x10   : > { %595 = vmatprep.subr.bf16.mxu1 %v689_v0  ;;  %597 = vmatprep.mubr.msk.bf16.mxu1 %vm690_vm0, %v689_v0  ;;  %s270_s21 = scalar_select %p269_p7, %s671_s12, 5  ;;  %v373_v15 = vsel %vm371_vm2, 4294967295, %v691_v14  ;;  %vm420_vm5 = vsmask.f32 2304 }
  0x11   : > { %s283_s22 = sadd.s32 %s749_s20, %s805_s19  ;;  %s293_s6 = sadd.s32 %s749_s20, %s807_s5  ;;  %v374_v16 = vsel %vm372_vm3, %v373_v15, 0  ;;  %vm421_vm6 = vmand %vm372_vm3, %vm420_vm5 }
  0x12   : > { %s578_s23 = sshll.u32 %s283_s22, 2  ;;  %s274_s24 = sadd.s32 %s749_s20, %s270_s21 }
  0x13   : > { %s285_s27 = scalar_lea.vmem %s789_s1, %s578_s23  ;;  %s577_s28 = sshll.u32 %s274_s24, 2 }
  0x14   : > { %v311_v1 = vld [vmem:[%s285_s27] sm:$0x7]  ;;  %s276_s4 = scalar_lea.vmem %s788_s0, %s577_s28  ;;  %s579_s7 = sshll.u32 %s293_s6, 2 }
  0x15   : > { %590 = vmatpush3.bf16.xpose.msra.mxu0 %v311_v1  ;;  %v310_v2 = vld [vmem:[%s276_s4] sm:$0x7]  ;;  %s295_s10 = scalar_lea.vmem %s790_s2, %s579_s7  ;;  %s809_s12 = smov (!%p301_p9, %s671_s12), 1 }
  0x16   : > { %v312_v17 = vld [vmem:[%s295_s10] sm:$0x7]  ;;  %s580_s11 = sshll.u32 %s803_s13, 1 }
  0x17   : > { %v376_v18 = vand.u32 %v374_v16, %v312_v17  ;;  %s306_s19 = sadd.s32 %s580_s11, %s809_s12 }
  0x18   : > { %s581_s20 = sshll.u32 %s306_s19, 2 }
  0x19   : > { %596 = vmatpush3.bf16.msra.mxu1 %v376_v18  ;;  %s308_s23 = scalar_lea.vmem %s791_s3, %s581_s20 }
  0x1a   : > { %v422_v24 = vld [vmem:[%s308_s23] sm:$0x7] }
  0x1c   : > { %592 = vmatmul.mubr.bf16.vlgmr.msra.gmra.mxu0 %v310_v2 }
  0xdc   : > { %v347_v3 = vpop.f32.mrf.mxu0 }
  0xdd   : > { %v353_v4 = vmul.f32 0.088388346, %v347_v3 }
  0xde   : > { %v593_v5 = vpop.f32.mrf.mxu0 }
  0xdf   : > { %v355_v6 = vsel %vm354_vm1, %v353_v4, -inf }
  0xe0   : > { %356 = vmax.xlane.f32.xlu0 %v355_v6  ;;  %v350_v7 = vpop.f32.mrf.mxu0 }
  0xe2   : > { %v594_v8 = vpop.f32.mrf.mxu0 }
 0x169   : > { %v357_v9 = vpop.xlane.xlu0 %356 }
 0x16a   : > { %v358_v10 = vsub.f32 %v353_v4, %v357_v9 }
 0x16c   : > { %v359_v11 = vmul.f32 1.442695, %v358_v10 }
 0x16e   : > { %645 = vpow2.f32 %v359_v11 }
 0x17b   : > { %v646_v12 = vpop.eup %645 }
 0x17c   : > { %v361_v13 = vsel %vm354_vm1, %v646_v12, 0.0 }
 0x17d   : > { %362 = vadd.xlane.f32.xlu0 %v361_v13 }
 0x206   : > { %v363_v19 = vpop.xlane.xlu0 %362 }
 0x207   : > { %647 = vrcp.f32 %v363_v19 }
 0x214   : > { %v648_v20 = vpop.eup %647 }
 0x215   : > { %v365_v21 = vmul.f32 %v648_v20, %v646_v12 }
 0x217   : > { %v366_v22 = vpack.c.bf16 %v365_v21, %v365_v21 }
 0x219   : > { %598 = vmatmul.mubr.msk.bf16.vlgmr.msra.gmra.mxu1 %vm367_vm4, %v366_v22 }
 0x2d9   : > { %v412_v23 = vpop.f32.mrf.mxu1 }
 0x2da   : > { %v418_v25 = vpack.c.bf16 %v412_v23, %v412_v23 }
 0x2db   : > { %v599_v26 = vpop.f32.mrf.mxu1 }
 0x2dc   : > { %v423_v27 = vsel %vm421_vm6, %v418_v25, %v422_v24 }
 0x2dd   : > { %424 = vst [vmem:[%s308_s23] sm:$0x7] %v423_v27  ;;  %v415_v28 = vpop.f32.mrf.mxu1 }
 0x2df   : > { %v600_v29 = vpop.f32.mrf.mxu1 }
 0x2e0 PF: > { %s13_s16 = sadd.s32 1, %s687_s16   ;;  %s792_s12 = smov %s679_s14 }
 0x2e1   : > { %p10_p10 = scmp.ge.s32.totalorder %s13_s16, 6   ;;  %s793_s13 = smov %s683_s15 }
 0x2e2   : > { %s794_s14 = smov %s797_s17  ;;  %s795_s15 = smov %s801_s18 }
 0x2e3   :  { %12 = sbr.rel (!%p10_p10) target bundleno = 3 (0x3), region = 68 }

// kernel: _lambda_.25
= control target key start
LH: loop header
LB: loop body
LE: loop exit
PB: predicated region body
PF: predicated region fallthrough
CT: control target
= control target key end

     0   :  { %s1522_s18 = smov 0   ;;  %s1524_s19 = smov 0   ;;  %s1821_s0 = inlined_call_operand.vmem [shape: f32[10,256], index: 0, kind: input, shape index: {}]   ;;  %s1822_s1 = inlined_call_operand.vmem [shape: bf16[256,768], index: 1, kind: input, shape index: {}]   ;;  %s1823_s2 = inlined_call_operand.vmem [shape: f32[1,768], index: 2, kind: input, shape index: {}]   ;;  %s1824_s3 = inlined_call_operand.vmem [shape: f32[1,256], index: 3, kind: input, shape index: {}]   ;;  %s1825_s4 = inlined_call_operand.vmem [shape: f32[1,256], index: 4, kind: input, shape index: {}]   ;;  %s1826_s5 = inlined_call_operand.vmem [shape: bf16[10,768], index: 5, kind: output, shape index: {}]  }
   0x1   :  { %s1526_s20 = smov 0   ;;  %s1528_s21 = smov 0  }
   0x2   :  { %s1530_s22 = smov 0  }
   0x3 LB: > { %s30_s23 = sadd.s32 1, %s1486_s21  ;;  %s1173_s24 = sadd.s32 4294967295, %s1490_s22   ;;  %s1490_s22 = sphi %s1530_s22, %s15_s22   ;;  %s1486_s21 = sphi %s1528_s21, %s1831_s21   ;;  %s1482_s20 = sphi %s1526_s20, %s1830_s20   ;;  %s1478_s19 = sphi %s1524_s19, %s1829_s19   ;;  %s1474_s18 = sphi %s1522_s18, %s1828_s18  }
   0x4   : > { %p32_p0 = scmp.ge.s32.totalorder %s30_s23, 2  ;;  %p78_p1 = scmp.ne.s32.totalorder %s1478_s19, %s1474_s18 }
   0x5   : > { %p79_p2 = scmp.eq.s32.totalorder %s1490_s22, 0  ;;  %p178_p4 = scmp.eq.s32.totalorder %s1173_s24, 1 }
   0x6   : > { %s1833_s23 = smov (%p32_p0, %s30_s23), 0  ;;  %s71_s26 = sadd.s32 1, %s1478_s19 }
   0x7   : > { %p80_p3 = por %p79_p2, %p78_p1  ;;  %s67_s25 = ssub.s32 %s1486_s21, %s1833_s23 }
   0x8   : > { %p69_p5 = scmp.eq.s32.totalorder %s67_s25, 0  ;;  %p1557_p6 = por %p178_p4, %p78_p1 }
   0x9   : > { %p1177_p7 = scmp.ge.s32.totalorder %s1490_s22, 2 }
   0xa   : > { %s1562_s28 = scalar_select %p69_p5, %s1478_s19, %s71_s26  }
   0xb   : > { %221 = sbr.rel (%p1177_p7) target bundleno = 58 (0x3a), region = 28 }
  0x10   : > { %224 = sbr.rel (!%p80_p3) target bundleno = 58 (0x3a), region = 32  ;;  %s226_s29 = sand.u32 (%p80_p3), 1, %s1478_s19  }
  0x11   : > { %s1308_s30 = smul.u32 (%p80_p3), 12, %s1486_s21 }
  0x12   : > { %s1338_s6 = smul.u32 (%p80_p3), 384, %s226_s29 }
  0x13   : > { %s1570_s9 = scalar_lea.vmem (%p80_p3), %s1822_s1, %s1308_s30 }
  0x14   : > { %v249_v0 = vld [vmem:[%s1570_s9] sm:$0xff] (%p80_p3)  ;;  %v251_v1 = vld [vmem:[%s1570_s9 + $0x18] sm:$0xff] (%p80_p3)  ;;  %v253_v2 = vld [vmem:[%s1570_s9 + $0x30] sm:$0xff] (%p80_p3)  ;;  %s1575_s10 = scalar_lea.vmem (%p80_p3), [#allocation3], %s1338_s6 }
  0x15   : > { %250 = vst [vmem:[%s1575_s10] sm:$0xff] %v249_v0  ;;  %252 = vst [vmem:[%s1575_s10 + $0xc] sm:$0xff] %v251_v1  ;;  %v255_v3 = vld [vmem:[%s1570_s9 + $0x48] sm:$0xff]  ;;  %v257_v4 = vld [vmem:[%s1570_s9 + $0x60] sm:$0xff] }
  0x16   : > { %254 = vst [vmem:[%s1575_s10 + $0x18] sm:$0xff] %v253_v2  ;;  %v259_v5 = vld [vmem:[%s1570_s9 + $0x78] sm:$0xff]  ;;  %256 = vst [vmem:[%s1575_s10 + $0x24] sm:$0xff] %v255_v3  ;;  %v261_v6 = vld [vmem:[%s1570_s9 + $0x90] sm:$0xff] }
  0x17   : > { %258 = vst [vmem:[%s1575_s10 + $0x30] sm:$0xff] %v257_v4  ;;  %260 = vst [vmem:[%s1575_s10 + $0x3c] sm:$0xff] %v259_v5  ;;  %v263_v7 = vld [vmem:[%s1570_s9 + $0xa8] sm:$0xff]  ;;  %v265_v8 = vld [vmem:[%s1570_s9 + $0xc0] sm:$0xff] }
  0x18   : > { %262 = vst [vmem:[%s1575_s10 + $0x48] sm:$0xff] %v261_v6  ;;  %264 = vst [vmem:[%s1575_s10 + $0x54] sm:$0xff] %v263_v7  ;;  %v267_v9 = vld [vmem:[%s1570_s9 + $0xd8] sm:$0xff]  ;;  %v269_v10 = vld [vmem:[%s1570_s9 + $0xf0] sm:$0xff] }
  0x19   : > { %266 = vst [vmem:[%s1575_s10 + $0x60] sm:$0xff] %v265_v8  ;;  %v271_v11 = vld [vmem:[%s1570_s9 + $0x108] sm:$0xff]  ;;  %268 = vst [vmem:[%s1575_s10 + $0x6c] sm:$0xff] %v267_v9  ;;  %v273_v12 = vld [vmem:[%s1570_s9 + $0x120] sm:$0xff] }
  0x1a   : > { %270 = vst [vmem:[%s1575_s10 + $0x78] sm:$0xff] %v269_v10  ;;  %272 = vst [vmem:[%s1575_s10 + $0x84] sm:$0xff] %v271_v11  ;;  %v275_v13 = vld [vmem:[%s1570_s9 + $0x138] sm:$0xff]  ;;  %v277_v14 = vld [vmem:[%s1570_s9 + $0x150] sm:$0xff] }
  0x1b   : > { %274 = vst [vmem:[%s1575_s10 + $0x90] sm:$0xff] %v273_v12  ;;  %276 = vst [vmem:[%s1575_s10 + $0x9c] sm:$0xff] %v275_v13  ;;  %v279_v15 = vld [vmem:[%s1570_s9 + $0x168] sm:$0xff]  ;;  %v281_v16 = vld [vmem:[%s1570_s9 + $0x180] sm:$0xff] }
  0x1c   : > { %278 = vst [vmem:[%s1575_s10 + $0xa8] sm:$0xff] %v277_v14  ;;  %v283_v17 = vld [vmem:[%s1570_s9 + $0x198] sm:$0xff]  ;;  %280 = vst [vmem:[%s1575_s10 + $0xb4] sm:$0xff] %v279_v15  ;;  %v285_v18 = vld [vmem:[%s1570_s9 + $0x1b0] sm:$0xff] }
  0x1d   : > { %282 = vst [vmem:[%s1575_s10 + $0xc0] sm:$0xff] %v281_v16  ;;  %284 = vst [vmem:[%s1575_s10 + $0xcc] sm:$0xff] %v283_v17  ;;  %v287_v19 = vld [vmem:[%s1570_s9 + $0x1c8] sm:$0xff]  ;;  %v289_v20 = vld [vmem:[%s1570_s9 + $0x1e0] sm:$0xff] }
  0x1e   : > { %286 = vst [vmem:[%s1575_s10 + $0xd8] sm:$0xff] %v285_v18  ;;  %288 = vst [vmem:[%s1575_s10 + $0xe4] sm:$0xff] %v287_v19  ;;  %v291_v21 = vld [vmem:[%s1570_s9 + $0x1f8] sm:$0xff]  ;;  %v293_v22 = vld [vmem:[%s1570_s9 + $0x210] sm:$0xff] }
  0x1f   : > { %290 = vst [vmem:[%s1575_s10 + $0xf0] sm:$0xff] %v289_v20  ;;  %v295_v23 = vld [vmem:[%s1570_s9 + $0x228] sm:$0xff]  ;;  %292 = vst [vmem:[%s1575_s10 + $0xfc] sm:$0xff] %v291_v21  ;;  %v297_v24 = vld [vmem:[%s1570_s9 + $0x240] sm:$0xff] }
  0x20   : > { %294 = vst [vmem:[%s1575_s10 + $0x108] sm:$0xff] %v293_v22  ;;  %296 = vst [vmem:[%s1575_s10 + $0x114] sm:$0xff] %v295_v23  ;;  %v299_v25 = vld [vmem:[%s1570_s9 + $0x258] sm:$0xff]  ;;  %v301_v26 = vld [vmem:[%s1570_s9 + $0x270] sm:$0xff] }
  0x21   : > { %298 = vst [vmem:[%s1575_s10 + $0x120] sm:$0xff] %v297_v24  ;;  %300 = vst [vmem:[%s1575_s10 + $0x12c] sm:$0xff] %v299_v25  ;;  %v303_v27 = vld [vmem:[%s1570_s9 + $0x288] sm:$0xff]  ;;  %v305_v28 = vld [vmem:[%s1570_s9 + $0x2a0] sm:$0xff] }
  0x22   : > { %302 = vst [vmem:[%s1575_s10 + $0x138] sm:$0xff] %v301_v26  ;;  %v307_v29 = vld [vmem:[%s1570_s9 + $0x2b8] sm:$0xff]  ;;  %304 = vst [vmem:[%s1575_s10 + $0x144] sm:$0xff] %v303_v27  ;;  %v309_v30 = vld [vmem:[%s1570_s9 + $0x2d0] sm:$0xff] }
  0x23   : > { %306 = vst [vmem:[%s1575_s10 + $0x150] sm:$0xff] %v305_v28  ;;  %308 = vst [vmem:[%s1575_s10 + $0x15c] sm:$0xff] %v307_v29  ;;  %v311_v31 = vld [vmem:[%s1570_s9 + $0x2e8] sm:$0xff]  ;;  %v1181_v33 = vld [vmem:[%s1570_s9 + $0x20] sm:$0xf] }
  0x24   : > { %v1179_v32 = vld [vmem:[%s1570_s9 + $0x8] sm:$0xf]  ;;  %310 = vst [vmem:[%s1575_s10 + $0x168] sm:$0xff] %v309_v30  ;;  %312 = vst [vmem:[%s1575_s10 + $0x174] sm:$0xff] %v311_v31  ;;  %v1183_v34 = vld [vmem:[%s1570_s9 + $0x38] sm:$0xf] }
  0x25   : > { %1180 = vst [vmem:[%s1575_s10 + $0x8] sm:$0xf] %v1179_v32  ;;  %v1185_v35 = vld [vmem:[%s1570_s9 + $0x50] sm:$0xf]  ;;  %1182 = vst [vmem:[%s1575_s10 + $0x14] sm:$0xf] %v1181_v33 }
  0x26   : > { %1184 = vst [vmem:[%s1575_s10 + $0x20] sm:$0xf] %v1183_v34  ;;  %1186 = vst [vmem:[%s1575_s10 + $0x2c] sm:$0xf] %v1185_v35  ;;  %v1187_v36 = vld [vmem:[%s1570_s9 + $0x68] sm:$0xf] }
  0x27   : > { %v1189_v37 = vld [vmem:[%s1570_s9 + $0x80] sm:$0xf]  ;;  %v1191_v38 = vld [vmem:[%s1570_s9 + $0x98] sm:$0xf]  ;;  %1188 = vst [vmem:[%s1575_s10 + $0x38] sm:$0xf] %v1187_v36 }
  0x28   : > { %1190 = vst [vmem:[%s1575_s10 + $0x44] sm:$0xf] %v1189_v37  ;;  %1192 = vst [vmem:[%s1575_s10 + $0x50] sm:$0xf] %v1191_v38  ;;  %v1193_v39 = vld [vmem:[%s1570_s9 + $0xb0] sm:$0xf] }
  0x29   : > { %v1195_v40 = vld [vmem:[%s1570_s9 + $0xc8] sm:$0xf]  ;;  %v1197_v41 = vld [vmem:[%s1570_s9 + $0xe0] sm:$0xf]  ;;  %1194 = vst [vmem:[%s1575_s10 + $0x5c] sm:$0xf] %v1193_v39 }
  0x2a   : > { %1196 = vst [vmem:[%s1575_s10 + $0x68] sm:$0xf] %v1195_v40  ;;  %1198 = vst [vmem:[%s1575_s10 + $0x74] sm:$0xf] %v1197_v41  ;;  %v1199_v42 = vld [vmem:[%s1570_s9 + $0xf8] sm:$0xf] }
  0x2b   : > { %v1201_v43 = vld [vmem:[%s1570_s9 + $0x110] sm:$0xf]  ;;  %v1203_v44 = vld [vmem:[%s1570_s9 + $0x128] sm:$0xf]  ;;  %1200 = vst [vmem:[%s1575_s10 + $0x80] sm:$0xf] %v1199_v42 }
  0x2c   : > { %1202 = vst [vmem:[%s1575_s10 + $0x8c] sm:$0xf] %v1201_v43  ;;  %1204 = vst [vmem:[%s1575_s10 + $0x98] sm:$0xf] %v1203_v44  ;;  %v1205_v45 = vld [vmem:[%s1570_s9 + $0x140] sm:$0xf] }
  0x2d   : > { %v1207_v46 = vld [vmem:[%s1570_s9 + $0x158] sm:$0xf]  ;;  %v1209_v47 = vld [vmem:[%s1570_s9 + $0x170] sm:$0xf]  ;;  %1206 = vst [vmem:[%s1575_s10 + $0xa4] sm:$0xf] %v1205_v45 }
  0x2e   : > { %1208 = vst [vmem:[%s1575_s10 + $0xb0] sm:$0xf] %v1207_v46  ;;  %1210 = vst [vmem:[%s1575_s10 + $0xbc] sm:$0xf] %v1209_v47  ;;  %v1211_v48 = vld [vmem:[%s1570_s9 + $0x188] sm:$0xf] }
  0x2f   : > { %v1213_v49 = vld [vmem:[%s1570_s9 + $0x1a0] sm:$0xf]  ;;  %v1215_v50 = vld [vmem:[%s1570_s9 + $0x1b8] sm:$0xf]  ;;  %1212 = vst [vmem:[%s1575_s10 + $0xc8] sm:$0xf] %v1211_v48 }
  0x30   : > { %1214 = vst [vmem:[%s1575_s10 + $0xd4] sm:$0xf] %v1213_v49  ;;  %1216 = vst [vmem:[%s1575_s10 + $0xe0] sm:$0xf] %v1215_v50  ;;  %v1217_v51 = vld [vmem:[%s1570_s9 + $0x1d0] sm:$0xf] }
  0x31   : > { %v1219_v52 = vld [vmem:[%s1570_s9 + $0x1e8] sm:$0xf]  ;;  %v1221_v53 = vld [vmem:[%s1570_s9 + $0x200] sm:$0xf]  ;;  %1218 = vst [vmem:[%s1575_s10 + $0xec] sm:$0xf] %v1217_v51 }
  0x32   : > { %1220 = vst [vmem:[%s1575_s10 + $0xf8] sm:$0xf] %v1219_v52  ;;  %1222 = vst [vmem:[%s1575_s10 + $0x104] sm:$0xf] %v1221_v53  ;;  %v1223_v54 = vld [vmem:[%s1570_s9 + $0x218] sm:$0xf] }
  0x33   : > { %v1225_v55 = vld [vmem:[%s1570_s9 + $0x230] sm:$0xf]  ;;  %v1227_v56 = vld [vmem:[%s1570_s9 + $0x248] sm:$0xf]  ;;  %1224 = vst [vmem:[%s1575_s10 + $0x110] sm:$0xf] %v1223_v54 }
  0x34   : > { %1226 = vst [vmem:[%s1575_s10 + $0x11c] sm:$0xf] %v1225_v55  ;;  %1228 = vst [vmem:[%s1575_s10 + $0x128] sm:$0xf] %v1227_v56  ;;  %v1229_v57 = vld [vmem:[%s1570_s9 + $0x260] sm:$0xf] }
  0x35   : > { %v1231_v58 = vld [vmem:[%s1570_s9 + $0x278] sm:$0xf]  ;;  %v1233_v59 = vld [vmem:[%s1570_s9 + $0x290] sm:$0xf]  ;;  %1230 = vst [vmem:[%s1575_s10 + $0x134] sm:$0xf] %v1229_v57 }
  0x36   : > { %1232 = vst [vmem:[%s1575_s10 + $0x140] sm:$0xf] %v1231_v58  ;;  %1234 = vst [vmem:[%s1575_s10 + $0x14c] sm:$0xf] %v1233_v59  ;;  %v1235_v60 = vld [vmem:[%s1570_s9 + $0x2a8] sm:$0xf] }
  0x37   : > { %v1237_v61 = vld [vmem:[%s1570_s9 + $0x2c0] sm:$0xf]  ;;  %v1239_v62 = vld [vmem:[%s1570_s9 + $0x2d8] sm:$0xf]  ;;  %1236 = vst [vmem:[%s1575_s10 + $0x158] sm:$0xf] %v1235_v60 }
  0x38   : > { %1238 = vst [vmem:[%s1575_s10 + $0x164] sm:$0xf] %v1237_v61  ;;  %1240 = vst [vmem:[%s1575_s10 + $0x170] sm:$0xf] %v1239_v62  ;;  %v1241_v63 = vld [vmem:[%s1570_s9 + $0x2f0] sm:$0xf] }
  0x39   : > { %1242 = vst [vmem:[%s1575_s10 + $0x17c] sm:$0xf] %v1241_v63 }
  0x3a PF: > { %p1243_p8 = scmp.ge.s32.totalorder %s1490_s22, 1  ;;  %p397_p9 = scmp.lt.s32.totalorder %s1490_s22, 3 }
  0x3c   : > { %p398_p10 = pnand %p1243_p8, %p397_p9 }
  0x3d   : > { %s404_s11 = sand.u32 (!%p398_p10), 1, %s1474_s18   ;;  %s458_s12 = smul.u32 (!%p398_p10), 3, %s1482_s20 }
  0x3e   : > { %401 = sbr.rel (%p398_p10) target bundleno = 672 (0x2a0), region = 62  ;;  %p1244_p12 = scmp.ne.s32.totalorder (!%p398_p10), %s1482_s20, 0 }
  0x3f   : > { %s1339_s13 = smul.u32 (!%p398_p10), 384, %s404_s11  ;;  %p459_p11 = scmp.lt.s32.totalorder (!%p398_p10), %s458_s12, 5 }
  0x40   : > { %s1340_s14 = smul.u32 (!%p398_p10), 24, %s404_s11 }
  0x41   : > { %s1712_s24 = scalar_lea.vmem (!%p398_p10), [#allocation3], %s1339_s13 }
  0x42   : > { %s1714_s25 = scalar_lea.vmem (!%p398_p10), [#allocation4], %s1340_s14 }
  0x43   : > { %s1835_s12 = smov (!%p459_p11, %s458_s12), 5  ;;  %469 = sbr.rel (%p1244_p12) target bundleno = 395 (0x18b), region = 70 }
  0x44   : > { %s461_s17 = scalar_lea.vmem %s1823_s2, %s1835_s12 }
  0x48   : > { %v472_v0 = vld [vmem:[%s1821_s0 + $0x10] sm:$0x3]  ;;  %v473_v1 = vld [vmem:[%s1821_s0 + $0x18] sm:$0x3]  ;;  %vm477_vm0 = vcmask 1041408   ;;  %v470_v4 = vld [vmem:[%s1821_s0] sm:$0xff]  ;;  %v514_v28 = vlaneseq }
  0x49   : > { %v478_v2 = vsel %vm477_vm0, %v472_v0, 0.0  ;;  %v479_v3 = vsel %vm477_vm0, %v473_v1, 0.0  ;;  %v471_v5 = vld [vmem:[%s1821_s0 + $0x8] sm:$0xff]  ;;  %v512_v34 = vld [vmem:[%s1824_s3] sm:$0x3] }
  0x4a   : > { %v480_v6 = vadd.f32 %v479_v3, %v478_v2  ;;  %v474_v7 = vadd.f32 %v471_v5, %v470_v4  ;;  %v515_v31 = vshrl.u32 %v514_v28, 7  ;;  %v528_v35 = vld [vmem:[%s1825_s4] sm:$0x3] }
  0x4c   : > { %481 = vadd.xlane.f32.xlu0 %v480_v6  ;;  %v516_v32 = vsub.s32 0, %v515_v31  ;;  %v520_v33 = vsub.s32 1, %v515_v31 }
  0x4e   : > { %v517_v36 = vrot.slane %v512_v34, %v516_v32  ;;  %v521_v37 = vrot.slane %v512_v34, %v520_v33  ;;  %v533_v39 = vrot.slane %v528_v35, %v516_v32  ;;  %v537_v40 = vrot.slane %v528_v35, %v520_v33 }
  0x50   : > { %475 = vadd.xlane.f32.xlu0 %v474_v7 }
  0xd5   : > { %v482_v8 = vpop.xlane.xlu0 %481 }
  0xd6   : > { %v485_v9 = vmul.f32 0.00390625, %v482_v8 }
  0xd8   : > { %v488_v10 = vsub.f32 %v472_v0, %v485_v9  ;;  %v489_v11 = vsub.f32 %v473_v1, %v485_v9 }
  0xd9   : > { %v476_v12 = vpop.xlane.xlu0 %475 }
  0xda   : > { %v484_v13 = vmul.f32 0.00390625, %v476_v12  ;;  %v492_v16 = vmul.f32 %v488_v10, %v488_v10  ;;  %v493_v17 = vmul.f32 %v489_v11, %v489_v11 }
  0xdc   : > { %v486_v14 = vsub.f32 %v470_v4, %v484_v13  ;;  %v487_v15 = vsub.f32 %v471_v5, %v484_v13  ;;  %v497_v21 = vsel %vm477_vm0, %v492_v16, 0.0  ;;  %v498_v22 = vsel %vm477_vm0, %v493_v17, 0.0 }
  0xdd   : > { %v499_v23 = vadd.f32 %v498_v22, %v497_v21 }
  0xde   : > { %v490_v18 = vmul.f32 %v486_v14, %v486_v14  ;;  %v491_v19 = vmul.f32 %v487_v15, %v487_v15 }
  0xe0   : > { %v494_v20 = vadd.f32 %v491_v19, %v490_v18 }
  0xe2   : > { %495 = vadd.xlane.f32.xlu1 %v494_v20 }
  0xe6   : > { %500 = vadd.xlane.f32.xlu1 %v499_v23 }
 0x16b   : > { %v496_v24 = vpop.xlane.xlu1 %495 }
 0x16c   : > { %v502_v25 = vmul.f32 0.00390625, %v496_v24 }
 0x16e   : > { %v504_v26 = vadd.f32 1e-05, %v502_v25 }
 0x16f   : > { %v501_v27 = vpop.xlane.xlu1 %500 }
 0x170   : > { %1381 = vrsqrt.f32 %v504_v26  ;;  %v503_v29 = vmul.f32 0.00390625, %v501_v27 }
 0x172   : > { %v505_v30 = vadd.f32 1e-05, %v503_v29 }
 0x174   : > { %1383 = vrsqrt.f32 %v505_v30 }
 0x17d   : > { %v1382_v38 = vpop.eup %1381 }
 0x17e   : > { %v508_v41 = vmul.f32 %v1382_v38, %v486_v14  ;;  %v509_v42 = vmul.f32 %v1382_v38, %v487_v15 }
 0x180   : > { %v524_v43 = vmul.f32 %v517_v36, %v508_v41  ;;  %v525_v44 = vmul.f32 %v521_v37, %v509_v42 }
 0x181   : > { %v1384_v45 = vpop.eup %1383 }
 0x182   : > { %v540_v46 = vadd.f32 %v533_v39, %v524_v43  ;;  %v541_v47 = vadd.f32 %v537_v40, %v525_v44  ;;  %v510_v48 = vmul.f32 %v1384_v45, %v488_v10  ;;  %v511_v49 = vmul.f32 %v1384_v45, %v489_v11 }
 0x184   : > { %v1309_v50 = vpack.c.bf16 %v541_v47, %v540_v46  ;;  %v526_v51 = vmul.f32 %v517_v36, %v510_v48  ;;  %v527_v52 = vmul.f32 %v521_v37, %v511_v49 }
 0x186   : > { %556 = vst [vmem:[#allocation2] sm:$0xff] %v1309_v50  ;;  %v542_v53 = vadd.f32 %v533_v39, %v526_v51  ;;  %v543_v54 = vadd.f32 %v537_v40, %v527_v52 }
 0x188   : > { %v1310_v55 = vpack.c.bf16 %v543_v54, %v542_v53 }
 0x18a   : > { %557 = vst [vmem:[#allocation2 + $0x8] sm:$0x11] %v1310_v55 }
 0x18b PF: > { %v1385_v56 = vld [vmem:[%s1712_s24 + $0xac] ss:$12 sps:$4 sm:$0xff]   ;;  %v1387_v57 = vld [vmem:[%s1712_s24 + $0xa8] ss:$12 sps:$4 sm:$0xff]   ;;  %v1390_v59 = vld [vmem:[%s1712_s24 + $0x90] ss:$12 sps:$4 sm:$0xff]   ;;  %v626_v42 = vlaneseq }
 0x18c   : > { %907 = vmatprep.subr.bf16.mxu0 %v1385_v56  ;;  %v1388_v58 = vld [vmem:[%s1712_s24 + $0x94] ss:$12 sps:$4 sm:$0xff]   ;;  %v1391_v60 = vld [vmem:[%s1712_s24 + $0x7c] ss:$12 sps:$4 sm:$0xff]   ;;  %v1393_v61 = vld [vmem:[%s1712_s24 + $0x78] ss:$12 sps:$4 sm:$0xff]  }
 0x18d   : > { %908 = vmatpush1.bf16.msra.mxu0 %v1387_v57  ;;  %v1394_v62 = vld [vmem:[%s1712_s24 + $0x64] ss:$12 sps:$4 sm:$0xff]   ;;  %v1396_v0 = vld [vmem:[%s1712_s24 + $0x60] ss:$12 sps:$4 sm:$0xff]   ;;  %v1399_v5 = vld [vmem:[%s1712_s24 + $0x48] ss:$12 sps:$4 sm:$0xff]  }
 0x18e   : > { %909 = vmatprep.subr.bf16.mxu0 %v1388_v58  ;;  %v1405_v63 = vld [vmem:[%s1712_s24 + $0x170] ss:$12 sps:$4 sm:$0xff]   ;;  %v1397_v2 = vld [vmem:[%s1712_s24 + $0x4c] ss:$12 sps:$4 sm:$0xff]   ;;  %v1400_v6 = vld [vmem:[%s1712_s24 + $0x34] ss:$12 sps:$4 sm:$0xff]  }
 0x18f   : > { %1316 = vmatprep.subr.bf16.mxu1 %v1405_v63  ;;  %v1407_v1 = vld [vmem:[%s1712_s24 + $0xb0] ss:$12 sps:$4 sm:$0xff]   ;;  %v1410_v3 = vld [vmem:[%s1712_s24 + $0x158] ss:$12 sps:$4 sm:$0xff]   ;;  %v1415_v7 = vld [vmem:[%s1712_s24 + $0x140] ss:$12 sps:$4 sm:$0xff]  }
 0x190   : > { %1317 = vmatpush3.bf16.msra.mxu1 %v1407_v1  ;;  %v1412_v4 = vld [vmem:[%s1712_s24 + $0x98] ss:$12 sps:$4 sm:$0xff]   ;;  %v1417_v8 = vld [vmem:[%s1712_s24 + $0x80] ss:$12 sps:$4 sm:$0xff]   ;;  %v1402_v9 = vld [vmem:[%s1712_s24 + $0x30] ss:$12 sps:$4 sm:$0xff]  }
 0x191   : > { %910 = vmatpush1.bf16.msra.mxu0 %v1390_v59  ;;  %1318 = vmatprep.subr.bf16.mxu1 %v1410_v3  ;;  %v1420_v10 = vld [vmem:[%s1712_s24 + $0x128] ss:$12 sps:$4 sm:$0xff]   ;;  %v1406_v13 = vld [vmem:[%s1712_s24 + $0x18] ss:$12 sps:$4 sm:$0xff]   ;;  %v1425_v14 = vld [vmem:[%s1712_s24 + $0x110] ss:$12 sps:$4 sm:$0xff]  }
 0x192   : > { %911 = vmatprep.subr.bf16.mxu0 %v1391_v60  ;;  %v1403_v11 = vld [vmem:[%s1712_s24 + $0x1c] ss:$12 sps:$4 sm:$0xff]   ;;  %v1408_v15 = vld [vmem:[%s1712_s24 + $0x4] ss:$12 sps:$4 sm:$0xff]   ;;  %v1411_v18 = vld [vmem:[%s1712_s24] ss:$12 sps:$4 sm:$0xff]  }
 0x193   : > { %v1422_v12 = vld [vmem:[%s1712_s24 + $0x68] ss:$12 sps:$4 sm:$0xff]   ;;  %v1427_v16 = vld [vmem:[%s1712_s24 + $0x50] ss:$12 sps:$4 sm:$0xff]   ;;  %v1430_v17 = vld [vmem:[%s1712_s24 + $0xf8] ss:$12 sps:$4 sm:$0xff]  }
 0x194   : > { %1319 = vmatpush3.bf16.msra.mxu1 %v1412_v4  ;;  %v1413_v19 = vld [vmem:[%s1712_s24 + $0x16c] ss:$12 sps:$4 sm:$0xff]   ;;  %v1416_v22 = vld [vmem:[%s1712_s24 + $0x168] ss:$12 sps:$4 sm:$0xff]   ;;  %v1421_v26 = vld [vmem:[%s1712_s24 + $0x150] ss:$12 sps:$4 sm:$0xff]  }
 0x195   : > { %912 = vmatpush1.bf16.msra.mxu0 %v1393_v61  ;;  %1320 = vmatprep.subr.bf16.mxu1 %v1415_v7  ;;  %v1432_v20 = vld [vmem:[%s1712_s24 + $0x38] ss:$12 sps:$4 sm:$0xff]   ;;  %v1435_v21 = vld [vmem:[%s1712_s24 + $0xe0] ss:$12 sps:$4 sm:$0xff]   ;;  %v1440_v25 = vld [vmem:[%s1712_s24 + $0xc8] ss:$12 sps:$4 sm:$0xff]  }
 0x196   : > { %913 = vmatprep.subr.bf16.mxu0 %v1394_v62  ;;  %v1418_v23 = vld [vmem:[%s1712_s24 + $0x154] ss:$12 sps:$4 sm:$0xff]   ;;  %v1423_v27 = vld [vmem:[%s1712_s24 + $0x13c] ss:$12 sps:$4 sm:$0xff]   ;;  %v1426_v30 = vld [vmem:[%s1712_s24 + $0x138] ss:$12 sps:$4 sm:$0xff]  }
 0x197   : > { %v1437_v24 = vld [vmem:[%s1712_s24 + $0x20] ss:$12 sps:$4 sm:$0xff]   ;;  %v1445_v28 = vld [vmem:[#allocation2 + $0x4] ss:$8 sps:$4 sm:$0x1f]   ;;  %v627_v43 = vshrl.u32 %v626_v42, 7 }
 0x198   : > { %1321 = vmatpush3.bf16.msra.mxu1 %v1417_v8  ;;  %v1442_v29 = vld [vmem:[%s1712_s24 + $0x8] ss:$12 sps:$4 sm:$0xff]   ;;  %982 = vmatprep.mubr.bf16.mxu1 %v1445_v28  ;;  %v1428_v31 = vld [vmem:[%s1712_s24 + $0x124] ss:$12 sps:$4 sm:$0xff]   ;;  %v1431_v33 = vld [vmem:[%s1712_s24 + $0x120] ss:$12 sps:$4 sm:$0xff]  }
 0x199   : > { %914 = vmatpush1.bf16.msra.mxu0 %v1396_v0  ;;  %1322 = vmatprep.subr.bf16.mxu1 %v1420_v10  ;;  %v1443_v32 = vld [vmem:[#allocation2] ss:$8 sps:$4 sm:$0x1f]   ;;  %v1436_v35 = vld [vmem:[%s1712_s24 + $0x108] ss:$12 sps:$4 sm:$0xff]   ;;  %v636_v44 = vsub.s32 2, %v627_v43 }
 0x19a   : > { %915 = vmatprep.subr.bf16.mxu0 %v1397_v2  ;;  %939 = vmatprep.mubr.bf16.mxu0 %v1445_v28  ;;  %v1433_v34 = vld [vmem:[%s1712_s24 + $0x10c] ss:$12 sps:$4 sm:$0xff]   ;;  %v1438_v36 = vld [vmem:[%s1712_s24 + $0xf4] ss:$12 sps:$4 sm:$0xff]   ;;  %v1441_v37 = vld [vmem:[%s1712_s24 + $0xf0] ss:$12 sps:$4 sm:$0xff]  }
 0x19b   : > { %v1446_v38 = vld [vmem:[%s1712_s24 + $0xdc] ss:$12 sps:$4 sm:$0xff]   ;;  %v1448_v39 = vld [vmem:[%s1712_s24 + $0xd8] ss:$12 sps:$4 sm:$0xff]   ;;  %v1451_v41 = vld [vmem:[%s1712_s24 + $0xc0] ss:$12 sps:$4 sm:$0xff]  }
 0x19c   : > { %1323 = vmatpush3.bf16.msra.mxu1 %v1422_v12  ;;  %v1449_v40 = vld [vmem:[%s1712_s24 + $0xc4] ss:$12 sps:$4 sm:$0xff]   ;;  %v628_v57 = vsub.s32 0, %v627_v43  ;;  %v632_v58 = vsub.s32 1, %v627_v43  ;;  %s1315_s12 = smul.u32 (%p1557_p6), 12, %s1482_s20 }
 0x19d   : > { %916 = vmatpush1.bf16.msra.mxu0 %v1399_v5  ;;  %1324 = vmatprep.subr.bf16.mxu1 %v1425_v14  ;;  %v624_v45 = vld [vmem:[%s461_s17] sm:$0x7] }
 0x19e   : > { %917 = vmatprep.subr.bf16.mxu0 %v1400_v6  ;;  %v637_v47 = vrot.slane %v624_v45, %v636_v44  ;;  %v629_v59 = vrot.slane %v624_v45, %v628_v57  ;;  %v633_v60 = vrot.slane %v624_v45, %v632_v58  ;;  %s1027_s26 = scalar_lea.vmem (%p1557_p6), %s1826_s5, %s1315_s12 }
 0x1a0   : > { %1325 = vmatpush3.bf16.msra.mxu1 %v1427_v16 }
 0x1a1   : > { %918 = vmatpush1.bf16.msra.mxu0 %v1402_v9  ;;  %1326 = vmatprep.subr.bf16.mxu1 %v1430_v17 }
 0x1a2   : > { %919 = vmatprep.subr.bf16.mxu0 %v1403_v11 }
 0x1a4   : > { %1327 = vmatpush3.bf16.msra.mxu1 %v1432_v20 }
 0x1a5   : > { %920 = vmatpush1.bf16.msra.mxu0 %v1406_v13  ;;  %1328 = vmatprep.subr.bf16.mxu1 %v1435_v21 }
 0x1a6   : > { %921 = vmatprep.subr.bf16.mxu0 %v1408_v15 }
 0x1a8   : > { %1329 = vmatpush3.bf16.msra.mxu1 %v1437_v24 }
 0x1a9   : > { %922 = vmatpush1.bf16.msra.mxu0 %v1411_v18  ;;  %1330 = vmatprep.subr.bf16.mxu1 %v1440_v25 }
 0x1aa   : > { %923 = vmatprep.subr.bf16.mxu0 %v1413_v19 }
 0x1ac   : > { %1331 = vmatpush3.bf16.msra.mxu1 %v1442_v29 }
 0x1ad   : > { %924 = vmatpush2.bf16.msra.mxu0 %v1416_v22 }
 0x1ae   : > { %925 = vmatprep.subr.bf16.mxu0 %v1418_v23 }
 0x1af   : > { %983 = vmatmul.mubr.bf16.vlgmr.msra.gmra.mxu1 %v1443_v32 }
 0x1b1   : > { %926 = vmatpush2.bf16.msra.mxu0 %v1421_v26 }
 0x1b2   : > { %927 = vmatprep.subr.bf16.mxu0 %v1423_v27 }
 0x1b5   : > { %928 = vmatpush2.bf16.msra.mxu0 %v1426_v30 }
 0x1b6   : > { %929 = vmatprep.subr.bf16.mxu0 %v1428_v31 }
 0x1b9   : > { %930 = vmatpush2.bf16.msra.mxu0 %v1431_v33 }
 0x1ba   : > { %931 = vmatprep.subr.bf16.mxu0 %v1433_v34 }
 0x1bd   : > { %932 = vmatpush2.bf16.msra.mxu0 %v1436_v35 }
 0x1be   : > { %933 = vmatprep.subr.bf16.mxu0 %v1438_v36 }
 0x1c1   : > { %934 = vmatpush2.bf16.msra.mxu0 %v1441_v37 }
 0x1c2   : > { %935 = vmatprep.subr.bf16.mxu0 %v1446_v38 }
 0x1c5   : > { %936 = vmatpush2.bf16.msra.mxu0 %v1448_v39 }
 0x1c6   : > { %937 = vmatprep.subr.bf16.mxu0 %v1449_v40 }
 0x1c9   : > { %938 = vmatpush2.bf16.msra.mxu0 %v1451_v41 }
 0x1cc   : > { %940 = vmatmul.mubr.bf16.vlgmr.msra.gmra.mxu0 %v1443_v32 }
 0x26f   : > { %v1332_v46 = vpop.f32.mrf.mxu1 }
 0x271   : > { %v1333_v48 = vpop.f32.mrf.mxu1 }
 0x272   : > { %v1334_v49 = vadd.f32 %v1333_v48, %v1332_v46 }
 0x273   : > { %v1335_v50 = vpop.f32.mrf.mxu1 }
 0x274   : > { %v985_v51 = vadd.f32 %v1334_v49, %v637_v47 }
 0x275   : > { %v1336_v52 = vpop.f32.mrf.mxu1 }
 0x276   : > { %v1312_v53 = vpack.c.bf16 %v985_v51, %v985_v51  ;;  %v1337_v54 = vadd.f32 %v1336_v52, %v1335_v50 }
 0x278   : > { %1012 = vst [vmem:[%s1714_s25 + $0x8] sm:$0xf] %v1312_v53  ;;  %v988_v55 = vadd.f32 %v1337_v54, %v637_v47 }
 0x27a   : > { %v1314_v56 = vpack.c.bf16 %v988_v55, %v988_v55 }
 0x27c   : > { %1014 = vst [vmem:[%s1714_s25 + $0x14] sm:$0x1] %v1314_v56 }
 0x27f   : > { %v1302_v9 = vld [vmem:[%s1714_s25 + $0x8] sm:$0xf] (%p1557_p6) }
 0x280   : > { %1303 = vst [vmem:[%s1027_s26 + $0x8] sm:$0xf] (%p1557_p6), %v1302_v9 }
 0x283   : > { %v1304_v10 = vld [vmem:[%s1714_s25 + $0x14] sm:$0xf] (%p1557_p6) }
 0x284   : > { %1305 = vst [vmem:[%s1027_s26 + $0x20] sm:$0xf] (%p1557_p6), %v1304_v10 }
 0x28c   : > { %v941_v61 = vpop.f32.mrf.mxu0 }
 0x28d   : > { %v942_v63 = vadd.f32 %v941_v61, %v629_v59 }
 0x28e   : > { %v943_v62 = vpop.f32.mrf.mxu0 }
 0x28f   : > { %v944_v0 = vadd.f32 %v943_v62, %v633_v60 }
 0x290   : > { %v945_v1 = vpop.f32.mrf.mxu0 }
 0x291   : > { %v1311_v2 = vpack.c.bf16 %v944_v0, %v942_v63  ;;  %v946_v4 = vadd.f32 %v945_v1, %v629_v59 }
 0x292   : > { %v947_v3 = vpop.f32.mrf.mxu0 }
 0x293   : > { %1011 = vst [vmem:[%s1714_s25] sm:$0xff] %v1311_v2  ;;  %v948_v5 = vadd.f32 %v947_v3, %v633_v60  ;;  %1021 = sbr.rel (!%p1557_p6) target bundleno = 672 (0x2a0), region = 74 }
 0x295   : > { %v1313_v6 = vpack.c.bf16 %v948_v5, %v946_v4 }
 0x297   : > { %1013 = vst [vmem:[%s1714_s25 + $0xc] sm:$0x11] %v1313_v6 }
 0x29a   : > { %v1042_v7 = vld [vmem:[%s1714_s25] sm:$0xff] }
 0x29b   : > { %1043 = vst [vmem:[%s1027_s26] sm:$0xff] %v1042_v7 }
 0x29e   : > { %v1044_v8 = vld [vmem:[%s1714_s25 + $0xc] sm:$0xff] }
 0x29f   : > { %1045 = vst [vmem:[%s1027_s26 + $0x18] sm:$0xff] %v1044_v8 }
 0x2a0 PF: > { %s15_s22 = sadd.s32 1, %s1490_s22   ;;  %s1828_s18 = smov %s1478_s19 }
 0x2a1   : > { %p12_p13 = scmp.ge.s32.totalorder %s15_s22, 4   ;;  %s1829_s19 = smov %s1562_s28 }
 0x2a2   : > { %s1830_s20 = smov %s1486_s21  ;;  %s1831_s21 = smov %s1833_s23 }
 0x2a3   :  { %14 = sbr.rel (!%p12_p13) target bundleno = 3 (0x3), region = 149 }

// kernel: _lambda_.27
= control target key start
LH: loop header
LB: loop body
LE: loop exit
PB: predicated region body
PF: predicated region fallthrough
CT: control target
= control target key end

     0   :  { %v53_v34 = vlaneseq  ;;  %s531_s1 = inlined_call_operand.vmem [shape: bf16[256,256], index: 1, kind: input, shape index: {}]   ;;  %s532_s0 = inlined_call_operand.vmem [shape: bf16[10,256], index: 0, kind: input, shape index: {}]   ;;  %s533_s2 = inlined_call_operand.vmem [shape: f32[1,256], index: 2, kind: input, shape index: {}]   ;;  %s534_s3 = inlined_call_operand.vmem [shape: f32[10,256], index: 3, kind: input, shape index: {}]   ;;  %s535_s4 = inlined_call_operand.vmem [shape: f32[10,256], index: 4, kind: output, shape index: {}]  }
   0x1   :  { %v326_v0 = vld [vmem:[%s531_s1 + $0x74] ss:$8 sps:$4 sm:$0xff]   ;;  %v328_v1 = vld [vmem:[%s531_s1 + $0x70] ss:$8 sps:$4 sm:$0xff]   ;;  %v329_v2 = vld [vmem:[%s531_s1 + $0x64] ss:$8 sps:$4 sm:$0xff]  }
   0x2   :  { %233 = vmatprep.subr.bf16.mxu0 %v326_v0  ;;  %v331_v3 = vld [vmem:[%s531_s1 + $0x60] ss:$8 sps:$4 sm:$0xff]   ;;  %v332_v4 = vld [vmem:[%s531_s1 + $0x54] ss:$8 sps:$4 sm:$0xff]   ;;  %v334_v5 = vld [vmem:[%s531_s1 + $0x50] ss:$8 sps:$4 sm:$0xff]  }
   0x3   :  { %234 = vmatpush1.bf16.msra.mxu0 %v328_v1  ;;  %v335_v6 = vld [vmem:[%s531_s1 + $0x44] ss:$8 sps:$4 sm:$0xff]   ;;  %v337_v7 = vld [vmem:[%s531_s1 + $0x40] ss:$8 sps:$4 sm:$0xff]   ;;  %v338_v8 = vld [vmem:[%s531_s1 + $0x34] ss:$8 sps:$4 sm:$0xff]  }
   0x4   :  { %235 = vmatprep.subr.bf16.mxu0 %v329_v2  ;;  %v340_v9 = vld [vmem:[%s531_s1 + $0x30] ss:$8 sps:$4 sm:$0xff]   ;;  %v341_v10 = vld [vmem:[%s531_s1 + $0x24] ss:$8 sps:$4 sm:$0xff]   ;;  %v343_v11 = vld [vmem:[%s531_s1 + $0x20] ss:$8 sps:$4 sm:$0xff]  }
   0x5   :  { %v344_v12 = vld [vmem:[%s531_s1 + $0x14] ss:$8 sps:$4 sm:$0xff]   ;;  %v376_v13 = vld [vmem:[%s532_s0 + $0x4] ss:$8 sps:$4 sm:$0x1f]   ;;  %v54_v35 = vshrl.u32 %v53_v34, 7 }
   0x6   :  { %v346_v14 = vld [vmem:[%s531_s1 + $0x10] ss:$8 sps:$4 sm:$0xff]   ;;  %v347_v15 = vld [vmem:[%s531_s1 + $0x4] ss:$8 sps:$4 sm:$0xff]   ;;  %265 = vmatprep.mubr.bf16.mxu0 %v376_v13  ;;  %v349_v16 = vld [vmem:[%s531_s1] ss:$8 sps:$4 sm:$0xff]  }
   0x7   :  { %236 = vmatpush1.bf16.msra.mxu0 %v331_v3  ;;  %v350_v17 = vld [vmem:[%s531_s1 + $0xf4] ss:$8 sps:$4 sm:$0xff]   ;;  %v352_v18 = vld [vmem:[%s531_s1 + $0xf0] ss:$8 sps:$4 sm:$0xff]   ;;  %v353_v19 = vld [vmem:[%s531_s1 + $0xe4] ss:$8 sps:$4 sm:$0xff]  }
   0x8   :  { %237 = vmatprep.subr.bf16.mxu0 %v332_v4  ;;  %v355_v20 = vld [vmem:[%s531_s1 + $0xe0] ss:$8 sps:$4 sm:$0xff]   ;;  %v356_v21 = vld [vmem:[%s531_s1 + $0xd4] ss:$8 sps:$4 sm:$0xff]   ;;  %v358_v22 = vld [vmem:[%s531_s1 + $0xd0] ss:$8 sps:$4 sm:$0xff]  }
   0x9   :  { %v359_v23 = vld [vmem:[%s531_s1 + $0xc4] ss:$8 sps:$4 sm:$0xff]   ;;  %v361_v24 = vld [vmem:[%s531_s1 + $0xc0] ss:$8 sps:$4 sm:$0xff]   ;;  %v362_v25 = vld [vmem:[%s531_s1 + $0xb4] ss:$8 sps:$4 sm:$0xff]  }
   0xa   :  { %v364_v26 = vld [vmem:[%s531_s1 + $0xb0] ss:$8 sps:$4 sm:$0xff]   ;;  %v365_v27 = vld [vmem:[%s531_s1 + $0xa4] ss:$8 sps:$4 sm:$0xff]   ;;  %v367_v28 = vld [vmem:[%s531_s1 + $0xa0] ss:$8 sps:$4 sm:$0xff]  }
   0xb   :  { %238 = vmatpush1.bf16.msra.mxu0 %v334_v5  ;;  %v368_v29 = vld [vmem:[%s531_s1 + $0x94] ss:$8 sps:$4 sm:$0xff]   ;;  %v370_v30 = vld [vmem:[%s531_s1 + $0x90] ss:$8 sps:$4 sm:$0xff]   ;;  %v371_v31 = vld [vmem:[%s531_s1 + $0x84] ss:$8 sps:$4 sm:$0xff]  }
   0xc   :  { %239 = vmatprep.subr.bf16.mxu0 %v335_v6  ;;  %v373_v32 = vld [vmem:[%s531_s1 + $0x80] ss:$8 sps:$4 sm:$0xff]   ;;  %v55_v36 = vsub.s32 0, %v54_v35  ;;  %v59_v38 = vsub.s32 1, %v54_v35  ;;  %v278_v49 = vld [vmem:[%s534_s3 + $0x10] sm:$0x3] }
   0xd   :  { %v374_v33 = vld [vmem:[%s532_s0] ss:$8 sps:$4 sm:$0x1f]   ;;  %v279_v53 = vld [vmem:[%s534_s3 + $0x18] sm:$0x3] }
   0xe   :  { %v51_v37 = vld [vmem:[%s533_s2] sm:$0x3]  ;;  %v277_v45 = vld [vmem:[%s534_s3 + $0x8] sm:$0xff] }
   0xf   :  { %240 = vmatpush1.bf16.msra.mxu0 %v337_v7  ;;  %v56_v39 = vrot.slane %v51_v37, %v55_v36  ;;  %v60_v40 = vrot.slane %v51_v37, %v59_v38  ;;  %v276_v42 = vld [vmem:[%s534_s3] sm:$0xff] }
  0x10   :  { %241 = vmatprep.subr.bf16.mxu0 %v338_v8 }
  0x13   :  { %242 = vmatpush1.bf16.msra.mxu0 %v340_v9 }
  0x14   :  { %243 = vmatprep.subr.bf16.mxu0 %v341_v10 }
  0x17   :  { %244 = vmatpush1.bf16.msra.mxu0 %v343_v11 }
  0x18   :  { %245 = vmatprep.subr.bf16.mxu0 %v344_v12 }
  0x1b   :  { %246 = vmatpush1.bf16.msra.mxu0 %v346_v14 }
  0x1c   :  { %247 = vmatprep.subr.bf16.mxu0 %v347_v15 }
  0x1f   :  { %248 = vmatpush1.bf16.msra.mxu0 %v349_v16 }
  0x20   :  { %249 = vmatprep.subr.bf16.mxu0 %v350_v17 }
  0x23   :  { %250 = vmatpush2.bf16.msra.mxu0 %v352_v18 }
  0x24   :  { %251 = vmatprep.subr.bf16.mxu0 %v353_v19 }
  0x27   :  { %252 = vmatpush2.bf16.msra.mxu0 %v355_v20 }
  0x28   :  { %253 = vmatprep.subr.bf16.mxu0 %v356_v21 }
  0x2b   :  { %254 = vmatpush2.bf16.msra.mxu0 %v358_v22 }
  0x2c   :  { %255 = vmatprep.subr.bf16.mxu0 %v359_v23 }
  0x2f   :  { %256 = vmatpush2.bf16.msra.mxu0 %v361_v24 }
  0x30   :  { %257 = vmatprep.subr.bf16.mxu0 %v362_v25 }
  0x33   :  { %258 = vmatpush2.bf16.msra.mxu0 %v364_v26 }
  0x34   :  { %259 = vmatprep.subr.bf16.mxu0 %v365_v27 }
  0x37   :  { %260 = vmatpush2.bf16.msra.mxu0 %v367_v28 }
  0x38   :  { %261 = vmatprep.subr.bf16.mxu0 %v368_v29 }
  0x3b   :  { %262 = vmatpush2.bf16.msra.mxu0 %v370_v30 }
  0x3c   :  { %263 = vmatprep.subr.bf16.mxu0 %v371_v31 }
  0x3f   :  { %264 = vmatpush2.bf16.msra.mxu0 %v373_v32 }
  0x42   :  { %266 = vmatmul.mubr.bf16.vlgmr.msra.gmra.mxu0 %v374_v33 }
 0x102   :  { %v267_v41 = vpop.f32.mrf.mxu0 }
 0x103   :  { %v268_v43 = vadd.f32 %v267_v41, %v56_v39 }
 0x104   :  { %v269_v44 = vpop.f32.mrf.mxu0 }
 0x105   :  { %v280_v46 = vadd.f32 %v276_v42, %v268_v43  ;;  %v270_v47 = vadd.f32 %v269_v44, %v60_v40 }
 0x106   :  { %v271_v48 = vpop.f32.mrf.mxu0 }
 0x107   :  { %284 = vst [vmem:[%s535_s4] sm:$0xff] %v280_v46  ;;  %v281_v50 = vadd.f32 %v277_v45, %v270_v47  ;;  %v272_v51 = vadd.f32 %v271_v48, %v56_v39 }
 0x108   :  { %v273_v52 = vpop.f32.mrf.mxu0 }
 0x109   :  { %285 = vst [vmem:[%s535_s4 + $0x8] sm:$0xff] %v281_v50  ;;  %v282_v54 = vadd.f32 %v278_v49, %v272_v51  ;;  %v274_v55 = vadd.f32 %v273_v52, %v60_v40 }
 0x10b   :  { %286 = vst [vmem:[%s535_s4 + $0x10] sm:$0x3] %v282_v54  ;;  %v283_v56 = vadd.f32 %v279_v53, %v274_v55 }
 0x10d   :  { %287 = vst [vmem:[%s535_s4 + $0x18] sm:$0x3] %v283_v56 }

// kernel: _lambda_.28
= control target key start
LH: loop header
LB: loop body
LE: loop exit
PB: predicated region body
PF: predicated region fallthrough
CT: control target
= control target key end

     0   :  { %vm27_vm0 = vcmask 1041408   ;;  %s1210_s0 = inlined_call_operand.vmem [shape: f32[10,256], index: 0, kind: input, shape index: {}]   ;;  %s1211_s1 = inlined_call_operand.vmem [shape: bf16[256,512], index: 1, kind: input, shape index: {}]   ;;  %s1212_s3 = inlined_call_operand.vmem [shape: f32[1,256], index: 3, kind: input, shape index: {}]   ;;  %s1213_s4 = inlined_call_operand.vmem [shape: f32[1,256], index: 4, kind: input, shape index: {}]   ;;  %s1214_s2 = inlined_call_operand.vmem [shape: f32[1,512], index: 2, kind: input, shape index: {}]   ;;  %s1215_s5 = inlined_call_operand.vmem [shape: bf16[10,512], index: 5, kind: output, shape index: {}]  }
   0x1   :  { %v913_v0 = vld [vmem:[%s1210_s0 + $0x10] sm:$0x3]  ;;  %v918_v1 = vld [vmem:[%s1210_s0 + $0x18] sm:$0x3]  ;;  %v927_v4 = vld [vmem:[%s1210_s0] sm:$0xff] }
   0x2   :  { %v28_v2 = vsel %vm27_vm0, %v913_v0, 0.0  ;;  %v29_v3 = vsel %vm27_vm0, %v918_v1, 0.0  ;;  %v932_v5 = vld [vmem:[%s1210_s0 + $0x8] sm:$0xff]  ;;  %v764_v8 = vld [vmem:[%s1211_s1 + $0xe4] ss:$16 sps:$4 sm:$0xff]  }
   0x3   :  { %v30_v6 = vadd.f32 %v29_v3, %v28_v2  ;;  %v24_v7 = vadd.f32 %v932_v5, %v927_v4  ;;  %v766_v9 = vld [vmem:[%s1211_s1 + $0xec] ss:$16 sps:$4 sm:$0xff]   ;;  %502 = vmatprep.subr.bf16.mxu0 %v764_v8  ;;  %v768_v10 = vld [vmem:[%s1211_s1 + $0xe0] ss:$16 sps:$4 sm:$0xff]   ;;  %v769_v11 = vld [vmem:[%s1211_s1 + $0xe8] ss:$16 sps:$4 sm:$0xff]  }
   0x4   :  { %545 = vmatprep.subr.bf16.mxu1 %v766_v9  ;;  %v770_v12 = vld [vmem:[%s1211_s1 + $0xc4] ss:$16 sps:$4 sm:$0xff]   ;;  %503 = vmatpush1.bf16.msra.mxu0 %v768_v10  ;;  %v772_v13 = vld [vmem:[%s1211_s1 + $0xcc] ss:$16 sps:$4 sm:$0xff]   ;;  %v774_v14 = vld [vmem:[%s1211_s1 + $0xc0] ss:$16 sps:$4 sm:$0xff]  }
   0x5   :  { %31 = vadd.xlane.f32.xlu0 %v30_v6  ;;  %546 = vmatpush1.bf16.msra.mxu1 %v769_v11  ;;  %v775_v15 = vld [vmem:[%s1211_s1 + $0xc8] ss:$16 sps:$4 sm:$0xff]   ;;  %v776_v16 = vld [vmem:[%s1211_s1 + $0xa4] ss:$16 sps:$4 sm:$0xff]   ;;  %v778_v17 = vld [vmem:[%s1211_s1 + $0xac] ss:$16 sps:$4 sm:$0xff]  }
   0x6   :  { %504 = vmatprep.subr.bf16.mxu0 %v770_v12  ;;  %547 = vmatprep.subr.bf16.mxu1 %v772_v13  ;;  %v780_v18 = vld [vmem:[%s1211_s1 + $0xa0] ss:$16 sps:$4 sm:$0xff]   ;;  %v781_v19 = vld [vmem:[%s1211_s1 + $0xa8] ss:$16 sps:$4 sm:$0xff]   ;;  %v782_v20 = vld [vmem:[%s1211_s1 + $0x84] ss:$16 sps:$4 sm:$0xff]  }
   0x7   :  { %v784_v21 = vld [vmem:[%s1211_s1 + $0x8c] ss:$16 sps:$4 sm:$0xff]   ;;  %v786_v22 = vld [vmem:[%s1211_s1 + $0x80] ss:$16 sps:$4 sm:$0xff]   ;;  %v787_v23 = vld [vmem:[%s1211_s1 + $0x88] ss:$16 sps:$4 sm:$0xff]  }
   0x8   :  { %505 = vmatpush1.bf16.msra.mxu0 %v774_v14  ;;  %v788_v24 = vld [vmem:[%s1211_s1 + $0x64] ss:$16 sps:$4 sm:$0xff]   ;;  %v790_v25 = vld [vmem:[%s1211_s1 + $0x6c] ss:$16 sps:$4 sm:$0xff]   ;;  %v792_v26 = vld [vmem:[%s1211_s1 + $0x60] ss:$16 sps:$4 sm:$0xff]  }
   0x9   :  { %25 = vadd.xlane.f32.xlu0 %v24_v7  ;;  %548 = vmatpush1.bf16.msra.mxu1 %v775_v15  ;;  %v793_v27 = vld [vmem:[%s1211_s1 + $0x68] ss:$16 sps:$4 sm:$0xff]   ;;  %v794_v28 = vld [vmem:[%s1211_s1 + $0x44] ss:$16 sps:$4 sm:$0xff]   ;;  %v796_v29 = vld [vmem:[%s1211_s1 + $0x4c] ss:$16 sps:$4 sm:$0xff]  }
   0xa   :  { %506 = vmatprep.subr.bf16.mxu0 %v776_v16  ;;  %549 = vmatprep.subr.bf16.mxu1 %v778_v17  ;;  %v798_v30 = vld [vmem:[%s1211_s1 + $0x40] ss:$16 sps:$4 sm:$0xff]   ;;  %v799_v31 = vld [vmem:[%s1211_s1 + $0x48] ss:$16 sps:$4 sm:$0xff]   ;;  %v800_v32 = vld [vmem:[%s1211_s1 + $0x24] ss:$16 sps:$4 sm:$0xff]  }
   0xb   :  { %v802_v33 = vld [vmem:[%s1211_s1 + $0x2c] ss:$16 sps:$4 sm:$0xff]   ;;  %v804_v34 = vld [vmem:[%s1211_s1 + $0x20] ss:$16 sps:$4 sm:$0xff]   ;;  %v805_v35 = vld [vmem:[%s1211_s1 + $0x28] ss:$16 sps:$4 sm:$0xff]  }
   0xc   :  { %507 = vmatpush1.bf16.msra.mxu0 %v780_v18  ;;  %v806_v36 = vld [vmem:[%s1211_s1 + $0x4] ss:$16 sps:$4 sm:$0xff]   ;;  %v808_v37 = vld [vmem:[%s1211_s1 + $0xc] ss:$16 sps:$4 sm:$0xff]   ;;  %v810_v38 = vld [vmem:[%s1211_s1] ss:$16 sps:$4 sm:$0xff]  }
   0xd   :  { %550 = vmatpush1.bf16.msra.mxu1 %v781_v19  ;;  %508 = vmatprep.subr.bf16.mxu0 %v782_v20  ;;  %v811_v39 = vld [vmem:[%s1211_s1 + $0x8] ss:$16 sps:$4 sm:$0xff]   ;;  %v812_v40 = vld [vmem:[%s1211_s1 + $0x1e4] ss:$16 sps:$4 sm:$0xff]   ;;  %v814_v41 = vld [vmem:[%s1211_s1 + $0x1ec] ss:$16 sps:$4 sm:$0xff]  }
   0xe   :  { %551 = vmatprep.subr.bf16.mxu1 %v784_v21  ;;  %v816_v58 = vld [vmem:[%s1211_s1 + $0x1e0] ss:$16 sps:$4 sm:$0xff]   ;;  %v817_v59 = vld [vmem:[%s1211_s1 + $0x1e8] ss:$16 sps:$4 sm:$0xff]   ;;  %v818_v60 = vld [vmem:[%s1211_s1 + $0x1c4] ss:$16 sps:$4 sm:$0xff]  }
   0xf   :  { %v820_v61 = vld [vmem:[%s1211_s1 + $0x1cc] ss:$16 sps:$4 sm:$0xff]   ;;  %v822_v62 = vld [vmem:[%s1211_s1 + $0x1c0] ss:$16 sps:$4 sm:$0xff]   ;;  %v823_v63 = vld [vmem:[%s1211_s1 + $0x1c8] ss:$16 sps:$4 sm:$0xff]  }
  0x10   :  { %509 = vmatpush1.bf16.msra.mxu0 %v786_v22  ;;  %v828_v2 = vld [vmem:[%s1211_s1 + $0x1a0] ss:$16 sps:$4 sm:$0xff]   ;;  %v829_v3 = vld [vmem:[%s1211_s1 + $0x1a8] ss:$16 sps:$4 sm:$0xff]   ;;  %v836_v8 = vld [vmem:[%s1211_s1 + $0x164] ss:$16 sps:$4 sm:$0xff]  }
  0x11   :  { %552 = vmatpush1.bf16.msra.mxu1 %v787_v23  ;;  %510 = vmatprep.subr.bf16.mxu0 %v788_v24  ;;  %v834_v6 = vld [vmem:[%s1211_s1 + $0x180] ss:$16 sps:$4 sm:$0xff]   ;;  %v835_v7 = vld [vmem:[%s1211_s1 + $0x188] ss:$16 sps:$4 sm:$0xff]   ;;  %v838_v9 = vld [vmem:[%s1211_s1 + $0x16c] ss:$16 sps:$4 sm:$0xff]  }
  0x12   :  { %553 = vmatprep.subr.bf16.mxu1 %v790_v25  ;;  %v840_v10 = vld [vmem:[%s1211_s1 + $0x160] ss:$16 sps:$4 sm:$0xff]   ;;  %v841_v11 = vld [vmem:[%s1211_s1 + $0x168] ss:$16 sps:$4 sm:$0xff]   ;;  %v842_v12 = vld [vmem:[%s1211_s1 + $0x144] ss:$16 sps:$4 sm:$0xff]  }
  0x13   :  { %v844_v13 = vld [vmem:[%s1211_s1 + $0x14c] ss:$16 sps:$4 sm:$0xff]   ;;  %v846_v14 = vld [vmem:[%s1211_s1 + $0x140] ss:$16 sps:$4 sm:$0xff]   ;;  %v847_v15 = vld [vmem:[%s1211_s1 + $0x148] ss:$16 sps:$4 sm:$0xff]  }
  0x14   :  { %511 = vmatpush1.bf16.msra.mxu0 %v792_v26  ;;  %v848_v16 = vld [vmem:[%s1211_s1 + $0x124] ss:$16 sps:$4 sm:$0xff]   ;;  %v850_v17 = vld [vmem:[%s1211_s1 + $0x12c] ss:$16 sps:$4 sm:$0xff]   ;;  %v852_v18 = vld [vmem:[%s1211_s1 + $0x120] ss:$16 sps:$4 sm:$0xff]  }
  0x15   :  { %554 = vmatpush1.bf16.msra.mxu1 %v793_v27  ;;  %512 = vmatprep.subr.bf16.mxu0 %v794_v28  ;;  %v853_v19 = vld [vmem:[%s1211_s1 + $0x128] ss:$16 sps:$4 sm:$0xff]   ;;  %v854_v20 = vld [vmem:[%s1211_s1 + $0x104] ss:$16 sps:$4 sm:$0xff]   ;;  %v856_v21 = vld [vmem:[%s1211_s1 + $0x10c] ss:$16 sps:$4 sm:$0xff]  }
  0x16   :  { %555 = vmatprep.subr.bf16.mxu1 %v796_v29  ;;  %v858_v22 = vld [vmem:[%s1211_s1 + $0x100] ss:$16 sps:$4 sm:$0xff]   ;;  %v859_v23 = vld [vmem:[%s1211_s1 + $0x108] ss:$16 sps:$4 sm:$0xff]  }
  0x18   :  { %513 = vmatpush1.bf16.msra.mxu0 %v798_v30  ;;  %v64_v30 = vlaneseq }
  0x19   :  { %556 = vmatpush1.bf16.msra.mxu1 %v799_v31  ;;  %514 = vmatprep.subr.bf16.mxu0 %v800_v32 }
  0x1a   :  { %557 = vmatprep.subr.bf16.mxu1 %v802_v33  ;;  %v65_v31 = vshrl.u32 %v64_v30, 7 }
  0x1c   :  { %515 = vmatpush1.bf16.msra.mxu0 %v804_v34  ;;  %v66_v32 = vsub.s32 0, %v65_v31  ;;  %v70_v33 = vsub.s32 1, %v65_v31  ;;  %v62_v34 = vld [vmem:[%s1212_s3] sm:$0x3] }
  0x1d   :  { %558 = vmatpush1.bf16.msra.mxu1 %v805_v35  ;;  %516 = vmatprep.subr.bf16.mxu0 %v806_v36 }
  0x1e   :  { %559 = vmatprep.subr.bf16.mxu1 %v808_v37  ;;  %v67_v37 = vrot.slane %v62_v34, %v66_v32 }
  0x20   :  { %517 = vmatpush1.bf16.msra.mxu0 %v810_v38  ;;  %v71_v38 = vrot.slane %v62_v34, %v70_v33 }
  0x21   :  { %560 = vmatpush1.bf16.msra.mxu1 %v811_v39  ;;  %518 = vmatprep.subr.bf16.mxu0 %v812_v40  ;;  %v78_v39 = vld [vmem:[%s1213_s4] sm:$0x3] }
  0x22   :  { %561 = vmatprep.subr.bf16.mxu1 %v814_v41 }
  0x24   :  { %519 = vmatpush2.bf16.msra.mxu0 %v816_v58 }
  0x25   :  { %562 = vmatpush2.bf16.msra.mxu1 %v817_v59  ;;  %520 = vmatprep.subr.bf16.mxu0 %v818_v60  ;;  %v176_v59 = vsub.s32 3, %v65_v31 }
  0x26   :  { %563 = vmatprep.subr.bf16.mxu1 %v820_v61 }
  0x28   :  { %521 = vmatpush2.bf16.msra.mxu0 %v822_v62 }
  0x29   :  { %564 = vmatpush2.bf16.msra.mxu1 %v823_v63 }
  0x8e   :  { %v32_v42 = vpop.xlane.xlu0 %31 }
  0x8f   :  { %v35_v43 = vmul.f32 0.00390625, %v32_v42  ;;  %v83_v42 = vrot.slane %v78_v39, %v66_v32 }
  0x91   :  { %v1039_v44 = vsub.f32 %v913_v0, %v35_v43  ;;  %v1042_v45 = vsub.f32 %v918_v1, %v35_v43  ;;  %v824_v0 = vld [vmem:[%s1211_s1 + $0x1a4] ss:$16 sps:$4 sm:$0xff]   ;;  %v826_v1 = vld [vmem:[%s1211_s1 + $0x1ac] ss:$16 sps:$4 sm:$0xff]   ;;  %v87_v43 = vrot.slane %v78_v39, %v70_v33 }
  0x92   :  { %v26_v46 = vpop.xlane.xlu0 %25  ;;  %522 = vmatprep.subr.bf16.mxu0 %v824_v0  ;;  %565 = vmatprep.subr.bf16.mxu1 %v826_v1 }
  0x93   :  { %v34_v47 = vmul.f32 0.00390625, %v26_v46  ;;  %v42_v50 = vmul.f32 %v1039_v44, %v1039_v44  ;;  %v43_v51 = vmul.f32 %v1042_v45, %v1042_v45  ;;  %523 = vmatpush2.bf16.msra.mxu0 %v828_v2  ;;  %566 = vmatpush2.bf16.msra.mxu1 %v829_v3 }
  0x95   :  { %v1045_v48 = vsub.f32 %v927_v4, %v34_v47  ;;  %v1048_v49 = vsub.f32 %v932_v5, %v34_v47  ;;  %v47_v55 = vsel %vm27_vm0, %v42_v50, 0.0  ;;  %v48_v56 = vsel %vm27_vm0, %v43_v51, 0.0  ;;  %v830_v4 = vld [vmem:[%s1211_s1 + $0x184] ss:$16 sps:$4 sm:$0xff]   ;;  %v832_v5 = vld [vmem:[%s1211_s1 + $0x18c] ss:$16 sps:$4 sm:$0xff]  }
  0x96   :  { %v49_v57 = vadd.f32 %v48_v56, %v47_v55  ;;  %524 = vmatprep.subr.bf16.mxu0 %v830_v4  ;;  %567 = vmatprep.subr.bf16.mxu1 %v832_v5 }
  0x97   :  { %v40_v52 = vmul.f32 %v1045_v48, %v1045_v48  ;;  %v41_v53 = vmul.f32 %v1048_v49, %v1048_v49  ;;  %525 = vmatpush2.bf16.msra.mxu0 %v834_v6  ;;  %568 = vmatpush2.bf16.msra.mxu1 %v835_v7 }
  0x98   :  { %526 = vmatprep.subr.bf16.mxu0 %v836_v8  ;;  %569 = vmatprep.subr.bf16.mxu1 %v838_v9 }
  0x99   :  { %v44_v54 = vadd.f32 %v41_v53, %v40_v52 }
  0x9b   :  { %45 = vadd.xlane.f32.xlu1 %v44_v54  ;;  %527 = vmatpush2.bf16.msra.mxu0 %v840_v10 }
  0x9c   :  { %570 = vmatpush2.bf16.msra.mxu1 %v841_v11  ;;  %528 = vmatprep.subr.bf16.mxu0 %v842_v12 }
  0x9d   :  { %571 = vmatprep.subr.bf16.mxu1 %v844_v13 }
  0x9f   :  { %50 = vadd.xlane.f32.xlu1 %v49_v57  ;;  %529 = vmatpush2.bf16.msra.mxu0 %v846_v14 }
  0xa0   :  { %572 = vmatpush2.bf16.msra.mxu1 %v847_v15  ;;  %530 = vmatprep.subr.bf16.mxu0 %v848_v16 }
  0xa1   :  { %573 = vmatprep.subr.bf16.mxu1 %v850_v17 }
  0xa3   :  { %531 = vmatpush2.bf16.msra.mxu0 %v852_v18 }
  0xa4   :  { %574 = vmatpush2.bf16.msra.mxu1 %v853_v19  ;;  %532 = vmatprep.subr.bf16.mxu0 %v854_v20 }
  0xa5   :  { %575 = vmatprep.subr.bf16.mxu1 %v856_v21 }
  0xa7   :  { %533 = vmatpush2.bf16.msra.mxu0 %v858_v22 }
  0xa8   :  { %576 = vmatpush2.bf16.msra.mxu1 %v859_v23 }
 0x124   :  { %v46_v24 = vpop.xlane.xlu1 %45 }
 0x125   :  { %v52_v25 = vmul.f32 0.00390625, %v46_v24 }
 0x127   :  { %v54_v26 = vadd.f32 1e-05, %v52_v25 }
 0x128   :  { %v51_v27 = vpop.xlane.xlu1 %50 }
 0x129   :  { %860 = vrsqrt.f32 %v54_v26  ;;  %v53_v28 = vmul.f32 0.00390625, %v51_v27 }
 0x12b   :  { %v55_v29 = vadd.f32 1e-05, %v53_v28 }
 0x12d   :  { %862 = vrsqrt.f32 %v55_v29 }
 0x136   :  { %v861_v35 = vpop.eup %860 }
 0x137   :  { %v59_v36 = vmul.f32 %v861_v35, %v1048_v49  ;;  %v58_v40 = vmul.f32 %v861_v35, %v1045_v48  ;;  %v172_v48 = vsub.s32 2, %v65_v31 }
 0x139   :  { %v75_v47 = vmul.f32 %v71_v38, %v59_v36  ;;  %v74_v51 = vmul.f32 %v67_v37, %v58_v40 }
 0x13a   :  { %v863_v41 = vpop.eup %862 }
 0x13b   :  { %v61_v46 = vmul.f32 %v863_v41, %v1042_v45  ;;  %v60_v50 = vmul.f32 %v863_v41, %v1039_v44  ;;  %v91_v49 = vadd.f32 %v87_v43, %v75_v47  ;;  %v90_v55 = vadd.f32 %v83_v42, %v74_v51  ;;  %v160_v45 = vld [vmem:[%s1214_s2] sm:$0xf] }
 0x13c   :  { %v165_v44 = vrot.slane %v160_v45, %v66_v32  ;;  %v173_v60 = vrot.slane %v160_v45, %v172_v48  ;;  %v169_v63 = vrot.slane %v160_v45, %v70_v33  ;;  %v177_v0 = vrot.slane %v160_v45, %v176_v59 }
 0x13d   :  { %v77_v52 = vmul.f32 %v71_v38, %v61_v46  ;;  %v76_v53 = vmul.f32 %v67_v37, %v60_v50 }
 0x13f   :  { %v93_v54 = vadd.f32 %v87_v43, %v77_v52  ;;  %v92_v56 = vadd.f32 %v83_v42, %v76_v53 }
 0x141   :  { %v95_v57 = vpack.c.bf16 %v93_v54, %v91_v49  ;;  %v94_v58 = vpack.c.bf16 %v92_v56, %v90_v55 }
 0x143   :  { %534 = vmatprep.mubr.bf16.mxu0 %v95_v57  ;;  %577 = vmatprep.mubr.bf16.mxu1 %v95_v57 }
 0x144   :  { %535 = vmatmul.mubr.bf16.vlgmr.msra.gmra.mxu0 %v94_v58  ;;  %578 = vmatmul.mubr.bf16.vlgmr.msra.gmra.mxu1 %v94_v58 }
 0x204   :  { %v536_v61 = vpop.f32.mrf.mxu0  ;;  %v579_v62 = vpop.f32.mrf.mxu1 }
 0x205   :  { %v1163_v1 = vadd.f32 %v536_v61, %v165_v44  ;;  %v1165_v2 = vadd.f32 %v579_v62, %v173_v60 }
 0x206   :  { %v538_v3 = vpop.f32.mrf.mxu0  ;;  %v581_v4 = vpop.f32.mrf.mxu1 }
 0x207   :  { %v596_v5 = vmul.f32 0.044715, %v1163_v1  ;;  %v598_v6 = vmul.f32 0.044715, %v1165_v2  ;;  %v539_v7 = vadd.f32 %v538_v3, %v169_v63  ;;  %v1169_v8 = vadd.f32 %v581_v4, %v177_v0 }
 0x208   :  { %v540_v9 = vpop.f32.mrf.mxu0  ;;  %v583_v10 = vpop.f32.mrf.mxu1  ;;  %v588_v61 = vmul.f32 0.5, %v1163_v1 }
 0x209   :  { %v604_v11 = vmul.f32 %v596_v5, %v1163_v1  ;;  %v606_v12 = vmul.f32 %v598_v6, %v1165_v2  ;;  %v1173_v13 = vadd.f32 %v540_v9, %v165_v44  ;;  %v1175_v14 = vadd.f32 %v583_v10, %v173_v60 }
 0x20a   :  { %v597_v15 = vmul.f32 0.044715, %v539_v7  ;;  %v599_v16 = vmul.f32 0.044715, %v1169_v8  ;;  %v542_v17 = vpop.f32.mrf.mxu0  ;;  %v585_v21 = vpop.f32.mrf.mxu1  ;;  %v589_v62 = vmul.f32 0.5, %v539_v7  ;;  %v591_v3 = vmul.f32 0.5, %v1169_v8 }
 0x20b   :  { %v612_v18 = vmul.f32 %v604_v11, %v1163_v1  ;;  %v614_v19 = vmul.f32 %v606_v12, %v1165_v2  ;;  %v600_v20 = vmul.f32 0.044715, %v1173_v13  ;;  %v602_v24 = vmul.f32 0.044715, %v1175_v14 }
 0x20c   :  { %v605_v22 = vmul.f32 %v597_v15, %v539_v7  ;;  %v607_v23 = vmul.f32 %v599_v16, %v1169_v8  ;;  %v543_v28 = vadd.f32 %v542_v17, %v169_v63  ;;  %v586_v32 = vadd.f32 %v585_v21, %v177_v0 }
 0x20d   :  { %v620_v25 = vadd.f32 %v612_v18, %v1163_v1  ;;  %v622_v26 = vadd.f32 %v614_v19, %v1165_v2  ;;  %v608_v27 = vmul.f32 %v600_v20, %v1173_v13  ;;  %v610_v31 = vmul.f32 %v602_v24, %v1175_v14 }
 0x20e   :  { %v613_v29 = vmul.f32 %v605_v22, %v539_v7  ;;  %v615_v30 = vmul.f32 %v607_v23, %v1169_v8  ;;  %v601_v39 = vmul.f32 0.044715, %v543_v28  ;;  %v603_v41 = vmul.f32 0.044715, %v586_v32 }
 0x20f   :  { %v628_v33 = vmul.f32 0.7978846, %v620_v25  ;;  %v630_v34 = vmul.f32 0.7978846, %v622_v26  ;;  %v616_v35 = vmul.f32 %v608_v27, %v1173_v13  ;;  %v618_v38 = vmul.f32 %v610_v31, %v1175_v14 }
 0x210   :  { %v621_v36 = vadd.f32 %v613_v29, %v539_v7  ;;  %v623_v37 = vadd.f32 %v615_v30, %v1169_v8  ;;  %v609_v50 = vmul.f32 %v601_v39, %v543_v28  ;;  %v611_v51 = vmul.f32 %v603_v41, %v586_v32 }
 0x211   :  { %864 = vtanh.f32 %v628_v33  ;;  %v624_v40 = vadd.f32 %v616_v35, %v1173_v13  ;;  %v626_v46 = vadd.f32 %v618_v38, %v1175_v14  ;;  %v590_v0 = vmul.f32 0.5, %v1165_v2 }
 0x212   :  { %866 = vtanh.f32 %v630_v34  ;;  %v629_v42 = vmul.f32 0.7978846, %v621_v36  ;;  %v631_v43 = vmul.f32 0.7978846, %v623_v37  ;;  %v617_v53 = vmul.f32 %v609_v50, %v543_v28 }
 0x213   :  { %v632_v47 = vmul.f32 0.7978846, %v624_v40  ;;  %v634_v52 = vmul.f32 0.7978846, %v626_v46  ;;  %v619_v49 = vmul.f32 %v611_v51, %v586_v32  ;;  %v592_v2 = vmul.f32 0.5, %v1173_v13 }
 0x214   :  { %868 = vtanh.f32 %v629_v42  ;;  %v625_v54 = vadd.f32 %v617_v53, %v543_v28  ;;  %v593_v8 = vmul.f32 0.5, %v543_v28  ;;  %v594_v20 = vmul.f32 0.5, %v1175_v14 }
 0x215   :  { %870 = vtanh.f32 %v631_v43  ;;  %v627_v55 = vadd.f32 %v619_v49, %v586_v32  ;;  %v595_v21 = vmul.f32 0.5, %v586_v32 }
 0x216   :  { %872 = vtanh.f32 %v632_v47  ;;  %v633_v56 = vmul.f32 0.7978846, %v625_v54 }
 0x217   :  { %874 = vtanh.f32 %v634_v52  ;;  %v635_v57 = vmul.f32 0.7978846, %v627_v55 }
 0x218   :  { %876 = vtanh.f32 %v633_v56 }
 0x219   :  { %878 = vtanh.f32 %v635_v57 }
 0x21e   :  { %v865_v58 = vpop.eup %864 }
 0x21f   :  { %v867_v48 = vpop.eup %866  ;;  %v644_v45 = vadd.f32 1.0, %v865_v58 }
 0x220   :  { %v646_v44 = vadd.f32 1.0, %v867_v48 }
 0x221   :  { %v869_v59 = vpop.eup %868  ;;  %v652_v6 = vmul.f32 %v644_v45, %v588_v61 }
 0x222   :  { %v871_v60 = vpop.eup %870  ;;  %v645_v63 = vadd.f32 1.0, %v869_v59  ;;  %v654_v11 = vmul.f32 %v646_v44, %v590_v0 }
 0x223   :  { %v647_v4 = vadd.f32 1.0, %v871_v60  ;;  %v873_v5 = vpop.eup %872 }
 0x224   :  { %v653_v9 = vmul.f32 %v645_v63, %v589_v62  ;;  %v875_v10 = vpop.eup %874  ;;  %v648_v17 = vadd.f32 1.0, %v873_v5 }
 0x225   :  { %v655_v12 = vmul.f32 %v647_v4, %v591_v3  ;;  %v877_v18 = vpop.eup %876  ;;  %v650_v1 = vadd.f32 1.0, %v875_v10 }
 0x226   :  { %v760_v15 = vpack.c.bf16 %v653_v9, %v652_v6  ;;  %v879_v7 = vpop.eup %878  ;;  %v649_v19 = vadd.f32 1.0, %v877_v18  ;;  %v656_v23 = vmul.f32 %v648_v17, %v592_v2 }
 0x227   :  { %v761_v16 = vpack.c.bf16 %v655_v12, %v654_v11  ;;  %v651_v22 = vadd.f32 1.0, %v879_v7  ;;  %v658_v25 = vmul.f32 %v650_v1, %v594_v20 }
 0x228   :  { %684 = vst [vmem:[%s1215_s5] sm:$0xff] %v760_v15  ;;  %v657_v24 = vmul.f32 %v649_v19, %v593_v8 }
 0x229   :  { %685 = vst [vmem:[%s1215_s5 + $0x8] sm:$0xff] %v761_v16  ;;  %v659_v26 = vmul.f32 %v651_v22, %v595_v21 }
 0x22a   :  { %v762_v27 = vpack.c.bf16 %v657_v24, %v656_v23 }
 0x22b   :  { %v763_v29 = vpack.c.bf16 %v659_v26, %v658_v25 }
 0x22c   :  { %686 = vst [vmem:[%s1215_s5 + $0x10] sm:$0x11] %v762_v27 }
 0x22d   :  { %687 = vst [vmem:[%s1215_s5 + $0x18] sm:$0x11] %v763_v29 }

// kernel: _lambda_.35
= control target key start
LH: loop header
LB: loop body
LE: loop exit
PB: predicated region body
PF: predicated region fallthrough
CT: control target
= control target key end

     0   :  { %vm27_vm0 = vcmask 1041408   ;;  %v64_v62 = vlaneseq  ;;  %s608_s0 = inlined_call_operand.vmem [shape: f32[10,256], index: 0, kind: input, shape index: {}]   ;;  %s609_s1 = inlined_call_operand.vmem [shape: bf16[256,256], index: 1, kind: input, shape index: {}]   ;;  %s610_s3 = inlined_call_operand.vmem [shape: f32[1,256], index: 3, kind: input, shape index: {}]   ;;  %s611_s4 = inlined_call_operand.vmem [shape: f32[1,256], index: 4, kind: input, shape index: {}, may-alias: {2,4}]   ;;  %s612_s2 = inlined_call_operand.vmem [shape: f32[1,256], index: 2, kind: input, shape index: {}, may-alias: {2,4}]   ;;  %s613_s5 = inlined_call_operand.vmem [shape: f32[10,256], index: 5, kind: output, shape index: {}]  }
   0x1   :  { %v22_v0 = vld [vmem:[%s608_s0 + $0x10] sm:$0x3]  ;;  %v23_v1 = vld [vmem:[%s608_s0 + $0x18] sm:$0x3]  ;;  %v20_v4 = vld [vmem:[%s608_s0] sm:$0xff] }
   0x2   :  { %v28_v2 = vsel %vm27_vm0, %v22_v0, 0.0  ;;  %v29_v3 = vsel %vm27_vm0, %v23_v1, 0.0  ;;  %v21_v5 = vld [vmem:[%s608_s0 + $0x8] sm:$0xff]  ;;  %v383_v8 = vld [vmem:[%s609_s1 + $0x74] ss:$8 sps:$4 sm:$0xff]   ;;  %v65_v63 = vshrl.u32 %v64_v62, 7 }
   0x3   :  { %v30_v6 = vadd.f32 %v29_v3, %v28_v2  ;;  %v24_v7 = vadd.f32 %v21_v5, %v20_v4  ;;  %v385_v9 = vld [vmem:[%s609_s1 + $0x70] ss:$8 sps:$4 sm:$0xff]   ;;  %300 = vmatprep.subr.bf16.mxu0 %v383_v8  ;;  %v386_v10 = vld [vmem:[%s609_s1 + $0x64] ss:$8 sps:$4 sm:$0xff]   ;;  %v388_v11 = vld [vmem:[%s609_s1 + $0x60] ss:$8 sps:$4 sm:$0xff]  }
   0x4   :  { %301 = vmatpush1.bf16.msra.mxu0 %v385_v9  ;;  %v389_v12 = vld [vmem:[%s609_s1 + $0x54] ss:$8 sps:$4 sm:$0xff]   ;;  %v391_v13 = vld [vmem:[%s609_s1 + $0x50] ss:$8 sps:$4 sm:$0xff]   ;;  %v392_v14 = vld [vmem:[%s609_s1 + $0x44] ss:$8 sps:$4 sm:$0xff]  }
   0x5   :  { %31 = vadd.xlane.f32.xlu0 %v30_v6  ;;  %302 = vmatprep.subr.bf16.mxu0 %v386_v10  ;;  %v394_v15 = vld [vmem:[%s609_s1 + $0x40] ss:$8 sps:$4 sm:$0xff]   ;;  %v395_v16 = vld [vmem:[%s609_s1 + $0x34] ss:$8 sps:$4 sm:$0xff]   ;;  %v397_v17 = vld [vmem:[%s609_s1 + $0x30] ss:$8 sps:$4 sm:$0xff]  }
   0x6   :  { %v398_v18 = vld [vmem:[%s609_s1 + $0x24] ss:$8 sps:$4 sm:$0xff]   ;;  %v400_v19 = vld [vmem:[%s609_s1 + $0x20] ss:$8 sps:$4 sm:$0xff]   ;;  %v401_v20 = vld [vmem:[%s609_s1 + $0x14] ss:$8 sps:$4 sm:$0xff]  }
   0x7   :  { %v403_v21 = vld [vmem:[%s609_s1 + $0x10] ss:$8 sps:$4 sm:$0xff]   ;;  %v404_v22 = vld [vmem:[%s609_s1 + $0x4] ss:$8 sps:$4 sm:$0xff]   ;;  %v406_v23 = vld [vmem:[%s609_s1] ss:$8 sps:$4 sm:$0xff]  }
   0x8   :  { %303 = vmatpush1.bf16.msra.mxu0 %v388_v11  ;;  %v407_v24 = vld [vmem:[%s609_s1 + $0xf4] ss:$8 sps:$4 sm:$0xff]   ;;  %v409_v41 = vld [vmem:[%s609_s1 + $0xf0] ss:$8 sps:$4 sm:$0xff]   ;;  %v410_v42 = vld [vmem:[%s609_s1 + $0xe4] ss:$8 sps:$4 sm:$0xff]  }
   0x9   :  { %25 = vadd.xlane.f32.xlu0 %v24_v7  ;;  %304 = vmatprep.subr.bf16.mxu0 %v389_v12  ;;  %v412_v43 = vld [vmem:[%s609_s1 + $0xe0] ss:$8 sps:$4 sm:$0xff]   ;;  %v413_v44 = vld [vmem:[%s609_s1 + $0xd4] ss:$8 sps:$4 sm:$0xff]   ;;  %v415_v45 = vld [vmem:[%s609_s1 + $0xd0] ss:$8 sps:$4 sm:$0xff]  }
   0xa   :  { %v416_v46 = vld [vmem:[%s609_s1 + $0xc4] ss:$8 sps:$4 sm:$0xff]   ;;  %v418_v47 = vld [vmem:[%s609_s1 + $0xc0] ss:$8 sps:$4 sm:$0xff]   ;;  %v419_v48 = vld [vmem:[%s609_s1 + $0xb4] ss:$8 sps:$4 sm:$0xff]  }
   0xb   :  { %v421_v49 = vld [vmem:[%s609_s1 + $0xb0] ss:$8 sps:$4 sm:$0xff]   ;;  %v422_v50 = vld [vmem:[%s609_s1 + $0xa4] ss:$8 sps:$4 sm:$0xff]   ;;  %v424_v51 = vld [vmem:[%s609_s1 + $0xa0] ss:$8 sps:$4 sm:$0xff]  }
   0xc   :  { %305 = vmatpush1.bf16.msra.mxu0 %v391_v13  ;;  %v425_v52 = vld [vmem:[%s609_s1 + $0x94] ss:$8 sps:$4 sm:$0xff]   ;;  %v427_v53 = vld [vmem:[%s609_s1 + $0x90] ss:$8 sps:$4 sm:$0xff]   ;;  %v428_v54 = vld [vmem:[%s609_s1 + $0x84] ss:$8 sps:$4 sm:$0xff]  }
   0xd   :  { %306 = vmatprep.subr.bf16.mxu0 %v392_v14  ;;  %v430_v55 = vld [vmem:[%s609_s1 + $0x80] ss:$8 sps:$4 sm:$0xff]  }
   0xe   :  { %v62_v2 = vld [vmem:[%s610_s3] sm:$0x3] }
   0xf   :  { %v78_v7 = vld [vmem:[%s611_s4] sm:$0x3] }
  0x10   :  { %307 = vmatpush1.bf16.msra.mxu0 %v394_v15 }
  0x11   :  { %308 = vmatprep.subr.bf16.mxu0 %v395_v16 }
  0x14   :  { %309 = vmatpush1.bf16.msra.mxu0 %v397_v17 }
  0x15   :  { %310 = vmatprep.subr.bf16.mxu0 %v398_v18 }
  0x18   :  { %311 = vmatpush1.bf16.msra.mxu0 %v400_v19 }
  0x19   :  { %312 = vmatprep.subr.bf16.mxu0 %v401_v20 }
  0x1c   :  { %313 = vmatpush1.bf16.msra.mxu0 %v403_v21 }
  0x1d   :  { %314 = vmatprep.subr.bf16.mxu0 %v404_v22 }
  0x20   :  { %315 = vmatpush1.bf16.msra.mxu0 %v406_v23 }
  0x21   :  { %316 = vmatprep.subr.bf16.mxu0 %v407_v24  ;;  %v128_v24 = vld [vmem:[%s612_s2] sm:$0x3] }
  0x24   :  { %317 = vmatpush2.bf16.msra.mxu0 %v409_v41 }
  0x25   :  { %318 = vmatprep.subr.bf16.mxu0 %v410_v42 }
  0x28   :  { %319 = vmatpush2.bf16.msra.mxu0 %v412_v43 }
  0x29   :  { %320 = vmatprep.subr.bf16.mxu0 %v413_v44 }
  0x2c   :  { %321 = vmatpush2.bf16.msra.mxu0 %v415_v45 }
  0x2d   :  { %322 = vmatprep.subr.bf16.mxu0 %v416_v46 }
  0x30   :  { %323 = vmatpush2.bf16.msra.mxu0 %v418_v47 }
  0x31   :  { %324 = vmatprep.subr.bf16.mxu0 %v419_v48 }
  0x34   :  { %325 = vmatpush2.bf16.msra.mxu0 %v421_v49 }
  0x35   :  { %326 = vmatprep.subr.bf16.mxu0 %v422_v50 }
  0x38   :  { %327 = vmatpush2.bf16.msra.mxu0 %v424_v51 }
  0x39   :  { %328 = vmatprep.subr.bf16.mxu0 %v425_v52 }
  0x3c   :  { %329 = vmatpush2.bf16.msra.mxu0 %v427_v53 }
  0x3d   :  { %330 = vmatprep.subr.bf16.mxu0 %v428_v54 }
  0x40   :  { %331 = vmatpush2.bf16.msra.mxu0 %v430_v55 }
  0x8e   :  { %v32_v25 = vpop.xlane.xlu0 %31 }
  0x8f   :  { %v35_v26 = vmul.f32 0.00390625, %v32_v25 }
  0x91   :  { %v530_v27 = vsub.f32 %v22_v0, %v35_v26  ;;  %v532_v28 = vsub.f32 %v23_v1, %v35_v26  ;;  %v66_v0 = vsub.s32 0, %v65_v63  ;;  %v70_v1 = vsub.s32 1, %v65_v63 }
  0x92   :  { %v26_v29 = vpop.xlane.xlu0 %25 }
  0x93   :  { %v34_v30 = vmul.f32 0.00390625, %v26_v29  ;;  %v42_v33 = vmul.f32 %v530_v27, %v530_v27  ;;  %v43_v34 = vmul.f32 %v532_v28, %v532_v28  ;;  %v71_v6 = vrot.slane %v62_v2, %v70_v1 }
  0x94   :  { %v83_v10 = vrot.slane %v78_v7, %v66_v0  ;;  %v87_v11 = vrot.slane %v78_v7, %v70_v1  ;;  %v133_v25 = vrot.slane %v128_v24, %v66_v0  ;;  %v137_v26 = vrot.slane %v128_v24, %v70_v1 }
  0x95   :  { %v36_v31 = vsub.f32 %v20_v4, %v34_v30  ;;  %v37_v32 = vsub.f32 %v21_v5, %v34_v30  ;;  %v47_v38 = vsel %vm27_vm0, %v42_v33, 0.0  ;;  %v48_v39 = vsel %vm27_vm0, %v43_v34, 0.0 }
  0x96   :  { %v49_v40 = vadd.f32 %v48_v39, %v47_v38  ;;  %v67_v5 = vrot.slane %v62_v2, %v66_v0 }
  0x97   :  { %v40_v35 = vmul.f32 %v36_v31, %v36_v31  ;;  %v41_v36 = vmul.f32 %v37_v32, %v37_v32 }
  0x99   :  { %v44_v37 = vadd.f32 %v41_v36, %v40_v35 }
  0x9b   :  { %45 = vadd.xlane.f32.xlu1 %v44_v37 }
  0x9f   :  { %50 = vadd.xlane.f32.xlu1 %v49_v40 }
 0x124   :  { %v46_v56 = vpop.xlane.xlu1 %45 }
 0x125   :  { %v52_v57 = vmul.f32 0.00390625, %v46_v56 }
 0x127   :  { %v54_v58 = vadd.f32 1e-05, %v52_v57 }
 0x128   :  { %v51_v59 = vpop.xlane.xlu1 %50 }
 0x129   :  { %431 = vrsqrt.f32 %v54_v58  ;;  %v53_v60 = vmul.f32 0.00390625, %v51_v59 }
 0x12b   :  { %v55_v61 = vadd.f32 1e-05, %v53_v60 }
 0x12d   :  { %433 = vrsqrt.f32 %v55_v61 }
 0x136   :  { %v432_v3 = vpop.eup %431 }
 0x137   :  { %v59_v4 = vmul.f32 %v432_v3, %v37_v32  ;;  %v58_v8 = vmul.f32 %v432_v3, %v36_v31 }
 0x139   :  { %v75_v13 = vmul.f32 %v71_v6, %v59_v4  ;;  %v74_v15 = vmul.f32 %v67_v5, %v58_v8 }
 0x13a   :  { %v434_v9 = vpop.eup %433 }
 0x13b   :  { %v61_v12 = vmul.f32 %v434_v9, %v532_v28  ;;  %v60_v14 = vmul.f32 %v434_v9, %v530_v27  ;;  %v91_v18 = vadd.f32 %v87_v11, %v75_v13  ;;  %v90_v20 = vadd.f32 %v83_v10, %v74_v15 }
 0x13d   :  { %v77_v16 = vmul.f32 %v71_v6, %v61_v12  ;;  %v76_v17 = vmul.f32 %v67_v5, %v60_v14 }
 0x13f   :  { %v93_v19 = vadd.f32 %v87_v11, %v77_v16  ;;  %v92_v21 = vadd.f32 %v83_v10, %v76_v17 }
 0x141   :  { %v95_v22 = vpack.c.bf16 %v93_v19, %v91_v18  ;;  %v94_v23 = vpack.c.bf16 %v92_v21, %v90_v20 }
 0x143   :  { %332 = vmatprep.mubr.bf16.mxu0 %v95_v22 }
 0x144   :  { %333 = vmatmul.mubr.bf16.vlgmr.msra.gmra.mxu0 %v94_v23 }
 0x204   :  { %v334_v28 = vpop.f32.mrf.mxu0 }
 0x205   :  { %v335_v29 = vadd.f32 %v334_v28, %v133_v25 }
 0x206   :  { %v336_v27 = vpop.f32.mrf.mxu0 }
 0x207   :  { %343 = vst [vmem:[%s613_s5] sm:$0xff] %v335_v29  ;;  %v337_v30 = vadd.f32 %v336_v27, %v137_v26 }
 0x208   :  { %v338_v31 = vpop.f32.mrf.mxu0 }
 0x209   :  { %344 = vst [vmem:[%s613_s5 + $0x8] sm:$0xff] %v337_v30  ;;  %v339_v32 = vadd.f32 %v338_v31, %v133_v25 }
 0x20a   :  { %v340_v33 = vpop.f32.mrf.mxu0 }
 0x20b   :  { %345 = vst [vmem:[%s613_s5 + $0x10] sm:$0x3] %v339_v32  ;;  %v341_v34 = vadd.f32 %v340_v33, %v137_v26 }
 0x20d   :  { %346 = vst [vmem:[%s613_s5 + $0x18] sm:$0x3] %v341_v34 }

// kernel: _lambda_.29
= control target key start
LH: loop header
LB: loop body
LE: loop exit
PB: predicated region body
PF: predicated region fallthrough
CT: control target
= control target key end

     0   :  { %s965_s1 = inlined_call_operand.vmem [shape: bf16[512,256], index: 1, kind: input, shape index: {}]   ;;  %s966_s0 = inlined_call_operand.vmem [shape: bf16[10,512], index: 0, kind: input, shape index: {}]   ;;  %s967_s2 = inlined_call_operand.vmem [shape: f32[1,256], index: 2, kind: input, shape index: {}]   ;;  %s968_s3 = inlined_call_operand.vmem [shape: f32[10,256], index: 3, kind: input, shape index: {}]   ;;  %s969_s4 = inlined_call_operand.vmem [shape: f32[10,256], index: 4, kind: output, shape index: {}]  }
   0x1   :  { %v607_v0 = vld [vmem:[%s965_s1 + $0x74] ss:$8 sps:$4 sm:$0xff]   ;;  %v611_v2 = vld [vmem:[%s965_s1 + $0x70] ss:$8 sps:$4 sm:$0xff]   ;;  %v613_v4 = vld [vmem:[%s965_s1 + $0x64] ss:$8 sps:$4 sm:$0xff]  }
   0x2   :  { %v609_v1 = vld [vmem:[%s965_s1 + $0x174] ss:$8 sps:$4 sm:$0xff]   ;;  %437 = vmatprep.subr.bf16.mxu0 %v607_v0  ;;  %v612_v3 = vld [vmem:[%s965_s1 + $0x170] ss:$8 sps:$4 sm:$0xff]   ;;  %v615_v5 = vld [vmem:[%s965_s1 + $0x164] ss:$8 sps:$4 sm:$0xff]  }
   0x3   :  { %480 = vmatprep.subr.bf16.mxu1 %v609_v1  ;;  %438 = vmatpush1.bf16.msra.mxu0 %v611_v2  ;;  %v617_v6 = vld [vmem:[%s965_s1 + $0x60] ss:$8 sps:$4 sm:$0xff]   ;;  %v619_v8 = vld [vmem:[%s965_s1 + $0x54] ss:$8 sps:$4 sm:$0xff]   ;;  %v623_v10 = vld [vmem:[%s965_s1 + $0x50] ss:$8 sps:$4 sm:$0xff]  }
   0x4   :  { %481 = vmatpush1.bf16.msra.mxu1 %v612_v3  ;;  %439 = vmatprep.subr.bf16.mxu0 %v613_v4  ;;  %v618_v7 = vld [vmem:[%s965_s1 + $0x160] ss:$8 sps:$4 sm:$0xff]   ;;  %v621_v9 = vld [vmem:[%s965_s1 + $0x154] ss:$8 sps:$4 sm:$0xff]   ;;  %v624_v11 = vld [vmem:[%s965_s1 + $0x150] ss:$8 sps:$4 sm:$0xff]   ;;  %v87_v4 = vlaneseq }
   0x5   :  { %482 = vmatprep.subr.bf16.mxu1 %v615_v5  ;;  %v625_v12 = vld [vmem:[%s965_s1 + $0x44] ss:$8 sps:$4 sm:$0xff]   ;;  %v629_v14 = vld [vmem:[%s965_s1 + $0x40] ss:$8 sps:$4 sm:$0xff]   ;;  %v631_v16 = vld [vmem:[%s965_s1 + $0x34] ss:$8 sps:$4 sm:$0xff]  }
   0x6   :  { %v627_v13 = vld [vmem:[%s965_s1 + $0x144] ss:$8 sps:$4 sm:$0xff]   ;;  %v630_v15 = vld [vmem:[%s965_s1 + $0x140] ss:$8 sps:$4 sm:$0xff]   ;;  %v633_v17 = vld [vmem:[%s965_s1 + $0x134] ss:$8 sps:$4 sm:$0xff]  }
   0x7   :  { %440 = vmatpush1.bf16.msra.mxu0 %v617_v6  ;;  %v635_v18 = vld [vmem:[%s965_s1 + $0x30] ss:$8 sps:$4 sm:$0xff]   ;;  %v637_v20 = vld [vmem:[%s965_s1 + $0x24] ss:$8 sps:$4 sm:$0xff]   ;;  %v641_v22 = vld [vmem:[%s965_s1 + $0x20] ss:$8 sps:$4 sm:$0xff]  }
   0x8   :  { %483 = vmatpush1.bf16.msra.mxu1 %v618_v7  ;;  %441 = vmatprep.subr.bf16.mxu0 %v619_v8  ;;  %v636_v19 = vld [vmem:[%s965_s1 + $0x130] ss:$8 sps:$4 sm:$0xff]   ;;  %v639_v21 = vld [vmem:[%s965_s1 + $0x124] ss:$8 sps:$4 sm:$0xff]   ;;  %v642_v23 = vld [vmem:[%s965_s1 + $0x120] ss:$8 sps:$4 sm:$0xff]  }
   0x9   :  { %484 = vmatprep.subr.bf16.mxu1 %v621_v9  ;;  %v643_v24 = vld [vmem:[%s965_s1 + $0x14] ss:$8 sps:$4 sm:$0xff]   ;;  %v647_v26 = vld [vmem:[%s965_s1 + $0x10] ss:$8 sps:$4 sm:$0xff]   ;;  %v649_v28 = vld [vmem:[%s965_s1 + $0x4] ss:$8 sps:$4 sm:$0xff]  }
   0xa   :  { %v645_v25 = vld [vmem:[%s965_s1 + $0x114] ss:$8 sps:$4 sm:$0xff]   ;;  %v648_v27 = vld [vmem:[%s965_s1 + $0x110] ss:$8 sps:$4 sm:$0xff]   ;;  %v651_v29 = vld [vmem:[%s965_s1 + $0x104] ss:$8 sps:$4 sm:$0xff]  }
   0xb   :  { %442 = vmatpush1.bf16.msra.mxu0 %v623_v10  ;;  %v653_v30 = vld [vmem:[%s965_s1] ss:$8 sps:$4 sm:$0xff]   ;;  %v655_v32 = vld [vmem:[%s965_s1 + $0xf4] ss:$8 sps:$4 sm:$0xff]   ;;  %v659_v34 = vld [vmem:[%s965_s1 + $0xf0] ss:$8 sps:$4 sm:$0xff]  }
   0xc   :  { %485 = vmatpush1.bf16.msra.mxu1 %v624_v11  ;;  %443 = vmatprep.subr.bf16.mxu0 %v625_v12  ;;  %v654_v31 = vld [vmem:[%s965_s1 + $0x100] ss:$8 sps:$4 sm:$0xff]   ;;  %v657_v33 = vld [vmem:[%s965_s1 + $0x1f4] ss:$8 sps:$4 sm:$0xff]   ;;  %v660_v35 = vld [vmem:[%s965_s1 + $0x1f0] ss:$8 sps:$4 sm:$0xff]  }
   0xd   :  { %486 = vmatprep.subr.bf16.mxu1 %v627_v13  ;;  %v661_v36 = vld [vmem:[%s965_s1 + $0xe4] ss:$8 sps:$4 sm:$0xff]   ;;  %v665_v38 = vld [vmem:[%s965_s1 + $0xe0] ss:$8 sps:$4 sm:$0xff]   ;;  %v667_v40 = vld [vmem:[%s965_s1 + $0xd4] ss:$8 sps:$4 sm:$0xff]  }
   0xe   :  { %v663_v37 = vld [vmem:[%s965_s1 + $0x1e4] ss:$8 sps:$4 sm:$0xff]   ;;  %v666_v39 = vld [vmem:[%s965_s1 + $0x1e0] ss:$8 sps:$4 sm:$0xff]   ;;  %v669_v41 = vld [vmem:[%s965_s1 + $0x1d4] ss:$8 sps:$4 sm:$0xff]  }
   0xf   :  { %444 = vmatpush1.bf16.msra.mxu0 %v629_v14  ;;  %v671_v42 = vld [vmem:[%s965_s1 + $0xd0] ss:$8 sps:$4 sm:$0xff]   ;;  %v673_v44 = vld [vmem:[%s965_s1 + $0xc4] ss:$8 sps:$4 sm:$0xff]   ;;  %v677_v46 = vld [vmem:[%s965_s1 + $0xc0] ss:$8 sps:$4 sm:$0xff]  }
  0x10   :  { %487 = vmatpush1.bf16.msra.mxu1 %v630_v15  ;;  %445 = vmatprep.subr.bf16.mxu0 %v631_v16  ;;  %v672_v43 = vld [vmem:[%s965_s1 + $0x1d0] ss:$8 sps:$4 sm:$0xff]   ;;  %v675_v45 = vld [vmem:[%s965_s1 + $0x1c4] ss:$8 sps:$4 sm:$0xff]   ;;  %v678_v47 = vld [vmem:[%s965_s1 + $0x1c0] ss:$8 sps:$4 sm:$0xff]  }
  0x11   :  { %488 = vmatprep.subr.bf16.mxu1 %v633_v17  ;;  %v679_v48 = vld [vmem:[%s965_s1 + $0xb4] ss:$8 sps:$4 sm:$0xff]   ;;  %v683_v52 = vld [vmem:[%s965_s1 + $0xb0] ss:$8 sps:$4 sm:$0xff]   ;;  %v685_v54 = vld [vmem:[%s965_s1 + $0xa4] ss:$8 sps:$4 sm:$0xff]  }
  0x12   :  { %v705_v49 = vld [vmem:[%s966_s0 + $0x4] ss:$16 sps:$4 sm:$0x1f]   ;;  %v708_v51 = vld [vmem:[%s966_s0 + $0xc] ss:$16 sps:$4 sm:$0x1f]  }
  0x13   :  { %446 = vmatpush1.bf16.msra.mxu0 %v635_v18  ;;  %v681_v50 = vld [vmem:[%s965_s1 + $0x1b4] ss:$8 sps:$4 sm:$0xff]   ;;  %469 = vmatprep.mubr.bf16.mxu0 %v705_v49  ;;  %v684_v53 = vld [vmem:[%s965_s1 + $0x1b0] ss:$8 sps:$4 sm:$0xff]   ;;  %v687_v55 = vld [vmem:[%s965_s1 + $0x1a4] ss:$8 sps:$4 sm:$0xff]  }
  0x14   :  { %489 = vmatpush1.bf16.msra.mxu1 %v636_v19  ;;  %447 = vmatprep.subr.bf16.mxu0 %v637_v20  ;;  %v689_v56 = vld [vmem:[%s965_s1 + $0xa0] ss:$8 sps:$4 sm:$0xff]   ;;  %v691_v58 = vld [vmem:[%s965_s1 + $0x94] ss:$8 sps:$4 sm:$0xff]   ;;  %v695_v60 = vld [vmem:[%s965_s1 + $0x90] ss:$8 sps:$4 sm:$0xff]  }
  0x15   :  { %490 = vmatprep.subr.bf16.mxu1 %v639_v21  ;;  %512 = vmatprep.mubr.bf16.mxu1 %v708_v51  ;;  %v690_v57 = vld [vmem:[%s965_s1 + $0x1a0] ss:$8 sps:$4 sm:$0xff]   ;;  %v693_v59 = vld [vmem:[%s965_s1 + $0x194] ss:$8 sps:$4 sm:$0xff]   ;;  %v696_v61 = vld [vmem:[%s965_s1 + $0x190] ss:$8 sps:$4 sm:$0xff]  }
  0x16   :  { %v697_v62 = vld [vmem:[%s965_s1 + $0x84] ss:$8 sps:$4 sm:$0xff]   ;;  %v701_v0 = vld [vmem:[%s965_s1 + $0x80] ss:$8 sps:$4 sm:$0xff]   ;;  %v88_v5 = vshrl.u32 %v87_v4, 7 }
  0x17   :  { %448 = vmatpush1.bf16.msra.mxu0 %v641_v22  ;;  %v699_v63 = vld [vmem:[%s965_s1 + $0x184] ss:$8 sps:$4 sm:$0xff]   ;;  %v702_v1 = vld [vmem:[%s965_s1 + $0x180] ss:$8 sps:$4 sm:$0xff]  }
  0x18   :  { %491 = vmatpush1.bf16.msra.mxu1 %v642_v23  ;;  %449 = vmatprep.subr.bf16.mxu0 %v643_v24  ;;  %v703_v2 = vld [vmem:[%s966_s0] ss:$16 sps:$4 sm:$0x1f]   ;;  %v706_v3 = vld [vmem:[%s966_s0 + $0x8] ss:$16 sps:$4 sm:$0x1f]  }
  0x19   :  { %492 = vmatprep.subr.bf16.mxu1 %v645_v25  ;;  %v89_v6 = vsub.s32 0, %v88_v5  ;;  %v85_v7 = vld [vmem:[%s967_s2] sm:$0x3]  ;;  %v93_v8 = vsub.s32 1, %v88_v5  ;;  %v524_v19 = vld [vmem:[%s968_s3 + $0x8] sm:$0xff] }
  0x1a   :  { %v523_v14 = vld [vmem:[%s968_s3] sm:$0xff]  ;;  %v525_v25 = vld [vmem:[%s968_s3 + $0x10] sm:$0x3] }
  0x1b   :  { %450 = vmatpush1.bf16.msra.mxu0 %v647_v26  ;;  %v90_v9 = vrot.slane %v85_v7, %v89_v6  ;;  %v94_v10 = vrot.slane %v85_v7, %v93_v8 }
  0x1c   :  { %493 = vmatpush1.bf16.msra.mxu1 %v648_v27  ;;  %451 = vmatprep.subr.bf16.mxu0 %v649_v28 }
  0x1d   :  { %494 = vmatprep.subr.bf16.mxu1 %v651_v29 }
  0x1f   :  { %452 = vmatpush1.bf16.msra.mxu0 %v653_v30 }
  0x20   :  { %495 = vmatpush1.bf16.msra.mxu1 %v654_v31  ;;  %453 = vmatprep.subr.bf16.mxu0 %v655_v32  ;;  %v526_v31 = vld [vmem:[%s968_s3 + $0x18] sm:$0x3] }
  0x21   :  { %496 = vmatprep.subr.bf16.mxu1 %v657_v33 }
  0x23   :  { %454 = vmatpush2.bf16.msra.mxu0 %v659_v34 }
  0x24   :  { %497 = vmatpush2.bf16.msra.mxu1 %v660_v35  ;;  %455 = vmatprep.subr.bf16.mxu0 %v661_v36 }
  0x25   :  { %498 = vmatprep.subr.bf16.mxu1 %v663_v37 }
  0x27   :  { %456 = vmatpush2.bf16.msra.mxu0 %v665_v38 }
  0x28   :  { %499 = vmatpush2.bf16.msra.mxu1 %v666_v39  ;;  %457 = vmatprep.subr.bf16.mxu0 %v667_v40 }
  0x29   :  { %500 = vmatprep.subr.bf16.mxu1 %v669_v41 }
  0x2b   :  { %458 = vmatpush2.bf16.msra.mxu0 %v671_v42 }
  0x2c   :  { %501 = vmatpush2.bf16.msra.mxu1 %v672_v43  ;;  %459 = vmatprep.subr.bf16.mxu0 %v673_v44 }
  0x2d   :  { %502 = vmatprep.subr.bf16.mxu1 %v675_v45 }
  0x2f   :  { %460 = vmatpush2.bf16.msra.mxu0 %v677_v46 }
  0x30   :  { %503 = vmatpush2.bf16.msra.mxu1 %v678_v47  ;;  %461 = vmatprep.subr.bf16.mxu0 %v679_v48 }
  0x31   :  { %504 = vmatprep.subr.bf16.mxu1 %v681_v50 }
  0x33   :  { %462 = vmatpush2.bf16.msra.mxu0 %v683_v52 }
  0x34   :  { %505 = vmatpush2.bf16.msra.mxu1 %v684_v53  ;;  %463 = vmatprep.subr.bf16.mxu0 %v685_v54 }
  0x35   :  { %506 = vmatprep.subr.bf16.mxu1 %v687_v55 }
  0x37   :  { %464 = vmatpush2.bf16.msra.mxu0 %v689_v56 }
  0x38   :  { %507 = vmatpush2.bf16.msra.mxu1 %v690_v57  ;;  %465 = vmatprep.subr.bf16.mxu0 %v691_v58 }
  0x39   :  { %508 = vmatprep.subr.bf16.mxu1 %v693_v59 }
  0x3b   :  { %466 = vmatpush2.bf16.msra.mxu0 %v695_v60 }
  0x3c   :  { %509 = vmatpush2.bf16.msra.mxu1 %v696_v61  ;;  %467 = vmatprep.subr.bf16.mxu0 %v697_v62 }
  0x3d   :  { %510 = vmatprep.subr.bf16.mxu1 %v699_v63 }
  0x3f   :  { %468 = vmatpush2.bf16.msra.mxu0 %v701_v0 }
  0x40   :  { %511 = vmatpush2.bf16.msra.mxu1 %v702_v1 }
  0x42   :  { %470 = vmatmul.mubr.bf16.vlgmr.msra.gmra.mxu0 %v703_v2 }
  0x43   :  { %513 = vmatmul.mubr.bf16.vlgmr.msra.gmra.mxu1 %v706_v3 }
 0x102   :  { %v471_v11 = vpop.f32.mrf.mxu0 }
 0x103   :  { %v514_v12 = vpop.f32.mrf.mxu1  ;;  %v472_v13 = vadd.f32 %v471_v11, %v90_v9 }
 0x104   :  { %v473_v15 = vpop.f32.mrf.mxu0 }
 0x105   :  { %v516_v16 = vpop.f32.mrf.mxu1  ;;  %v515_v17 = vadd.f32 %v514_v12, %v472_v13  ;;  %v474_v18 = vadd.f32 %v473_v15, %v94_v10 }
 0x106   :  { %v475_v20 = vpop.f32.mrf.mxu0 }
 0x107   :  { %v518_v21 = vpop.f32.mrf.mxu1  ;;  %v527_v22 = vadd.f32 %v523_v14, %v515_v17  ;;  %v517_v23 = vadd.f32 %v516_v16, %v474_v18  ;;  %v476_v24 = vadd.f32 %v475_v20, %v90_v9 }
 0x108   :  { %v477_v26 = vpop.f32.mrf.mxu0 }
 0x109   :  { %531 = vst [vmem:[%s969_s4] sm:$0xff] %v527_v22  ;;  %v528_v27 = vadd.f32 %v524_v19, %v517_v23  ;;  %v519_v28 = vadd.f32 %v518_v21, %v476_v24  ;;  %v478_v29 = vadd.f32 %v477_v26, %v94_v10  ;;  %v520_v30 = vpop.f32.mrf.mxu1 }
 0x10b   :  { %532 = vst [vmem:[%s969_s4 + $0x8] sm:$0xff] %v528_v27  ;;  %v529_v32 = vadd.f32 %v525_v25, %v519_v28  ;;  %v521_v33 = vadd.f32 %v520_v30, %v478_v29 }
 0x10d   :  { %533 = vst [vmem:[%s969_s4 + $0x10] sm:$0x3] %v529_v32  ;;  %v530_v34 = vadd.f32 %v526_v31, %v521_v33 }
 0x10f   :  { %534 = vst [vmem:[%s969_s4 + $0x18] sm:$0x3] %v530_v34 }

// kernel: _lambda_.37
= control target key start
LH: loop header
LB: loop body
LE: loop exit
PB: predicated region body
PF: predicated region fallthrough
CT: control target
= control target key end

     0   :  { %s1288_s0 = inlined_call_operand.vmem [shape: bf16[2,17,768], index: 0, kind: input, shape index: {}, may-alias: {0,1,2}]   ;;  %s1289_s1 = inlined_call_operand.vmem [shape: bf16[2,17,768], index: 1, kind: input, shape index: {}, may-alias: {0,1,2}]   ;;  %s1290_s2 = inlined_call_operand.vmem [shape: bf16[2,17,768], index: 2, kind: input, shape index: {}, may-alias: {0,1,2}]   ;;  %s1291_s3 = inlined_call_operand.vmem [shape: bf16[2,17,256], index: 3, kind: output, shape index: {}]  }
   0x1   :  { %1293 = sst [smem:[#allocation7_spill]] %s1291_s3 }
   0x2   :  { %s1084_s12 = smov 0   ;;  %s1086_s13 = smov 0  }
   0x3   :  { %s1088_s14 = smov 0   ;;  %s1090_s15 = smov 0  }
   0x4   :  { %s1092_s16 = smov 0   ;;  %s1094_s17 = smov 0  }
   0x5   :  { %s1096_s18 = smov 0   ;;  %s1098_s19 = smov 0  }
   0x6   :  { %s1100_s20 = smov 0   ;;  %s1102_s21 = smov 0  }
   0x7   :  { %s1104_s22 = smov 0  }
   0x8 LB: > { %s28_s24 = sadd.s32 1, %s1053_s20  ;;  %s32_s25 = sadd.s32 1, %s1057_s21  ;;  %s1061_s22 = sphi %s1104_s22, %s13_s22   ;;  %s1057_s21 = sphi %s1102_s21, %s1311_s21   ;;  %s1053_s20 = sphi %s1100_s20, %s1310_s20   ;;  %s1049_s19 = sphi %s1098_s19, %s1309_s19   ;;  %s1045_s18 = sphi %s1096_s18, %s1308_s18   ;;  %s1041_s17 = sphi %s1094_s17, %s1307_s17   ;;  %s1037_s16 = sphi %s1092_s16, %s1306_s16   ;;  %s1033_s15 = sphi %s1090_s15, %s1305_s15   ;;  %s1029_s14 = sphi %s1088_s14, %s1304_s14   ;;  %s1025_s13 = sphi %s1086_s13, %s1303_s13   ;;  %s1021_s12 = sphi %s1084_s12, %s1302_s12  }
   0x9   : > { %p30_p0 = scmp.ge.s32.totalorder %s28_s24, 2  ;;  %s43_s26 = sadd.s32 1, %s1041_s17 }
   0xa   : > { %p50_p1 = scmp.ne.s32.totalorder %s1041_s17, %s1037_s16  ;;  %p51_p2 = scmp.eq.s32.totalorder %s1061_s22, 0 }
   0xb   : > { %s1313_s24 = smov (%p30_p0, %s28_s24), 0  ;;  %s1315_s25 = smov (!%p30_p0, %s32_s25), %s1057_s21 }
   0xc   : > { %s39_s27 = ssub.s32 %s1053_s20, %s1313_s24  ;;  %p34_p3 = scmp.ge.s32.totalorder %s1315_s25, 2 }
   0xd   : > { %s66_s28 = sadd.s32 2, %s1053_s20  ;;  %p1157_p4 = por %p51_p2, %p50_p1 }
   0xe   : > { %s67_s30 = sadd.s32 2, %s1313_s24  ;;  %s1317_s25 = smov (%p34_p3, %s1315_s25), 0 }
   0xf   : > { %1295 = sst [smem:[#allocation6_spill]] %s1317_s25  ;;  %s69_s4 = ssub.s32 %s66_s28, %s67_s30 }
  0x10   : > { %s73_s5 = sadd.s32 1, %s1033_s15  ;;  %s36_s6 = ssub.s32 %s1057_s21, %s1317_s25 }
  0x11   : > { %p80_p5 = scmp.ne.s32.totalorder %s1033_s15, %s1029_s14  ;;  %s40_s7 = sor.u32 %s39_s27, %s36_s6 }
  0x12   : > { %s70_s8 = sor.u32 %s69_s4, %s36_s6  ;;  %p41_p6 = scmp.eq.s32.totalorder %s40_s7, 0 }
  0x13   : > { %p71_p7 = scmp.eq.s32.totalorder %s70_s8, 0  ;;  %p1171_p8 = por %p80_p5, %p51_p2 }
  0x14   : > { %s96_s10 = sadd.s32 4, %s1053_s20  ;;  %s97_s30 = sadd.s32 4, %s1313_s24 }
  0x15   : > { %s1177_s11 = scalar_select %p41_p6, %s1041_s17, %s43_s26  }
  0x16   : > { %s1180_s28 = scalar_select %p71_p7, %s1033_s15, %s73_s5  }
  0x17   : > { %s103_s23 = sadd.s32 1, %s1025_s13  ;;  %s99_s25 = ssub.s32 %s96_s10, %s97_s30 }
  0x18   : > { %p110_p9 = scmp.ne.s32.totalorder %s1025_s13, %s1021_s12  ;;  %s100_s27 = sor.u32 %s99_s25, %s36_s6 }
  0x19   : > { %s1297_s3 = sadd.s32 4294967295, %s1061_s22   ;;  %p101_p11 = scmp.eq.s32.totalorder %s100_s27, 0 }
  0x1a   : > { %p144_p10 = scmp.eq.s32.totalorder %s1297_s3, 3  ;;  %p1190_p12 = por %p110_p9, %p51_p2 }
  0x1b   : > { %s1202_s26 = scalar_select %p101_p11, %s1025_s13, %s103_s23  }
  0x1c   : > { %p1197_p13 = por %p144_p10, %p50_p1  ;;  %p803_p0 = scmp.ge.s32.totalorder %s1061_s22, 4 }
  0x1e   : > { %166 = sbr.rel (%p803_p0) target bundleno = 62 (0x3e), region = 16 }
  0x23   : > { %169 = sbr.rel (!%p1157_p4) target bundleno = 44 (0x2c), region = 20  ;;  %s171_s3 = sand.u32 (%p1157_p4), 1, %s1041_s17  }
  0x24   : > { %s861_s25 = smul.u32 (%p1157_p4), 18, %s1057_s21 }
  0x25   : > { %s860_s5 = smul.u32 (%p1157_p4), 12, %s171_s3 }
  0x26   : > { %s178_s6 = sadd.s32 (%p1157_p4), %s1053_s20, %s861_s25 }
  0x27   : > { %s804_s8 = sshll.u32 (%p1157_p4), %s178_s6, 2  ;;  %s173_s23 = scalar_lea.vmem (%p1157_p4), [#allocation2], %s860_s5 }
  0x28   : > { %s180_s27 = scalar_lea.vmem %s1288_s0, %s804_s8 }
  0x29   : > { %v197_v0 = vld [vmem:[%s180_s27] sm:$0xf]  ;;  %v199_v1 = vld [vmem:[%s180_s27 + $0x18] sm:$0xf]  ;;  %v201_v2 = vld [vmem:[%s180_s27 + $0x30] sm:$0xf] }
  0x2a   : > { %198 = vst [vmem:[%s173_s23] sm:$0xf] %v197_v0  ;;  %200 = vst [vmem:[%s173_s23 + $0x4] sm:$0xf] %v199_v1 }
  0x2b   : > { %202 = vst [vmem:[%s173_s23 + $0x8] sm:$0xf] %v201_v2 }
  0x2c PF: > { %232 = sbr.rel (!%p1171_p8) target bundleno = 53 (0x35), region = 61  ;;  %s234_s29 = sand.u32 (%p1171_p8), 1, %s1033_s15  }
  0x2d   : > { %s701_s3 = smul.u32 (%p1171_p8), 18, %s1057_s21 }
  0x2e   : > { %s862_s25 = smul.u32 (%p1171_p8), 12, %s234_s29 }
  0x2f   : > { %s702_s6 = sadd.s32 (%p1171_p8), %s1053_s20, %s701_s3 }
  0x30   : > { %s805_s10 = sshll.u32 (%p1171_p8), %s702_s6, 2  ;;  %s236_s5 = scalar_lea.vmem (%p1171_p8), [#allocation3], %s862_s25 }
  0x31   : > { %s704_s27 = scalar_lea.vmem %s1289_s1, %s805_s10 }
  0x32   : > { %v806_v3 = vld [vmem:[%s704_s27 + $0x8] sm:$0xf]  ;;  %v807_v4 = vld [vmem:[%s704_s27 + $0x20] sm:$0xf]  ;;  %v808_v5 = vld [vmem:[%s704_s27 + $0x38] sm:$0xf] }
  0x33   : > { %259 = vst [vmem:[%s236_s5] sm:$0xf] %v806_v3  ;;  %261 = vst [vmem:[%s236_s5 + $0x4] sm:$0xf] %v807_v4 }
  0x34   : > { %263 = vst [vmem:[%s236_s5 + $0x8] sm:$0xf] %v808_v5 }
  0x35 PF: > { %293 = sbr.rel (!%p1190_p12) target bundleno = 62 (0x3e), region = 102  ;;  %s295_s9 = sand.u32 (%p1190_p12), 1, %s1025_s13  }
  0x36   : > { %s708_s23 = smul.u32 (%p1190_p12), 18, %s1057_s21 }
  0x37   : > { %s863_s29 = smul.u32 (%p1190_p12), 12, %s295_s9 }
  0x38   : > { %s709_s3 = sadd.s32 (%p1190_p12), %s1053_s20, %s708_s23 }
  0x39   : > { %s809_s6 = sshll.u32 (%p1190_p12), %s709_s3, 2  ;;  %s297_s25 = scalar_lea.vmem (%p1190_p12), [#allocation4], %s863_s29 }
  0x3a   : > { %s711_s30 = scalar_lea.vmem %s1290_s2, %s809_s6 }
  0x3b   : > { %v810_v6 = vld [vmem:[%s711_s30 + $0x10] sm:$0xf]  ;;  %v811_v7 = vld [vmem:[%s711_s30 + $0x28] sm:$0xf]  ;;  %v812_v8 = vld [vmem:[%s711_s30 + $0x40] sm:$0xf] }
  0x3c   : > { %320 = vst [vmem:[%s297_s25] sm:$0xf] %v810_v6  ;;  %322 = vst [vmem:[%s297_s25 + $0x4] sm:$0xf] %v811_v7 }
  0x3d   : > { %324 = vst [vmem:[%s297_s25 + $0x8] sm:$0xf] %v812_v8 }
  0x3e PF: > { %p813_p1 = scmp.ge.s32.totalorder %s1061_s22, 1  ;;  %p353_p2 = scmp.lt.s32.totalorder %s1061_s22, 5 }
  0x40   : > { %p354_p3 = pnand %p813_p1, %p353_p2 }
  0x41   : > { %s367_s4 = sand.u32 (!%p354_p3), 1, %s1029_s14   ;;  %s360_s27 = sand.u32 (!%p354_p3), 1, %s1037_s16  }
  0x42   : > { %357 = sbr.rel (%p354_p3) target bundleno = 815 (0x32f), region = 143  ;;  %s374_s14 = sand.u32 (!%p354_p3), 1, %s1021_s12  }
  0x43   : > { %s865_s5 = smul.u32 (!%p354_p3), 12, %s367_s4 }
  0x44   : > { %s1233_s9 = smul.u32 (!%p354_p3), 12, %s360_s27 }
  0x45   : > { %s369_s23 = scalar_lea.vmem (!%p354_p3), [#allocation3], %s865_s5  ;;  %s866_s16 = smul.u32 (!%p354_p3), 12, %s374_s14 }
  0x46   : > { %s362_s29 = scalar_lea.vmem (!%p354_p3), [#allocation2], %s1233_s9  ;;  %s403_s12 = scalar_lea.vmem (!%p354_p3), [#allocation5], %s1233_s9 }
  0x47   : > { %v957_v9 = vld [vmem:[%s369_s23 + $0x8] ss:$0 sps:$4 sm:$0x11]   ;;  %v958_v10 = vld [vmem:[%s369_s23] sm:$0xff]   ;;  %vm496_vm0 = vcmask 131072   ;;  %vm489_vm1 = vcmask 138240  }
  0x48   : > { %844 = vmatprep.subr.bf16.mxu0 %v957_v9  ;;  %v959_v11 = vld [vmem:[%s362_s29] sm:$0xff]   ;;  %v960_v12 = vld [vmem:[%s362_s29 + $0x8] ss:$0 sps:$4 sm:$0x11]   ;;  %vm541_vm2 = vcmask 1040384   ;;  %v1063_v38 = vmov 0  }
  0x49   : > { %845 = vmatpush3.bf16.xpose.msra.mxu0 %v957_v9  ;;  %848 = vmatprep.mubr.bf16.mxu0 %v959_v11  ;;  %v543_v39 = vsel %vm541_vm2, 65535, %v1063_v38  ;;  %s376_s3 = scalar_lea.vmem [#allocation4], %s866_s16  ;;  %vm611_vm3 = vsmask.f32 256  ;;  %v613_v55 = vld [vmem:[%s403_s12 + $0x8] sm:$0x1] }
  0x4a   : > { %846 = vmatprep.subr.bf16.mxu0 %v958_v10  ;;  %v961_v40 = vld [vmem:[%s376_s3 + $0x8] ss:$0 sps:$4 sm:$0x11]   ;;  %v962_v42 = vld [vmem:[%s376_s3] sm:$0xff]   ;;  %vm612_vm4 = vmand %vm541_vm2, %vm611_vm3  ;;  %s867_s6 = smul.u32 (%p1197_p13), 6, %s1049_s19  ;;  %s1300_s4 = sld [smem:[#allocation7_spill]] (%p1197_p13) }
  0x4b   : > { %v545_v41 = vand.u32 %v961_v40, %v543_v39 }
  0x4c   : > { %s627_s10 = sadd.s32 (%p1197_p13), %s1045_s18, %s867_s6 }
  0x4d   : > { %852 = vmatprep.subr.bf16.mxu1 %v545_v41  ;;  %s825_s8 = sshll.u32 (%p1197_p13), %s627_s10, 2 }
  0x4e   : > { %853 = vmatpush3.bf16.msra.mxu1 %v545_v41 }
  0x4f   : > { %854 = vmatprep.subr.bf16.mxu1 %v962_v42 }
  0x50   : > { %s629_s27 = scalar_lea.vmem (%p1197_p13), %s1300_s4, %s825_s8 }
  0x51   : > { %847 = vmatpush3.bf16.xpose.msra.mxu0 %v958_v10 }
  0x52   : > { %855 = vmatpush3.bf16.msra.mxu1 %v962_v42 }
  0x58   : > { %849 = vmatmul.mubr.bf16.vlgmr.msra.gmra.mxu0 %v960_v12 }
 0x118   : > { %v850_v13 = vpop.f32.mrf.mxu0 }
 0x119   : > { %v488_v14 = vmul.f32 0.088388346, %v850_v13 }
 0x11a   : > { %v472_v15 = vpop.f32.mrf.mxu0 }
 0x11b   : > { %v486_v16 = vmul.f32 0.088388346, %v472_v15  ;;  %v497_v17 = vsel %vm496_vm0, %v488_v14, -inf }
 0x11c   : > { %498 = vmax.xlane.f32.xlu1 %v497_v17  ;;  %v851_v18 = vpop.f32.mrf.mxu0 }
 0x11d   : > { %v490_v19 = vsel %vm489_vm1, %v486_v16, -inf }
 0x11e   : > { %491 = vmax.xlane.f32.xlu0 %v490_v19  ;;  %v475_v20 = vpop.f32.mrf.mxu0 }
 0x11f   : > { %v487_v21 = vmul.f32 0.088388346, %v475_v20 }
 0x121   : > { %v493_v22 = vsel %vm489_vm1, %v487_v21, -inf }
 0x122   : > { %494 = vmax.xlane.f32.xlu0 %v493_v22 }
 0x1a5   : > { %v499_v23 = vpop.xlane.xlu1 %498 }
 0x1a6   : > { %v502_v24 = vsub.f32 %v488_v14, %v499_v23 }
 0x1a7   : > { %v492_v25 = vpop.xlane.xlu0 %491 }
 0x1a8   : > { %v500_v26 = vsub.f32 %v486_v16, %v492_v25  ;;  %v507_v27 = vmul.f32 1.442695, %v502_v24 }
 0x1aa   : > { %v503_v28 = vmul.f32 1.442695, %v500_v26 }
 0x1ab   : > { %v495_v29 = vpop.xlane.xlu0 %494 }
 0x1ac   : > { %963 = vpow2.f32 %v503_v28  ;;  %v501_v30 = vsub.f32 %v487_v21, %v495_v29 }
 0x1ad   : > { %965 = vpow2.f32 %v507_v27 }
 0x1ae   : > { %v505_v31 = vmul.f32 1.442695, %v501_v30 }
 0x1b0   : > { %967 = vpow2.f32 %v505_v31 }
 0x1b9   : > { %v964_v32 = vpop.eup %963 }
 0x1ba   : > { %v509_v33 = vsel %vm489_vm1, %v964_v32, 0.0  ;;  %v966_v34 = vpop.eup %965 }
 0x1bb   : > { %510 = vadd.xlane.f32.xlu1 %v509_v33  ;;  %v515_v36 = vsel %vm496_vm0, %v966_v34, 0.0 }
 0x1bd   : > { %v968_v35 = vpop.eup %967 }
 0x1be   : > { %v512_v37 = vsel %vm489_vm1, %v968_v35, 0.0 }
 0x1bf   : > { %516 = vadd.xlane.f32.xlu1 %v515_v36  ;;  %513 = vadd.xlane.f32.xlu0 %v512_v37 }
 0x244   : > { %v511_v43 = vpop.xlane.xlu1 %510 }
 0x245   : > { %969 = vrcp.f32 %v511_v43 }
 0x248   : > { %v517_v44 = vpop.xlane.xlu1 %516  ;;  %v514_v45 = vpop.xlane.xlu0 %513 }
 0x249   : > { %971 = vrcp.f32 %v517_v44 }
 0x24a   : > { %973 = vrcp.f32 %v514_v45 }
 0x252   : > { %v970_v46 = vpop.eup %969 }
 0x253   : > { %v521_v50 = vmul.f32 %v970_v46, %v964_v32 }
 0x256   : > { %v972_v47 = vpop.eup %971 }
 0x257   : > { %v974_v48 = vpop.eup %973  ;;  %v523_v49 = vmul.f32 %v972_v47, %v966_v34 }
 0x258   : > { %v522_v51 = vmul.f32 %v974_v48, %v968_v35 }
 0x259   : > { %v525_v52 = vpack.c.bf16 %v523_v49, %v523_v49 }
 0x25a   : > { %v524_v53 = vpack.c.bf16 %v522_v51, %v521_v50 }
 0x25c   : > { %856 = vmatprep.mubr.msk.bf16.mxu1 %vm489_vm1, %v524_v53 }
 0x25d   : > { %857 = vmatmul.mubr.msk.bf16.vlgmr.msra.gmra.mxu1 %vm489_vm1, %v525_v52 }
 0x31d   : > { %v858_v54 = vpop.f32.mrf.mxu1 }
 0x31e   : > { %v830_v56 = vpack.c.bf16 %v858_v54, %v858_v54 }
 0x31f   : > { %v581_v57 = vpop.f32.mrf.mxu1 }
 0x320   : > { %v614_v58 = vsel %vm612_vm4, %v830_v56, %v613_v55 }
 0x321   : > { %v859_v59 = vpop.f32.mrf.mxu1  ;;  %615 = vst [vmem:[%s403_s12 + $0x8] sm:$0x1] %v614_v58 }
 0x322   : > { %622 = sbr.rel (!%p1197_p13) target bundleno = 815 (0x32f), region = 159 }
 0x323   : > { %v584_v60 = vpop.f32.mrf.mxu1 }
 0x324   : > { %v834_v61 = vpack.c.bf16 %v584_v60, %v581_v57 }
 0x326   : > { %835 = vst [vmem:[%s403_s12] sm:$0xff] %v834_v61  }
 0x328   : > { %v650_v0 = vld [vmem:[%s403_s12 + $0x8] sm:$0xf] }
 0x329   : > { %651 = vst [vmem:[%s629_s27 + $0x10] sm:$0xf] %v650_v0 }
 0x32d   : > { %v646_v62 = vld [vmem:[%s403_s12] sm:$0xf]  ;;  %v648_v63 = vld [vmem:[%s403_s12 + $0x4] sm:$0xf] }
 0x32e   : > { %647 = vst [vmem:[%s629_s27] sm:$0xf] %v646_v62  ;;  %649 = vst [vmem:[%s629_s27 + $0x8] sm:$0xf] %v648_v63 }
 0x32f PF: > { %s13_s22 = sadd.s32 1, %s1061_s22   ;;  %s1301_s7 = sld [smem:[#allocation6_spill]] }
 0x330   : > { %p10_p4 = scmp.ge.s32.totalorder %s13_s22, 6   ;;  %s1302_s12 = smov %s1025_s13 }
 0x331   : > { %s1303_s13 = smov %s1202_s26  ;;  %s1304_s14 = smov %s1033_s15 }
 0x332   : > { %s1305_s15 = smov %s1180_s28  ;;  %s1306_s16 = smov %s1041_s17 }
 0x333   : > { %s1307_s17 = smov %s1177_s11  ;;  %s1308_s18 = smov %s1053_s20 }
 0x334   : > { %s1309_s19 = smov %s1057_s21  ;;  %s1310_s20 = smov %s1313_s24 }
 0x335   : > { %s1311_s21 = smov %s1301_s7  ;;  %12 = sbr.rel (!%p10_p4) target bundleno = 8 (0x8), region = 247 }

// kernel: _lambda_.38
= control target key start
LH: loop header
LB: loop body
LE: loop exit
PB: predicated region body
PF: predicated region fallthrough
CT: control target
= control target key end

     0   :  { %v56_v39 = vlaneseq  ;;  %s673_s1 = inlined_call_operand.vmem [shape: bf16[256,256], index: 1, kind: input, shape index: {}]   ;;  %s674_s0 = inlined_call_operand.vmem [shape: bf16[34,256], index: 0, kind: input, shape index: {}]   ;;  %s675_s2 = inlined_call_operand.vmem [shape: f32[1,256], index: 2, kind: input, shape index: {}]   ;;  %s676_s3 = inlined_call_operand.vmem [shape: f32[34,256], index: 3, kind: input, shape index: {}]   ;;  %s677_s4 = inlined_call_operand.vmem [shape: f32[34,256], index: 4, kind: output, shape index: {}]  }
   0x1   :  { %v418_v0 = vld [vmem:[%s673_s1 + $0x74] ss:$8 sps:$4 sm:$0xff]   ;;  %v420_v1 = vld [vmem:[%s673_s1 + $0x70] ss:$8 sps:$4 sm:$0xff]   ;;  %v421_v2 = vld [vmem:[%s673_s1 + $0x64] ss:$8 sps:$4 sm:$0xff]  }
   0x2   :  { %253 = vmatprep.subr.bf16.mxu0 %v418_v0  ;;  %386 = vmatprep.subr.bf16.mxu1 %v418_v0  ;;  %v423_v3 = vld [vmem:[%s673_s1 + $0x60] ss:$8 sps:$4 sm:$0xff]   ;;  %v424_v4 = vld [vmem:[%s673_s1 + $0x54] ss:$8 sps:$4 sm:$0xff]   ;;  %v426_v5 = vld [vmem:[%s673_s1 + $0x50] ss:$8 sps:$4 sm:$0xff]  }
   0x3   :  { %254 = vmatpush1.bf16.msra.mxu0 %v420_v1  ;;  %402 = vmatpush1.bf16.msra.mxu1 %v420_v1  ;;  %v427_v6 = vld [vmem:[%s673_s1 + $0x44] ss:$8 sps:$4 sm:$0xff]   ;;  %v429_v7 = vld [vmem:[%s673_s1 + $0x40] ss:$8 sps:$4 sm:$0xff]   ;;  %v430_v8 = vld [vmem:[%s673_s1 + $0x34] ss:$8 sps:$4 sm:$0xff]  }
   0x4   :  { %255 = vmatprep.subr.bf16.mxu0 %v421_v2  ;;  %387 = vmatprep.subr.bf16.mxu1 %v421_v2  ;;  %v432_v9 = vld [vmem:[%s673_s1 + $0x30] ss:$8 sps:$4 sm:$0xff]   ;;  %v433_v10 = vld [vmem:[%s673_s1 + $0x24] ss:$8 sps:$4 sm:$0xff]   ;;  %v435_v11 = vld [vmem:[%s673_s1 + $0x20] ss:$8 sps:$4 sm:$0xff]  }
   0x5   :  { %v436_v12 = vld [vmem:[%s673_s1 + $0x14] ss:$8 sps:$4 sm:$0xff]   ;;  %v468_v13 = vld [vmem:[%s674_s0 + $0x4] ss:$8 sps:$4 sm:$0xff]   ;;  %v438_v14 = vld [vmem:[%s673_s1 + $0x10] ss:$8 sps:$4 sm:$0xff]  }
   0x6   :  { %v471_v15 = vld [vmem:[%s674_s0 + $0x14] ss:$8 sps:$4 sm:$0xff]   ;;  %v439_v16 = vld [vmem:[%s673_s1 + $0x4] ss:$8 sps:$4 sm:$0xff]   ;;  %285 = vmatprep.mubr.bf16.mxu0 %v468_v13  ;;  %v441_v17 = vld [vmem:[%s673_s1] ss:$8 sps:$4 sm:$0xff]  }
   0x7   :  { %256 = vmatpush1.bf16.msra.mxu0 %v423_v3  ;;  %403 = vmatpush1.bf16.msra.mxu1 %v423_v3  ;;  %v442_v18 = vld [vmem:[%s673_s1 + $0xf4] ss:$8 sps:$4 sm:$0xff]   ;;  %v444_v19 = vld [vmem:[%s673_s1 + $0xf0] ss:$8 sps:$4 sm:$0xff]   ;;  %v445_v20 = vld [vmem:[%s673_s1 + $0xe4] ss:$8 sps:$4 sm:$0xff]  }
   0x8   :  { %257 = vmatprep.subr.bf16.mxu0 %v424_v4  ;;  %388 = vmatprep.subr.bf16.mxu1 %v424_v4  ;;  %v447_v21 = vld [vmem:[%s673_s1 + $0xe0] ss:$8 sps:$4 sm:$0xff]   ;;  %v448_v22 = vld [vmem:[%s673_s1 + $0xd4] ss:$8 sps:$4 sm:$0xff]   ;;  %v450_v23 = vld [vmem:[%s673_s1 + $0xd0] ss:$8 sps:$4 sm:$0xff]  }
   0x9   :  { %295 = vmatprep.mubr.bf16.mxu1 %v471_v15  ;;  %v451_v24 = vld [vmem:[%s673_s1 + $0xc4] ss:$8 sps:$4 sm:$0xff]   ;;  %v453_v25 = vld [vmem:[%s673_s1 + $0xc0] ss:$8 sps:$4 sm:$0xff]   ;;  %v454_v26 = vld [vmem:[%s673_s1 + $0xb4] ss:$8 sps:$4 sm:$0xff]  }
   0xa   :  { %v456_v27 = vld [vmem:[%s673_s1 + $0xb0] ss:$8 sps:$4 sm:$0xff]   ;;  %v457_v28 = vld [vmem:[%s673_s1 + $0xa4] ss:$8 sps:$4 sm:$0xff]   ;;  %v459_v29 = vld [vmem:[%s673_s1 + $0xa0] ss:$8 sps:$4 sm:$0xff]  }
   0xb   :  { %258 = vmatpush1.bf16.msra.mxu0 %v426_v5  ;;  %404 = vmatpush1.bf16.msra.mxu1 %v426_v5  ;;  %v460_v30 = vld [vmem:[%s673_s1 + $0x94] ss:$8 sps:$4 sm:$0xff]   ;;  %v462_v31 = vld [vmem:[%s673_s1 + $0x90] ss:$8 sps:$4 sm:$0xff]   ;;  %v463_v32 = vld [vmem:[%s673_s1 + $0x84] ss:$8 sps:$4 sm:$0xff]  }
   0xc   :  { %259 = vmatprep.subr.bf16.mxu0 %v427_v6  ;;  %389 = vmatprep.subr.bf16.mxu1 %v427_v6  ;;  %v465_v33 = vld [vmem:[%s673_s1 + $0x80] ss:$8 sps:$4 sm:$0xff]   ;;  %v469_v36 = vld [vmem:[%s674_s0 + $0x10] ss:$8 sps:$4 sm:$0xff]   ;;  %v57_v40 = vshrl.u32 %v56_v39, 7 }
   0xd   :  { %v21_v34 = vld [vmem:[%s674_s0 + $0x20] sm:$0x11]  ;;  %v315_v53 = vld [vmem:[%s676_s3 + $0x8] sm:$0xff]  ;;  %v316_v61 = vld [vmem:[%s676_s3 + $0x10] sm:$0xff] }
   0xe   :  { %v466_v35 = vld [vmem:[%s674_s0] ss:$8 sps:$4 sm:$0xff]   ;;  %v353_v37 = vcombine.high %v21_v34, %v21_v34  ;;  %v352_v38 = vcombine.low %v21_v34, %v21_v34  ;;  %v58_v41 = vsub.s32 0, %v57_v40  ;;  %v62_v43 = vsub.s32 1, %v57_v40  ;;  %v320_v63 = vld [vmem:[%s676_s3 + $0x30] sm:$0xff]  ;;  %v317_v5 = vld [vmem:[%s676_s3 + $0x18] sm:$0xff] }
   0xf   :  { %260 = vmatpush1.bf16.msra.mxu0 %v429_v7  ;;  %405 = vmatpush1.bf16.msra.mxu1 %v429_v7  ;;  %v54_v42 = vld [vmem:[%s675_s2] sm:$0x3]  ;;  %v319_v55 = vld [vmem:[%s676_s3 + $0x28] sm:$0xff]  ;;  %v321_v7 = vld [vmem:[%s676_s3 + $0x38] sm:$0xff] }
  0x10   :  { %261 = vmatprep.subr.bf16.mxu0 %v430_v8  ;;  %390 = vmatprep.subr.bf16.mxu1 %v430_v8  ;;  %v59_v44 = vrot.slane %v54_v42, %v58_v41  ;;  %v63_v45 = vrot.slane %v54_v42, %v62_v43  ;;  %v314_v47 = vld [vmem:[%s676_s3] sm:$0xff] }
  0x11   :  { %v318_v49 = vld [vmem:[%s676_s3 + $0x20] sm:$0xff] }
  0x12   :  { %v322_v13 = vld [vmem:[%s676_s3 + $0x40] sm:$0x3] }
  0x13   :  { %262 = vmatpush1.bf16.msra.mxu0 %v432_v9  ;;  %406 = vmatpush1.bf16.msra.mxu1 %v432_v9 }
  0x14   :  { %263 = vmatprep.subr.bf16.mxu0 %v433_v10  ;;  %391 = vmatprep.subr.bf16.mxu1 %v433_v10 }
  0x17   :  { %264 = vmatpush1.bf16.msra.mxu0 %v435_v11  ;;  %407 = vmatpush1.bf16.msra.mxu1 %v435_v11 }
  0x18   :  { %265 = vmatprep.subr.bf16.mxu0 %v436_v12  ;;  %392 = vmatprep.subr.bf16.mxu1 %v436_v12 }
  0x1b   :  { %266 = vmatpush1.bf16.msra.mxu0 %v438_v14  ;;  %408 = vmatpush1.bf16.msra.mxu1 %v438_v14 }
  0x1c   :  { %267 = vmatprep.subr.bf16.mxu0 %v439_v16  ;;  %393 = vmatprep.subr.bf16.mxu1 %v439_v16 }
  0x1f   :  { %268 = vmatpush1.bf16.msra.mxu0 %v441_v17  ;;  %409 = vmatpush1.bf16.msra.mxu1 %v441_v17 }
  0x20   :  { %269 = vmatprep.subr.bf16.mxu0 %v442_v18  ;;  %394 = vmatprep.subr.bf16.mxu1 %v442_v18  ;;  %v323_v18 = vld [vmem:[%s676_s3 + $0x48] sm:$0x3] }
  0x23   :  { %270 = vmatpush2.bf16.msra.mxu0 %v444_v19  ;;  %410 = vmatpush2.bf16.msra.mxu1 %v444_v19 }
  0x24   :  { %271 = vmatprep.subr.bf16.mxu0 %v445_v20  ;;  %395 = vmatprep.subr.bf16.mxu1 %v445_v20 }
  0x27   :  { %272 = vmatpush2.bf16.msra.mxu0 %v447_v21  ;;  %411 = vmatpush2.bf16.msra.mxu1 %v447_v21 }
  0x28   :  { %273 = vmatprep.subr.bf16.mxu0 %v448_v22  ;;  %396 = vmatprep.subr.bf16.mxu1 %v448_v22 }
  0x2b   :  { %274 = vmatpush2.bf16.msra.mxu0 %v450_v23  ;;  %412 = vmatpush2.bf16.msra.mxu1 %v450_v23 }
  0x2c   :  { %275 = vmatprep.subr.bf16.mxu0 %v451_v24  ;;  %397 = vmatprep.subr.bf16.mxu1 %v451_v24 }
  0x2f   :  { %276 = vmatpush2.bf16.msra.mxu0 %v453_v25  ;;  %413 = vmatpush2.bf16.msra.mxu1 %v453_v25 }
  0x30   :  { %277 = vmatprep.subr.bf16.mxu0 %v454_v26  ;;  %398 = vmatprep.subr.bf16.mxu1 %v454_v26 }
  0x33   :  { %278 = vmatpush2.bf16.msra.mxu0 %v456_v27  ;;  %414 = vmatpush2.bf16.msra.mxu1 %v456_v27 }
  0x34   :  { %279 = vmatprep.subr.bf16.mxu0 %v457_v28  ;;  %399 = vmatprep.subr.bf16.mxu1 %v457_v28 }
  0x37   :  { %280 = vmatpush2.bf16.msra.mxu0 %v459_v29  ;;  %415 = vmatpush2.bf16.msra.mxu1 %v459_v29 }
  0x38   :  { %281 = vmatprep.subr.bf16.mxu0 %v460_v30  ;;  %400 = vmatprep.subr.bf16.mxu1 %v460_v30 }
  0x3b   :  { %282 = vmatpush2.bf16.msra.mxu0 %v462_v31  ;;  %416 = vmatpush2.bf16.msra.mxu1 %v462_v31 }
  0x3c   :  { %283 = vmatprep.subr.bf16.mxu0 %v463_v32  ;;  %401 = vmatprep.subr.bf16.mxu1 %v463_v32 }
  0x3f   :  { %284 = vmatpush2.bf16.msra.mxu0 %v465_v33  ;;  %417 = vmatpush2.bf16.msra.mxu1 %v465_v33 }
  0x42   :  { %286 = vmatmul.mubr.bf16.vlgmr.msra.gmra.mxu0 %v466_v35  ;;  %296 = vmatmul.mubr.bf16.vlgmr.msra.gmra.mxu1 %v469_v36 }
  0x43   :  { %305 = vmatprep.mubr.bf16.mxu1 %v353_v37 }
  0x4a   :  { %306 = vmatmul.mubr.bf16.gmra.mxu1 %v352_v38 }
 0x102   :  { %v287_v46 = vpop.f32.mrf.mxu0  ;;  %v297_v48 = vpop.f32.mrf.mxu1 }
 0x103   :  { %v288_v50 = vadd.f32 %v287_v46, %v59_v44  ;;  %v298_v51 = vadd.f32 %v297_v48, %v59_v44 }
 0x104   :  { %v289_v52 = vpop.f32.mrf.mxu0  ;;  %v299_v54 = vpop.f32.mrf.mxu1 }
 0x105   :  { %v324_v56 = vadd.f32 %v314_v47, %v288_v50  ;;  %v328_v57 = vadd.f32 %v318_v49, %v298_v51  ;;  %v290_v58 = vadd.f32 %v289_v52, %v63_v45  ;;  %v300_v59 = vadd.f32 %v299_v54, %v63_v45 }
 0x106   :  { %v291_v60 = vpop.f32.mrf.mxu0  ;;  %v301_v62 = vpop.f32.mrf.mxu1 }
 0x107   :  { %334 = vst [vmem:[%s677_s4] sm:$0xff] %v324_v56  ;;  %338 = vst [vmem:[%s677_s4 + $0x20] sm:$0xff] %v328_v57  ;;  %v325_v0 = vadd.f32 %v315_v53, %v290_v58  ;;  %v329_v1 = vadd.f32 %v319_v55, %v300_v59  ;;  %v292_v2 = vadd.f32 %v291_v60, %v59_v44 }
 0x108   :  { %v302_v3 = vadd.f32 %v301_v62, %v59_v44  ;;  %v293_v4 = vpop.f32.mrf.mxu0  ;;  %v303_v6 = vpop.f32.mrf.mxu1 }
 0x109   :  { %335 = vst [vmem:[%s677_s4 + $0x8] sm:$0xff] %v325_v0  ;;  %339 = vst [vmem:[%s677_s4 + $0x28] sm:$0xff] %v329_v1  ;;  %v326_v8 = vadd.f32 %v316_v61, %v292_v2  ;;  %v294_v10 = vadd.f32 %v293_v4, %v63_v45  ;;  %v304_v11 = vadd.f32 %v303_v6, %v63_v45 }
 0x10a   :  { %v330_v9 = vadd.f32 %v320_v63, %v302_v3  ;;  %v307_v12 = vpop.f32.mrf.mxu1 }
 0x10b   :  { %336 = vst [vmem:[%s677_s4 + $0x10] sm:$0xff] %v326_v8  ;;  %v327_v14 = vadd.f32 %v317_v5, %v294_v10  ;;  %v331_v15 = vadd.f32 %v321_v7, %v304_v11  ;;  %v308_v16 = vadd.f32 %v307_v12, %v59_v44 }
 0x10c   :  { %340 = vst [vmem:[%s677_s4 + $0x30] sm:$0xff] %v330_v9  ;;  %v309_v17 = vpop.f32.mrf.mxu1 }
 0x10d   :  { %337 = vst [vmem:[%s677_s4 + $0x18] sm:$0xff] %v327_v14  ;;  %341 = vst [vmem:[%s677_s4 + $0x38] sm:$0xff] %v331_v15  ;;  %v332_v19 = vadd.f32 %v322_v13, %v308_v16  ;;  %v310_v20 = vadd.f32 %v309_v17, %v63_v45 }
 0x10e   :  { %v311_v21 = vpop.f32.mrf.mxu1 }
 0x10f   :  { %342 = vst [vmem:[%s677_s4 + $0x40] sm:$0x3] %v332_v19  ;;  %v333_v22 = vadd.f32 %v323_v18, %v310_v20 }
 0x110   :  { %v312_v23 = vpop.f32.mrf.mxu1 }
 0x111   :  { %343 = vst [vmem:[%s677_s4 + $0x48] sm:$0x3] %v333_v22 }

// kernel: _lambda_.36
= control target key start
LH: loop header
LB: loop body
LE: loop exit
PB: predicated region body
PF: predicated region fallthrough
CT: control target
= control target key end

     0   :  { %s1766_s18 = smov 0   ;;  %s1768_s19 = smov 0   ;;  %s2145_s0 = inlined_call_operand.vmem [shape: f32[34,256], index: 0, kind: input, shape index: {}]   ;;  %s2146_s1 = inlined_call_operand.vmem [shape: bf16[256,768], index: 1, kind: input, shape index: {}]   ;;  %s2147_s2 = inlined_call_operand.vmem [shape: f32[1,768], index: 2, kind: input, shape index: {}]   ;;  %s2148_s3 = inlined_call_operand.vmem [shape: f32[1,256], index: 3, kind: input, shape index: {}]   ;;  %s2149_s4 = inlined_call_operand.vmem [shape: f32[1,256], index: 4, kind: input, shape index: {}]   ;;  %s2150_s5 = inlined_call_operand.vmem [shape: bf16[34,768], index: 5, kind: output, shape index: {}]  }
   0x1   :  { %s1770_s20 = smov 0   ;;  %s1772_s21 = smov 0  }
   0x2   :  { %s1774_s22 = smov 0  }
   0x3 LB: > { %s30_s23 = sadd.s32 1, %s1730_s21  ;;  %s1366_s24 = sadd.s32 4294967295, %s1734_s22   ;;  %s1734_s22 = sphi %s1774_s22, %s15_s22   ;;  %s1730_s21 = sphi %s1772_s21, %s2155_s21   ;;  %s1726_s20 = sphi %s1770_s20, %s2154_s20   ;;  %s1722_s19 = sphi %s1768_s19, %s2153_s19   ;;  %s1718_s18 = sphi %s1766_s18, %s2152_s18  }
   0x4   : > { %p32_p0 = scmp.ge.s32.totalorder %s30_s23, 2  ;;  %p78_p1 = scmp.ne.s32.totalorder %s1722_s19, %s1718_s18 }
   0x5   : > { %p79_p2 = scmp.eq.s32.totalorder %s1734_s22, 0  ;;  %p178_p4 = scmp.eq.s32.totalorder %s1366_s24, 1 }
   0x6   : > { %s2157_s23 = smov (%p32_p0, %s30_s23), 0  ;;  %s71_s26 = sadd.s32 1, %s1722_s19 }
   0x7   : > { %p80_p3 = por %p79_p2, %p78_p1  ;;  %s67_s25 = ssub.s32 %s1730_s21, %s2157_s23 }
   0x8   : > { %p69_p5 = scmp.eq.s32.totalorder %s67_s25, 0  ;;  %p1801_p6 = por %p178_p4, %p78_p1 }
   0x9   : > { %p1370_p7 = scmp.ge.s32.totalorder %s1734_s22, 2 }
   0xa   : > { %s1806_s28 = scalar_select %p69_p5, %s1722_s19, %s71_s26  }
   0xb   : > { %221 = sbr.rel (%p1370_p7) target bundleno = 58 (0x3a), region = 28 }
  0x10   : > { %224 = sbr.rel (!%p80_p3) target bundleno = 58 (0x3a), region = 32  ;;  %s226_s29 = sand.u32 (%p80_p3), 1, %s1722_s19  }
  0x11   : > { %s1520_s30 = smul.u32 (%p80_p3), 12, %s1730_s21 }
  0x12   : > { %s1571_s6 = smul.u32 (%p80_p3), 384, %s226_s29 }
  0x13   : > { %s1814_s9 = scalar_lea.vmem (%p80_p3), %s2146_s1, %s1520_s30 }
  0x14   : > { %v249_v0 = vld [vmem:[%s1814_s9] sm:$0xff] (%p80_p3)  ;;  %v251_v1 = vld [vmem:[%s1814_s9 + $0x18] sm:$0xff] (%p80_p3)  ;;  %v253_v2 = vld [vmem:[%s1814_s9 + $0x30] sm:$0xff] (%p80_p3)  ;;  %s1819_s10 = scalar_lea.vmem (%p80_p3), [#allocation3], %s1571_s6 }
  0x15   : > { %250 = vst [vmem:[%s1819_s10] sm:$0xff] %v249_v0  ;;  %252 = vst [vmem:[%s1819_s10 + $0xc] sm:$0xff] %v251_v1  ;;  %v255_v3 = vld [vmem:[%s1814_s9 + $0x48] sm:$0xff]  ;;  %v257_v4 = vld [vmem:[%s1814_s9 + $0x60] sm:$0xff] }
  0x16   : > { %254 = vst [vmem:[%s1819_s10 + $0x18] sm:$0xff] %v253_v2  ;;  %v259_v5 = vld [vmem:[%s1814_s9 + $0x78] sm:$0xff]  ;;  %256 = vst [vmem:[%s1819_s10 + $0x24] sm:$0xff] %v255_v3  ;;  %v261_v6 = vld [vmem:[%s1814_s9 + $0x90] sm:$0xff] }
  0x17   : > { %258 = vst [vmem:[%s1819_s10 + $0x30] sm:$0xff] %v257_v4  ;;  %260 = vst [vmem:[%s1819_s10 + $0x3c] sm:$0xff] %v259_v5  ;;  %v263_v7 = vld [vmem:[%s1814_s9 + $0xa8] sm:$0xff]  ;;  %v265_v8 = vld [vmem:[%s1814_s9 + $0xc0] sm:$0xff] }
  0x18   : > { %262 = vst [vmem:[%s1819_s10 + $0x48] sm:$0xff] %v261_v6  ;;  %264 = vst [vmem:[%s1819_s10 + $0x54] sm:$0xff] %v263_v7  ;;  %v267_v9 = vld [vmem:[%s1814_s9 + $0xd8] sm:$0xff]  ;;  %v269_v10 = vld [vmem:[%s1814_s9 + $0xf0] sm:$0xff] }
  0x19   : > { %266 = vst [vmem:[%s1819_s10 + $0x60] sm:$0xff] %v265_v8  ;;  %v271_v11 = vld [vmem:[%s1814_s9 + $0x108] sm:$0xff]  ;;  %268 = vst [vmem:[%s1819_s10 + $0x6c] sm:$0xff] %v267_v9  ;;  %v273_v12 = vld [vmem:[%s1814_s9 + $0x120] sm:$0xff] }
  0x1a   : > { %270 = vst [vmem:[%s1819_s10 + $0x78] sm:$0xff] %v269_v10  ;;  %272 = vst [vmem:[%s1819_s10 + $0x84] sm:$0xff] %v271_v11  ;;  %v275_v13 = vld [vmem:[%s1814_s9 + $0x138] sm:$0xff]  ;;  %v277_v14 = vld [vmem:[%s1814_s9 + $0x150] sm:$0xff] }
  0x1b   : > { %274 = vst [vmem:[%s1819_s10 + $0x90] sm:$0xff] %v273_v12  ;;  %276 = vst [vmem:[%s1819_s10 + $0x9c] sm:$0xff] %v275_v13  ;;  %v279_v15 = vld [vmem:[%s1814_s9 + $0x168] sm:$0xff]  ;;  %v281_v16 = vld [vmem:[%s1814_s9 + $0x180] sm:$0xff] }
  0x1c   : > { %278 = vst [vmem:[%s1819_s10 + $0xa8] sm:$0xff] %v277_v14  ;;  %v283_v17 = vld [vmem:[%s1814_s9 + $0x198] sm:$0xff]  ;;  %280 = vst [vmem:[%s1819_s10 + $0xb4] sm:$0xff] %v279_v15  ;;  %v285_v18 = vld [vmem:[%s1814_s9 + $0x1b0] sm:$0xff] }
  0x1d   : > { %282 = vst [vmem:[%s1819_s10 + $0xc0] sm:$0xff] %v281_v16  ;;  %284 = vst [vmem:[%s1819_s10 + $0xcc] sm:$0xff] %v283_v17  ;;  %v287_v19 = vld [vmem:[%s1814_s9 + $0x1c8] sm:$0xff]  ;;  %v289_v20 = vld [vmem:[%s1814_s9 + $0x1e0] sm:$0xff] }
  0x1e   : > { %286 = vst [vmem:[%s1819_s10 + $0xd8] sm:$0xff] %v285_v18  ;;  %288 = vst [vmem:[%s1819_s10 + $0xe4] sm:$0xff] %v287_v19  ;;  %v291_v21 = vld [vmem:[%s1814_s9 + $0x1f8] sm:$0xff]  ;;  %v293_v22 = vld [vmem:[%s1814_s9 + $0x210] sm:$0xff] }
  0x1f   : > { %290 = vst [vmem:[%s1819_s10 + $0xf0] sm:$0xff] %v289_v20  ;;  %v295_v23 = vld [vmem:[%s1814_s9 + $0x228] sm:$0xff]  ;;  %292 = vst [vmem:[%s1819_s10 + $0xfc] sm:$0xff] %v291_v21  ;;  %v297_v24 = vld [vmem:[%s1814_s9 + $0x240] sm:$0xff] }
  0x20   : > { %294 = vst [vmem:[%s1819_s10 + $0x108] sm:$0xff] %v293_v22  ;;  %296 = vst [vmem:[%s1819_s10 + $0x114] sm:$0xff] %v295_v23  ;;  %v299_v25 = vld [vmem:[%s1814_s9 + $0x258] sm:$0xff]  ;;  %v301_v26 = vld [vmem:[%s1814_s9 + $0x270] sm:$0xff] }
  0x21   : > { %298 = vst [vmem:[%s1819_s10 + $0x120] sm:$0xff] %v297_v24  ;;  %300 = vst [vmem:[%s1819_s10 + $0x12c] sm:$0xff] %v299_v25  ;;  %v303_v27 = vld [vmem:[%s1814_s9 + $0x288] sm:$0xff]  ;;  %v305_v28 = vld [vmem:[%s1814_s9 + $0x2a0] sm:$0xff] }
  0x22   : > { %302 = vst [vmem:[%s1819_s10 + $0x138] sm:$0xff] %v301_v26  ;;  %v307_v29 = vld [vmem:[%s1814_s9 + $0x2b8] sm:$0xff]  ;;  %304 = vst [vmem:[%s1819_s10 + $0x144] sm:$0xff] %v303_v27  ;;  %v309_v30 = vld [vmem:[%s1814_s9 + $0x2d0] sm:$0xff] }
  0x23   : > { %306 = vst [vmem:[%s1819_s10 + $0x150] sm:$0xff] %v305_v28  ;;  %308 = vst [vmem:[%s1819_s10 + $0x15c] sm:$0xff] %v307_v29  ;;  %v311_v31 = vld [vmem:[%s1814_s9 + $0x2e8] sm:$0xff]  ;;  %v1374_v33 = vld [vmem:[%s1814_s9 + $0x20] sm:$0xf] }
  0x24   : > { %v1372_v32 = vld [vmem:[%s1814_s9 + $0x8] sm:$0xf]  ;;  %310 = vst [vmem:[%s1819_s10 + $0x168] sm:$0xff] %v309_v30  ;;  %312 = vst [vmem:[%s1819_s10 + $0x174] sm:$0xff] %v311_v31  ;;  %v1376_v34 = vld [vmem:[%s1814_s9 + $0x38] sm:$0xf] }
  0x25   : > { %1373 = vst [vmem:[%s1819_s10 + $0x8] sm:$0xf] %v1372_v32  ;;  %v1378_v35 = vld [vmem:[%s1814_s9 + $0x50] sm:$0xf]  ;;  %1375 = vst [vmem:[%s1819_s10 + $0x14] sm:$0xf] %v1374_v33 }
  0x26   : > { %1377 = vst [vmem:[%s1819_s10 + $0x20] sm:$0xf] %v1376_v34  ;;  %1379 = vst [vmem:[%s1819_s10 + $0x2c] sm:$0xf] %v1378_v35  ;;  %v1380_v36 = vld [vmem:[%s1814_s9 + $0x68] sm:$0xf] }
  0x27   : > { %v1382_v37 = vld [vmem:[%s1814_s9 + $0x80] sm:$0xf]  ;;  %v1384_v38 = vld [vmem:[%s1814_s9 + $0x98] sm:$0xf]  ;;  %1381 = vst [vmem:[%s1819_s10 + $0x38] sm:$0xf] %v1380_v36 }
  0x28   : > { %1383 = vst [vmem:[%s1819_s10 + $0x44] sm:$0xf] %v1382_v37  ;;  %1385 = vst [vmem:[%s1819_s10 + $0x50] sm:$0xf] %v1384_v38  ;;  %v1386_v39 = vld [vmem:[%s1814_s9 + $0xb0] sm:$0xf] }
  0x29   : > { %v1388_v40 = vld [vmem:[%s1814_s9 + $0xc8] sm:$0xf]  ;;  %v1390_v41 = vld [vmem:[%s1814_s9 + $0xe0] sm:$0xf]  ;;  %1387 = vst [vmem:[%s1819_s10 + $0x5c] sm:$0xf] %v1386_v39 }
  0x2a   : > { %1389 = vst [vmem:[%s1819_s10 + $0x68] sm:$0xf] %v1388_v40  ;;  %1391 = vst [vmem:[%s1819_s10 + $0x74] sm:$0xf] %v1390_v41  ;;  %v1392_v42 = vld [vmem:[%s1814_s9 + $0xf8] sm:$0xf] }
  0x2b   : > { %v1394_v43 = vld [vmem:[%s1814_s9 + $0x110] sm:$0xf]  ;;  %v1396_v44 = vld [vmem:[%s1814_s9 + $0x128] sm:$0xf]  ;;  %1393 = vst [vmem:[%s1819_s10 + $0x80] sm:$0xf] %v1392_v42 }
  0x2c   : > { %1395 = vst [vmem:[%s1819_s10 + $0x8c] sm:$0xf] %v1394_v43  ;;  %1397 = vst [vmem:[%s1819_s10 + $0x98] sm:$0xf] %v1396_v44  ;;  %v1398_v45 = vld [vmem:[%s1814_s9 + $0x140] sm:$0xf] }
  0x2d   : > { %v1400_v46 = vld [vmem:[%s1814_s9 + $0x158] sm:$0xf]  ;;  %v1402_v47 = vld [vmem:[%s1814_s9 + $0x170] sm:$0xf]  ;;  %1399 = vst [vmem:[%s1819_s10 + $0xa4] sm:$0xf] %v1398_v45 }
  0x2e   : > { %1401 = vst [vmem:[%s1819_s10 + $0xb0] sm:$0xf] %v1400_v46  ;;  %1403 = vst [vmem:[%s1819_s10 + $0xbc] sm:$0xf] %v1402_v47  ;;  %v1404_v48 = vld [vmem:[%s1814_s9 + $0x188] sm:$0xf] }
  0x2f   : > { %v1406_v49 = vld [vmem:[%s1814_s9 + $0x1a0] sm:$0xf]  ;;  %v1408_v50 = vld [vmem:[%s1814_s9 + $0x1b8] sm:$0xf]  ;;  %1405 = vst [vmem:[%s1819_s10 + $0xc8] sm:$0xf] %v1404_v48 }
  0x30   : > { %1407 = vst [vmem:[%s1819_s10 + $0xd4] sm:$0xf] %v1406_v49  ;;  %1409 = vst [vmem:[%s1819_s10 + $0xe0] sm:$0xf] %v1408_v50  ;;  %v1410_v51 = vld [vmem:[%s1814_s9 + $0x1d0] sm:$0xf] }
  0x31   : > { %v1412_v52 = vld [vmem:[%s1814_s9 + $0x1e8] sm:$0xf]  ;;  %v1414_v53 = vld [vmem:[%s1814_s9 + $0x200] sm:$0xf]  ;;  %1411 = vst [vmem:[%s1819_s10 + $0xec] sm:$0xf] %v1410_v51 }
  0x32   : > { %1413 = vst [vmem:[%s1819_s10 + $0xf8] sm:$0xf] %v1412_v52  ;;  %1415 = vst [vmem:[%s1819_s10 + $0x104] sm:$0xf] %v1414_v53  ;;  %v1416_v54 = vld [vmem:[%s1814_s9 + $0x218] sm:$0xf] }
  0x33   : > { %v1418_v55 = vld [vmem:[%s1814_s9 + $0x230] sm:$0xf]  ;;  %v1420_v56 = vld [vmem:[%s1814_s9 + $0x248] sm:$0xf]  ;;  %1417 = vst [vmem:[%s1819_s10 + $0x110] sm:$0xf] %v1416_v54 }
  0x34   : > { %1419 = vst [vmem:[%s1819_s10 + $0x11c] sm:$0xf] %v1418_v55  ;;  %1421 = vst [vmem:[%s1819_s10 + $0x128] sm:$0xf] %v1420_v56  ;;  %v1422_v57 = vld [vmem:[%s1814_s9 + $0x260] sm:$0xf] }
  0x35   : > { %v1424_v58 = vld [vmem:[%s1814_s9 + $0x278] sm:$0xf]  ;;  %v1426_v59 = vld [vmem:[%s1814_s9 + $0x290] sm:$0xf]  ;;  %1423 = vst [vmem:[%s1819_s10 + $0x134] sm:$0xf] %v1422_v57 }
  0x36   : > { %1425 = vst [vmem:[%s1819_s10 + $0x140] sm:$0xf] %v1424_v58  ;;  %1427 = vst [vmem:[%s1819_s10 + $0x14c] sm:$0xf] %v1426_v59  ;;  %v1428_v60 = vld [vmem:[%s1814_s9 + $0x2a8] sm:$0xf] }
  0x37   : > { %v1430_v61 = vld [vmem:[%s1814_s9 + $0x2c0] sm:$0xf]  ;;  %v1432_v62 = vld [vmem:[%s1814_s9 + $0x2d8] sm:$0xf]  ;;  %1429 = vst [vmem:[%s1819_s10 + $0x158] sm:$0xf] %v1428_v60 }
  0x38   : > { %1431 = vst [vmem:[%s1819_s10 + $0x164] sm:$0xf] %v1430_v61  ;;  %1433 = vst [vmem:[%s1819_s10 + $0x170] sm:$0xf] %v1432_v62  ;;  %v1434_v63 = vld [vmem:[%s1814_s9 + $0x2f0] sm:$0xf] }
  0x39   : > { %1435 = vst [vmem:[%s1819_s10 + $0x17c] sm:$0xf] %v1434_v63 }
  0x3a PF: > { %p1436_p8 = scmp.ge.s32.totalorder %s1734_s22, 1  ;;  %p397_p9 = scmp.lt.s32.totalorder %s1734_s22, 3 }
  0x3c   : > { %p398_p10 = pnand %p1436_p8, %p397_p9 }
  0x3d   : > { %s404_s11 = sand.u32 (!%p398_p10), 1, %s1718_s18   ;;  %s458_s12 = smul.u32 (!%p398_p10), 3, %s1726_s20 }
  0x3e   : > { %401 = sbr.rel (%p398_p10) target bundleno = 685 (0x2ad), region = 62  ;;  %p1437_p12 = scmp.ne.s32.totalorder (!%p398_p10), %s1726_s20, 0 }
  0x3f   : > { %s1572_s13 = smul.u32 (!%p398_p10), 384, %s404_s11  ;;  %p459_p11 = scmp.lt.s32.totalorder (!%p398_p10), %s458_s12, 5 }
  0x40   : > { %s1573_s14 = smul.u32 (!%p398_p10), 60, %s404_s11 }
  0x41   : > { %s1956_s24 = scalar_lea.vmem (!%p398_p10), [#allocation3], %s1572_s13 }
  0x42   : > { %s1958_s25 = scalar_lea.vmem (!%p398_p10), [#allocation4], %s1573_s14 }
  0x43   : > { %s2159_s12 = smov (!%p459_p11, %s458_s12), 5  ;;  %469 = sbr.rel (%p1437_p12) target bundleno = 396 (0x18c), region = 70 }
  0x44   : > { %s461_s17 = scalar_lea.vmem %s2147_s2, %s2159_s12 }
  0x48   : > { %v472_v0 = vld [vmem:[%s2145_s0 + $0x10] sm:$0xff]  ;;  %v473_v1 = vld [vmem:[%s2145_s0 + $0x18] sm:$0xff]  ;;  %v470_v2 = vld [vmem:[%s2145_s0] sm:$0xff]  ;;  %vm492_vm0 = vcmask 1041408   ;;  %v568_v60 = vlaneseq }
  0x49   : > { %v483_v3 = vadd.f32 %v473_v1, %v472_v0  ;;  %v471_v4 = vld [vmem:[%s2145_s0 + $0x8] sm:$0xff]  ;;  %v474_v5 = vld [vmem:[%s2145_s0 + $0x20] sm:$0xff]  ;;  %v476_v14 = vld [vmem:[%s2145_s0 + $0x30] sm:$0xff] }
  0x4a   : > { %v475_v6 = vld [vmem:[%s2145_s0 + $0x28] sm:$0xff]  ;;  %v480_v7 = vadd.f32 %v471_v4, %v470_v2  ;;  %v478_v8 = vld [vmem:[%s2145_s0 + $0x40] sm:$0x3]  ;;  %v477_v15 = vld [vmem:[%s2145_s0 + $0x38] sm:$0xff] }
  0x4b   : > { %v479_v9 = vld [vmem:[%s2145_s0 + $0x48] sm:$0x3]  ;;  %484 = vadd.xlane.f32.xlu1 %v483_v3  ;;  %v486_v10 = vadd.f32 %v475_v6, %v474_v5  ;;  %v493_v11 = vsel %vm492_vm0, %v478_v8, 0.0  ;;  %v489_v16 = vadd.f32 %v477_v15, %v476_v14 }
  0x4c   : > { %v494_v12 = vsel %vm492_vm0, %v479_v9, 0.0  ;;  %481 = vadd.xlane.f32.xlu0 %v480_v7 }
  0x4d   : > { %v495_v13 = vadd.f32 %v494_v12, %v493_v11 }
  0x4f   : > { %487 = vadd.xlane.f32.xlu1 %v486_v10  ;;  %v588_v10 = vld [vmem:[%s2149_s4] sm:$0x3] }
  0x50   : > { %496 = vadd.xlane.f32.xlu0 %v495_v13 }
  0x54   : > { %490 = vadd.xlane.f32.xlu0 %v489_v16 }
  0xd4   : > { %v485_v17 = vpop.xlane.xlu1 %484 }
  0xd5   : > { %v500_v18 = vmul.f32 0.00390625, %v485_v17  ;;  %v482_v19 = vpop.xlane.xlu0 %481 }
  0xd6   : > { %v499_v20 = vmul.f32 0.00390625, %v482_v19 }
  0xd7   : > { %v1993_v21 = vsub.f32 %v472_v0, %v500_v18  ;;  %v1995_v22 = vsub.f32 %v473_v1, %v500_v18  ;;  %v569_v0 = vshrl.u32 %v568_v60, 7 }
  0xd8   : > { %v1997_v23 = vsub.f32 %v470_v2, %v499_v20  ;;  %v1999_v24 = vsub.f32 %v471_v4, %v499_v20  ;;  %v488_v25 = vpop.xlane.xlu1 %487 }
  0xd9   : > { %v501_v26 = vmul.f32 0.00390625, %v488_v25  ;;  %v497_v27 = vpop.xlane.xlu0 %496  ;;  %v516_v28 = vmul.f32 %v1993_v21, %v1993_v21  ;;  %v517_v29 = vmul.f32 %v1995_v22, %v1995_v22  ;;  %v570_v7 = vsub.s32 0, %v569_v0 }
  0xda   : > { %v503_v30 = vmul.f32 0.00390625, %v497_v27  ;;  %v514_v31 = vmul.f32 %v1997_v23, %v1997_v23  ;;  %v515_v32 = vmul.f32 %v1999_v24, %v1999_v24 }
  0xdb   : > { %v2009_v33 = vsub.f32 %v474_v5, %v501_v26  ;;  %v2011_v34 = vsub.f32 %v475_v6, %v501_v26  ;;  %v527_v35 = vadd.f32 %v517_v29, %v516_v28 }
  0xdc   : > { %v2013_v36 = vsub.f32 %v478_v8, %v503_v30  ;;  %v2015_v37 = vsub.f32 %v479_v9, %v503_v30  ;;  %v524_v38 = vadd.f32 %v515_v32, %v514_v31  ;;  %v574_v8 = vsub.s32 1, %v569_v0  ;;  %v566_v9 = vld [vmem:[%s2148_s3] sm:$0x3] }
  0xdd   : > { %v491_v39 = vpop.xlane.xlu0 %490  ;;  %528 = vadd.xlane.f32.xlu0 %v527_v35  ;;  %v518_v40 = vmul.f32 %v2009_v33, %v2009_v33  ;;  %v519_v41 = vmul.f32 %v2011_v34, %v2011_v34  ;;  %v571_v11 = vrot.slane %v566_v9, %v570_v7 }
  0xde   : > { %v502_v42 = vmul.f32 0.00390625, %v491_v39  ;;  %525 = vadd.xlane.f32.xlu1 %v524_v38  ;;  %v522_v43 = vmul.f32 %v2013_v36, %v2013_v36  ;;  %v523_v44 = vmul.f32 %v2015_v37, %v2015_v37  ;;  %v575_v12 = vrot.slane %v566_v9, %v574_v8 }
  0xdf   : > { %v530_v45 = vadd.f32 %v519_v41, %v518_v40  ;;  %v597_v16 = vrot.slane %v588_v10, %v574_v8 }
  0xe0   : > { %v2025_v46 = vsub.f32 %v476_v14, %v502_v42  ;;  %v2027_v47 = vsub.f32 %v477_v15, %v502_v42  ;;  %v536_v48 = vsel %vm492_vm0, %v522_v43, 0.0  ;;  %v537_v49 = vsel %vm492_vm0, %v523_v44, 0.0 }
  0xe1   : > { %v538_v52 = vadd.f32 %v537_v49, %v536_v48  ;;  %v593_v15 = vrot.slane %v588_v10, %v570_v7 }
  0xe2   : > { %531 = vadd.xlane.f32.xlu1 %v530_v45  ;;  %v520_v50 = vmul.f32 %v2025_v46, %v2025_v46  ;;  %v521_v51 = vmul.f32 %v2027_v47, %v2027_v47 }
  0xe4   : > { %v533_v53 = vadd.f32 %v521_v51, %v520_v50 }
  0xe6   : > { %539 = vadd.xlane.f32.xlu1 %v538_v52  ;;  %534 = vadd.xlane.f32.xlu0 %v533_v53 }
 0x166   : > { %v529_v54 = vpop.xlane.xlu0 %528 }
 0x167   : > { %v526_v55 = vpop.xlane.xlu1 %525  ;;  %v542_v56 = vmul.f32 0.00390625, %v529_v54 }
 0x168   : > { %v541_v57 = vmul.f32 0.00390625, %v526_v55 }
 0x169   : > { %v547_v58 = vadd.f32 1e-05, %v542_v56 }
 0x16a   : > { %v546_v59 = vadd.f32 1e-05, %v541_v57 }
 0x16b   : > { %1614 = vrsqrt.f32 %v547_v58  ;;  %v532_v61 = vpop.xlane.xlu1 %531 }
 0x16c   : > { %1616 = vrsqrt.f32 %v546_v59  ;;  %v543_v62 = vmul.f32 0.00390625, %v532_v61 }
 0x16e   : > { %v548_v63 = vadd.f32 1e-05, %v543_v62 }
 0x16f   : > { %v540_v1 = vpop.xlane.xlu1 %539  ;;  %v535_v2 = vpop.xlane.xlu0 %534 }
 0x170   : > { %1618 = vrsqrt.f32 %v548_v63  ;;  %v545_v3 = vmul.f32 0.00390625, %v540_v1  ;;  %v544_v4 = vmul.f32 0.00390625, %v535_v2 }
 0x172   : > { %v550_v5 = vadd.f32 1e-05, %v545_v3  ;;  %v549_v6 = vadd.f32 1e-05, %v544_v4 }
 0x174   : > { %1620 = vrsqrt.f32 %v550_v5 }
 0x175   : > { %1622 = vrsqrt.f32 %v549_v6 }
 0x178   : > { %v1615_v13 = vpop.eup %1614 }
 0x179   : > { %v1617_v14 = vpop.eup %1616  ;;  %v558_v17 = vmul.f32 %v1615_v13, %v1993_v21  ;;  %v559_v18 = vmul.f32 %v1615_v13, %v1995_v22 }
 0x17a   : > { %v556_v19 = vmul.f32 %v1617_v14, %v1997_v23  ;;  %v557_v20 = vmul.f32 %v1617_v14, %v1999_v24 }
 0x17b   : > { %v580_v25 = vmul.f32 %v571_v11, %v558_v17  ;;  %v581_v26 = vmul.f32 %v575_v12, %v559_v18 }
 0x17c   : > { %v578_v27 = vmul.f32 %v571_v11, %v556_v19  ;;  %v579_v28 = vmul.f32 %v575_v12, %v557_v20 }
 0x17d   : > { %v1619_v29 = vpop.eup %1618  ;;  %v602_v30 = vadd.f32 %v593_v15, %v580_v25  ;;  %v603_v31 = vadd.f32 %v597_v16, %v581_v26 }
 0x17e   : > { %v600_v32 = vadd.f32 %v593_v15, %v578_v27  ;;  %v601_v35 = vadd.f32 %v597_v16, %v579_v28  ;;  %v560_v38 = vmul.f32 %v1619_v29, %v2009_v33  ;;  %v561_v39 = vmul.f32 %v1619_v29, %v2011_v34 }
 0x17f   : > { %v1522_v21 = vpack.c.bf16 %v603_v31, %v602_v30 }
 0x180   : > { %v1521_v40 = vpack.c.bf16 %v601_v35, %v600_v32  ;;  %v582_v22 = vmul.f32 %v571_v11, %v560_v38  ;;  %v583_v41 = vmul.f32 %v575_v12, %v561_v39 }
 0x181   : > { %v1621_v23 = vpop.eup %1620  ;;  %643 = vst [vmem:[#allocation2] sm:$0xff] %v1522_v21 }
 0x182   : > { %v1623_v24 = vpop.eup %1622  ;;  %642 = vst [vmem:[#allocation2 + $0x8] sm:$0xff] %v1521_v40  ;;  %v604_v42 = vadd.f32 %v593_v15, %v582_v22  ;;  %v605_v43 = vadd.f32 %v597_v16, %v583_v41  ;;  %v564_v44 = vmul.f32 %v1621_v23, %v2013_v36  ;;  %v565_v45 = vmul.f32 %v1621_v23, %v2015_v37 }
 0x183   : > { %v562_v48 = vmul.f32 %v1623_v24, %v2025_v46  ;;  %v563_v33 = vmul.f32 %v1623_v24, %v2027_v47 }
 0x184   : > { %v1523_v49 = vpack.c.bf16 %v605_v43, %v604_v42  ;;  %v586_v34 = vmul.f32 %v571_v11, %v564_v44  ;;  %v587_v50 = vmul.f32 %v575_v12, %v565_v45 }
 0x185   : > { %v584_v51 = vmul.f32 %v571_v11, %v562_v48  ;;  %v585_v52 = vmul.f32 %v575_v12, %v563_v33 }
 0x186   : > { %644 = vst [vmem:[#allocation2 + $0x20] sm:$0xff] %v1523_v49  ;;  %v608_v53 = vadd.f32 %v593_v15, %v586_v34  ;;  %v609_v54 = vadd.f32 %v597_v16, %v587_v50 }
 0x187   : > { %v606_v55 = vadd.f32 %v593_v15, %v584_v51  ;;  %v607_v56 = vadd.f32 %v597_v16, %v585_v52 }
 0x188   : > { %v1525_v57 = vpack.c.bf16 %v609_v54, %v608_v53 }
 0x189   : > { %v1524_v58 = vpack.c.bf16 %v607_v56, %v606_v55 }
 0x18a   : > { %646 = vst [vmem:[#allocation2 + $0x18] sm:$0x11] %v1525_v57 }
 0x18b   : > { %645 = vst [vmem:[#allocation2 + $0x10] sm:$0xff] %v1524_v58 }
 0x18c PF: > { %v1624_v36 = vld [vmem:[%s1956_s24 + $0xac] ss:$12 sps:$4 sm:$0xff]   ;;  %v1626_v37 = vld [vmem:[%s1956_s24 + $0xa8] ss:$12 sps:$4 sm:$0xff]   ;;  %v1629_v47 = vld [vmem:[%s1956_s24 + $0x90] ss:$12 sps:$4 sm:$0xff]   ;;  %v718_v50 = vlaneseq }
 0x18d   : > { %1016 = vmatprep.subr.bf16.mxu0 %v1624_v36  ;;  %v1627_v46 = vld [vmem:[%s1956_s24 + $0x94] ss:$12 sps:$4 sm:$0xff]   ;;  %v1630_v59 = vld [vmem:[%s1956_s24 + $0x7c] ss:$12 sps:$4 sm:$0xff]   ;;  %v1632_v60 = vld [vmem:[%s1956_s24 + $0x78] ss:$12 sps:$4 sm:$0xff]  }
 0x18e   : > { %1017 = vmatpush1.bf16.msra.mxu0 %v1626_v37  ;;  %v1633_v61 = vld [vmem:[%s1956_s24 + $0x64] ss:$12 sps:$4 sm:$0xff]   ;;  %v1635_v63 = vld [vmem:[%s1956_s24 + $0x60] ss:$12 sps:$4 sm:$0xff]   ;;  %v1638_v4 = vld [vmem:[%s1956_s24 + $0x48] ss:$12 sps:$4 sm:$0xff]  }
 0x18f   : > { %1018 = vmatprep.subr.bf16.mxu0 %v1627_v46  ;;  %v1644_v62 = vld [vmem:[%s1956_s24 + $0x170] ss:$12 sps:$4 sm:$0xff]   ;;  %v1636_v1 = vld [vmem:[%s1956_s24 + $0x4c] ss:$12 sps:$4 sm:$0xff]   ;;  %v1639_v5 = vld [vmem:[%s1956_s24 + $0x34] ss:$12 sps:$4 sm:$0xff]  }
 0x190   : > { %1537 = vmatprep.subr.bf16.mxu1 %v1644_v62  ;;  %v1646_v0 = vld [vmem:[%s1956_s24 + $0xb0] ss:$12 sps:$4 sm:$0xff]   ;;  %v1649_v2 = vld [vmem:[%s1956_s24 + $0x158] ss:$12 sps:$4 sm:$0xff]   ;;  %v1654_v6 = vld [vmem:[%s1956_s24 + $0x140] ss:$12 sps:$4 sm:$0xff]  }
 0x191   : > { %1538 = vmatpush3.bf16.msra.mxu1 %v1646_v0  ;;  %v1651_v3 = vld [vmem:[%s1956_s24 + $0x98] ss:$12 sps:$4 sm:$0xff]   ;;  %v1656_v7 = vld [vmem:[%s1956_s24 + $0x80] ss:$12 sps:$4 sm:$0xff]   ;;  %v1641_v8 = vld [vmem:[%s1956_s24 + $0x30] ss:$12 sps:$4 sm:$0xff]  }
 0x192   : > { %1019 = vmatpush1.bf16.msra.mxu0 %v1629_v47  ;;  %1539 = vmatprep.subr.bf16.mxu1 %v1649_v2  ;;  %v1659_v9 = vld [vmem:[%s1956_s24 + $0x128] ss:$12 sps:$4 sm:$0xff]   ;;  %v1645_v12 = vld [vmem:[%s1956_s24 + $0x18] ss:$12 sps:$4 sm:$0xff]   ;;  %v1664_v13 = vld [vmem:[%s1956_s24 + $0x110] ss:$12 sps:$4 sm:$0xff]  }
 0x193   : > { %1020 = vmatprep.subr.bf16.mxu0 %v1630_v59  ;;  %v1642_v10 = vld [vmem:[%s1956_s24 + $0x1c] ss:$12 sps:$4 sm:$0xff]   ;;  %v1647_v14 = vld [vmem:[%s1956_s24 + $0x4] ss:$12 sps:$4 sm:$0xff]   ;;  %v1650_v17 = vld [vmem:[%s1956_s24] ss:$12 sps:$4 sm:$0xff]  }
 0x194   : > { %v1661_v11 = vld [vmem:[%s1956_s24 + $0x68] ss:$12 sps:$4 sm:$0xff]   ;;  %v1666_v15 = vld [vmem:[%s1956_s24 + $0x50] ss:$12 sps:$4 sm:$0xff]   ;;  %v1669_v16 = vld [vmem:[%s1956_s24 + $0xf8] ss:$12 sps:$4 sm:$0xff]  }
 0x195   : > { %1540 = vmatpush3.bf16.msra.mxu1 %v1651_v3  ;;  %v1652_v18 = vld [vmem:[%s1956_s24 + $0x16c] ss:$12 sps:$4 sm:$0xff]   ;;  %v1655_v25 = vld [vmem:[%s1956_s24 + $0x168] ss:$12 sps:$4 sm:$0xff]   ;;  %v1660_v29 = vld [vmem:[%s1956_s24 + $0x150] ss:$12 sps:$4 sm:$0xff]  }
 0x196   : > { %1021 = vmatpush1.bf16.msra.mxu0 %v1632_v60  ;;  %1541 = vmatprep.subr.bf16.mxu1 %v1654_v6  ;;  %v1671_v19 = vld [vmem:[%s1956_s24 + $0x38] ss:$12 sps:$4 sm:$0xff]   ;;  %v1674_v20 = vld [vmem:[%s1956_s24 + $0xe0] ss:$12 sps:$4 sm:$0xff]   ;;  %v1679_v28 = vld [vmem:[%s1956_s24 + $0xc8] ss:$12 sps:$4 sm:$0xff]  }
 0x197   : > { %1022 = vmatprep.subr.bf16.mxu0 %v1633_v61  ;;  %v1657_v26 = vld [vmem:[%s1956_s24 + $0x154] ss:$12 sps:$4 sm:$0xff]   ;;  %v1684_v30 = vld [vmem:[#allocation2 + $0xc] ss:$-8 sps:$4 sm:$0xff]   ;;  %v1672_v22 = vld [vmem:[%s1956_s24 + $0x10c] ss:$12 sps:$4 sm:$0xff]  }
 0x198   : > { %v1676_v27 = vld [vmem:[%s1956_s24 + $0x20] ss:$12 sps:$4 sm:$0xff]   ;;  %v1662_v31 = vld [vmem:[%s1956_s24 + $0x13c] ss:$12 sps:$4 sm:$0xff]   ;;  %1109 = vmatprep.mubr.bf16.mxu1 %v1684_v30  ;;  %1048 = vmatprep.mubr.bf16.mxu0 %v1684_v30  ;;  %v1665_v35 = vld [vmem:[%s1956_s24 + $0x138] ss:$12 sps:$4 sm:$0xff]  }
 0x199   : > { %1542 = vmatpush3.bf16.msra.mxu1 %v1656_v7  ;;  %v1681_v32 = vld [vmem:[%s1956_s24 + $0x8] ss:$12 sps:$4 sm:$0xff]   ;;  %v1667_v38 = vld [vmem:[%s1956_s24 + $0x124] ss:$12 sps:$4 sm:$0xff]   ;;  %v1682_v39 = vld [vmem:[#allocation2 + $0x8] ss:$-8 sps:$4 sm:$0xff]  }
 0x19a   : > { %1023 = vmatpush1.bf16.msra.mxu0 %v1635_v63  ;;  %1543 = vmatprep.subr.bf16.mxu1 %v1659_v9  ;;  %v1691_v21 = vld [vmem:[#allocation2 + $0x24] ss:$-16 sps:$4 sm:$0xff]   ;;  %v651_v41 = vld [vmem:[#allocation2 + $0x18] sm:$0x11]  ;;  %v1693_v42 = vld [vmem:[#allocation2 + $0x20] ss:$-16 sps:$4 sm:$0xff]  }
 0x19b   : > { %1024 = vmatprep.subr.bf16.mxu0 %v1636_v1  ;;  %v1670_v40 = vld [vmem:[%s1956_s24 + $0x120] ss:$12 sps:$4 sm:$0xff]   ;;  %v1675_v23 = vld [vmem:[%s1956_s24 + $0x108] ss:$12 sps:$4 sm:$0xff]   ;;  %v1448_v43 = vcombine.high %v651_v41, %v651_v41  ;;  %v1680_v44 = vld [vmem:[%s1956_s24 + $0xf0] ss:$12 sps:$4 sm:$0xff]   ;;  %v1447_v49 = vcombine.low %v651_v41, %v651_v41 }
 0x19c   : > { %v1677_v24 = vld [vmem:[%s1956_s24 + $0xf4] ss:$12 sps:$4 sm:$0xff]   ;;  %v1685_v45 = vld [vmem:[%s1956_s24 + $0xdc] ss:$12 sps:$4 sm:$0xff]   ;;  %v1687_v48 = vld [vmem:[%s1956_s24 + $0xd8] ss:$12 sps:$4 sm:$0xff]  }
 0x19d   : > { %1544 = vmatpush3.bf16.msra.mxu1 %v1661_v11  ;;  %v1688_v33 = vld [vmem:[%s1956_s24 + $0xc4] ss:$12 sps:$4 sm:$0xff]   ;;  %v1690_v34 = vld [vmem:[%s1956_s24 + $0xc0] ss:$12 sps:$4 sm:$0xff]   ;;  %v719_v51 = vshrl.u32 %v718_v50, 7  ;;  %s1536_s12 = smul.u32 (%p1801_p6), 12, %s1726_s20 }
 0x19e   : > { %1025 = vmatpush1.bf16.msra.mxu0 %v1638_v4  ;;  %1545 = vmatprep.subr.bf16.mxu1 %v1664_v13  ;;  %v716_v53 = vld [vmem:[%s461_s17] sm:$0x7] }
 0x19f   : > { %1026 = vmatprep.subr.bf16.mxu0 %v1639_v5  ;;  %v728_v52 = vsub.s32 2, %v719_v51  ;;  %v720_v6 = vsub.s32 0, %v719_v51  ;;  %v724_v7 = vsub.s32 1, %v719_v51  ;;  %s1208_s24 = scalar_lea.vmem (%p1801_p6), %s2150_s5, %s1536_s12 }
 0x1a1   : > { %1546 = vmatpush3.bf16.msra.mxu1 %v1666_v15  ;;  %v729_v55 = vrot.slane %v716_v53, %v728_v52  ;;  %v721_v13 = vrot.slane %v716_v53, %v720_v6 }
 0x1a2   : > { %1027 = vmatpush1.bf16.msra.mxu0 %v1641_v8  ;;  %1547 = vmatprep.subr.bf16.mxu1 %v1669_v16 }
 0x1a3   : > { %1028 = vmatprep.subr.bf16.mxu0 %v1642_v10 }
 0x1a5   : > { %1548 = vmatpush3.bf16.msra.mxu1 %v1671_v19 }
 0x1a6   : > { %1029 = vmatpush1.bf16.msra.mxu0 %v1645_v12  ;;  %1549 = vmatprep.subr.bf16.mxu1 %v1674_v20 }
 0x1a7   : > { %1030 = vmatprep.subr.bf16.mxu0 %v1647_v14  ;;  %v725_v14 = vrot.slane %v716_v53, %v724_v7 }
 0x1a9   : > { %1550 = vmatpush3.bf16.msra.mxu1 %v1676_v27 }
 0x1aa   : > { %1031 = vmatpush1.bf16.msra.mxu0 %v1650_v17  ;;  %1551 = vmatprep.subr.bf16.mxu1 %v1679_v28 }
 0x1ab   : > { %1032 = vmatprep.subr.bf16.mxu0 %v1652_v18 }
 0x1ad   : > { %1552 = vmatpush3.bf16.msra.mxu1 %v1681_v32 }
 0x1ae   : > { %1033 = vmatpush2.bf16.msra.mxu0 %v1655_v25 }
 0x1af   : > { %1034 = vmatprep.subr.bf16.mxu0 %v1657_v26 }
 0x1b0   : > { %1110 = vmatmul.mubr.bf16.vlgmr.msra.gmra.mxu1 %v1682_v39 }
 0x1b1   : > { %1117 = vmatprep.mubr.bf16.mxu1 %v1691_v21 }
 0x1b2   : > { %1035 = vmatpush2.bf16.msra.mxu0 %v1660_v29 }
 0x1b3   : > { %1036 = vmatprep.subr.bf16.mxu0 %v1662_v31 }
 0x1b6   : > { %1037 = vmatpush2.bf16.msra.mxu0 %v1665_v35 }
 0x1b7   : > { %1038 = vmatprep.subr.bf16.mxu0 %v1667_v38 }
 0x1b8   : > { %1118 = vmatmul.mubr.bf16.gmra.mxu1 %v1693_v42 }
 0x1b9   : > { %1125 = vmatprep.mubr.bf16.mxu1 %v1448_v43 }
 0x1ba   : > { %1039 = vmatpush2.bf16.msra.mxu0 %v1670_v40 }
 0x1bb   : > { %1040 = vmatprep.subr.bf16.mxu0 %v1672_v22 }
 0x1be   : > { %1041 = vmatpush2.bf16.msra.mxu0 %v1675_v23 }
 0x1bf   : > { %1042 = vmatprep.subr.bf16.mxu0 %v1677_v24 }
 0x1c0   : > { %1126 = vmatmul.mubr.bf16.gmra.mxu1 %v1447_v49 }
 0x1c2   : > { %1043 = vmatpush2.bf16.msra.mxu0 %v1680_v44 }
 0x1c3   : > { %1044 = vmatprep.subr.bf16.mxu0 %v1685_v45 }
 0x1c6   : > { %1045 = vmatpush2.bf16.msra.mxu0 %v1687_v48 }
 0x1c7   : > { %1046 = vmatprep.subr.bf16.mxu0 %v1688_v33 }
 0x1ca   : > { %1047 = vmatpush2.bf16.msra.mxu0 %v1690_v34 }
 0x1cd   : > { %1049 = vmatmul.mubr.bf16.vlgmr.msra.gmra.mxu0 %v1682_v39 }
 0x1ce   : > { %1058 = vmatprep.mubr.bf16.mxu0 %v1691_v21 }
 0x1d5   : > { %1059 = vmatmul.mubr.bf16.gmra.mxu0 %v1693_v42 }
 0x1d6   : > { %1068 = vmatprep.mubr.bf16.mxu0 %v1448_v43 }
 0x1dd   : > { %1069 = vmatmul.mubr.bf16.gmra.mxu0 %v1447_v49 }
 0x270   : > { %v1553_v54 = vpop.f32.mrf.mxu1 }
 0x272   : > { %v1554_v56 = vpop.f32.mrf.mxu1 }
 0x273   : > { %v1555_v57 = vadd.f32 %v1554_v56, %v1553_v54 }
 0x274   : > { %v1556_v58 = vpop.f32.mrf.mxu1 }
 0x275   : > { %v1112_v36 = vadd.f32 %v1555_v57, %v729_v55 }
 0x276   : > { %v1557_v37 = vpop.f32.mrf.mxu1 }
 0x277   : > { %v1527_v46 = vpack.c.bf16 %v1112_v36, %v1112_v36  ;;  %v1558_v47 = vadd.f32 %v1557_v37, %v1556_v58 }
 0x278   : > { %v1559_v59 = vpop.f32.mrf.mxu1 }
 0x279   : > { %1187 = vst [vmem:[%s1958_s25 + $0x8] sm:$0xf] %v1527_v46  ;;  %v1115_v60 = vadd.f32 %v1558_v47, %v729_v55 }
 0x27a   : > { %v1560_v61 = vpop.f32.mrf.mxu1 }
 0x27b   : > { %v1529_v62 = vpack.c.bf16 %v1115_v60, %v1115_v60  ;;  %v1561_v63 = vadd.f32 %v1560_v61, %v1559_v59 }
 0x27c   : > { %v1562_v0 = vpop.f32.mrf.mxu1 }
 0x27d   : > { %1189 = vst [vmem:[%s1958_s25 + $0x14] sm:$0xf] %v1529_v62  ;;  %v1120_v1 = vadd.f32 %v1561_v63, %v729_v55 }
 0x27e   : > { %v1563_v2 = vpop.f32.mrf.mxu1 }
 0x27f   : > { %v1531_v3 = vpack.c.bf16 %v1120_v1, %v1120_v1  ;;  %v1564_v4 = vadd.f32 %v1563_v2, %v1562_v0 }
 0x280   : > { %v1565_v5 = vpop.f32.mrf.mxu1  ;;  %v1508_v54 = vld [vmem:[%s1958_s25 + $0x8] sm:$0xf] (%p1801_p6) }
 0x281   : > { %1191 = vst [vmem:[%s1958_s25 + $0x20] sm:$0xf] %v1531_v3  ;;  %v1123_v8 = vadd.f32 %v1564_v4, %v729_v55  ;;  %1509 = vst [vmem:[%s1208_s24 + $0x8] sm:$0xf] (%p1801_p6), %v1508_v54 }
 0x282   : > { %v1566_v9 = vpop.f32.mrf.mxu1 }
 0x283   : > { %v1533_v10 = vpack.c.bf16 %v1123_v8, %v1123_v8  ;;  %v1567_v11 = vadd.f32 %v1566_v9, %v1565_v5 }
 0x284   : > { %v1568_v12 = vpop.f32.mrf.mxu1 }
 0x285   : > { %1193 = vst [vmem:[%s1958_s25 + $0x2c] sm:$0xf] %v1533_v10  ;;  %v1128_v15 = vadd.f32 %v1567_v11, %v729_v55  ;;  %v1510_v55 = vld [vmem:[%s1958_s25 + $0x14] sm:$0xf] (%p1801_p6) }
 0x286   : > { %v1569_v17 = vpop.f32.mrf.mxu1  ;;  %1511 = vst [vmem:[%s1208_s24 + $0x20] sm:$0xf] (%p1801_p6), %v1510_v55 }
 0x287   : > { %v1535_v18 = vpack.c.bf16 %v1128_v15, %v1128_v15 }
 0x288   : > { %v1512_v56 = vld [vmem:[%s1958_s25 + $0x20] sm:$0xf] (%p1801_p6) }
 0x289   : > { %1195 = vst [vmem:[%s1958_s25 + $0x38] sm:$0x1] %v1535_v18  ;;  %1513 = vst [vmem:[%s1208_s24 + $0x38] sm:$0xf] (%p1801_p6), %v1512_v56 }
 0x28c   : > { %v1514_v57 = vld [vmem:[%s1958_s25 + $0x2c] sm:$0xf] (%p1801_p6) }
 0x28d   : > { %v1050_v16 = vpop.f32.mrf.mxu0  ;;  %1515 = vst [vmem:[%s1208_s24 + $0x50] sm:$0xf] (%p1801_p6), %v1514_v57 }
 0x28e   : > { %v1051_v20 = vadd.f32 %v1050_v16, %v721_v13 }
 0x28f   : > { %v1052_v19 = vpop.f32.mrf.mxu0 }
 0x290   : > { %v1053_v25 = vadd.f32 %v1052_v19, %v725_v14  ;;  %v1516_v58 = vld [vmem:[%s1958_s25 + $0x38] sm:$0xf] (%p1801_p6) }
 0x291   : > { %v1054_v26 = vpop.f32.mrf.mxu0  ;;  %1517 = vst [vmem:[%s1208_s24 + $0x68] sm:$0xf] (%p1801_p6), %v1516_v58 }
 0x292   : > { %v1526_v27 = vpack.c.bf16 %v1053_v25, %v1051_v20  ;;  %v1055_v29 = vadd.f32 %v1054_v26, %v721_v13 }
 0x293   : > { %v1056_v28 = vpop.f32.mrf.mxu0 }
 0x294   : > { %1186 = vst [vmem:[%s1958_s25] sm:$0xff] %v1526_v27  ;;  %v1057_v30 = vadd.f32 %v1056_v28, %v725_v14 }
 0x295   : > { %v1060_v31 = vpop.f32.mrf.mxu0 }
 0x296   : > { %v1528_v32 = vpack.c.bf16 %v1057_v30, %v1055_v29  ;;  %v1061_v38 = vadd.f32 %v1060_v31, %v721_v13 }
 0x297   : > { %v1062_v35 = vpop.f32.mrf.mxu0 }
 0x298   : > { %1188 = vst [vmem:[%s1958_s25 + $0xc] sm:$0xff] %v1528_v32  ;;  %v1063_v39 = vadd.f32 %v1062_v35, %v725_v14 }
 0x299   : > { %v1064_v21 = vpop.f32.mrf.mxu0 }
 0x29a   : > { %v1530_v40 = vpack.c.bf16 %v1063_v39, %v1061_v38  ;;  %v1065_v41 = vadd.f32 %v1064_v21, %v721_v13 }
 0x29b   : > { %v1066_v22 = vpop.f32.mrf.mxu0  ;;  %v1223_v34 = vld [vmem:[%s1958_s25] sm:$0xff] (%p1801_p6) }
 0x29c   : > { %1190 = vst [vmem:[%s1958_s25 + $0x18] sm:$0xff] %v1530_v40  ;;  %v1067_v23 = vadd.f32 %v1066_v22, %v725_v14  ;;  %1224 = vst [vmem:[%s1208_s24] sm:$0xff] (%p1801_p6), %v1223_v34 }
 0x29d   : > { %v1070_v24 = vpop.f32.mrf.mxu0 }
 0x29e   : > { %v1532_v42 = vpack.c.bf16 %v1067_v23, %v1065_v41  ;;  %v1071_v44 = vadd.f32 %v1070_v24, %v721_v13 }
 0x29f   : > { %v1072_v43 = vpop.f32.mrf.mxu0  ;;  %v1225_v50 = vld [vmem:[%s1958_s25 + $0xc] sm:$0xff] (%p1801_p6) }
 0x2a0   : > { %1192 = vst [vmem:[%s1958_s25 + $0x24] sm:$0xff] %v1532_v42  ;;  %v1073_v45 = vadd.f32 %v1072_v43, %v725_v14  ;;  %1202 = sbr.rel (!%p1801_p6) target bundleno = 685 (0x2ad), region = 74  ;;  %1226 = vst [vmem:[%s1208_s24 + $0x18] sm:$0xff] (%p1801_p6), %v1225_v50 }
 0x2a1   : > { %v1074_v48 = vpop.f32.mrf.mxu0 }
 0x2a2   : > { %v1534_v33 = vpack.c.bf16 %v1073_v45, %v1071_v44 }
 0x2a3   : > { %v1075_v49 = vpop.f32.mrf.mxu0  ;;  %v1227_v51 = vld [vmem:[%s1958_s25 + $0x18] sm:$0xff] (%p1801_p6) }
 0x2a4   : > { %1194 = vst [vmem:[%s1958_s25 + $0x30] sm:$0x11] %v1534_v33  ;;  %1228 = vst [vmem:[%s1208_s24 + $0x30] sm:$0xff] (%p1801_p6), %v1227_v51 }
 0x2a7   : > { %v1229_v52 = vld [vmem:[%s1958_s25 + $0x24] sm:$0xff] }
 0x2a8   : > { %1230 = vst [vmem:[%s1208_s24 + $0x48] sm:$0xff] %v1229_v52 }
 0x2ab   : > { %v1231_v53 = vld [vmem:[%s1958_s25 + $0x30] sm:$0xff] }
 0x2ac   : > { %1232 = vst [vmem:[%s1208_s24 + $0x60] sm:$0xff] %v1231_v53 }
 0x2ad PF: > { %s15_s22 = sadd.s32 1, %s1734_s22   ;;  %s2152_s18 = smov %s1722_s19 }
 0x2ae   : > { %p12_p13 = scmp.ge.s32.totalorder %s15_s22, 4   ;;  %s2153_s19 = smov %s1806_s28 }
 0x2af   : > { %s2154_s20 = smov %s1730_s21  ;;  %s2155_s21 = smov %s2157_s23 }
 0x2b0   :  { %14 = sbr.rel (!%p12_p13) target bundleno = 3 (0x3), region = 149 }

// kernel: _lambda_.40
= control target key start
LH: loop header
LB: loop body
LE: loop exit
PB: predicated region body
PF: predicated region fallthrough
CT: control target
= control target key end

     0   :  { %s1138_s1 = inlined_call_operand.vmem [shape: bf16[512,256], index: 1, kind: input, shape index: {}]   ;;  %s1139_s0 = inlined_call_operand.vmem [shape: bf16[34,512], index: 0, kind: input, shape index: {}]   ;;  %s1140_s2 = inlined_call_operand.vmem [shape: f32[1,256], index: 2, kind: input, shape index: {}]   ;;  %s1141_s3 = inlined_call_operand.vmem [shape: f32[34,256], index: 3, kind: input, shape index: {}]   ;;  %s1142_s4 = inlined_call_operand.vmem [shape: f32[34,256], index: 4, kind: output, shape index: {}]  }
   0x1   :  { %v709_v0 = vld [vmem:[%s1138_s1 + $0x74] ss:$8 sps:$4 sm:$0xff]   ;;  %v713_v2 = vld [vmem:[%s1138_s1 + $0x70] ss:$8 sps:$4 sm:$0xff]   ;;  %v715_v4 = vld [vmem:[%s1138_s1 + $0x64] ss:$8 sps:$4 sm:$0xff]  }
   0x2   :  { %v711_v1 = vld [vmem:[%s1138_s1 + $0x174] ss:$8 sps:$4 sm:$0xff]   ;;  %477 = vmatprep.subr.bf16.mxu0 %v709_v0  ;;  %v714_v3 = vld [vmem:[%s1138_s1 + $0x170] ss:$8 sps:$4 sm:$0xff]   ;;  %v717_v5 = vld [vmem:[%s1138_s1 + $0x164] ss:$8 sps:$4 sm:$0xff]  }
   0x3   :  { %538 = vmatprep.subr.bf16.mxu1 %v711_v1  ;;  %478 = vmatpush1.bf16.msra.mxu0 %v713_v2  ;;  %v719_v6 = vld [vmem:[%s1138_s1 + $0x60] ss:$8 sps:$4 sm:$0xff]   ;;  %v721_v8 = vld [vmem:[%s1138_s1 + $0x54] ss:$8 sps:$4 sm:$0xff]   ;;  %v725_v10 = vld [vmem:[%s1138_s1 + $0x50] ss:$8 sps:$4 sm:$0xff]  }
   0x4   :  { %539 = vmatpush1.bf16.msra.mxu1 %v714_v3  ;;  %479 = vmatprep.subr.bf16.mxu0 %v715_v4  ;;  %v720_v7 = vld [vmem:[%s1138_s1 + $0x160] ss:$8 sps:$4 sm:$0xff]   ;;  %v723_v9 = vld [vmem:[%s1138_s1 + $0x154] ss:$8 sps:$4 sm:$0xff]   ;;  %v726_v11 = vld [vmem:[%s1138_s1 + $0x150] ss:$8 sps:$4 sm:$0xff]  }
   0x5   :  { %540 = vmatprep.subr.bf16.mxu1 %v717_v5  ;;  %v727_v12 = vld [vmem:[%s1138_s1 + $0x44] ss:$8 sps:$4 sm:$0xff]   ;;  %v731_v14 = vld [vmem:[%s1138_s1 + $0x40] ss:$8 sps:$4 sm:$0xff]   ;;  %v733_v16 = vld [vmem:[%s1138_s1 + $0x34] ss:$8 sps:$4 sm:$0xff]  }
   0x6   :  { %v729_v13 = vld [vmem:[%s1138_s1 + $0x144] ss:$8 sps:$4 sm:$0xff]   ;;  %v732_v15 = vld [vmem:[%s1138_s1 + $0x140] ss:$8 sps:$4 sm:$0xff]   ;;  %v735_v17 = vld [vmem:[%s1138_s1 + $0x134] ss:$8 sps:$4 sm:$0xff]  }
   0x7   :  { %480 = vmatpush1.bf16.msra.mxu0 %v719_v6  ;;  %v737_v18 = vld [vmem:[%s1138_s1 + $0x30] ss:$8 sps:$4 sm:$0xff]   ;;  %v739_v20 = vld [vmem:[%s1138_s1 + $0x24] ss:$8 sps:$4 sm:$0xff]   ;;  %v743_v22 = vld [vmem:[%s1138_s1 + $0x20] ss:$8 sps:$4 sm:$0xff]  }
   0x8   :  { %541 = vmatpush1.bf16.msra.mxu1 %v720_v7  ;;  %481 = vmatprep.subr.bf16.mxu0 %v721_v8  ;;  %v738_v19 = vld [vmem:[%s1138_s1 + $0x130] ss:$8 sps:$4 sm:$0xff]   ;;  %v741_v21 = vld [vmem:[%s1138_s1 + $0x124] ss:$8 sps:$4 sm:$0xff]   ;;  %v744_v23 = vld [vmem:[%s1138_s1 + $0x120] ss:$8 sps:$4 sm:$0xff]  }
   0x9   :  { %542 = vmatprep.subr.bf16.mxu1 %v723_v9  ;;  %v745_v24 = vld [vmem:[%s1138_s1 + $0x14] ss:$8 sps:$4 sm:$0xff]   ;;  %v749_v26 = vld [vmem:[%s1138_s1 + $0x10] ss:$8 sps:$4 sm:$0xff]   ;;  %v751_v28 = vld [vmem:[%s1138_s1 + $0x4] ss:$8 sps:$4 sm:$0xff]  }
   0xa   :  { %v747_v25 = vld [vmem:[%s1138_s1 + $0x114] ss:$8 sps:$4 sm:$0xff]   ;;  %v750_v27 = vld [vmem:[%s1138_s1 + $0x110] ss:$8 sps:$4 sm:$0xff]   ;;  %v753_v29 = vld [vmem:[%s1138_s1 + $0x104] ss:$8 sps:$4 sm:$0xff]  }
   0xb   :  { %482 = vmatpush1.bf16.msra.mxu0 %v725_v10  ;;  %v755_v30 = vld [vmem:[%s1138_s1] ss:$8 sps:$4 sm:$0xff]   ;;  %v757_v32 = vld [vmem:[%s1138_s1 + $0xf4] ss:$8 sps:$4 sm:$0xff]   ;;  %v761_v34 = vld [vmem:[%s1138_s1 + $0xf0] ss:$8 sps:$4 sm:$0xff]  }
   0xc   :  { %543 = vmatpush1.bf16.msra.mxu1 %v726_v11  ;;  %483 = vmatprep.subr.bf16.mxu0 %v727_v12  ;;  %v756_v31 = vld [vmem:[%s1138_s1 + $0x100] ss:$8 sps:$4 sm:$0xff]   ;;  %v759_v33 = vld [vmem:[%s1138_s1 + $0x1f4] ss:$8 sps:$4 sm:$0xff]   ;;  %v762_v35 = vld [vmem:[%s1138_s1 + $0x1f0] ss:$8 sps:$4 sm:$0xff]  }
   0xd   :  { %544 = vmatprep.subr.bf16.mxu1 %v729_v13  ;;  %v763_v36 = vld [vmem:[%s1138_s1 + $0xe4] ss:$8 sps:$4 sm:$0xff]   ;;  %v767_v38 = vld [vmem:[%s1138_s1 + $0xe0] ss:$8 sps:$4 sm:$0xff]   ;;  %v769_v40 = vld [vmem:[%s1138_s1 + $0xd4] ss:$8 sps:$4 sm:$0xff]  }
   0xe   :  { %v765_v37 = vld [vmem:[%s1138_s1 + $0x1e4] ss:$8 sps:$4 sm:$0xff]   ;;  %v768_v39 = vld [vmem:[%s1138_s1 + $0x1e0] ss:$8 sps:$4 sm:$0xff]   ;;  %v771_v41 = vld [vmem:[%s1138_s1 + $0x1d4] ss:$8 sps:$4 sm:$0xff]  }
   0xf   :  { %484 = vmatpush1.bf16.msra.mxu0 %v731_v14  ;;  %v773_v42 = vld [vmem:[%s1138_s1 + $0xd0] ss:$8 sps:$4 sm:$0xff]   ;;  %v775_v44 = vld [vmem:[%s1138_s1 + $0xc4] ss:$8 sps:$4 sm:$0xff]   ;;  %v779_v46 = vld [vmem:[%s1138_s1 + $0xc0] ss:$8 sps:$4 sm:$0xff]   ;;  %v93_v14 = vlaneseq }
  0x10   :  { %545 = vmatpush1.bf16.msra.mxu1 %v732_v15  ;;  %485 = vmatprep.subr.bf16.mxu0 %v733_v16  ;;  %v774_v43 = vld [vmem:[%s1138_s1 + $0x1d0] ss:$8 sps:$4 sm:$0xff]   ;;  %v777_v45 = vld [vmem:[%s1138_s1 + $0x1c4] ss:$8 sps:$4 sm:$0xff]   ;;  %v780_v47 = vld [vmem:[%s1138_s1 + $0x1c0] ss:$8 sps:$4 sm:$0xff]  }
  0x11   :  { %546 = vmatprep.subr.bf16.mxu1 %v735_v17  ;;  %v781_v48 = vld [vmem:[%s1138_s1 + $0xb4] ss:$8 sps:$4 sm:$0xff]   ;;  %v785_v52 = vld [vmem:[%s1138_s1 + $0xb0] ss:$8 sps:$4 sm:$0xff]   ;;  %v787_v54 = vld [vmem:[%s1138_s1 + $0xa4] ss:$8 sps:$4 sm:$0xff]  }
  0x12   :  { %v807_v49 = vld [vmem:[%s1139_s0 + $0x4] ss:$16 sps:$4 sm:$0xff]   ;;  %v810_v51 = vld [vmem:[%s1139_s0 + $0xc] ss:$16 sps:$4 sm:$0xff]   ;;  %v786_v53 = vld [vmem:[%s1138_s1 + $0x1b0] ss:$8 sps:$4 sm:$0xff]  }
  0x13   :  { %486 = vmatpush1.bf16.msra.mxu0 %v737_v18  ;;  %v783_v50 = vld [vmem:[%s1138_s1 + $0x1b4] ss:$8 sps:$4 sm:$0xff]   ;;  %509 = vmatprep.mubr.bf16.mxu0 %v807_v49  ;;  %v789_v55 = vld [vmem:[%s1138_s1 + $0x1a4] ss:$8 sps:$4 sm:$0xff]   ;;  %v791_v56 = vld [vmem:[%s1138_s1 + $0xa0] ss:$8 sps:$4 sm:$0xff]  }
  0x14   :  { %547 = vmatpush1.bf16.msra.mxu1 %v738_v19  ;;  %487 = vmatprep.subr.bf16.mxu0 %v739_v20  ;;  %v792_v57 = vld [vmem:[%s1138_s1 + $0x1a0] ss:$8 sps:$4 sm:$0xff]   ;;  %v793_v58 = vld [vmem:[%s1138_s1 + $0x94] ss:$8 sps:$4 sm:$0xff]   ;;  %v797_v60 = vld [vmem:[%s1138_s1 + $0x90] ss:$8 sps:$4 sm:$0xff]  }
  0x15   :  { %548 = vmatprep.subr.bf16.mxu1 %v741_v21  ;;  %570 = vmatprep.mubr.bf16.mxu1 %v810_v51  ;;  %v795_v59 = vld [vmem:[%s1138_s1 + $0x194] ss:$8 sps:$4 sm:$0xff]   ;;  %v798_v61 = vld [vmem:[%s1138_s1 + $0x190] ss:$8 sps:$4 sm:$0xff]   ;;  %v799_v62 = vld [vmem:[%s1138_s1 + $0x84] ss:$8 sps:$4 sm:$0xff]  }
  0x16   :  { %v801_v63 = vld [vmem:[%s1138_s1 + $0x184] ss:$8 sps:$4 sm:$0xff]   ;;  %v803_v0 = vld [vmem:[%s1138_s1 + $0x80] ss:$8 sps:$4 sm:$0xff]   ;;  %v94_v15 = vshrl.u32 %v93_v14, 7 }
  0x17   :  { %488 = vmatpush1.bf16.msra.mxu0 %v743_v22  ;;  %v804_v1 = vld [vmem:[%s1138_s1 + $0x180] ss:$8 sps:$4 sm:$0xff]   ;;  %v811_v4 = vld [vmem:[%s1139_s0 + $0x24] ss:$16 sps:$4 sm:$0xff]   ;;  %v813_v5 = vld [vmem:[%s1139_s0 + $0x2c] ss:$16 sps:$4 sm:$0xff]  }
  0x18   :  { %549 = vmatpush1.bf16.msra.mxu1 %v744_v23  ;;  %489 = vmatprep.subr.bf16.mxu0 %v745_v24  ;;  %v805_v2 = vld [vmem:[%s1139_s0] ss:$16 sps:$4 sm:$0xff]   ;;  %v808_v3 = vld [vmem:[%s1139_s0 + $0x8] ss:$16 sps:$4 sm:$0xff]   ;;  %v95_v16 = vsub.s32 0, %v94_v15  ;;  %v99_v18 = vsub.s32 1, %v94_v15 }
  0x19   :  { %550 = vmatprep.subr.bf16.mxu1 %v747_v25  ;;  %v25_v6 = vld [vmem:[%s1139_s0 + $0x40] sm:$0x11]  ;;  %v26_v7 = vld [vmem:[%s1139_s0 + $0x48] sm:$0x11] }
  0x1a   :  { %v815_v8 = vld [vmem:[%s1139_s0 + $0x20] ss:$16 sps:$4 sm:$0xff]   ;;  %v816_v9 = vld [vmem:[%s1139_s0 + $0x28] ss:$16 sps:$4 sm:$0xff]   ;;  %v642_v10 = vcombine.high %v25_v6, %v25_v6  ;;  %v644_v11 = vcombine.high %v26_v7, %v26_v7  ;;  %v641_v12 = vcombine.low %v25_v6, %v25_v6  ;;  %v643_v13 = vcombine.low %v26_v7, %v26_v7 }
  0x1b   :  { %490 = vmatpush1.bf16.msra.mxu0 %v749_v26  ;;  %v91_v17 = vld [vmem:[%s1140_s2] sm:$0x3] }
  0x1c   :  { %551 = vmatpush1.bf16.msra.mxu1 %v750_v27  ;;  %491 = vmatprep.subr.bf16.mxu0 %v751_v28  ;;  %v96_v19 = vrot.slane %v91_v17, %v95_v16  ;;  %v1071_v20 = vrot.slane %v91_v17, %v99_v18  ;;  %v599_v24 = vld [vmem:[%s1141_s3] sm:$0xff] }
  0x1d   :  { %552 = vmatprep.subr.bf16.mxu1 %v753_v29  ;;  %v600_v29 = vld [vmem:[%s1141_s3 + $0x8] sm:$0xff]  ;;  %v607_v7 = vld [vmem:[%s1141_s3 + $0x40] sm:$0x3] }
  0x1f   :  { %492 = vmatpush1.bf16.msra.mxu0 %v755_v30 }
  0x20   :  { %553 = vmatpush1.bf16.msra.mxu1 %v756_v31  ;;  %493 = vmatprep.subr.bf16.mxu0 %v757_v32 }
  0x21   :  { %554 = vmatprep.subr.bf16.mxu1 %v759_v33 }
  0x23   :  { %494 = vmatpush2.bf16.msra.mxu0 %v761_v34 }
  0x24   :  { %555 = vmatpush2.bf16.msra.mxu1 %v762_v35  ;;  %495 = vmatprep.subr.bf16.mxu0 %v763_v36  ;;  %v601_v35 = vld [vmem:[%s1141_s3 + $0x10] sm:$0xff] }
  0x25   :  { %556 = vmatprep.subr.bf16.mxu1 %v765_v37 }
  0x27   :  { %496 = vmatpush2.bf16.msra.mxu0 %v767_v38 }
  0x28   :  { %557 = vmatpush2.bf16.msra.mxu1 %v768_v39  ;;  %497 = vmatprep.subr.bf16.mxu0 %v769_v40 }
  0x29   :  { %558 = vmatprep.subr.bf16.mxu1 %v771_v41  ;;  %v602_v41 = vld [vmem:[%s1141_s3 + $0x18] sm:$0xff] }
  0x2b   :  { %498 = vmatpush2.bf16.msra.mxu0 %v773_v42 }
  0x2c   :  { %559 = vmatpush2.bf16.msra.mxu1 %v774_v43  ;;  %499 = vmatprep.subr.bf16.mxu0 %v775_v44 }
  0x2d   :  { %560 = vmatprep.subr.bf16.mxu1 %v777_v45 }
  0x2f   :  { %500 = vmatpush2.bf16.msra.mxu0 %v779_v46 }
  0x30   :  { %561 = vmatpush2.bf16.msra.mxu1 %v780_v47  ;;  %501 = vmatprep.subr.bf16.mxu0 %v781_v48  ;;  %v603_v47 = vld [vmem:[%s1141_s3 + $0x20] sm:$0xff] }
  0x31   :  { %562 = vmatprep.subr.bf16.mxu1 %v783_v50 }
  0x33   :  { %502 = vmatpush2.bf16.msra.mxu0 %v785_v52 }
  0x34   :  { %563 = vmatpush2.bf16.msra.mxu1 %v786_v53  ;;  %503 = vmatprep.subr.bf16.mxu0 %v787_v54  ;;  %v604_v53 = vld [vmem:[%s1141_s3 + $0x28] sm:$0xff] }
  0x35   :  { %564 = vmatprep.subr.bf16.mxu1 %v789_v55 }
  0x37   :  { %504 = vmatpush2.bf16.msra.mxu0 %v791_v56 }
  0x38   :  { %565 = vmatpush2.bf16.msra.mxu1 %v792_v57  ;;  %505 = vmatprep.subr.bf16.mxu0 %v793_v58 }
  0x39   :  { %566 = vmatprep.subr.bf16.mxu1 %v795_v59  ;;  %v605_v59 = vld [vmem:[%s1141_s3 + $0x30] sm:$0xff] }
  0x3b   :  { %506 = vmatpush2.bf16.msra.mxu0 %v797_v60 }
  0x3c   :  { %567 = vmatpush2.bf16.msra.mxu1 %v798_v61  ;;  %507 = vmatprep.subr.bf16.mxu0 %v799_v62 }
  0x3d   :  { %568 = vmatprep.subr.bf16.mxu1 %v801_v63 }
  0x3f   :  { %508 = vmatpush2.bf16.msra.mxu0 %v803_v0 }
  0x40   :  { %569 = vmatpush2.bf16.msra.mxu1 %v804_v1  ;;  %v606_v1 = vld [vmem:[%s1141_s3 + $0x38] sm:$0xff] }
  0x42   :  { %510 = vmatmul.mubr.bf16.vlgmr.msra.gmra.mxu0 %v805_v2 }
  0x43   :  { %571 = vmatmul.mubr.bf16.vlgmr.msra.gmra.mxu1 %v808_v3  ;;  %519 = vmatprep.mubr.bf16.mxu0 %v811_v4 }
  0x44   :  { %580 = vmatprep.mubr.bf16.mxu1 %v813_v5 }
  0x4a   :  { %520 = vmatmul.mubr.bf16.gmra.mxu0 %v815_v8 }
  0x4b   :  { %581 = vmatmul.mubr.bf16.gmra.mxu1 %v816_v9  ;;  %529 = vmatprep.mubr.bf16.mxu0 %v642_v10 }
  0x4c   :  { %590 = vmatprep.mubr.bf16.mxu1 %v644_v11 }
  0x52   :  { %530 = vmatmul.mubr.bf16.gmra.mxu0 %v641_v12 }
  0x53   :  { %591 = vmatmul.mubr.bf16.gmra.mxu1 %v643_v13  ;;  %v608_v13 = vld [vmem:[%s1141_s3 + $0x48] sm:$0x3] }
 0x102   :  { %v511_v21 = vpop.f32.mrf.mxu0 }
 0x103   :  { %v572_v22 = vpop.f32.mrf.mxu1  ;;  %v512_v23 = vadd.f32 %v511_v21, %v96_v19 }
 0x104   :  { %v513_v25 = vpop.f32.mrf.mxu0 }
 0x105   :  { %v574_v26 = vpop.f32.mrf.mxu1  ;;  %v573_v27 = vadd.f32 %v572_v22, %v512_v23  ;;  %v514_v28 = vadd.f32 %v513_v25, %v1071_v20 }
 0x106   :  { %v515_v30 = vpop.f32.mrf.mxu0 }
 0x107   :  { %v576_v31 = vpop.f32.mrf.mxu1  ;;  %v609_v32 = vadd.f32 %v599_v24, %v573_v27  ;;  %v575_v33 = vadd.f32 %v574_v26, %v514_v28  ;;  %v516_v34 = vadd.f32 %v515_v30, %v96_v19 }
 0x108   :  { %v517_v36 = vpop.f32.mrf.mxu0 }
 0x109   :  { %v578_v37 = vpop.f32.mrf.mxu1  ;;  %619 = vst [vmem:[%s1142_s4] sm:$0xff] %v609_v32  ;;  %v610_v38 = vadd.f32 %v600_v29, %v575_v33  ;;  %v577_v39 = vadd.f32 %v576_v31, %v516_v34  ;;  %v518_v40 = vadd.f32 %v517_v36, %v1071_v20 }
 0x10a   :  { %v521_v42 = vpop.f32.mrf.mxu0 }
 0x10b   :  { %v582_v43 = vpop.f32.mrf.mxu1  ;;  %620 = vst [vmem:[%s1142_s4 + $0x8] sm:$0xff] %v610_v38  ;;  %v611_v44 = vadd.f32 %v601_v35, %v577_v39  ;;  %v579_v45 = vadd.f32 %v578_v37, %v518_v40  ;;  %v522_v46 = vadd.f32 %v521_v42, %v96_v19 }
 0x10c   :  { %v523_v48 = vpop.f32.mrf.mxu0 }
 0x10d   :  { %v584_v49 = vpop.f32.mrf.mxu1  ;;  %621 = vst [vmem:[%s1142_s4 + $0x10] sm:$0xff] %v611_v44  ;;  %v612_v50 = vadd.f32 %v602_v41, %v579_v45  ;;  %v583_v51 = vadd.f32 %v582_v43, %v522_v46  ;;  %v524_v52 = vadd.f32 %v523_v48, %v1071_v20 }
 0x10e   :  { %v525_v54 = vpop.f32.mrf.mxu0 }
 0x10f   :  { %v586_v55 = vpop.f32.mrf.mxu1  ;;  %622 = vst [vmem:[%s1142_s4 + $0x18] sm:$0xff] %v612_v50  ;;  %v613_v56 = vadd.f32 %v603_v47, %v583_v51  ;;  %v585_v57 = vadd.f32 %v584_v49, %v524_v52  ;;  %v526_v58 = vadd.f32 %v525_v54, %v96_v19 }
 0x110   :  { %v527_v60 = vpop.f32.mrf.mxu0 }
 0x111   :  { %v588_v61 = vpop.f32.mrf.mxu1  ;;  %623 = vst [vmem:[%s1142_s4 + $0x20] sm:$0xff] %v613_v56  ;;  %v614_v62 = vadd.f32 %v604_v53, %v585_v57  ;;  %v587_v63 = vadd.f32 %v586_v55, %v526_v58  ;;  %v528_v0 = vadd.f32 %v527_v60, %v1071_v20 }
 0x112   :  { %v531_v2 = vpop.f32.mrf.mxu0 }
 0x113   :  { %v592_v3 = vpop.f32.mrf.mxu1  ;;  %624 = vst [vmem:[%s1142_s4 + $0x28] sm:$0xff] %v614_v62  ;;  %v615_v4 = vadd.f32 %v605_v59, %v587_v63  ;;  %v589_v5 = vadd.f32 %v588_v61, %v528_v0  ;;  %v532_v6 = vadd.f32 %v531_v2, %v96_v19 }
 0x114   :  { %v533_v8 = vpop.f32.mrf.mxu0 }
 0x115   :  { %v594_v9 = vpop.f32.mrf.mxu1  ;;  %625 = vst [vmem:[%s1142_s4 + $0x30] sm:$0xff] %v615_v4  ;;  %v616_v10 = vadd.f32 %v606_v1, %v589_v5  ;;  %v593_v11 = vadd.f32 %v592_v3, %v532_v6  ;;  %v534_v12 = vadd.f32 %v533_v8, %v1071_v20 }
 0x116   :  { %v535_v14 = vpop.f32.mrf.mxu0 }
 0x117   :  { %v596_v15 = vpop.f32.mrf.mxu1  ;;  %626 = vst [vmem:[%s1142_s4 + $0x38] sm:$0xff] %v616_v10  ;;  %v617_v16 = vadd.f32 %v607_v7, %v593_v11  ;;  %v595_v17 = vadd.f32 %v594_v9, %v534_v12 }
 0x118   :  { %v536_v18 = vpop.f32.mrf.mxu0 }
 0x119   :  { %v597_v19 = vpop.f32.mrf.mxu1  ;;  %627 = vst [vmem:[%s1142_s4 + $0x40] sm:$0x3] %v617_v16  ;;  %v618_v21 = vadd.f32 %v608_v13, %v595_v17 }
 0x11b   :  { %628 = vst [vmem:[%s1142_s4 + $0x48] sm:$0x3] %v618_v21 }

// kernel: _lambda_.39
= control target key start
LH: loop header
LB: loop body
LE: loop exit
PB: predicated region body
PF: predicated region fallthrough
CT: control target
= control target key end

     0   :  { %vm42_vm0 = vcmask 1041408   ;;  %s1769_s0 = inlined_call_operand.vmem [shape: f32[34,256], index: 0, kind: input, shape index: {}]   ;;  %s1770_s1 = inlined_call_operand.vmem [shape: bf16[256,512], index: 1, kind: input, shape index: {}]   ;;  %s1771_s3 = inlined_call_operand.vmem [shape: f32[1,256], index: 3, kind: input, shape index: {}]   ;;  %s1772_s4 = inlined_call_operand.vmem [shape: f32[1,256], index: 4, kind: input, shape index: {}]   ;;  %s1773_s2 = inlined_call_operand.vmem [shape: f32[1,512], index: 2, kind: input, shape index: {}]   ;;  %s1774_s5 = inlined_call_operand.vmem [shape: bf16[34,512], index: 5, kind: output, shape index: {}]  }
   0x1   :  { %v1215_v0 = vld [vmem:[%s1769_s0] sm:$0xff]  ;;  %v1220_v1 = vld [vmem:[%s1769_s0 + $0x8] sm:$0xff]  ;;  %v1237_v5 = vld [vmem:[%s1769_s0 + $0x10] sm:$0xff] }
   0x2   :  { %v1225_v2 = vld [vmem:[%s1769_s0 + $0x20] sm:$0xff]  ;;  %v30_v3 = vadd.f32 %v1220_v1, %v1215_v0  ;;  %v1232_v4 = vld [vmem:[%s1769_s0 + $0x28] sm:$0xff]  ;;  %v1242_v6 = vld [vmem:[%s1769_s0 + $0x18] sm:$0xff] }
   0x3   :  { %v36_v7 = vadd.f32 %v1232_v4, %v1225_v2  ;;  %v1249_v8 = vld [vmem:[%s1769_s0 + $0x30] sm:$0xff]  ;;  %v1254_v9 = vld [vmem:[%s1769_s0 + $0x38] sm:$0xff]  ;;  %v1259_v10 = vld [vmem:[%s1769_s0 + $0x40] sm:$0x3]  ;;  %v33_v11 = vadd.f32 %v1242_v6, %v1237_v5 }
   0x4   :  { %31 = vadd.xlane.f32.xlu0 %v30_v3  ;;  %v1266_v12 = vld [vmem:[%s1769_s0 + $0x48] sm:$0x3]  ;;  %v39_v13 = vadd.f32 %v1254_v9, %v1249_v8  ;;  %v43_v14 = vsel %vm42_vm0, %v1259_v10, 0.0  ;;  %v1036_v17 = vld [vmem:[%s1770_s1 + $0xe4] ss:$16 sps:$4 sm:$0xff]  }
   0x5   :  { %37 = vadd.xlane.f32.xlu1 %v36_v7  ;;  %v44_v15 = vsel %vm42_vm0, %v1266_v12, 0.0  ;;  %v1038_v18 = vld [vmem:[%s1770_s1 + $0xec] ss:$16 sps:$4 sm:$0xff]   ;;  %572 = vmatprep.subr.bf16.mxu0 %v1036_v17  ;;  %v1040_v19 = vld [vmem:[%s1770_s1 + $0xe0] ss:$16 sps:$4 sm:$0xff]  }
   0x6   :  { %v45_v16 = vadd.f32 %v44_v15, %v43_v14  ;;  %v1041_v20 = vld [vmem:[%s1770_s1 + $0xe8] ss:$16 sps:$4 sm:$0xff]   ;;  %633 = vmatprep.subr.bf16.mxu1 %v1038_v18  ;;  %v1042_v21 = vld [vmem:[%s1770_s1 + $0xc4] ss:$16 sps:$4 sm:$0xff]   ;;  %573 = vmatpush1.bf16.msra.mxu0 %v1040_v19  ;;  %v1044_v22 = vld [vmem:[%s1770_s1 + $0xcc] ss:$16 sps:$4 sm:$0xff]  }
   0x7   :  { %634 = vmatpush1.bf16.msra.mxu1 %v1041_v20  ;;  %v1046_v23 = vld [vmem:[%s1770_s1 + $0xc0] ss:$16 sps:$4 sm:$0xff]   ;;  %574 = vmatprep.subr.bf16.mxu0 %v1042_v21  ;;  %v1047_v24 = vld [vmem:[%s1770_s1 + $0xc8] ss:$16 sps:$4 sm:$0xff]   ;;  %v1048_v25 = vld [vmem:[%s1770_s1 + $0xa4] ss:$16 sps:$4 sm:$0xff]  }
   0x8   :  { %34 = vadd.xlane.f32.xlu0 %v33_v11  ;;  %635 = vmatprep.subr.bf16.mxu1 %v1044_v22  ;;  %v1050_v26 = vld [vmem:[%s1770_s1 + $0xac] ss:$16 sps:$4 sm:$0xff]   ;;  %v1052_v27 = vld [vmem:[%s1770_s1 + $0xa0] ss:$16 sps:$4 sm:$0xff]   ;;  %v1053_v28 = vld [vmem:[%s1770_s1 + $0xa8] ss:$16 sps:$4 sm:$0xff]  }
   0x9   :  { %40 = vadd.xlane.f32.xlu1 %v39_v13  ;;  %v1054_v29 = vld [vmem:[%s1770_s1 + $0x84] ss:$16 sps:$4 sm:$0xff]   ;;  %v1056_v30 = vld [vmem:[%s1770_s1 + $0x8c] ss:$16 sps:$4 sm:$0xff]   ;;  %v1058_v31 = vld [vmem:[%s1770_s1 + $0x80] ss:$16 sps:$4 sm:$0xff]  }
   0xa   :  { %575 = vmatpush1.bf16.msra.mxu0 %v1046_v23  ;;  %v1059_v32 = vld [vmem:[%s1770_s1 + $0x88] ss:$16 sps:$4 sm:$0xff]   ;;  %v1060_v33 = vld [vmem:[%s1770_s1 + $0x64] ss:$16 sps:$4 sm:$0xff]   ;;  %v1062_v34 = vld [vmem:[%s1770_s1 + $0x6c] ss:$16 sps:$4 sm:$0xff]  }
   0xb   :  { %636 = vmatpush1.bf16.msra.mxu1 %v1047_v24  ;;  %576 = vmatprep.subr.bf16.mxu0 %v1048_v25  ;;  %v1064_v35 = vld [vmem:[%s1770_s1 + $0x60] ss:$16 sps:$4 sm:$0xff]   ;;  %v1065_v36 = vld [vmem:[%s1770_s1 + $0x68] ss:$16 sps:$4 sm:$0xff]   ;;  %v1066_v37 = vld [vmem:[%s1770_s1 + $0x44] ss:$16 sps:$4 sm:$0xff]  }
   0xc   :  { %46 = vadd.xlane.f32.xlu0 %v45_v16  ;;  %637 = vmatprep.subr.bf16.mxu1 %v1050_v26  ;;  %v1068_v38 = vld [vmem:[%s1770_s1 + $0x4c] ss:$16 sps:$4 sm:$0xff]   ;;  %v1070_v39 = vld [vmem:[%s1770_s1 + $0x40] ss:$16 sps:$4 sm:$0xff]   ;;  %v1071_v40 = vld [vmem:[%s1770_s1 + $0x48] ss:$16 sps:$4 sm:$0xff]  }
   0xd   :  { %v1072_v41 = vld [vmem:[%s1770_s1 + $0x24] ss:$16 sps:$4 sm:$0xff]   ;;  %v1074_v42 = vld [vmem:[%s1770_s1 + $0x2c] ss:$16 sps:$4 sm:$0xff]   ;;  %v1076_v43 = vld [vmem:[%s1770_s1 + $0x20] ss:$16 sps:$4 sm:$0xff]  }
   0xe   :  { %577 = vmatpush1.bf16.msra.mxu0 %v1052_v27  ;;  %v1077_v44 = vld [vmem:[%s1770_s1 + $0x28] ss:$16 sps:$4 sm:$0xff]   ;;  %v1078_v45 = vld [vmem:[%s1770_s1 + $0x4] ss:$16 sps:$4 sm:$0xff]   ;;  %v1080_v46 = vld [vmem:[%s1770_s1 + $0xc] ss:$16 sps:$4 sm:$0xff]  }
   0xf   :  { %638 = vmatpush1.bf16.msra.mxu1 %v1053_v28  ;;  %578 = vmatprep.subr.bf16.mxu0 %v1054_v29  ;;  %v1082_v47 = vld [vmem:[%s1770_s1] ss:$16 sps:$4 sm:$0xff]   ;;  %v1083_v48 = vld [vmem:[%s1770_s1 + $0x8] ss:$16 sps:$4 sm:$0xff]   ;;  %v1084_v49 = vld [vmem:[%s1770_s1 + $0x1e4] ss:$16 sps:$4 sm:$0xff]  }
  0x10   :  { %639 = vmatprep.subr.bf16.mxu1 %v1056_v30  ;;  %v1086_v50 = vld [vmem:[%s1770_s1 + $0x1ec] ss:$16 sps:$4 sm:$0xff]   ;;  %v1090_v26 = vld [vmem:[%s1770_s1 + $0x1c4] ss:$16 sps:$4 sm:$0xff]   ;;  %v1094_v28 = vld [vmem:[%s1770_s1 + $0x1c0] ss:$16 sps:$4 sm:$0xff]  }
  0x11   :  { %v1092_v27 = vld [vmem:[%s1770_s1 + $0x1cc] ss:$16 sps:$4 sm:$0xff]   ;;  %v1095_v29 = vld [vmem:[%s1770_s1 + $0x1c8] ss:$16 sps:$4 sm:$0xff]   ;;  %v1096_v30 = vld [vmem:[%s1770_s1 + $0x1a4] ss:$16 sps:$4 sm:$0xff]  }
  0x12   :  { %579 = vmatpush1.bf16.msra.mxu0 %v1058_v31  ;;  %v1098_v31 = vld [vmem:[%s1770_s1 + $0x1ac] ss:$16 sps:$4 sm:$0xff]  }
  0x13   :  { %640 = vmatpush1.bf16.msra.mxu1 %v1059_v32  ;;  %580 = vmatprep.subr.bf16.mxu0 %v1060_v33  ;;  %v1100_v32 = vld [vmem:[%s1770_s1 + $0x1a0] ss:$16 sps:$4 sm:$0xff]   ;;  %v1101_v33 = vld [vmem:[%s1770_s1 + $0x1a8] ss:$16 sps:$4 sm:$0xff]  }
  0x14   :  { %641 = vmatprep.subr.bf16.mxu1 %v1062_v34  ;;  %v1102_v34 = vld [vmem:[%s1770_s1 + $0x184] ss:$16 sps:$4 sm:$0xff]  }
  0x16   :  { %581 = vmatpush1.bf16.msra.mxu0 %v1064_v35  ;;  %v1104_v35 = vld [vmem:[%s1770_s1 + $0x18c] ss:$16 sps:$4 sm:$0xff]  }
  0x17   :  { %642 = vmatpush1.bf16.msra.mxu1 %v1065_v36  ;;  %582 = vmatprep.subr.bf16.mxu0 %v1066_v37  ;;  %v1106_v36 = vld [vmem:[%s1770_s1 + $0x180] ss:$16 sps:$4 sm:$0xff]   ;;  %v1107_v37 = vld [vmem:[%s1770_s1 + $0x188] ss:$16 sps:$4 sm:$0xff]  }
  0x18   :  { %643 = vmatprep.subr.bf16.mxu1 %v1068_v38  ;;  %v1108_v38 = vld [vmem:[%s1770_s1 + $0x164] ss:$16 sps:$4 sm:$0xff]  }
  0x1a   :  { %583 = vmatpush1.bf16.msra.mxu0 %v1070_v39  ;;  %v1110_v39 = vld [vmem:[%s1770_s1 + $0x16c] ss:$16 sps:$4 sm:$0xff]  }
  0x1b   :  { %644 = vmatpush1.bf16.msra.mxu1 %v1071_v40  ;;  %584 = vmatprep.subr.bf16.mxu0 %v1072_v41  ;;  %v1112_v40 = vld [vmem:[%s1770_s1 + $0x160] ss:$16 sps:$4 sm:$0xff]   ;;  %v1113_v41 = vld [vmem:[%s1770_s1 + $0x168] ss:$16 sps:$4 sm:$0xff]  }
  0x1c   :  { %645 = vmatprep.subr.bf16.mxu1 %v1074_v42  ;;  %v1114_v42 = vld [vmem:[%s1770_s1 + $0x144] ss:$16 sps:$4 sm:$0xff]  }
  0x1e   :  { %585 = vmatpush1.bf16.msra.mxu0 %v1076_v43  ;;  %v1116_v43 = vld [vmem:[%s1770_s1 + $0x14c] ss:$16 sps:$4 sm:$0xff]  }
  0x1f   :  { %646 = vmatpush1.bf16.msra.mxu1 %v1077_v44  ;;  %586 = vmatprep.subr.bf16.mxu0 %v1078_v45  ;;  %v1118_v44 = vld [vmem:[%s1770_s1 + $0x140] ss:$16 sps:$4 sm:$0xff]   ;;  %v1119_v45 = vld [vmem:[%s1770_s1 + $0x148] ss:$16 sps:$4 sm:$0xff]  }
  0x20   :  { %647 = vmatprep.subr.bf16.mxu1 %v1080_v46  ;;  %v1120_v46 = vld [vmem:[%s1770_s1 + $0x124] ss:$16 sps:$4 sm:$0xff]  }
  0x22   :  { %587 = vmatpush1.bf16.msra.mxu0 %v1082_v47  ;;  %v1122_v47 = vld [vmem:[%s1770_s1 + $0x12c] ss:$16 sps:$4 sm:$0xff]  }
  0x23   :  { %648 = vmatpush1.bf16.msra.mxu1 %v1083_v48  ;;  %588 = vmatprep.subr.bf16.mxu0 %v1084_v49  ;;  %v1124_v48 = vld [vmem:[%s1770_s1 + $0x120] ss:$16 sps:$4 sm:$0xff]   ;;  %v1125_v49 = vld [vmem:[%s1770_s1 + $0x128] ss:$16 sps:$4 sm:$0xff]  }
  0x24   :  { %649 = vmatprep.subr.bf16.mxu1 %v1086_v50  ;;  %v1126_v50 = vld [vmem:[%s1770_s1 + $0x104] ss:$16 sps:$4 sm:$0xff]  }
  0x8d   :  { %v32_v51 = vpop.xlane.xlu0 %31 }
  0x8e   :  { %v49_v52 = vmul.f32 0.00390625, %v32_v51  ;;  %v38_v53 = vpop.xlane.xlu1 %37  ;;  %v1128_v51 = vld [vmem:[%s1770_s1 + $0x10c] ss:$16 sps:$4 sm:$0xff]  }
  0x8f   :  { %v51_v54 = vmul.f32 0.00390625, %v38_v53  ;;  %v1131_v53 = vld [vmem:[%s1770_s1 + $0x108] ss:$16 sps:$4 sm:$0xff]  }
  0x90   :  { %v1377_v55 = vsub.f32 %v1215_v0, %v49_v52  ;;  %v1380_v56 = vsub.f32 %v1220_v1, %v49_v52  ;;  %v1130_v52 = vld [vmem:[%s1770_s1 + $0x100] ss:$16 sps:$4 sm:$0xff]  }
  0x91   :  { %v1383_v57 = vsub.f32 %v1225_v2, %v51_v54  ;;  %v1386_v58 = vsub.f32 %v1232_v4, %v51_v54  ;;  %v35_v59 = vpop.xlane.xlu0 %34 }
  0x92   :  { %v50_v60 = vmul.f32 0.00390625, %v35_v59  ;;  %v41_v61 = vpop.xlane.xlu1 %40  ;;  %v64_v62 = vmul.f32 %v1377_v55, %v1377_v55  ;;  %v65_v63 = vmul.f32 %v1380_v56, %v1380_v56 }
  0x93   :  { %v52_v0 = vmul.f32 0.00390625, %v41_v61  ;;  %v68_v1 = vmul.f32 %v1383_v57, %v1383_v57  ;;  %v69_v2 = vmul.f32 %v1386_v58, %v1386_v58 }
  0x94   :  { %v1397_v3 = vsub.f32 %v1237_v5, %v50_v60  ;;  %v1400_v4 = vsub.f32 %v1242_v6, %v50_v60  ;;  %v74_v7 = vadd.f32 %v65_v63, %v64_v62 }
  0x95   :  { %v1403_v11 = vsub.f32 %v1249_v8, %v52_v0  ;;  %v1406_v13 = vsub.f32 %v1254_v9, %v52_v0  ;;  %v47_v14 = vpop.xlane.xlu0 %46  ;;  %v80_v16 = vadd.f32 %v69_v2, %v68_v1 }
  0x96   :  { %v53_v15 = vmul.f32 0.00390625, %v47_v14  ;;  %75 = vadd.xlane.f32.xlu1 %v74_v7  ;;  %v66_v17 = vmul.f32 %v1397_v3, %v1397_v3  ;;  %v67_v5 = vmul.f32 %v1400_v4, %v1400_v4  ;;  %v118_v7 = vlaneseq }
  0x97   :  { %v70_v6 = vmul.f32 %v1403_v11, %v1403_v11  ;;  %v71_v8 = vmul.f32 %v1406_v13, %v1406_v13 }
  0x98   :  { %v1417_v18 = vsub.f32 %v1259_v10, %v53_v15  ;;  %v1420_v9 = vsub.f32 %v1266_v12, %v53_v15  ;;  %v77_v19 = vadd.f32 %v67_v5, %v66_v17  ;;  %v1088_v10 = vld [vmem:[%s1770_s1 + $0x1e0] ss:$16 sps:$4 sm:$0xff]   ;;  %v1089_v12 = vld [vmem:[%s1770_s1 + $0x1e8] ss:$16 sps:$4 sm:$0xff]  }
  0x99   :  { %v83_v20 = vadd.f32 %v71_v8, %v70_v6  ;;  %589 = vmatpush2.bf16.msra.mxu0 %v1088_v10  ;;  %650 = vmatpush2.bf16.msra.mxu1 %v1089_v12  ;;  %v1518_v6 = vshrl.u32 %v118_v7, 7  ;;  %v138_v10 = vld [vmem:[%s1772_s4] sm:$0x3] }
  0x9a   :  { %81 = vadd.xlane.f32.xlu1 %v80_v16  ;;  %78 = vadd.xlane.f32.xlu0 %v77_v19  ;;  %v72_v21 = vmul.f32 %v1417_v18, %v1417_v18  ;;  %v73_v22 = vmul.f32 %v1420_v9, %v1420_v9 }
  0x9b   :  { %590 = vmatprep.subr.bf16.mxu0 %v1090_v26  ;;  %651 = vmatprep.subr.bf16.mxu1 %v1092_v27  ;;  %v1521_v19 = vsub.s32 1, %v1518_v6 }
  0x9c   :  { %v86_v23 = vsel %vm42_vm0, %v72_v21, 0.0  ;;  %v87_v24 = vsel %vm42_vm0, %v73_v22, 0.0  ;;  %v1527_v21 = vsub.s32 0, %v1518_v6 }
  0x9d   :  { %v88_v25 = vadd.f32 %v87_v24, %v86_v23  ;;  %591 = vmatpush2.bf16.msra.mxu0 %v1094_v28  ;;  %652 = vmatpush2.bf16.msra.mxu1 %v1095_v29  ;;  %v147_v29 = vrot.slane %v138_v10, %v1521_v19 }
  0x9e   :  { %84 = vadd.xlane.f32.xlu0 %v83_v20  ;;  %592 = vmatprep.subr.bf16.mxu0 %v1096_v30  ;;  %v116_v20 = vld [vmem:[%s1771_s3] sm:$0x3] }
  0x9f   :  { %89 = vadd.xlane.f32.xlu1 %v88_v25  ;;  %653 = vmatprep.subr.bf16.mxu1 %v1098_v31  ;;  %v125_v24 = vrot.slane %v116_v20, %v1521_v19  ;;  %v121_v25 = vrot.slane %v116_v20, %v1527_v21 }
  0xa1   :  { %593 = vmatpush2.bf16.msra.mxu0 %v1100_v32  ;;  %654 = vmatpush2.bf16.msra.mxu1 %v1101_v33 }
  0xa2   :  { %594 = vmatprep.subr.bf16.mxu0 %v1102_v34  ;;  %655 = vmatprep.subr.bf16.mxu1 %v1104_v35 }
  0xa5   :  { %595 = vmatpush2.bf16.msra.mxu0 %v1106_v36  ;;  %656 = vmatpush2.bf16.msra.mxu1 %v1107_v37 }
  0xa6   :  { %596 = vmatprep.subr.bf16.mxu0 %v1108_v38  ;;  %657 = vmatprep.subr.bf16.mxu1 %v1110_v39 }
  0xa9   :  { %597 = vmatpush2.bf16.msra.mxu0 %v1112_v40  ;;  %658 = vmatpush2.bf16.msra.mxu1 %v1113_v41 }
  0xaa   :  { %598 = vmatprep.subr.bf16.mxu0 %v1114_v42  ;;  %659 = vmatprep.subr.bf16.mxu1 %v1116_v43 }
  0xad   :  { %599 = vmatpush2.bf16.msra.mxu0 %v1118_v44  ;;  %660 = vmatpush2.bf16.msra.mxu1 %v1119_v45 }
  0xae   :  { %600 = vmatprep.subr.bf16.mxu0 %v1120_v46  ;;  %661 = vmatprep.subr.bf16.mxu1 %v1122_v47 }
  0xb1   :  { %601 = vmatpush2.bf16.msra.mxu0 %v1124_v48  ;;  %662 = vmatpush2.bf16.msra.mxu1 %v1125_v49 }
  0xb2   :  { %602 = vmatprep.subr.bf16.mxu0 %v1126_v50  ;;  %663 = vmatprep.subr.bf16.mxu1 %v1128_v51 }
  0xb5   :  { %603 = vmatpush2.bf16.msra.mxu0 %v1130_v52  ;;  %664 = vmatpush2.bf16.msra.mxu1 %v1131_v53 }
 0x11f   :  { %v76_v54 = vpop.xlane.xlu1 %75 }
 0x120   :  { %v91_v59 = vmul.f32 0.00390625, %v76_v54 }
 0x122   :  { %v96_v60 = vadd.f32 1e-05, %v91_v59 }
 0x123   :  { %v82_v61 = vpop.xlane.xlu1 %81  ;;  %v79_v62 = vpop.xlane.xlu0 %78 }
 0x124   :  { %1132 = vrsqrt.f32 %v96_v60  ;;  %v93_v63 = vmul.f32 0.00390625, %v82_v61  ;;  %v92_v0 = vmul.f32 0.00390625, %v79_v62  ;;  %v242_v61 = vsub.s32 2, %v1518_v6  ;;  %v230_v62 = vld [vmem:[%s1773_s2] sm:$0xf] }
 0x125   :  { %v1557_v7 = vrot.slane %v230_v62, %v1521_v19 }
 0x126   :  { %v98_v1 = vadd.f32 1e-05, %v93_v63  ;;  %v97_v2 = vadd.f32 1e-05, %v92_v0  ;;  %v1552_v63 = vrot.slane %v230_v62, %v1527_v21  ;;  %v1554_v0 = vrot.slane %v230_v62, %v242_v61 }
 0x127   :  { %v85_v14 = vpop.xlane.xlu0 %84 }
 0x128   :  { %1134 = vrsqrt.f32 %v98_v1  ;;  %v94_v15 = vmul.f32 0.00390625, %v85_v14  ;;  %v90_v16 = vpop.xlane.xlu1 %89 }
 0x129   :  { %1136 = vrsqrt.f32 %v97_v2  ;;  %v95_v17 = vmul.f32 0.00390625, %v90_v16 }
 0x12a   :  { %v99_v5 = vadd.f32 1e-05, %v94_v15 }
 0x12b   :  { %v100_v8 = vadd.f32 1e-05, %v95_v17 }
 0x12c   :  { %1138 = vrsqrt.f32 %v99_v5 }
 0x12d   :  { %1140 = vrsqrt.f32 %v100_v8 }
 0x131   :  { %v1133_v22 = vpop.eup %1132 }
 0x132   :  { %v107_v23 = vmul.f32 %v1133_v22, %v1380_v56  ;;  %v106_v12 = vmul.f32 %v1133_v22, %v1377_v55  ;;  %v143_v56 = vrot.slane %v138_v10, %v1527_v21 }
 0x134   :  { %v129_v28 = vmul.f32 %v125_v24, %v107_v23  ;;  %v128_v33 = vmul.f32 %v121_v25, %v106_v12 }
 0x135   :  { %v1135_v26 = vpop.eup %1134 }
 0x136   :  { %v1137_v27 = vpop.eup %1136  ;;  %v111_v30 = vmul.f32 %v1135_v26, %v1386_v58  ;;  %v151_v38 = vadd.f32 %v147_v29, %v129_v28  ;;  %v150_v42 = vadd.f32 %v143_v56, %v128_v33  ;;  %v110_v44 = vmul.f32 %v1135_v26, %v1383_v57 }
 0x137   :  { %v109_v31 = vmul.f32 %v1137_v27, %v1400_v4  ;;  %v108_v32 = vmul.f32 %v1137_v27, %v1397_v3 }
 0x138   :  { %v133_v39 = vmul.f32 %v125_v24, %v111_v30 }
 0x139   :  { %v1139_v34 = vpop.eup %1138  ;;  %v131_v35 = vmul.f32 %v125_v24, %v109_v31  ;;  %v130_v36 = vmul.f32 %v121_v25, %v108_v32 }
 0x13a   :  { %v1141_v37 = vpop.eup %1140  ;;  %v113_v55 = vmul.f32 %v1139_v34, %v1406_v13  ;;  %v112_v40 = vmul.f32 %v1139_v34, %v1403_v11  ;;  %v155_v46 = vadd.f32 %v147_v29, %v133_v39  ;;  %v132_v11 = vmul.f32 %v121_v25, %v110_v44 }
 0x13b   :  { %v153_v41 = vadd.f32 %v147_v29, %v131_v35  ;;  %v152_v58 = vadd.f32 %v143_v56, %v130_v36  ;;  %v115_v4 = vmul.f32 %v1141_v37, %v1420_v9  ;;  %v114_v9 = vmul.f32 %v1141_v37, %v1417_v18 }
 0x13c   :  { %v135_v43 = vmul.f32 %v125_v24, %v113_v55  ;;  %v134_v48 = vmul.f32 %v121_v25, %v112_v40  ;;  %v154_v52 = vadd.f32 %v143_v56, %v132_v11  ;;  %v246_v18 = vsub.s32 3, %v1518_v6 }
 0x13d   :  { %v161_v3 = vpack.c.bf16 %v153_v41, %v151_v38  ;;  %v160_v45 = vpack.c.bf16 %v152_v58, %v150_v42  ;;  %v137_v49 = vmul.f32 %v125_v24, %v115_v4  ;;  %v136_v53 = vmul.f32 %v121_v25, %v114_v9 }
 0x13e   :  { %v157_v47 = vadd.f32 %v147_v29, %v135_v43  ;;  %v156_v50 = vadd.f32 %v143_v56, %v134_v48  ;;  %v1559_v14 = vrot.slane %v230_v62, %v246_v18 }
 0x13f   :  { %604 = vmatprep.mubr.bf16.mxu0 %v161_v3  ;;  %665 = vmatprep.mubr.bf16.mxu1 %v161_v3  ;;  %v159_v51 = vadd.f32 %v147_v29, %v137_v49  ;;  %v158_v59 = vadd.f32 %v143_v56, %v136_v53 }
 0x140   :  { %605 = vmatmul.mubr.bf16.vlgmr.msra.gmra.mxu0 %v160_v45  ;;  %666 = vmatmul.mubr.bf16.vlgmr.msra.gmra.mxu1 %v160_v45  ;;  %v163_v13 = vpack.c.bf16 %v157_v47, %v155_v46  ;;  %v162_v57 = vpack.c.bf16 %v156_v50, %v154_v52 }
 0x141   :  { %v165_v54 = vpack.c.bf16 %v159_v51, %v159_v51  ;;  %v164_v60 = vpack.c.bf16 %v158_v59, %v158_v59 }
 0x142   :  { %614 = vmatprep.mubr.bf16.mxu0 %v163_v13  ;;  %675 = vmatprep.mubr.bf16.mxu1 %v163_v13 }
 0x148   :  { %615 = vmatmul.mubr.bf16.gmra.mxu0 %v162_v57  ;;  %676 = vmatmul.mubr.bf16.gmra.mxu1 %v162_v57 }
 0x149   :  { %624 = vmatprep.mubr.bf16.mxu0 %v165_v54  ;;  %685 = vmatprep.mubr.bf16.mxu1 %v165_v54 }
 0x150   :  { %625 = vmatmul.mubr.bf16.gmra.mxu0 %v164_v60  ;;  %686 = vmatmul.mubr.bf16.gmra.mxu1 %v164_v60 }
 0x200   :  { %v606_v1 = vpop.f32.mrf.mxu0  ;;  %v667_v2 = vpop.f32.mrf.mxu1 }
 0x201   :  { %v1562_v15 = vadd.f32 %v606_v1, %v1552_v63  ;;  %v1565_v16 = vadd.f32 %v667_v2, %v1554_v0 }
 0x202   :  { %v608_v17 = vpop.f32.mrf.mxu0  ;;  %v669_v5 = vpop.f32.mrf.mxu1 }
 0x203   :  { %v714_v6 = vmul.f32 0.044715, %v1562_v15  ;;  %v716_v8 = vmul.f32 0.044715, %v1565_v16  ;;  %v1570_v20 = vadd.f32 %v608_v17, %v1557_v7  ;;  %v1573_v19 = vadd.f32 %v669_v5, %v1559_v14 }
 0x204   :  { %v610_v21 = vpop.f32.mrf.mxu0  ;;  %v671_v22 = vpop.f32.mrf.mxu1 }
 0x205   :  { %v734_v23 = vmul.f32 %v714_v6, %v1562_v15  ;;  %v736_v24 = vmul.f32 %v716_v8, %v1565_v16  ;;  %v1578_v25 = vadd.f32 %v610_v21, %v1552_v63  ;;  %v1581_v10 = vadd.f32 %v671_v22, %v1554_v0 }
 0x206   :  { %v715_v12 = vmul.f32 0.044715, %v1570_v20  ;;  %v717_v26 = vmul.f32 0.044715, %v1573_v19  ;;  %v612_v27 = vpop.f32.mrf.mxu0  ;;  %v673_v28 = vpop.f32.mrf.mxu1 }
 0x207   :  { %v754_v29 = vmul.f32 %v734_v23, %v1562_v15  ;;  %v756_v30 = vmul.f32 %v736_v24, %v1565_v16  ;;  %v718_v31 = vmul.f32 0.044715, %v1578_v25  ;;  %v720_v33 = vmul.f32 0.044715, %v1581_v10 }
 0x208   :  { %v735_v56 = vmul.f32 %v715_v12, %v1570_v20  ;;  %v737_v32 = vmul.f32 %v717_v26, %v1573_v19  ;;  %v616_v34 = vpop.f32.mrf.mxu0  ;;  %v677_v35 = vpop.f32.mrf.mxu1  ;;  %v1595_v55 = vadd.f32 %v612_v27, %v1557_v7  ;;  %v1601_v42 = vadd.f32 %v673_v28, %v1559_v14 }
 0x209   :  { %v774_v36 = vadd.f32 %v754_v29, %v1562_v15  ;;  %v776_v37 = vadd.f32 %v756_v30, %v1565_v16  ;;  %v738_v38 = vmul.f32 %v718_v31, %v1578_v25  ;;  %v740_v41 = vmul.f32 %v720_v33, %v1581_v10 }
 0x20a   :  { %v755_v39 = vmul.f32 %v735_v56, %v1570_v20  ;;  %v757_v40 = vmul.f32 %v737_v32, %v1573_v19  ;;  %v618_v58 = vpop.f32.mrf.mxu0  ;;  %v679_v4 = vpop.f32.mrf.mxu1  ;;  %v719_v48 = vmul.f32 0.044715, %v1595_v55  ;;  %v721_v50 = vmul.f32 0.044715, %v1601_v42 }
 0x20b   :  { %v794_v43 = vmul.f32 0.7978846, %v774_v36  ;;  %v796_v44 = vmul.f32 0.7978846, %v776_v37  ;;  %v758_v3 = vmul.f32 %v738_v38, %v1578_v25  ;;  %v760_v47 = vmul.f32 %v740_v41, %v1581_v10 }
 0x20c   :  { %v775_v45 = vadd.f32 %v755_v39, %v1570_v20  ;;  %v777_v46 = vadd.f32 %v757_v40, %v1573_v19  ;;  %v620_v49 = vpop.f32.mrf.mxu0  ;;  %v681_v13 = vpop.f32.mrf.mxu1  ;;  %v739_v59 = vmul.f32 %v719_v48, %v1595_v55  ;;  %v741_v60 = vmul.f32 %v721_v50, %v1601_v42 }
 0x20d   :  { %1142 = vtanh.f32 %v794_v43  ;;  %v778_v11 = vadd.f32 %v758_v3, %v1578_v25  ;;  %v780_v52 = vadd.f32 %v760_v47, %v1581_v10  ;;  %v1618_v61 = vadd.f32 %v616_v34, %v1552_v63 }
 0x20e   :  { %1144 = vtanh.f32 %v796_v44  ;;  %v795_v9 = vmul.f32 0.7978846, %v775_v45  ;;  %v797_v51 = vmul.f32 0.7978846, %v777_v46  ;;  %v1611_v57 = vpop.f32.mrf.mxu0  ;;  %v1613_v53 = vpop.f32.mrf.mxu1  ;;  %v1621_v18 = vadd.f32 %v677_v35, %v1554_v0 }
 0x20f   :  { %v798_v54 = vmul.f32 0.7978846, %v778_v11  ;;  %v800_v62 = vmul.f32 0.7978846, %v780_v52  ;;  %v1624_v1 = vadd.f32 %v618_v58, %v1557_v7  ;;  %v759_v5 = vmul.f32 %v739_v59, %v1595_v55 }
 0x210   :  { %1146 = vtanh.f32 %v795_v9  ;;  %v1626_v2 = vpop.f32.mrf.mxu0  ;;  %v1628_v17 = vpop.f32.mrf.mxu1  ;;  %v761_v6 = vmul.f32 %v741_v60, %v1601_v42  ;;  %v722_v8 = vmul.f32 0.044715, %v1618_v61  ;;  %v724_v21 = vmul.f32 0.044715, %v1621_v18 }
 0x211   :  { %1148 = vtanh.f32 %v797_v51  ;;  %v779_v24 = vadd.f32 %v759_v5, %v1595_v55  ;;  %v723_v28 = vmul.f32 0.044715, %v1624_v1  ;;  %v1644_v29 = vadd.f32 %v679_v4, %v1559_v14 }
 0x212   :  { %1150 = vtanh.f32 %v798_v54  ;;  %v1634_v22 = vpop.f32.mrf.mxu0  ;;  %v1636_v23 = vpop.f32.mrf.mxu1  ;;  %v781_v12 = vadd.f32 %v761_v6, %v1601_v42  ;;  %v742_v26 = vmul.f32 %v722_v8, %v1618_v61  ;;  %v744_v27 = vmul.f32 %v724_v21, %v1621_v18 }
 0x213   :  { %1152 = vtanh.f32 %v800_v62  ;;  %v799_v56 = vmul.f32 0.7978846, %v779_v24  ;;  %v1647_v33 = vadd.f32 %v620_v49, %v1552_v63  ;;  %v1650_v34 = vadd.f32 %v681_v13, %v1554_v0 }
 0x214   :  { %v630_v30 = vpop.f32.mrf.mxu0  ;;  %v691_v31 = vpop.f32.mrf.mxu1  ;;  %v801_v32 = vmul.f32 0.7978846, %v781_v12  ;;  %v694_v35 = vmul.f32 0.5, %v1562_v15  ;;  %v762_v36 = vmul.f32 %v742_v26, %v1618_v61  ;;  %v764_v37 = vmul.f32 %v744_v27, %v1621_v18 }
 0x215   :  { %v743_v38 = vmul.f32 %v723_v28, %v1624_v1  ;;  %v696_v41 = vmul.f32 0.5, %v1565_v16  ;;  %1154 = vtanh.f32 %v799_v56  ;;  %v725_v58 = vmul.f32 0.044715, %v1644_v29 }
 0x216   :  { %v631_v39 = vpop.f32.mrf.mxu0  ;;  %v692_v40 = vpop.f32.mrf.mxu1  ;;  %v726_v4 = vmul.f32 0.044715, %v1647_v33  ;;  %1156 = vtanh.f32 %v801_v32  ;;  %v782_v43 = vadd.f32 %v762_v36, %v1618_v61  ;;  %v784_v15 = vadd.f32 %v764_v37, %v1621_v18 }
 0x217   :  { %v763_v44 = vmul.f32 %v743_v38, %v1624_v1  ;;  %v695_v3 = vmul.f32 0.5, %v1570_v20  ;;  %v745_v45 = vmul.f32 %v725_v58, %v1644_v29  ;;  %v728_v16 = vmul.f32 0.044715, %v1650_v34 }
 0x218   :  { %v746_v46 = vmul.f32 %v726_v4, %v1647_v33  ;;  %v697_v48 = vmul.f32 0.5, %v1573_v19  ;;  %v802_v49 = vmul.f32 0.7978846, %v782_v43  ;;  %v804_v13 = vmul.f32 0.7978846, %v784_v15 }
 0x219   :  { %v783_v11 = vadd.f32 %v763_v44, %v1624_v1  ;;  %v765_v51 = vmul.f32 %v745_v45, %v1644_v29  ;;  %v748_v20 = vmul.f32 %v728_v16, %v1650_v34  ;;  %v698_v54 = vmul.f32 0.5, %v1578_v25 }
 0x21a   :  { %v1143_v47 = vpop.eup %1142  ;;  %v766_v52 = vmul.f32 %v746_v46, %v1647_v33  ;;  %1158 = vtanh.f32 %v802_v49  ;;  %v1674_v60 = vadd.f32 %v1611_v57, %v1557_v7  ;;  %v700_v24 = vmul.f32 0.5, %v1581_v10 }
 0x21b   :  { %v1145_v50 = vpop.eup %1144  ;;  %v834_v9 = vadd.f32 1.0, %v1143_v47  ;;  %v803_v59 = vmul.f32 0.7978846, %v783_v11  ;;  %1160 = vtanh.f32 %v804_v13  ;;  %v785_v5 = vadd.f32 %v765_v51, %v1644_v29 }
 0x21c   :  { %v836_v62 = vadd.f32 1.0, %v1145_v50  ;;  %v786_v6 = vadd.f32 %v766_v52, %v1647_v33  ;;  %v768_v25 = vmul.f32 %v748_v20, %v1650_v34  ;;  %v1682_v57 = vadd.f32 %v1613_v53, %v1559_v14 }
 0x21d   :  { %v1147_v19 = vpop.eup %1146  ;;  %1162 = vtanh.f32 %v803_v59  ;;  %v854_v26 = vmul.f32 %v834_v9, %v694_v35  ;;  %v805_v28 = vmul.f32 0.7978846, %v785_v5  ;;  %v727_v36 = vmul.f32 0.044715, %v1674_v60 }
 0x21e   :  { %v1149_v8 = vpop.eup %1148  ;;  %v835_v21 = vadd.f32 1.0, %v1147_v19  ;;  %v788_v32 = vadd.f32 %v768_v25, %v1650_v34  ;;  %v856_v37 = vmul.f32 %v836_v62, %v696_v41  ;;  %v806_v38 = vmul.f32 0.7978846, %v786_v6 }
 0x21f   :  { %v1151_v12 = vpop.eup %1150  ;;  %v837_v27 = vadd.f32 1.0, %v1149_v8  ;;  %1164 = vtanh.f32 %v805_v28  ;;  %v699_v35 = vmul.f32 0.5, %v1595_v55  ;;  %v701_v53 = vmul.f32 0.5, %v1601_v42 }
 0x220   :  { %v1153_v30 = vpop.eup %1152  ;;  %v855_v31 = vmul.f32 %v835_v21, %v695_v3  ;;  %v838_v56 = vadd.f32 1.0, %v1151_v12  ;;  %v808_v58 = vmul.f32 0.7978846, %v788_v32  ;;  %v747_v43 = vmul.f32 %v727_v36, %v1674_v60 }
 0x221   :  { %v857_v10 = vmul.f32 %v837_v27, %v697_v48  ;;  %v840_v40 = vadd.f32 1.0, %v1153_v30  ;;  %v729_v15 = vmul.f32 0.044715, %v1682_v57  ;;  %v1695_v3 = vadd.f32 %v1626_v2, %v1552_v63 }
 0x222   :  { %v1026_v39 = vpack.c.bf16 %v855_v31, %v854_v26  ;;  %v1155_v44 = vpop.eup %1154  ;;  %v858_v41 = vmul.f32 %v838_v56, %v698_v54  ;;  %v1699_v55 = vadd.f32 %v1628_v17, %v1554_v0  ;;  %v1703_v42 = vadd.f32 %v1634_v22, %v1557_v7 }
 0x223   :  { %v1027_v4 = vpack.c.bf16 %v857_v10, %v856_v37  ;;  %v1157_v45 = vpop.eup %1156  ;;  %v839_v46 = vadd.f32 1.0, %v1155_v44  ;;  %1166 = vtanh.f32 %v806_v38  ;;  %v767_v16 = vmul.f32 %v747_v43, %v1674_v60 }
 0x224   :  { %938 = vst [vmem:[%s1774_s5] sm:$0xff] %v1026_v39  ;;  %v749_v63 = vmul.f32 %v729_v15, %v1682_v57  ;;  %v860_v2 = vmul.f32 %v840_v40, %v700_v24  ;;  %v841_v47 = vadd.f32 1.0, %v1157_v45  ;;  %1168 = vtanh.f32 %v808_v58 }
 0x225   :  { %939 = vst [vmem:[%s1774_s5 + $0x8] sm:$0xff] %v1027_v4  ;;  %v730_v0 = vmul.f32 0.044715, %v1695_v3  ;;  %v859_v17 = vmul.f32 %v839_v46, %v699_v35  ;;  %v787_v7 = vadd.f32 %v767_v16, %v1674_v60  ;;  %v732_v48 = vmul.f32 0.044715, %v1699_v55 }
 0x226   :  { %v769_v22 = vmul.f32 %v749_v63, %v1682_v57  ;;  %v861_v49 = vmul.f32 %v841_v47, %v701_v53  ;;  %v731_v11 = vmul.f32 0.044715, %v1703_v42  ;;  %v1718_v50 = vadd.f32 %v1636_v23, %v1559_v14 }
 0x227   :  { %v750_v13 = vmul.f32 %v730_v0, %v1695_v3  ;;  %v1159_v9 = vpop.eup %1158  ;;  %v1028_v51 = vpack.c.bf16 %v859_v17, %v858_v41  ;;  %v807_v52 = vmul.f32 0.7978846, %v787_v7  ;;  %v752_v54 = vmul.f32 %v732_v48, %v1699_v55 }
 0x228   :  { %v789_v20 = vadd.f32 %v769_v22, %v1682_v57  ;;  %v1161_v59 = vpop.eup %1160  ;;  %v1029_v19 = vpack.c.bf16 %v861_v49, %v860_v2  ;;  %v842_v62 = vadd.f32 1.0, %v1159_v9  ;;  %v751_v6 = vmul.f32 %v731_v11, %v1703_v42 }
 0x229   :  { %v770_v5 = vmul.f32 %v750_v13, %v1695_v3  ;;  %940 = vst [vmem:[%s1774_s5 + $0x10] sm:$0xff] %v1028_v51  ;;  %v702_v14 = vmul.f32 0.5, %v1618_v61  ;;  %1170 = vtanh.f32 %v807_v52  ;;  %v772_v21 = vmul.f32 %v752_v54, %v1699_v55 }
 0x22a   :  { %v1163_v8 = vpop.eup %1162  ;;  %v809_v23 = vmul.f32 0.7978846, %v789_v20  ;;  %941 = vst [vmem:[%s1774_s5 + $0x18] sm:$0xff] %v1029_v19  ;;  %v703_v24 = vmul.f32 0.5, %v1624_v1  ;;  %v771_v26 = vmul.f32 %v751_v6, %v1703_v42  ;;  %v844_v28 = vadd.f32 1.0, %v1161_v59 }
 0x22b   :  { %v843_v25 = vadd.f32 1.0, %v1163_v8  ;;  %v790_v12 = vadd.f32 %v770_v5, %v1695_v3  ;;  %v862_v27 = vmul.f32 %v842_v62, %v702_v14  ;;  %v792_v61 = vadd.f32 %v772_v21, %v1699_v55 }
 0x22c   :  { %1172 = vtanh.f32 %v809_v23  ;;  %v1165_v30 = vpop.eup %1164  ;;  %v791_v32 = vadd.f32 %v771_v26, %v1703_v42  ;;  %v733_v36 = vmul.f32 0.044715, %v1718_v50  ;;  %v704_v37 = vmul.f32 0.5, %v1621_v18 }
 0x22d   :  { %v863_v31 = vmul.f32 %v843_v25, %v703_v24  ;;  %v810_v56 = vmul.f32 0.7978846, %v790_v12  ;;  %v705_v1 = vmul.f32 0.5, %v1644_v29  ;;  %v845_v10 = vadd.f32 1.0, %v1165_v30 }
 0x22e   :  { %v811_v39 = vmul.f32 0.7978846, %v791_v32  ;;  %v864_v40 = vmul.f32 %v844_v28, %v704_v37  ;;  %v812_v58 = vmul.f32 0.7978846, %v792_v61  ;;  %v753_v4 = vmul.f32 %v733_v36, %v1718_v50 }
 0x22f   :  { %v1030_v38 = vpack.c.bf16 %v863_v31, %v862_v27  ;;  %1174 = vtanh.f32 %v810_v56  ;;  %v865_v35 = vmul.f32 %v845_v10, %v705_v1  ;;  %v706_v46 = vmul.f32 0.5, %v1647_v33 }
 0x230   :  { %v1167_v53 = vpop.eup %1166  ;;  %1176 = vtanh.f32 %v811_v39  ;;  %v773_v18 = vmul.f32 %v753_v4, %v1718_v50  ;;  %v707_v63 = vmul.f32 0.5, %v1674_v60  ;;  %v708_v0 = vmul.f32 0.5, %v1650_v34 }
 0x231   :  { %942 = vst [vmem:[%s1774_s5 + $0x20] sm:$0xff] %v1030_v38  ;;  %v1169_v43 = vpop.eup %1168  ;;  %v1031_v15 = vpack.c.bf16 %v865_v35, %v864_v40  ;;  %1178 = vtanh.f32 %v812_v58  ;;  %v846_v44 = vadd.f32 1.0, %v1167_v53  ;;  %v709_v22 = vmul.f32 0.5, %v1682_v57 }
 0x232   :  { %v793_v29 = vadd.f32 %v773_v18, %v1718_v50  ;;  %v848_v16 = vadd.f32 1.0, %v1169_v43  ;;  %v710_v60 = vmul.f32 0.5, %v1695_v3  ;;  %v711_v34 = vmul.f32 0.5, %v1703_v42 }
 0x233   :  { %943 = vst [vmem:[%s1774_s5 + $0x28] sm:$0xff] %v1031_v15  ;;  %v866_v17 = vmul.f32 %v846_v44, %v706_v46  ;;  %v712_v6 = vmul.f32 0.5, %v1699_v55  ;;  %v713_v3 = vmul.f32 0.5, %v1718_v50 }
 0x234   :  { %v813_v41 = vmul.f32 0.7978846, %v793_v29  ;;  %v868_v13 = vmul.f32 %v848_v16, %v708_v0 }
 0x236   :  { %v1171_v45 = vpop.eup %1170  ;;  %1180 = vtanh.f32 %v813_v41 }
 0x237   :  { %v847_v2 = vadd.f32 1.0, %v1171_v45 }
 0x239   :  { %v1173_v47 = vpop.eup %1172  ;;  %v867_v7 = vmul.f32 %v847_v2, %v707_v63 }
 0x23a   :  { %v849_v48 = vadd.f32 1.0, %v1173_v47 }
 0x23b   :  { %v1032_v11 = vpack.c.bf16 %v867_v7, %v866_v17 }
 0x23c   :  { %v1175_v49 = vpop.eup %1174  ;;  %v869_v9 = vmul.f32 %v849_v48, %v709_v22 }
 0x23d   :  { %v850_v51 = vadd.f32 1.0, %v1175_v49  ;;  %v1177_v52 = vpop.eup %1176  ;;  %944 = vst [vmem:[%s1774_s5 + $0x30] sm:$0xff] %v1032_v11 }
 0x23e   :  { %v1033_v33 = vpack.c.bf16 %v869_v9, %v868_v13  ;;  %v851_v20 = vadd.f32 1.0, %v1177_v52  ;;  %v1179_v57 = vpop.eup %1178 }
 0x23f   :  { %v870_v54 = vmul.f32 %v850_v51, %v710_v60  ;;  %v852_v62 = vadd.f32 1.0, %v1179_v57 }
 0x240   :  { %945 = vst [vmem:[%s1774_s5 + $0x38] sm:$0xff] %v1033_v33  ;;  %v871_v59 = vmul.f32 %v851_v20, %v711_v34 }
 0x241   :  { %v872_v8 = vmul.f32 %v852_v62, %v712_v6 }
 0x242   :  { %v1034_v19 = vpack.c.bf16 %v871_v59, %v870_v54 }
 0x243   :  { %v1181_v5 = vpop.eup %1180 }
 0x244   :  { %946 = vst [vmem:[%s1774_s5 + $0x40] sm:$0x11] %v1034_v19  ;;  %v853_v42 = vadd.f32 1.0, %v1181_v5 }
 0x246   :  { %v873_v14 = vmul.f32 %v853_v42, %v713_v3 }
 0x248   :  { %v1035_v23 = vpack.c.bf16 %v873_v14, %v872_v8 }
 0x24a   :  { %947 = vst [vmem:[%s1774_s5 + $0x48] sm:$0x11] %v1035_v23 }

// kernel: _lambda_.46
= control target key start
LH: loop header
LB: loop body
LE: loop exit
PB: predicated region body
PF: predicated region fallthrough
CT: control target
= control target key end

     0   :  { %vm43_vm0 = vcmask 1041408   ;;  %vm358_vm1 = vcmask 130048   ;;  %vm363_vm2 = vcmask 123904   ;;  %s652_s0 = inlined_call_operand.vmem [shape: f32[34,256], index: 0, kind: input, shape index: {}]   ;;  %s653_s1 = inlined_call_operand.vmem [shape: bf16[256,16], index: 1, kind: input, shape index: {}]   ;;  %s654_s3 = inlined_call_operand.vmem [shape: f32[1,256], index: 3, kind: input, shape index: {}]   ;;  %s655_s4 = inlined_call_operand.vmem [shape: f32[1,256], index: 4, kind: input, shape index: {}]   ;;  %s656_s2 = inlined_call_operand.vmem [shape: f32[1,16], index: 2, kind: input, shape index: {}]   ;;  %s657_s5 = inlined_call_operand.vmem [shape: f32[34,16], index: 5, kind: output, shape index: {}]  }
   0x1   :  { %v25_v0 = vld [vmem:[%s652_s0 + $0x20] sm:$0xff]  ;;  %v26_v1 = vld [vmem:[%s652_s0 + $0x28] sm:$0xff]  ;;  %v27_v2 = vld [vmem:[%s652_s0 + $0x30] sm:$0xff] }
   0x2   :  { %v37_v3 = vadd.f32 %v26_v1, %v25_v0  ;;  %v28_v4 = vld [vmem:[%s652_s0 + $0x38] sm:$0xff]  ;;  %v21_v5 = vld [vmem:[%s652_s0] sm:$0xff]  ;;  %v22_v6 = vld [vmem:[%s652_s0 + $0x8] sm:$0xff] }
   0x3   :  { %v31_v7 = vadd.f32 %v22_v6, %v21_v5  ;;  %v29_v8 = vld [vmem:[%s652_s0 + $0x40] sm:$0x3]  ;;  %v30_v9 = vld [vmem:[%s652_s0 + $0x48] sm:$0x3]  ;;  %v23_v10 = vld [vmem:[%s652_s0 + $0x10] sm:$0xff]  ;;  %v40_v11 = vadd.f32 %v28_v4, %v27_v2 }
   0x4   :  { %38 = vadd.xlane.f32.xlu0 %v37_v3  ;;  %v24_v12 = vld [vmem:[%s652_s0 + $0x18] sm:$0xff]  ;;  %v44_v13 = vsel %vm43_vm0, %v29_v8, 0.0  ;;  %v45_v14 = vsel %vm43_vm0, %v30_v9, 0.0  ;;  %v438_v56 = vld [vmem:[%s653_s1 + $0x70] sm:$0xff]   ;;  %v440_v58 = vld [vmem:[%s653_s1 + $0x68] sm:$0xff]  }
   0x5   :  { %32 = vadd.xlane.f32.xlu1 %v31_v7  ;;  %v34_v15 = vadd.f32 %v24_v12, %v23_v10  ;;  %v46_v16 = vadd.f32 %v45_v14, %v44_v13  ;;  %v436_v17 = vld [vmem:[%s653_s1 + $0x78] sm:$0xff]   ;;  %v439_v57 = vld [vmem:[%s653_s1 + $0x30] sm:$0xff]   ;;  %v441_v59 = vld [vmem:[%s653_s1 + $0x28] sm:$0xff]   ;;  %v119_v13 = vlaneseq }
   0x6   :  { %420 = vmatprep.subr.bf16.mxu1 %v436_v17  ;;  %386 = vmatprep.subr.bf16.mxu0 %v436_v17  ;;  %v437_v55 = vld [vmem:[%s653_s1 + $0x38] sm:$0xff]   ;;  %v442_v60 = vld [vmem:[%s653_s1 + $0x60] sm:$0xff]   ;;  %v449_v3 = vld [vmem:[%s653_s1 + $0x8] sm:$0xff]  }
   0x7   :  { %428 = vmatpush3.bf16.msra.mxu1 %v437_v55  ;;  %387 = vmatpush3.bf16.msra.mxu0 %v437_v55  ;;  %v443_v61 = vld [vmem:[%s653_s1 + $0x20] sm:$0xff]   ;;  %v444_v62 = vld [vmem:[%s653_s1 + $0x58] sm:$0xff]  }
   0x8   :  { %41 = vadd.xlane.f32.xlu0 %v40_v11  ;;  %421 = vmatprep.subr.bf16.mxu1 %v438_v56  ;;  %v445_v63 = vld [vmem:[%s653_s1 + $0x18] sm:$0xff]  }
   0x9   :  { %35 = vadd.xlane.f32.xlu1 %v34_v15  ;;  %388 = vmatprep.subr.bf16.mxu0 %v438_v56 }
   0xb   :  { %429 = vmatpush3.bf16.msra.mxu1 %v439_v57  ;;  %389 = vmatpush3.bf16.msra.mxu0 %v439_v57 }
   0xc   :  { %47 = vadd.xlane.f32.xlu0 %v46_v16  ;;  %422 = vmatprep.subr.bf16.mxu1 %v440_v58 }
   0xd   :  { %390 = vmatprep.subr.bf16.mxu0 %v440_v58 }
   0xf   :  { %430 = vmatpush3.bf16.msra.mxu1 %v441_v59  ;;  %391 = vmatpush3.bf16.msra.mxu0 %v441_v59 }
  0x10   :  { %423 = vmatprep.subr.bf16.mxu1 %v442_v60  ;;  %392 = vmatprep.subr.bf16.mxu0 %v442_v60 }
  0x13   :  { %431 = vmatpush3.bf16.msra.mxu1 %v443_v61  ;;  %393 = vmatpush3.bf16.msra.mxu0 %v443_v61 }
  0x14   :  { %424 = vmatprep.subr.bf16.mxu1 %v444_v62  ;;  %394 = vmatprep.subr.bf16.mxu0 %v444_v62 }
  0x17   :  { %432 = vmatpush3.bf16.msra.mxu1 %v445_v63  ;;  %395 = vmatpush3.bf16.msra.mxu0 %v445_v63 }
  0x8d   :  { %v39_v18 = vpop.xlane.xlu0 %38 }
  0x8e   :  { %v52_v19 = vmul.f32 0.00390625, %v39_v18  ;;  %v33_v20 = vpop.xlane.xlu1 %32 }
  0x8f   :  { %v50_v21 = vmul.f32 0.00390625, %v33_v20  ;;  %v120_v20 = vshrl.u32 %v119_v13, 7 }
  0x90   :  { %v527_v22 = vsub.f32 %v25_v0, %v52_v19  ;;  %v529_v23 = vsub.f32 %v26_v1, %v52_v19  ;;  %v446_v0 = vld [vmem:[%s653_s1 + $0x50] sm:$0xff]  }
  0x91   :  { %v42_v24 = vpop.xlane.xlu0 %41  ;;  %v531_v25 = vsub.f32 %v21_v5, %v50_v21  ;;  %v533_v26 = vsub.f32 %v22_v6, %v50_v21  ;;  %v447_v1 = vld [vmem:[%s653_s1 + $0x10] sm:$0xff]   ;;  %425 = vmatprep.subr.bf16.mxu1 %v446_v0  ;;  %396 = vmatprep.subr.bf16.mxu0 %v446_v0  ;;  %v451_v5 = vld [vmem:[%s653_s1] sm:$0xff]  }
  0x92   :  { %v53_v27 = vmul.f32 0.00390625, %v42_v24  ;;  %v36_v28 = vpop.xlane.xlu1 %35  ;;  %v69_v29 = vmul.f32 %v527_v22, %v527_v22  ;;  %v70_v30 = vmul.f32 %v529_v23, %v529_v23  ;;  %433 = vmatpush3.bf16.msra.mxu1 %v447_v1  ;;  %397 = vmatpush3.bf16.msra.mxu0 %v447_v1 }
  0x93   :  { %v51_v31 = vmul.f32 0.00390625, %v36_v28  ;;  %v65_v32 = vmul.f32 %v531_v25, %v531_v25  ;;  %v66_v33 = vmul.f32 %v533_v26, %v533_v26  ;;  %v125_v28 = vsub.s32 1, %v120_v20 }
  0x94   :  { %v543_v34 = vsub.f32 %v27_v2, %v53_v27  ;;  %v545_v35 = vsub.f32 %v28_v4, %v53_v27  ;;  %v81_v36 = vadd.f32 %v70_v30, %v69_v29  ;;  %v448_v2 = vld [vmem:[%s653_s1 + $0x48] sm:$0xff]   ;;  %v450_v4 = vld [vmem:[%s653_s1 + $0x40] sm:$0xff]   ;;  %v121_v27 = vsub.s32 0, %v120_v20 }
  0x95   :  { %v48_v37 = vpop.xlane.xlu0 %47  ;;  %v547_v38 = vsub.f32 %v23_v10, %v51_v31  ;;  %v549_v39 = vsub.f32 %v24_v12, %v51_v31  ;;  %v75_v43 = vadd.f32 %v66_v33, %v65_v32  ;;  %426 = vmatprep.subr.bf16.mxu1 %v448_v2  ;;  %398 = vmatprep.subr.bf16.mxu0 %v448_v2  ;;  %v117_v29 = vld [vmem:[%s654_s3] sm:$0x3] }
  0x96   :  { %v54_v40 = vmul.f32 0.00390625, %v48_v37  ;;  %82 = vadd.xlane.f32.xlu1 %v81_v36  ;;  %v71_v41 = vmul.f32 %v543_v34, %v543_v34  ;;  %v72_v42 = vmul.f32 %v545_v35, %v545_v35  ;;  %434 = vmatpush3.bf16.msra.mxu1 %v449_v3  ;;  %v122_v31 = vrot.slane %v117_v29, %v121_v27  ;;  %v139_v36 = vld [vmem:[%s655_s4] sm:$0x3] }
  0x97   :  { %v67_v44 = vmul.f32 %v547_v38, %v547_v38  ;;  %v68_v45 = vmul.f32 %v549_v39, %v549_v39  ;;  %399 = vmatpush3.bf16.msra.mxu0 %v449_v3  ;;  %427 = vmatprep.subr.bf16.mxu1 %v450_v4  ;;  %v126_v32 = vrot.slane %v117_v29, %v125_v28 }
  0x98   :  { %v559_v46 = vsub.f32 %v29_v8, %v54_v40  ;;  %v561_v47 = vsub.f32 %v30_v9, %v54_v40  ;;  %v84_v48 = vadd.f32 %v72_v42, %v71_v41  ;;  %400 = vmatprep.subr.bf16.mxu0 %v450_v4  ;;  %v144_v42 = vrot.slane %v139_v36, %v121_v27 }
  0x99   :  { %v78_v49 = vadd.f32 %v68_v45, %v67_v44 }
  0x9a   :  { %85 = vadd.xlane.f32.xlu0 %v84_v48  ;;  %76 = vadd.xlane.f32.xlu1 %v75_v43  ;;  %v73_v50 = vmul.f32 %v559_v46, %v559_v46  ;;  %v74_v51 = vmul.f32 %v561_v47, %v561_v47  ;;  %v148_v43 = vrot.slane %v139_v36, %v125_v28 }
  0x9b   :  { %435 = vmatpush3.bf16.msra.mxu1 %v451_v5  ;;  %401 = vmatpush3.bf16.msra.mxu0 %v451_v5 }
  0x9c   :  { %v87_v52 = vsel %vm43_vm0, %v73_v50, 0.0  ;;  %v88_v53 = vsel %vm43_vm0, %v74_v51, 0.0 }
  0x9d   :  { %v89_v54 = vadd.f32 %v88_v53, %v87_v52 }
  0x9e   :  { %79 = vadd.xlane.f32.xlu0 %v78_v49 }
  0x9f   :  { %90 = vadd.xlane.f32.xlu1 %v89_v54 }
 0x11f   :  { %v83_v6 = vpop.xlane.xlu1 %82 }
 0x120   :  { %v94_v7 = vmul.f32 0.00390625, %v83_v6 }
 0x122   :  { %v99_v8 = vadd.f32 1e-05, %v94_v7 }
 0x123   :  { %v86_v9 = vpop.xlane.xlu0 %85  ;;  %v77_v10 = vpop.xlane.xlu1 %76 }
 0x124   :  { %452 = vrsqrt.f32 %v99_v8  ;;  %v95_v11 = vmul.f32 0.00390625, %v86_v9  ;;  %v92_v12 = vmul.f32 0.00390625, %v77_v10  ;;  %v369_v9 = vld [vmem:[%s656_s2] ss:$0 sm:$0xff] }
 0x126   :  { %v100_v14 = vadd.f32 1e-05, %v95_v11  ;;  %v97_v15 = vadd.f32 1e-05, %v92_v12 }
 0x127   :  { %v80_v16 = vpop.xlane.xlu0 %79 }
 0x128   :  { %454 = vrsqrt.f32 %v100_v14  ;;  %v93_v17 = vmul.f32 0.00390625, %v80_v16  ;;  %v91_v18 = vpop.xlane.xlu1 %90 }
 0x129   :  { %456 = vrsqrt.f32 %v97_v15  ;;  %v96_v19 = vmul.f32 0.00390625, %v91_v18 }
 0x12a   :  { %v98_v21 = vadd.f32 1e-05, %v93_v17 }
 0x12b   :  { %v101_v24 = vadd.f32 1e-05, %v96_v19 }
 0x12c   :  { %458 = vrsqrt.f32 %v98_v21 }
 0x12d   :  { %460 = vrsqrt.f32 %v101_v24 }
 0x131   :  { %v453_v30 = vpop.eup %452 }
 0x132   :  { %v112_v33 = vmul.f32 %v453_v30, %v529_v23  ;;  %v111_v37 = vmul.f32 %v453_v30, %v527_v22 }
 0x134   :  { %v134_v41 = vmul.f32 %v126_v32, %v112_v33  ;;  %v133_v44 = vmul.f32 %v122_v31, %v111_v37 }
 0x135   :  { %v455_v40 = vpop.eup %454 }
 0x136   :  { %v457_v45 = vpop.eup %456  ;;  %v114_v48 = vmul.f32 %v455_v40, %v545_v35  ;;  %v113_v49 = vmul.f32 %v455_v40, %v543_v34  ;;  %v156_v54 = vadd.f32 %v148_v43, %v134_v41  ;;  %v155_v55 = vadd.f32 %v144_v42, %v133_v44 }
 0x137   :  { %v108_v50 = vmul.f32 %v457_v45, %v533_v26  ;;  %v107_v23 = vmul.f32 %v457_v45, %v531_v25 }
 0x138   :  { %v136_v51 = vmul.f32 %v126_v32, %v114_v48  ;;  %v135_v52 = vmul.f32 %v122_v31, %v113_v49 }
 0x139   :  { %v459_v53 = vpop.eup %458  ;;  %v130_v22 = vmul.f32 %v126_v32, %v108_v50  ;;  %v129_v56 = vmul.f32 %v122_v31, %v107_v23 }
 0x13a   :  { %v461_v57 = vpop.eup %460  ;;  %v158_v58 = vadd.f32 %v148_v43, %v136_v51  ;;  %v157_v59 = vadd.f32 %v144_v42, %v135_v52  ;;  %v110_v60 = vmul.f32 %v459_v53, %v549_v39  ;;  %v109_v35 = vmul.f32 %v459_v53, %v547_v38 }
 0x13b   :  { %v116_v34 = vmul.f32 %v461_v57, %v561_v47  ;;  %v115_v26 = vmul.f32 %v461_v57, %v559_v46  ;;  %v152_v2 = vadd.f32 %v148_v43, %v130_v22  ;;  %v151_v4 = vadd.f32 %v144_v42, %v129_v56 }
 0x13c   :  { %v164_v61 = vpack.c.bf16 %v158_v58, %v156_v54  ;;  %v163_v25 = vpack.c.bf16 %v157_v59, %v155_v55  ;;  %v132_v62 = vmul.f32 %v126_v32, %v110_v60  ;;  %v131_v63 = vmul.f32 %v122_v31, %v109_v35 }
 0x13d   :  { %v138_v0 = vmul.f32 %v126_v32, %v116_v34  ;;  %v137_v1 = vmul.f32 %v122_v31, %v115_v26 }
 0x13e   :  { %342 = vmatprep.mubr.bf16.mxu1 %v164_v61  ;;  %v154_v3 = vadd.f32 %v148_v43, %v132_v62  ;;  %v153_v5 = vadd.f32 %v144_v42, %v131_v63 }
 0x13f   :  { %343 = vmatmul.mubr.bf16.vlgmr.msra.gmra.mxu1 %v163_v25  ;;  %v160_v6 = vadd.f32 %v148_v43, %v138_v0  ;;  %v159_v8 = vadd.f32 %v144_v42, %v137_v1 }
 0x140   :  { %v162_v39 = vpack.c.bf16 %v154_v3, %v152_v2  ;;  %v161_v7 = vpack.c.bf16 %v153_v5, %v151_v4 }
 0x141   :  { %v166_v38 = vpack.c.bf16 %v160_v6, %v160_v6  ;;  %v165_v46 = vpack.c.bf16 %v159_v8, %v159_v8 }
 0x142   :  { %334 = vmatprep.mubr.bf16.mxu0 %v162_v39 }
 0x143   :  { %335 = vmatmul.mubr.bf16.vlgmr.msra.gmra.mxu0 %v161_v7  ;;  %350 = vmatprep.mubr.bf16.mxu1 %v166_v38 }
 0x147   :  { %351 = vmatmul.mubr.bf16.gmra.mxu1 %v165_v46 }
 0x1ff   :  { %v408_v47 = vpop.f32.mrf.mxu1 }
 0x201   :  { %v409_v10 = vpop.f32.mrf.mxu1 }
 0x202   :  { %v410_v11 = vadd.f32 %v409_v10, %v408_v47 }
 0x203   :  { %v402_v12 = vpop.f32.mrf.mxu0  ;;  %v411_v13 = vpop.f32.mrf.mxu1 }
 0x204   :  { %v345_v14 = vadd.f32 %v410_v11, %v369_v9 }
 0x205   :  { %v403_v15 = vpop.f32.mrf.mxu0  ;;  %v412_v16 = vpop.f32.mrf.mxu1 }
 0x206   :  { %361 = vst.msk [vmem:[%s657_s5 + $0x10] sm:$0xff] %vm358_vm1, %v345_v14  ;;  %v404_v17 = vadd.f32 %v403_v15, %v402_v12  ;;  %v413_v18 = vadd.f32 %v412_v16, %v411_v13 }
 0x207   :  { %v405_v19 = vpop.f32.mrf.mxu0  ;;  %v414_v20 = vpop.f32.mrf.mxu1 }
 0x208   :  { %v337_v21 = vadd.f32 %v404_v17, %v369_v9  ;;  %v348_v24 = vadd.f32 %v413_v18, %v369_v9 }
 0x209   :  { %v406_v27 = vpop.f32.mrf.mxu0  ;;  %v415_v28 = vpop.f32.mrf.mxu1 }
 0x20a   :  { %359 = vst.msk [vmem:[%s657_s5] sm:$0xff] %vm358_vm1, %v337_v21  ;;  %362 = vst.msk [vmem:[%s657_s5 + $0x18] sm:$0xff] %vm358_vm1, %v348_v24  ;;  %v407_v29 = vadd.f32 %v406_v27, %v405_v19  ;;  %v416_v30 = vadd.f32 %v415_v28, %v414_v20 }
 0x20b   :  { %v417_v31 = vpop.f32.mrf.mxu1 }
 0x20c   :  { %v340_v32 = vadd.f32 %v407_v29, %v369_v9  ;;  %v353_v33 = vadd.f32 %v416_v30, %v369_v9 }
 0x20d   :  { %v418_v36 = vpop.f32.mrf.mxu1 }
 0x20e   :  { %360 = vst.msk [vmem:[%s657_s5 + $0x8] sm:$0xff] %vm358_vm1, %v340_v32 }
 0x20f   :  { %364 = vst.msk [vmem:[%s657_s5 + $0x20] sm:$0x3] %vm363_vm2, %v353_v33 }

// kernel: _lambda_.47
= control target key start
LH: loop header
LB: loop body
LE: loop exit
PB: predicated region body
PF: predicated region fallthrough
CT: control target
= control target key end

     0   :  { %vm88_vm0 = vcmask 7168   ;;  %v150_v2 = vmov 0   ;;  %s228_s0 = inlined_call_operand.vmem [shape: f32[32,16], index: 0, kind: input, shape index: {}]   ;;  %s229_s1 = inlined_call_operand.vmem [shape: f32[32,16], index: 1, kind: input, shape index: {}]   ;;  %s230_s2 = inlined_call_operand.vmem [shape: f32[32,1], index: 2, kind: input, shape index: {}]   ;;  %s231_s3 = inlined_call_operand.vmem [shape: f32[1,16], index: 3, kind: output, shape index: {0}]   ;;  %s232_s4 = inlined_call_operand.hbm [shape: f32[1,1], index: 4, kind: output, shape index: {1}]  }
   0x1   :  { %v39_v0 = vld [vmem:[%s230_s2 + $0x10] sm:$0xff]  ;;  %v37_v1 = vld [vmem:[%s230_s2] sm:$0xff]  ;;  %127 = vset.pattern.permute.xlu1 %v150_v2  ;;  %126 = vset.pattern.permute.xlu0 %v150_v2  ;;  %v38_v4 = vld [vmem:[%s230_s2 + $0x8] sm:$0xff] }
   0x2   :  { %v89_v3 = vsel %vm88_vm0, %v37_v1, 0.0  ;;  %58 = vperm.xlu1 %127, %v39_v0   ;;  %v92_v5 = vsel %vm88_vm0, %v39_v0, 0.0  ;;  %48 = vperm.xlu0 %126, %v37_v1   ;;  %v90_v6 = vsel %vm88_vm0, %v38_v4, 0.0  ;;  %v40_v7 = vld [vmem:[%s230_s2 + $0x18] sm:$0xff] }
   0x3   :  { %v91_v8 = vadd.f32 %v90_v6, %v89_v3  ;;  %v94_v9 = vsel %vm88_vm0, %v40_v7, 0.0 }
   0x4   :  { %10 = vsyncpa [#allocation3], 0  ;;  %vm23_vm1 = vcmask 0   ;;  %vm21_vm2 = vcmask 122880   ;;  %v151_v15 = vmov 0.0   ;;  %s152_s2 = smov [#allocation2]  }
   0x5   :  { %v93_v10 = vadd.f32 %v92_v5, %v91_v8  ;;  %24 = vst.msk [vmem:[#allocation2] sm:$0x1] %vm23_vm1, %v151_v15  ;;  %s113_s25 = sshll.u32 %s152_s2, 4  ;;  %s114_s25 = int_to_ptr.vmem [resolvable:$true] %s113_s25 }
   0x6   :  { %63 = vperm.xlu1 %127, %v40_v7   ;;  %53 = vperm.xlu0 %126, %v38_v4   ;;  %22 = vst.msk [vmem:[%s231_s3] sm:$0x1] %vm21_vm2, %v151_v15  ;;  %s128_s26 = scalar_lea.vmem %s114_s25, 16  ;;  %s132_s27 = scalar_lea.vmem %s114_s25, 32 }
   0x7   :  { %v95_v11 = vadd.f32 %v94_v9, %v93_v10  ;;  %p129_p0 = scmp.ne.s32.totalorder %s114_s25, %s128_s26  ;;  %p133_p1 = scmp.lt.s32.totalorder %s114_s25, %s114_s25 }
   0x8   :  { %p134_p2 = scmp.lt.s32.totalorder %s132_s27, %s128_s26 }
   0x9   :  { %v96_v12 = vrot.slane %v95_v11, 4 }
   0xa   :  { %p135_p3 = por %p134_p2, %p133_p1 }
   0xb   :  { %v97_v13 = vadd.f32 %v96_v12, %v95_v11 }
   0xc   :  { %v87_v19 = vld [vmem:[#allocation2] sm:$0x1]  ;;  %p136_p4 = pnand %p135_p3, %p129_p0 }
   0xd   :  { %v98_v14 = vrot.slane %v97_v13, 2 }
   0xf   :  { %v99_v16 = vadd.f32 %v98_v14, %v97_v13 }
  0x11   :  { %v100_v17 = vrot.slane %v99_v16, 1 }
  0x13   :  { %v101_v18 = vadd.f32 %v100_v17, %v99_v16 }
  0x15   :  { %v102_v20 = vadd.f32 %v101_v18, %v87_v19 }
  0x17   :  { %104 = vst.msk [vmem:[#allocation2] sm:$0x1] %vm23_vm1, %v102_v20 }
  0x18   :  { %139 = shalt.err (!%p136_p4)
}
  0x19   :  { %116 = dma.vmem_to_hbm [thread:$0]  %s114_s25, 16, %s232_s4, [#allocation3]   ;;  %v25_v21 = vld [vmem:[%s228_s0] sm:$0xff]  ;;  %v27_v23 = vld [vmem:[%s228_s0 + $0x10] sm:$0xff]  ;;  %v26_v25 = vld [vmem:[%s228_s0 + $0x8] sm:$0xff]  ;;  %vm70_vm3 = vcmask 130048  }
  0x1a   :  { %v29_v22 = vld [vmem:[%s229_s1] sm:$0xff]  ;;  %v31_v24 = vld [vmem:[%s229_s1 + $0x10] sm:$0xff]  ;;  %v30_v26 = vld [vmem:[%s229_s1 + $0x8] sm:$0xff] }
  0x1b   :  { %v33_v27 = vsub.f32 %v25_v21, %v29_v22  ;;  %v28_v28 = vld [vmem:[%s228_s0 + $0x18] sm:$0xff]  ;;  %v35_v30 = vsub.f32 %v27_v23, %v31_v24  ;;  %v34_v31 = vsub.f32 %v26_v25, %v30_v26  ;;  %v41_v57 = vld [vmem:[%s231_s3] sm:$0x1] }
  0x1c   :  { %v32_v29 = vld [vmem:[%s229_s1 + $0x18] sm:$0xff] }
  0x1d   :  { %v42_v32 = vmul.f32 %v33_v27, %v33_v27  ;;  %v36_v33 = vsub.f32 %v28_v28, %v32_v29  ;;  %v44_v36 = vmul.f32 %v35_v30, %v35_v30  ;;  %v43_v37 = vmul.f32 %v34_v31, %v34_v31 }
  0x1f   :  { %v45_v39 = vmul.f32 %v36_v33, %v36_v33 }
  0x7d   :  { %v59_v34 = vpop.permute.xlu1 %58  ;;  %v49_v35 = vpop.permute.xlu0 %48 }
  0x7e   :  { %v66_v38 = vmul.f32 %v49_v35, %v42_v32  ;;  %v68_v42 = vmul.f32 %v59_v34, %v44_v36 }
  0x80   :  { %v71_v44 = vsel %vm70_vm3, %v66_v38, 0.0  ;;  %v74_v48 = vsel %vm70_vm3, %v68_v42, 0.0 }
  0x81   :  { %v64_v40 = vpop.permute.xlu1 %63  ;;  %v54_v41 = vpop.permute.xlu0 %53 }
  0x82   :  { %v67_v43 = vmul.f32 %v54_v41, %v43_v37  ;;  %v69_v45 = vmul.f32 %v64_v40, %v45_v39 }
  0x84   :  { %v72_v46 = vsel %vm70_vm3, %v67_v43, 0.0  ;;  %v76_v50 = vsel %vm70_vm3, %v69_v45, 0.0 }
  0x85   :  { %v73_v47 = vadd.f32 %v72_v46, %v71_v44 }
  0x87   :  { %v75_v49 = vadd.f32 %v74_v48, %v73_v47 }
  0x89   :  { %v77_v51 = vadd.f32 %v76_v50, %v75_v49 }
  0x8b   :  { %v78_v52 = vrot.slane %v77_v51, 4 }
  0x8d   :  { %v79_v53 = vadd.f32 %v78_v52, %v77_v51 }
  0x8f   :  { %v80_v54 = vrot.slane %v79_v53, 2 }
  0x91   :  { %v81_v55 = vadd.f32 %v80_v54, %v79_v53 }
  0x93   :  { %v82_v56 = vrot.slane %v81_v55, 1 }
  0x95   :  { %v83_v58 = vadd.f32 %v82_v56, %v81_v55 }
  0x97   :  { %v84_v59 = vadd.f32 %v83_v58, %v41_v57 }
  0x99   :  { %86 = vst.msk [vmem:[%s231_s3] sm:$0x1] %vm21_vm2, %v84_v59 }
  0x9a   :  { %148 = dma.done.wait [#allocation3], 16  }
  0x9b   :  { %149 = vsyncadd [#allocation3], 4294967280 }
  0x9c   :  { %122 = vsyncpa [#allocation3], 1 }

</bundles_post_ra>
